<compile_context>
chip_gen: v5e
topology: v5e:2x2
jax: 0.10.0
libtpu: 0.0.40
codegen_flags: <defaults>
</compile_context>

<pallas_src>
import math

import jax
import jax.numpy as jnp
from jax import lax
from jax.experimental import pallas as pl
from jax.experimental.pallas import tpu as pltpu


# Geometry forced by the module definition.
H_IN = 279          # conv input spatial size
H1 = 139            # conv1 output spatial size
H2 = 69             # conv2 output spatial size
QH1 = 70            # per-parity quadrant size of the conv1 output
SLAB = 71           # per-residue (mod 4) slab size of the padded input
H_PAD = 4 * SLAB    # 284 (input padded with zeros; padding never reaches valid outputs)
C1 = 32             # conv1 output channels


# ----------------------------------------------------------------------------
# Kernel 1: fused conv front-end (conv1 + ReLU + conv2 + ReLU), one batch/step
# ----------------------------------------------------------------------------
def _frontend_kernel(x_ref, w1_ref, b1_ref, w2_ref, b2_ref, o_ref, y_ref):
    # x_ref : (32, 71, 71) VMEM  = mod-4 shuffled 2-channel input:
    #         x_ref[ci*16 + rh*4 + rw, u, v] = x[ci, 4u+rh, 4v+rw]
    # w1_ref: (18, 32) SMEM  conv1 weights, [(kh*3+kw)*2+ci, co]
    # b1_ref: (32,)    SMEM
    # w2_ref: (9, 32)  SMEM  conv2 weights, [kh*3+kw, co]
    # b2_ref: (1,)     SMEM
    # o_ref : (69, 69) VMEM  conv2 output (one batch element)
    # y_ref : (128, 70, 70) VMEM scratch = conv1 output, parity split:
    #         y_ref[co*4 + a*2 + b, m, n] = relu(conv1)[co, 2m+a, 2n+b]

    # ---- conv1 (2 -> 32, 3x3, stride 2) + ReLU, one output channel per step.
    def conv1_body(co, carry):
        bias = b1_ref[co]
        for a in (0, 1):                       # output-row parity
            for b in (0, 1):                   # output-col parity
                acc = jnp.full((QH1, QH1), bias, jnp.float32)
                for kh in range(3):
                    e = 2 * a + kh
                    rh, uh = e % 4, e // 4
                    for kw in range(3):
                        f = 2 * b + kw
                        rw, uw = f % 4, f // 4
                        for ci in range(2):
                            w = w1_ref[(kh * 3 + kw) * 2 + ci, co]
                            acc = acc + w * x_ref[ci * 16 + rh * 4 + rw,
                                                  uh:uh + QH1, uw:uw + QH1]
                y_ref[co * 4 + a * 2 + b, :, :] = jnp.maximum(acc, 0.0)
        return carry

    lax.fori_loop(0, C1, conv1_body, 0)

    # ---- conv2 (32 -> 1, 3x3, stride 2) + ReLU on the VMEM-resident conv1 out.
    def conv2_body(co, acc):
        for kh in range(3):
            a, uh = kh % 2, kh // 2
            for kw in range(3):
                b, uw = kw % 2, kw // 2
                w = w2_ref[kh * 3 + kw, co]
                acc = acc + w * y_ref[co * 4 + a * 2 + b,
                                      uh:uh + H2, uw:uw + H2]
        return acc

    acc0 = jnp.full((H2, H2), b2_ref[0], jnp.float32)
    acc = lax.fori_loop(0, C1, conv2_body, acc0)
    o_ref[:, :] = jnp.maximum(acc, 0.0)


def fused_frontend(xs, w1s, b1, w2s, b2):
    """xs: (B, 32, 71, 71) mod-4 shuffled 2-channel input -> (B, 69, 69)."""
    B = xs.shape[0]
    smem = pl.BlockSpec(memory_space=pltpu.MemorySpace.SMEM)
    return pl.pallas_call(
        _frontend_kernel,
        out_shape=jax.ShapeDtypeStruct((B, H2, H2), jnp.float32),
        grid=(B,),
        in_specs=[
            pl.BlockSpec((None, 32, SLAB, SLAB), lambda b: (b, 0, 0, 0)),
            smem, smem, smem, smem,
        ],
        out_specs=pl.BlockSpec((None, H2, H2), lambda b: (b, 0, 0)),
        scratch_shapes=[pltpu.VMEM((C1 * 4, QH1, QH1), jnp.float32)],
        compiler_params=pltpu.CompilerParams(
            dimension_semantics=("parallel",),   # batch -> both TCs on v7x
        ),
    )(xs, w1s, b1, w2s, b2)


# ----------------------------------------------------------------------------
# Kernel 2: fused head (meta MLP + fc1 + fc2 + fc3), single launch
# ----------------------------------------------------------------------------
def _head_kernel(rep_ref, sp_ref,
                 wm1_ref, bm1_ref, wm2_ref, bm2_ref,
                 w1a_ref, w1b_ref, b1_ref,
                 w2_ref, b2_ref, w3_ref, b3_ref,
                 o_ref):
    f32 = jnp.float32
    # ego-meta branch (Linear(1,16) has K==1 -> plain broadcast multiply)
    m = jnp.maximum(sp_ref[...] * wm1_ref[...] + bm1_ref[...], 0.0)          # (B,16)
    m = jnp.maximum(
        jnp.dot(m, wm2_ref[...], preferred_element_type=f32) + bm2_ref[...], 0.0)  # (B,8)

    # fc1 split into (rep part) + (meta part): avoids the concat entirely.
    rep_bf = rep_ref[...].astype(jnp.bfloat16)
    h = jnp.dot(rep_bf, w1a_ref[...], preferred_element_type=f32)
    h = h + jnp.dot(m, w1b_ref[...], preferred_element_type=f32) + b1_ref[...]
    h = jnp.maximum(h, 0.0)                                                   # (B,256)
    h = jnp.maximum(
        jnp.dot(h, w2_ref[...], preferred_element_type=f32) + b2_ref[...], 0.0)    # (B,128)
    out = jnp.dot(h, w3_ref[...], preferred_element_type=f32) + b3_ref[...]        # (B,3)
    o_ref[...] = out.astype(o_ref.dtype)


def fused_head(rep_flat, speed, params):
    B = rep_flat.shape[0]
    vmem = pl.BlockSpec(memory_space=pltpu.MemorySpace.VMEM)
    args = (rep_flat, speed,
            params["fc1m_w"], params["fc1m_b"],
            params["fc2m_w"], params["fc2m_b"],
            params["fc1_wa"], params["fc1_wb"], params["fc1_b"],
            params["fc2_w"], params["fc2_b"],
            params["fc3_w"], params["fc3_b"])
    return pl.pallas_call(
        _head_kernel,
        out_shape=jax.ShapeDtypeStruct((B, 3), jnp.float32),
        in_specs=[vmem] * len(args),
        out_specs=vmem,
    )(*args)


# ----------------------------------------------------------------------------
# Parameters (deterministic, PyTorch-default-style uniform init)
# ----------------------------------------------------------------------------
def _uniform(key, shape, bound):
    return jax.random.uniform(key, shape, jnp.float32, -bound, bound)


def init_params(key):
    ks = jax.random.split(key, 14)
    p = {}

    # rep_mix1: Conv2d(2, 32, 3, stride=2)   weights stored as (kh,kw,ci,co) -> (18,32)
    b = 1.0 / math.sqrt(2 * 3 * 3)
    p["w1s"] = _uniform(ks[0], (3, 3, 2, 32), b).reshape(18, 32)
    p["b1"] = _uniform(ks[1], (32,), b)

    # rep_mix2: Conv2d(32, 1, 3, stride=2)   weights stored as (kh,kw,ci) -> (9,32)
    b = 1.0 / math.sqrt(32 * 3 * 3)
    p["w2s"] = _uniform(ks[2], (3, 3, 32), b).reshape(9, 32)
    p["b2"] = _uniform(ks[3], (1,), b)

    # fc1_meta: Linear(1,16); fc2_meta: Linear(16,8)    (stored as (in, out))
    p["fc1m_w"] = _uniform(ks[4], (1, 16), 1.0)
    p["fc1m_b"] = _uniform(ks[5], (1, 16), 1.0)
    b = 1.0 / math.sqrt(16)
    p["fc2m_w"] = _uniform(ks[6], (16, 8), b)
    p["fc2m_b"] = _uniform(ks[7], (1, 8), b)

    # fc1: Linear(69*69 + 8, 256) -- split into rep part (bf16) + meta part (f32)
    b = 1.0 / math.sqrt(69 * 69 + 8)
    fc1_w = _uniform(ks[8], (69 * 69 + 8, 256), b)
    p["fc1_wa"] = fc1_w[:69 * 69].astype(jnp.bfloat16)   # bf16 halves HBM read
    p["fc1_wb"] = fc1_w[69 * 69:]
    p["fc1_b"] = _uniform(ks[9], (1, 256), b)

    # fc2: Linear(256,128); fc3: Linear(128,3)
    b = 1.0 / math.sqrt(256)
    p["fc2_w"] = _uniform(ks[10], (256, 128), b)
    p["fc2_b"] = _uniform(ks[11], (1, 128), b)
    b = 1.0 / math.sqrt(128)
    p["fc3_w"] = _uniform(ks[12], (128, 3), b)
    p["fc3_b"] = _uniform(ks[13], (1, 3), b)
    return p


# ----------------------------------------------------------------------------
# Forward pass (mirrors Aggregation.forward)
# ----------------------------------------------------------------------------
def aggregation_forward(params, ego_rep, other_rep, ego_speed, ego_command,
                        num_valid_neighbors=1):
    # ego_command / num_valid_neighbors are unused in the reference forward.
    del ego_command, num_valid_neighbors

    B, _, H, W = ego_rep.shape
    assert H == H_IN and W == H_IN, "fc1=Linear(69*69+8,256) requires 279x279 input"

    # mean over neighbors + channel concat + zero-pad to 284 + mod-4
    # space-to-depth (tiny, ~1.3 MB; keeps every in-kernel access unit-stride).
    other_mean = jnp.mean(other_rep, axis=1)               # (B,H,W)
    x2 = jnp.stack([ego_rep[:, 0], other_mean], axis=1)    # (B,2,H,W), ch0=ego, ch1=mean
    xp = jnp.pad(x2, ((0, 0), (0, 0), (0, H_PAD - H), (0, H_PAD - W)))
    xs = (xp.reshape(B, 2, SLAB, 4, SLAB, 4)
            .transpose(0, 1, 3, 5, 2, 4)                   # (B, 2, rh, rw, u, v)
            .reshape(B, 32, SLAB, SLAB))                   # xs[b, ci*16+rh*4+rw, u, v]

    # fused conv1 + ReLU + conv2 + ReLU (conv1 output never leaves VMEM)
    rep = fused_frontend(xs, params["w1s"], params["b1"],
                         params["w2s"], params["b2"])      # (B, 69, 69)
    rep_flat = rep.reshape(B, H2 * H2)                     # row-major == torch .view

    # fused head: meta MLP + fc1 (split) + fc2 + fc3
    pred_control = fused_head(rep_flat, ego_speed[:, None].astype(jnp.float32),
                              params)                      # (B, 3)
    return pred_control


# ----------------------------------------------------------------------------
if __name__ == "__main__":
    key = jax.random.PRNGKey(0)
    kp, k1, k2, k3 = jax.random.split(key, 4)

    params = init_params(kp)

    B, NEIGH = 2, 3
    ego_rep = jax.random.normal(k1, (B, 1, H_IN, H_IN), jnp.float32)
    other_rep = jax.random.normal(k2, (B, NEIGH, H_IN, H_IN), jnp.float32)
    ego_speed = jax.random.uniform(k3, (B,), jnp.float32)
    ego_command = jnp.zeros((B,), jnp.float32)  # unused by the forward pass

    fwd = jax.jit(aggregation_forward)
    out = fwd(params, ego_rep, other_rep, ego_speed, ego_command)
    out = jax.block_until_ready(out)

    assert out.shape == (B, 3) and out.dtype == jnp.float32
    print("KERNEL_OK")
</pallas_src>

<mosaic_0001>
module attributes {stable_mosaic.version = 11 : i64} {
  func.func @_frontend_kernel(%arg0: i32, %arg1: memref<1x32x71x71xf32, #tpu.memory_space<vmem>>, %arg2: memref<18x32xf32, #tpu.memory_space<smem>>, %arg3: memref<32xf32, #tpu.memory_space<smem>>, %arg4: memref<9x32xf32, #tpu.memory_space<smem>>, %arg5: memref<1xf32, #tpu.memory_space<smem>>, %arg6: memref<1x69x69xf32, #tpu.memory_space<vmem>>, %arg7: memref<128x70x70xf32, #tpu.memory_space<vmem>>) attributes {dimension_semantics = [#tpu.dimension_semantics<parallel>], iteration_bounds = array<i64: 2>, scalar_prefetch = 0 : i64, scratch_operands = 1 : i64, tpu.core_type = #tpu.core_type<tc>, window_params = [{transform_indices = @transform_0, window_bounds = array<i64: 1, 32, 71, 71>}, {transform_indices = @transform_1, window_bounds = array<i64: 18, 32>}, {transform_indices = @transform_2, window_bounds = array<i64: 32>}, {transform_indices = @transform_3, window_bounds = array<i64: 9, 32>}, {transform_indices = @transform_4, window_bounds = array<i64: 1>}, {transform_indices = @transform_5, window_bounds = array<i64: 1, 69, 69>}]} {
    %c0_i32 = arith.constant 0 : i32
    %c32_i32 = arith.constant 32 : i32
    %0 = arith.addi %c0_i32, %c32_i32 : i32
    %c1_i32 = arith.constant 1 : i32
    scf.for %arg8 = %c0_i32 to %0 step %c1_i32  : i32 {
      %10 = arith.index_cast %arg8 : i32 to index
      %11 = memref.load %arg3[%10] : memref<32xf32, #tpu.memory_space<smem>>
      %12 = vector.broadcast %11 : f32 to vector<70x70xf32>
      %c0_8 = arith.constant 0 : index
      %13 = arith.index_cast %arg8 : i32 to index
      %14 = memref.load %arg2[%c0_8, %13] : memref<18x32xf32, #tpu.memory_space<smem>>
      %c0_9 = arith.constant 0 : index
      %c0_10 = arith.constant 0 : index
      %c0_11 = arith.constant 0 : index
      %c0_12 = arith.constant 0 : index
      %15 = vector.load %arg1[%c0_9, %c0_10, %c0_11, %c0_12] : memref<1x32x71x71xf32, #tpu.memory_space<vmem>>, vector<1x1x70x70xf32>
      %16 = vector.shape_cast %15 : vector<1x1x70x70xf32> to vector<70x70xf32>
      %17 = vector.broadcast %14 : f32 to vector<70x70xf32>
      %18 = arith.mulf %17, %16 : vector<70x70xf32>
      %19 = arith.addf %12, %18 : vector<70x70xf32>
      %c1 = arith.constant 1 : index
      %20 = arith.index_cast %arg8 : i32 to index
      %21 = memref.load %arg2[%c1, %20] : memref<18x32xf32, #tpu.memory_space<smem>>
      %c0_13 = arith.constant 0 : index
      %c16 = arith.constant 16 : index
      %c0_14 = arith.constant 0 : index
      %c0_15 = arith.constant 0 : index
      %22 = vector.load %arg1[%c0_13, %c16, %c0_14, %c0_15] : memref<1x32x71x71xf32, #tpu.memory_space<vmem>>, vector<1x1x70x70xf32>
      %23 = vector.shape_cast %22 : vector<1x1x70x70xf32> to vector<70x70xf32>
      %24 = vector.broadcast %21 : f32 to vector<70x70xf32>
      %25 = arith.mulf %24, %23 : vector<70x70xf32>
      %26 = arith.addf %19, %25 : vector<70x70xf32>
      %c2 = arith.constant 2 : index
      %27 = arith.index_cast %arg8 : i32 to index
      %28 = memref.load %arg2[%c2, %27] : memref<18x32xf32, #tpu.memory_space<smem>>
      %c0_16 = arith.constant 0 : index
      %c1_17 = arith.constant 1 : index
      %c0_18 = arith.constant 0 : index
      %c0_19 = arith.constant 0 : index
      %29 = vector.load %arg1[%c0_16, %c1_17, %c0_18, %c0_19] : memref<1x32x71x71xf32, #tpu.memory_space<vmem>>, vector<1x1x70x70xf32>
      %30 = vector.shape_cast %29 : vector<1x1x70x70xf32> to vector<70x70xf32>
      %31 = vector.broadcast %28 : f32 to vector<70x70xf32>
      %32 = arith.mulf %31, %30 : vector<70x70xf32>
      %33 = arith.addf %26, %32 : vector<70x70xf32>
      %c3 = arith.constant 3 : index
      %34 = arith.index_cast %arg8 : i32 to index
      %35 = memref.load %arg2[%c3, %34] : memref<18x32xf32, #tpu.memory_space<smem>>
      %c0_20 = arith.constant 0 : index
      %c17 = arith.constant 17 : index
      %c0_21 = arith.constant 0 : index
      %c0_22 = arith.constant 0 : index
      %36 = vector.load %arg1[%c0_20, %c17, %c0_21, %c0_22] : memref<1x32x71x71xf32, #tpu.memory_space<vmem>>, vector<1x1x70x70xf32>
      %37 = vector.shape_cast %36 : vector<1x1x70x70xf32> to vector<70x70xf32>
      %38 = vector.broadcast %35 : f32 to vector<70x70xf32>
      %39 = arith.mulf %38, %37 : vector<70x70xf32>
      %40 = arith.addf %33, %39 : vector<70x70xf32>
      %c4 = arith.constant 4 : index
      %41 = arith.index_cast %arg8 : i32 to index
      %42 = memref.load %arg2[%c4, %41] : memref<18x32xf32, #tpu.memory_space<smem>>
      %c0_23 = arith.constant 0 : index
      %c2_24 = arith.constant 2 : index
      %c0_25 = arith.constant 0 : index
      %c0_26 = arith.constant 0 : index
      %43 = vector.load %arg1[%c0_23, %c2_24, %c0_25, %c0_26] : memref<1x32x71x71xf32, #tpu.memory_space<vmem>>, vector<1x1x70x70xf32>
      %44 = vector.shape_cast %43 : vector<1x1x70x70xf32> to vector<70x70xf32>
      %45 = vector.broadcast %42 : f32 to vector<70x70xf32>
      %46 = arith.mulf %45, %44 : vector<70x70xf32>
      %47 = arith.addf %40, %46 : vector<70x70xf32>
      %c5 = arith.constant 5 : index
      %48 = arith.index_cast %arg8 : i32 to index
      %49 = memref.load %arg2[%c5, %48] : memref<18x32xf32, #tpu.memory_space<smem>>
      %c0_27 = arith.constant 0 : index
      %c18 = arith.constant 18 : index
      %c0_28 = arith.constant 0 : index
      %c0_29 = arith.constant 0 : index
      %50 = vector.load %arg1[%c0_27, %c18, %c0_28, %c0_29] : memref<1x32x71x71xf32, #tpu.memory_space<vmem>>, vector<1x1x70x70xf32>
      %51 = vector.shape_cast %50 : vector<1x1x70x70xf32> to vector<70x70xf32>
      %52 = vector.broadcast %49 : f32 to vector<70x70xf32>
      %53 = arith.mulf %52, %51 : vector<70x70xf32>
      %54 = arith.addf %47, %53 : vector<70x70xf32>
      %c6 = arith.constant 6 : index
      %55 = arith.index_cast %arg8 : i32 to index
      %56 = memref.load %arg2[%c6, %55] : memref<18x32xf32, #tpu.memory_space<smem>>
      %c0_30 = arith.constant 0 : index
      %c4_31 = arith.constant 4 : index
      %c0_32 = arith.constant 0 : index
      %c0_33 = arith.constant 0 : index
      %57 = vector.load %arg1[%c0_30, %c4_31, %c0_32, %c0_33] : memref<1x32x71x71xf32, #tpu.memory_space<vmem>>, vector<1x1x70x70xf32>
      %58 = vector.shape_cast %57 : vector<1x1x70x70xf32> to vector<70x70xf32>
      %59 = vector.broadcast %56 : f32 to vector<70x70xf32>
      %60 = arith.mulf %59, %58 : vector<70x70xf32>
      %61 = arith.addf %54, %60 : vector<70x70xf32>
      %c7 = arith.constant 7 : index
      %62 = arith.index_cast %arg8 : i32 to index
      %63 = memref.load %arg2[%c7, %62] : memref<18x32xf32, #tpu.memory_space<smem>>
      %c0_34 = arith.constant 0 : index
      %c20 = arith.constant 20 : index
      %c0_35 = arith.constant 0 : index
      %c0_36 = arith.constant 0 : index
      %64 = vector.load %arg1[%c0_34, %c20, %c0_35, %c0_36] : memref<1x32x71x71xf32, #tpu.memory_space<vmem>>, vector<1x1x70x70xf32>
      %65 = vector.shape_cast %64 : vector<1x1x70x70xf32> to vector<70x70xf32>
      %66 = vector.broadcast %63 : f32 to vector<70x70xf32>
      %67 = arith.mulf %66, %65 : vector<70x70xf32>
      %68 = arith.addf %61, %67 : vector<70x70xf32>
      %c8 = arith.constant 8 : index
      %69 = arith.index_cast %arg8 : i32 to index
      %70 = memref.load %arg2[%c8, %69] : memref<18x32xf32, #tpu.memory_space<smem>>
      %c0_37 = arith.constant 0 : index
      %c5_38 = arith.constant 5 : index
      %c0_39 = arith.constant 0 : index
      %c0_40 = arith.constant 0 : index
      %71 = vector.load %arg1[%c0_37, %c5_38, %c0_39, %c0_40] : memref<1x32x71x71xf32, #tpu.memory_space<vmem>>, vector<1x1x70x70xf32>
      %72 = vector.shape_cast %71 : vector<1x1x70x70xf32> to vector<70x70xf32>
      %73 = vector.broadcast %70 : f32 to vector<70x70xf32>
      %74 = arith.mulf %73, %72 : vector<70x70xf32>
      %75 = arith.addf %68, %74 : vector<70x70xf32>
      %c9 = arith.constant 9 : index
      %76 = arith.index_cast %arg8 : i32 to index
      %77 = memref.load %arg2[%c9, %76] : memref<18x32xf32, #tpu.memory_space<smem>>
      %c0_41 = arith.constant 0 : index
      %c21 = arith.constant 21 : index
      %c0_42 = arith.constant 0 : index
      %c0_43 = arith.constant 0 : index
      %78 = vector.load %arg1[%c0_41, %c21, %c0_42, %c0_43] : memref<1x32x71x71xf32, #tpu.memory_space<vmem>>, vector<1x1x70x70xf32>
      %79 = vector.shape_cast %78 : vector<1x1x70x70xf32> to vector<70x70xf32>
      %80 = vector.broadcast %77 : f32 to vector<70x70xf32>
      %81 = arith.mulf %80, %79 : vector<70x70xf32>
      %82 = arith.addf %75, %81 : vector<70x70xf32>
      %c10 = arith.constant 10 : index
      %83 = arith.index_cast %arg8 : i32 to index
      %84 = memref.load %arg2[%c10, %83] : memref<18x32xf32, #tpu.memory_space<smem>>
      %c0_44 = arith.constant 0 : index
      %c6_45 = arith.constant 6 : index
      %c0_46 = arith.constant 0 : index
      %c0_47 = arith.constant 0 : index
      %85 = vector.load %arg1[%c0_44, %c6_45, %c0_46, %c0_47] : memref<1x32x71x71xf32, #tpu.memory_space<vmem>>, vector<1x1x70x70xf32>
      %86 = vector.shape_cast %85 : vector<1x1x70x70xf32> to vector<70x70xf32>
      %87 = vector.broadcast %84 : f32 to vector<70x70xf32>
      %88 = arith.mulf %87, %86 : vector<70x70xf32>
      %89 = arith.addf %82, %88 : vector<70x70xf32>
      %c11 = arith.constant 11 : index
      %90 = arith.index_cast %arg8 : i32 to index
      %91 = memref.load %arg2[%c11, %90] : memref<18x32xf32, #tpu.memory_space<smem>>
      %c0_48 = arith.constant 0 : index
      %c22 = arith.constant 22 : index
      %c0_49 = arith.constant 0 : index
      %c0_50 = arith.constant 0 : index
      %92 = vector.load %arg1[%c0_48, %c22, %c0_49, %c0_50] : memref<1x32x71x71xf32, #tpu.memory_space<vmem>>, vector<1x1x70x70xf32>
      %93 = vector.shape_cast %92 : vector<1x1x70x70xf32> to vector<70x70xf32>
      %94 = vector.broadcast %91 : f32 to vector<70x70xf32>
      %95 = arith.mulf %94, %93 : vector<70x70xf32>
      %96 = arith.addf %89, %95 : vector<70x70xf32>
      %c12 = arith.constant 12 : index
      %97 = arith.index_cast %arg8 : i32 to index
      %98 = memref.load %arg2[%c12, %97] : memref<18x32xf32, #tpu.memory_space<smem>>
      %c0_51 = arith.constant 0 : index
      %c8_52 = arith.constant 8 : index
      %c0_53 = arith.constant 0 : index
      %c0_54 = arith.constant 0 : index
      %99 = vector.load %arg1[%c0_51, %c8_52, %c0_53, %c0_54] : memref<1x32x71x71xf32, #tpu.memory_space<vmem>>, vector<1x1x70x70xf32>
      %100 = vector.shape_cast %99 : vector<1x1x70x70xf32> to vector<70x70xf32>
      %101 = vector.broadcast %98 : f32 to vector<70x70xf32>
      %102 = arith.mulf %101, %100 : vector<70x70xf32>
      %103 = arith.addf %96, %102 : vector<70x70xf32>
      %c13 = arith.constant 13 : index
      %104 = arith.index_cast %arg8 : i32 to index
      %105 = memref.load %arg2[%c13, %104] : memref<18x32xf32, #tpu.memory_space<smem>>
      %c0_55 = arith.constant 0 : index
      %c24 = arith.constant 24 : index
      %c0_56 = arith.constant 0 : index
      %c0_57 = arith.constant 0 : index
      %106 = vector.load %arg1[%c0_55, %c24, %c0_56, %c0_57] : memref<1x32x71x71xf32, #tpu.memory_space<vmem>>, vector<1x1x70x70xf32>
      %107 = vector.shape_cast %106 : vector<1x1x70x70xf32> to vector<70x70xf32>
      %108 = vector.broadcast %105 : f32 to vector<70x70xf32>
      %109 = arith.mulf %108, %107 : vector<70x70xf32>
      %110 = arith.addf %103, %109 : vector<70x70xf32>
      %c14 = arith.constant 14 : index
      %111 = arith.index_cast %arg8 : i32 to index
      %112 = memref.load %arg2[%c14, %111] : memref<18x32xf32, #tpu.memory_space<smem>>
      %c0_58 = arith.constant 0 : index
      %c9_59 = arith.constant 9 : index
      %c0_60 = arith.constant 0 : index
      %c0_61 = arith.constant 0 : index
      %113 = vector.load %arg1[%c0_58, %c9_59, %c0_60, %c0_61] : memref<1x32x71x71xf32, #tpu.memory_space<vmem>>, vector<1x1x70x70xf32>
      %114 = vector.shape_cast %113 : vector<1x1x70x70xf32> to vector<70x70xf32>
      %115 = vector.broadcast %112 : f32 to vector<70x70xf32>
      %116 = arith.mulf %115, %114 : vector<70x70xf32>
      %117 = arith.addf %110, %116 : vector<70x70xf32>
      %c15 = arith.constant 15 : index
      %118 = arith.index_cast %arg8 : i32 to index
      %119 = memref.load %arg2[%c15, %118] : memref<18x32xf32, #tpu.memory_space<smem>>
      %c0_62 = arith.constant 0 : index
      %c25 = arith.constant 25 : index
      %c0_63 = arith.constant 0 : index
      %c0_64 = arith.constant 0 : index
      %120 = vector.load %arg1[%c0_62, %c25, %c0_63, %c0_64] : memref<1x32x71x71xf32, #tpu.memory_space<vmem>>, vector<1x1x70x70xf32>
      %121 = vector.shape_cast %120 : vector<1x1x70x70xf32> to vector<70x70xf32>
      %122 = vector.broadcast %119 : f32 to vector<70x70xf32>
      %123 = arith.mulf %122, %121 : vector<70x70xf32>
      %124 = arith.addf %117, %123 : vector<70x70xf32>
      %c16_65 = arith.constant 16 : index
      %125 = arith.index_cast %arg8 : i32 to index
      %126 = memref.load %arg2[%c16_65, %125] : memref<18x32xf32, #tpu.memory_space<smem>>
      %c0_66 = arith.constant 0 : index
      %c10_67 = arith.constant 10 : index
      %c0_68 = arith.constant 0 : index
      %c0_69 = arith.constant 0 : index
      %127 = vector.load %arg1[%c0_66, %c10_67, %c0_68, %c0_69] : memref<1x32x71x71xf32, #tpu.memory_space<vmem>>, vector<1x1x70x70xf32>
      %128 = vector.shape_cast %127 : vector<1x1x70x70xf32> to vector<70x70xf32>
      %129 = vector.broadcast %126 : f32 to vector<70x70xf32>
      %130 = arith.mulf %129, %128 : vector<70x70xf32>
      %131 = arith.addf %124, %130 : vector<70x70xf32>
      %c17_70 = arith.constant 17 : index
      %132 = arith.index_cast %arg8 : i32 to index
      %133 = memref.load %arg2[%c17_70, %132] : memref<18x32xf32, #tpu.memory_space<smem>>
      %c0_71 = arith.constant 0 : index
      %c26 = arith.constant 26 : index
      %c0_72 = arith.constant 0 : index
      %c0_73 = arith.constant 0 : index
      %134 = vector.load %arg1[%c0_71, %c26, %c0_72, %c0_73] : memref<1x32x71x71xf32, #tpu.memory_space<vmem>>, vector<1x1x70x70xf32>
      %135 = vector.shape_cast %134 : vector<1x1x70x70xf32> to vector<70x70xf32>
      %136 = vector.broadcast %133 : f32 to vector<70x70xf32>
      %137 = arith.mulf %136, %135 : vector<70x70xf32>
      %138 = arith.addf %131, %137 : vector<70x70xf32>
      %cst_74 = arith.constant 0.000000e+00 : f32
      %139 = vector.broadcast %cst_74 : f32 to vector<70x70xf32>
      %140 = arith.maximumf %138, %139 : vector<70x70xf32>
      %c4_i32 = arith.constant 4 : i32
      %141 = arith.muli %arg8, %c4_i32 : i32
      %c0_i32_75 = arith.constant 0 : i32
      %142 = arith.addi %141, %c0_i32_75 : i32
      %c0_i32_76 = arith.constant 0 : i32
      %143 = arith.addi %142, %c0_i32_76 : i32
      %144 = arith.index_cast %143 : i32 to index
      %c0_77 = arith.constant 0 : index
      %c0_78 = arith.constant 0 : index
      %145 = vector.load %arg7[%144, %c0_77, %c0_78] : memref<128x70x70xf32, #tpu.memory_space<vmem>>, vector<1x70x70xf32>
      %146 = vector.shape_cast %145 : vector<1x70x70xf32> to vector<70x70xf32>
      %147 = vector.shape_cast %140 : vector<70x70xf32> to vector<1x70x70xf32>
      tpu.vector_store %arg7[%144, %c0_77, %c0_78], %147 {strides = array<i32>} : memref<128x70x70xf32, #tpu.memory_space<vmem>>, vector<1x70x70xf32>,
      %148 = vector.broadcast %11 : f32 to vector<70x70xf32>
      %c0_79 = arith.constant 0 : index
      %149 = arith.index_cast %arg8 : i32 to index
      %150 = memref.load %arg2[%c0_79, %149] : memref<18x32xf32, #tpu.memory_space<smem>>
      %c0_80 = arith.constant 0 : index
      %c2_81 = arith.constant 2 : index
      %c0_82 = arith.constant 0 : index
      %c0_83 = arith.constant 0 : index
      %151 = vector.load %arg1[%c0_80, %c2_81, %c0_82, %c0_83] : memref<1x32x71x71xf32, #tpu.memory_space<vmem>>, vector<1x1x70x70xf32>
      %152 = vector.shape_cast %151 : vector<1x1x70x70xf32> to vector<70x70xf32>
      %153 = vector.broadcast %150 : f32 to vector<70x70xf32>
      %154 = arith.mulf %153, %152 : vector<70x70xf32>
      %155 = arith.addf %148, %154 : vector<70x70xf32>
      %c1_84 = arith.constant 1 : index
      %156 = arith.index_cast %arg8 : i32 to index
      %157 = memref.load %arg2[%c1_84, %156] : memref<18x32xf32, #tpu.memory_space<smem>>
      %c0_85 = arith.constant 0 : index
      %c18_86 = arith.constant 18 : index
      %c0_87 = arith.constant 0 : index
      %c0_88 = arith.constant 0 : index
      %158 = vector.load %arg1[%c0_85, %c18_86, %c0_87, %c0_88] : memref<1x32x71x71xf32, #tpu.memory_space<vmem>>, vector<1x1x70x70xf32>
      %159 = vector.shape_cast %158 : vector<1x1x70x70xf32> to vector<70x70xf32>
      %160 = vector.broadcast %157 : f32 to vector<70x70xf32>
      %161 = arith.mulf %160, %159 : vector<70x70xf32>
      %162 = arith.addf %155, %161 : vector<70x70xf32>
      %c2_89 = arith.constant 2 : index
      %163 = arith.index_cast %arg8 : i32 to index
      %164 = memref.load %arg2[%c2_89, %163] : memref<18x32xf32, #tpu.memory_space<smem>>
      %c0_90 = arith.constant 0 : index
      %c3_91 = arith.constant 3 : index
      %c0_92 = arith.constant 0 : index
      %c0_93 = arith.constant 0 : index
      %165 = vector.load %arg1[%c0_90, %c3_91, %c0_92, %c0_93] : memref<1x32x71x71xf32, #tpu.memory_space<vmem>>, vector<1x1x70x70xf32>
      %166 = vector.shape_cast %165 : vector<1x1x70x70xf32> to vector<70x70xf32>
      %167 = vector.broadcast %164 : f32 to vector<70x70xf32>
      %168 = arith.mulf %167, %166 : vector<70x70xf32>
      %169 = arith.addf %162, %168 : vector<70x70xf32>
      %c3_94 = arith.constant 3 : index
      %170 = arith.index_cast %arg8 : i32 to index
      %171 = memref.load %arg2[%c3_94, %170] : memref<18x32xf32, #tpu.memory_space<smem>>
      %c0_95 = arith.constant 0 : index
      %c19 = arith.constant 19 : index
      %c0_96 = arith.constant 0 : index
      %c0_97 = arith.constant 0 : index
      %172 = vector.load %arg1[%c0_95, %c19, %c0_96, %c0_97] : memref<1x32x71x71xf32, #tpu.memory_space<vmem>>, vector<1x1x70x70xf32>
      %173 = vector.shape_cast %172 : vector<1x1x70x70xf32> to vector<70x70xf32>
      %174 = vector.broadcast %171 : f32 to vector<70x70xf32>
      %175 = arith.mulf %174, %173 : vector<70x70xf32>
      %176 = arith.addf %169, %175 : vector<70x70xf32>
      %c4_98 = arith.constant 4 : index
      %177 = arith.index_cast %arg8 : i32 to index
      %178 = memref.load %arg2[%c4_98, %177] : memref<18x32xf32, #tpu.memory_space<smem>>
      %c0_99 = arith.constant 0 : index
      %c0_100 = arith.constant 0 : index
      %c0_101 = arith.constant 0 : index
      %c1_102 = arith.constant 1 : index
      %179 = vector.load %arg1[%c0_99, %c0_100, %c0_101, %c1_102] : memref<1x32x71x71xf32, #tpu.memory_space<vmem>>, vector<1x1x70x70xf32>
      %180 = vector.shape_cast %179 : vector<1x1x70x70xf32> to vector<70x70xf32>
      %181 = vector.broadcast %178 : f32 to vector<70x70xf32>
      %182 = arith.mulf %181, %180 : vector<70x70xf32>
      %183 = arith.addf %176, %182 : vector<70x70xf32>
      %c5_103 = arith.constant 5 : index
      %184 = arith.index_cast %arg8 : i32 to index
      %185 = memref.load %arg2[%c5_103, %184] : memref<18x32xf32, #tpu.memory_space<smem>>
      %c0_104 = arith.constant 0 : index
      %c16_105 = arith.constant 16 : index
      %c0_106 = arith.constant 0 : index
      %c1_107 = arith.constant 1 : index
      %186 = vector.load %arg1[%c0_104, %c16_105, %c0_106, %c1_107] : memref<1x32x71x71xf32, #tpu.memory_space<vmem>>, vector<1x1x70x70xf32>
      %187 = vector.shape_cast %186 : vector<1x1x70x70xf32> to vector<70x70xf32>
      %188 = vector.broadcast %185 : f32 to vector<70x70xf32>
      %189 = arith.mulf %188, %187 : vector<70x70xf32>
      %190 = arith.addf %183, %189 : vector<70x70xf32>
      %c6_108 = arith.constant 6 : index
      %191 = arith.index_cast %arg8 : i32 to index
      %192 = memref.load %arg2[%c6_108, %191] : memref<18x32xf32, #tpu.memory_space<smem>>
      %c0_109 = arith.constant 0 : index
      %c6_110 = arith.constant 6 : index
      %c0_111 = arith.constant 0 : index
      %c0_112 = arith.constant 0 : index
      %193 = vector.load %arg1[%c0_109, %c6_110, %c0_111, %c0_112] : memref<1x32x71x71xf32, #tpu.memory_space<vmem>>, vector<1x1x70x70xf32>
      %194 = vector.shape_cast %193 : vector<1x1x70x70xf32> to vector<70x70xf32>
      %195 = vector.broadcast %192 : f32 to vector<70x70xf32>
      %196 = arith.mulf %195, %194 : vector<70x70xf32>
      %197 = arith.addf %190, %196 : vector<70x70xf32>
      %c7_113 = arith.constant 7 : index
      %198 = arith.index_cast %arg8 : i32 to index
      %199 = memref.load %arg2[%c7_113, %198] : memref<18x32xf32, #tpu.memory_space<smem>>
      %c0_114 = arith.constant 0 : index
      %c22_115 = arith.constant 22 : index
      %c0_116 = arith.constant 0 : index
      %c0_117 = arith.constant 0 : index
      %200 = vector.load %arg1[%c0_114, %c22_115, %c0_116, %c0_117] : memref<1x32x71x71xf32, #tpu.memory_space<vmem>>, vector<1x1x70x70xf32>
      %201 = vector.shape_cast %200 : vector<1x1x70x70xf32> to vector<70x70xf32>
      %202 = vector.broadcast %199 : f32 to vector<70x70xf32>
      %203 = arith.mulf %202, %201 : vector<70x70xf32>
      %204 = arith.addf %197, %203 : vector<70x70xf32>
      %c8_118 = arith.constant 8 : index
      %205 = arith.index_cast %arg8 : i32 to index
      %206 = memref.load %arg2[%c8_118, %205] : memref<18x32xf32, #tpu.memory_space<smem>>
      %c0_119 = arith.constant 0 : index
      %c7_120 = arith.constant 7 : index
      %c0_121 = arith.constant 0 : index
      %c0_122 = arith.constant 0 : index
      %207 = vector.load %arg1[%c0_119, %c7_120, %c0_121, %c0_122] : memref<1x32x71x71xf32, #tpu.memory_space<vmem>>, vector<1x1x70x70xf32>
      %208 = vector.shape_cast %207 : vector<1x1x70x70xf32> to vector<70x70xf32>
      %209 = vector.broadcast %206 : f32 to vector<70x70xf32>
      %210 = arith.mulf %209, %208 : vector<70x70xf32>
      %211 = arith.addf %204, %210 : vector<70x70xf32>
      %c9_123 = arith.constant 9 : index
      %212 = arith.index_cast %arg8 : i32 to index
      %213 = memref.load %arg2[%c9_123, %212] : memref<18x32xf32, #tpu.memory_space<smem>>
      %c0_124 = arith.constant 0 : index
      %c23 = arith.constant 23 : index
      %c0_125 = arith.constant 0 : index
      %c0_126 = arith.constant 0 : index
      %214 = vector.load %arg1[%c0_124, %c23, %c0_125, %c0_126] : memref<1x32x71x71xf32, #tpu.memory_space<vmem>>, vector<1x1x70x70xf32>
      %215 = vector.shape_cast %214 : vector<1x1x70x70xf32> to vector<70x70xf32>
      %216 = vector.broadcast %213 : f32 to vector<70x70xf32>
      %217 = arith.mulf %216, %215 : vector<70x70xf32>
      %218 = arith.addf %211, %217 : vector<70x70xf32>
      %c10_127 = arith.constant 10 : index
      %219 = arith.index_cast %arg8 : i32 to index
      %220 = memref.load %arg2[%c10_127, %219] : memref<18x32xf32, #tpu.memory_space<smem>>
      %c0_128 = arith.constant 0 : index
      %c4_129 = arith.constant 4 : index
      %c0_130 = arith.constant 0 : index
      %c1_131 = arith.constant 1 : index
      %221 = vector.load %arg1[%c0_128, %c4_129, %c0_130, %c1_131] : memref<1x32x71x71xf32, #tpu.memory_space<vmem>>, vector<1x1x70x70xf32>
      %222 = vector.shape_cast %221 : vector<1x1x70x70xf32> to vector<70x70xf32>
      %223 = vector.broadcast %220 : f32 to vector<70x70xf32>
      %224 = arith.mulf %223, %222 : vector<70x70xf32>
      %225 = arith.addf %218, %224 : vector<70x70xf32>
      %c11_132 = arith.constant 11 : index
      %226 = arith.index_cast %arg8 : i32 to index
      %227 = memref.load %arg2[%c11_132, %226] : memref<18x32xf32, #tpu.memory_space<smem>>
      %c0_133 = arith.constant 0 : index
      %c20_134 = arith.constant 20 : index
      %c0_135 = arith.constant 0 : index
      %c1_136 = arith.constant 1 : index
      %228 = vector.load %arg1[%c0_133, %c20_134, %c0_135, %c1_136] : memref<1x32x71x71xf32, #tpu.memory_space<vmem>>, vector<1x1x70x70xf32>
      %229 = vector.shape_cast %228 : vector<1x1x70x70xf32> to vector<70x70xf32>
      %230 = vector.broadcast %227 : f32 to vector<70x70xf32>
      %231 = arith.mulf %230, %229 : vector<70x70xf32>
      %232 = arith.addf %225, %231 : vector<70x70xf32>
      %c12_137 = arith.constant 12 : index
      %233 = arith.index_cast %arg8 : i32 to index
      %234 = memref.load %arg2[%c12_137, %233] : memref<18x32xf32, #tpu.memory_space<smem>>
      %c0_138 = arith.constant 0 : index
      %c10_139 = arith.constant 10 : index
      %c0_140 = arith.constant 0 : index
      %c0_141 = arith.constant 0 : index
      %235 = vector.load %arg1[%c0_138, %c10_139, %c0_140, %c0_141] : memref<1x32x71x71xf32, #tpu.memory_space<vmem>>, vector<1x1x70x70xf32>
      %236 = vector.shape_cast %235 : vector<1x1x70x70xf32> to vector<70x70xf32>
      %237 = vector.broadcast %234 : f32 to vector<70x70xf32>
      %238 = arith.mulf %237, %236 : vector<70x70xf32>
      %239 = arith.addf %232, %238 : vector<70x70xf32>
      %c13_142 = arith.constant 13 : index
      %240 = arith.index_cast %arg8 : i32 to index
      %241 = memref.load %arg2[%c13_142, %240] : memref<18x32xf32, #tpu.memory_space<smem>>
      %c0_143 = arith.constant 0 : index
      %c26_144 = arith.constant 26 : index
      %c0_145 = arith.constant 0 : index
      %c0_146 = arith.constant 0 : index
      %242 = vector.load %arg1[%c0_143, %c26_144, %c0_145, %c0_146] : memref<1x32x71x71xf32, #tpu.memory_space<vmem>>, vector<1x1x70x70xf32>
      %243 = vector.shape_cast %242 : vector<1x1x70x70xf32> to vector<70x70xf32>
      %244 = vector.broadcast %241 : f32 to vector<70x70xf32>
      %245 = arith.mulf %244, %243 : vector<70x70xf32>
      %246 = arith.addf %239, %245 : vector<70x70xf32>
      %c14_147 = arith.constant 14 : index
      %247 = arith.index_cast %arg8 : i32 to index
      %248 = memref.load %arg2[%c14_147, %247] : memref<18x32xf32, #tpu.memory_space<smem>>
      %c0_148 = arith.constant 0 : index
      %c11_149 = arith.constant 11 : index
      %c0_150 = arith.constant 0 : index
      %c0_151 = arith.constant 0 : index
      %249 = vector.load %arg1[%c0_148, %c11_149, %c0_150, %c0_151] : memref<1x32x71x71xf32, #tpu.memory_space<vmem>>, vector<1x1x70x70xf32>
      %250 = vector.shape_cast %249 : vector<1x1x70x70xf32> to vector<70x70xf32>
      %251 = vector.broadcast %248 : f32 to vector<70x70xf32>
      %252 = arith.mulf %251, %250 : vector<70x70xf32>
      %253 = arith.addf %246, %252 : vector<70x70xf32>
      %c15_152 = arith.constant 15 : index
      %254 = arith.index_cast %arg8 : i32 to index
      %255 = memref.load %arg2[%c15_152, %254] : memref<18x32xf32, #tpu.memory_space<smem>>
      %c0_153 = arith.constant 0 : index
      %c27 = arith.constant 27 : index
      %c0_154 = arith.constant 0 : index
      %c0_155 = arith.constant 0 : index
      %256 = vector.load %arg1[%c0_153, %c27, %c0_154, %c0_155] : memref<1x32x71x71xf32, #tpu.memory_space<vmem>>, vector<1x1x70x70xf32>
      %257 = vector.shape_cast %256 : vector<1x1x70x70xf32> to vector<70x70xf32>
      %258 = vector.broadcast %255 : f32 to vector<70x70xf32>
      %259 = arith.mulf %258, %257 : vector<70x70xf32>
      %260 = arith.addf %253, %259 : vector<70x70xf32>
      %c16_156 = arith.constant 16 : index
      %261 = arith.index_cast %arg8 : i32 to index
      %262 = memref.load %arg2[%c16_156, %261] : memref<18x32xf32, #tpu.memory_space<smem>>
      %c0_157 = arith.constant 0 : index
      %c8_158 = arith.constant 8 : index
      %c0_159 = arith.constant 0 : index
      %c1_160 = arith.constant 1 : index
      %263 = vector.load %arg1[%c0_157, %c8_158, %c0_159, %c1_160] : memref<1x32x71x71xf32, #tpu.memory_space<vmem>>, vector<1x1x70x70xf32>
      %264 = vector.shape_cast %263 : vector<1x1x70x70xf32> to vector<70x70xf32>
      %265 = vector.broadcast %262 : f32 to vector<70x70xf32>
      %266 = arith.mulf %265, %264 : vector<70x70xf32>
      %267 = arith.addf %260, %266 : vector<70x70xf32>
      %c17_161 = arith.constant 17 : index
      %268 = arith.index_cast %arg8 : i32 to index
      %269 = memref.load %arg2[%c17_161, %268] : memref<18x32xf32, #tpu.memory_space<smem>>
      %c0_162 = arith.constant 0 : index
      %c24_163 = arith.constant 24 : index
      %c0_164 = arith.constant 0 : index
      %c1_165 = arith.constant 1 : index
      %270 = vector.load %arg1[%c0_162, %c24_163, %c0_164, %c1_165] : memref<1x32x71x71xf32, #tpu.memory_space<vmem>>, vector<1x1x70x70xf32>
      %271 = vector.shape_cast %270 : vector<1x1x70x70xf32> to vector<70x70xf32>
      %272 = vector.broadcast %269 : f32 to vector<70x70xf32>
      %273 = arith.mulf %272, %271 : vector<70x70xf32>
      %274 = arith.addf %267, %273 : vector<70x70xf32>
      %cst_166 = arith.constant 0.000000e+00 : f32
      %275 = vector.broadcast %cst_166 : f32 to vector<70x70xf32>
      %276 = arith.maximumf %274, %275 : vector<70x70xf32>
      %c4_i32_167 = arith.constant 4 : i32
      %277 = arith.muli %arg8, %c4_i32_167 : i32
      %c0_i32_168 = arith.constant 0 : i32
      %278 = arith.addi %277, %c0_i32_168 : i32
      %c1_i32_169 = arith.constant 1 : i32
      %279 = arith.addi %278, %c1_i32_169 : i32
      %280 = arith.index_cast %279 : i32 to index
      %c0_170 = arith.constant 0 : index
      %c0_171 = arith.constant 0 : index
      %281 = vector.load %arg7[%280, %c0_170, %c0_171] : memref<128x70x70xf32, #tpu.memory_space<vmem>>, vector<1x70x70xf32>
      %282 = vector.shape_cast %281 : vector<1x70x70xf32> to vector<70x70xf32>
      %283 = vector.shape_cast %276 : vector<70x70xf32> to vector<1x70x70xf32>
      tpu.vector_store %arg7[%280, %c0_170, %c0_171], %283 {strides = array<i32>} : memref<128x70x70xf32, #tpu.memory_space<vmem>>, vector<1x70x70xf32>,
      %284 = vector.broadcast %11 : f32 to vector<70x70xf32>
      %c0_172 = arith.constant 0 : index
      %285 = arith.index_cast %arg8 : i32 to index
      %286 = memref.load %arg2[%c0_172, %285] : memref<18x32xf32, #tpu.memory_space<smem>>
      %c0_173 = arith.constant 0 : index
      %c8_174 = arith.constant 8 : index
      %c0_175 = arith.constant 0 : index
      %c0_176 = arith.constant 0 : index
      %287 = vector.load %arg1[%c0_173, %c8_174, %c0_175, %c0_176] : memref<1x32x71x71xf32, #tpu.memory_space<vmem>>, vector<1x1x70x70xf32>
      %288 = vector.shape_cast %287 : vector<1x1x70x70xf32> to vector<70x70xf32>
      %289 = vector.broadcast %286 : f32 to vector<70x70xf32>
      %290 = arith.mulf %289, %288 : vector<70x70xf32>
      %291 = arith.addf %284, %290 : vector<70x70xf32>
      %c1_177 = arith.constant 1 : index
      %292 = arith.index_cast %arg8 : i32 to index
      %293 = memref.load %arg2[%c1_177, %292] : memref<18x32xf32, #tpu.memory_space<smem>>
      %c0_178 = arith.constant 0 : index
      %c24_179 = arith.constant 24 : index
      %c0_180 = arith.constant 0 : index
      %c0_181 = arith.constant 0 : index
      %294 = vector.load %arg1[%c0_178, %c24_179, %c0_180, %c0_181] : memref<1x32x71x71xf32, #tpu.memory_space<vmem>>, vector<1x1x70x70xf32>
      %295 = vector.shape_cast %294 : vector<1x1x70x70xf32> to vector<70x70xf32>
      %296 = vector.broadcast %293 : f32 to vector<70x70xf32>
      %297 = arith.mulf %296, %295 : vector<70x70xf32>
      %298 = arith.addf %291, %297 : vector<70x70xf32>
      %c2_182 = arith.constant 2 : index
      %299 = arith.index_cast %arg8 : i32 to index
      %300 = memref.load %arg2[%c2_182, %299] : memref<18x32xf32, #tpu.memory_space<smem>>
      %c0_183 = arith.constant 0 : index
      %c9_184 = arith.constant 9 : index
      %c0_185 = arith.constant 0 : index
      %c0_186 = arith.constant 0 : index
      %301 = vector.load %arg1[%c0_183, %c9_184, %c0_185, %c0_186] : memref<1x32x71x71xf32, #tpu.memory_space<vmem>>, vector<1x1x70x70xf32>
      %302 = vector.shape_cast %301 : vector<1x1x70x70xf32> to vector<70x70xf32>
      %303 = vector.broadcast %300 : f32 to vector<70x70xf32>
      %304 = arith.mulf %303, %302 : vector<70x70xf32>
      %305 = arith.addf %298, %304 : vector<70x70xf32>
      %c3_187 = arith.constant 3 : index
      %306 = arith.index_cast %arg8 : i32 to index
      %307 = memref.load %arg2[%c3_187, %306] : memref<18x32xf32, #tpu.memory_space<smem>>
      %c0_188 = arith.constant 0 : index
      %c25_189 = arith.constant 25 : index
      %c0_190 = arith.constant 0 : index
      %c0_191 = arith.constant 0 : index
      %308 = vector.load %arg1[%c0_188, %c25_189, %c0_190, %c0_191] : memref<1x32x71x71xf32, #tpu.memory_space<vmem>>, vector<1x1x70x70xf32>
      %309 = vector.shape_cast %308 : vector<1x1x70x70xf32> to vector<70x70xf32>
      %310 = vector.broadcast %307 : f32 to vector<70x70xf32>
      %311 = arith.mulf %310, %309 : vector<70x70xf32>
      %312 = arith.addf %305, %311 : vector<70x70xf32>
      %c4_192 = arith.constant 4 : index
      %313 = arith.index_cast %arg8 : i32 to index
      %314 = memref.load %arg2[%c4_192, %313] : memref<18x32xf32, #tpu.memory_space<smem>>
      %c0_193 = arith.constant 0 : index
      %c10_194 = arith.constant 10 : index
      %c0_195 = arith.constant 0 : index
      %c0_196 = arith.constant 0 : index
      %315 = vector.load %arg1[%c0_193, %c10_194, %c0_195, %c0_196] : memref<1x32x71x71xf32, #tpu.memory_space<vmem>>, vector<1x1x70x70xf32>
      %316 = vector.shape_cast %315 : vector<1x1x70x70xf32> to vector<70x70xf32>
      %317 = vector.broadcast %314 : f32 to vector<70x70xf32>
      %318 = arith.mulf %317, %316 : vector<70x70xf32>
      %319 = arith.addf %312, %318 : vector<70x70xf32>
      %c5_197 = arith.constant 5 : index
      %320 = arith.index_cast %arg8 : i32 to index
      %321 = memref.load %arg2[%c5_197, %320] : memref<18x32xf32, #tpu.memory_space<smem>>
      %c0_198 = arith.constant 0 : index
      %c26_199 = arith.constant 26 : index
      %c0_200 = arith.constant 0 : index
      %c0_201 = arith.constant 0 : index
      %322 = vector.load %arg1[%c0_198, %c26_199, %c0_200, %c0_201] : memref<1x32x71x71xf32, #tpu.memory_space<vmem>>, vector<1x1x70x70xf32>
      %323 = vector.shape_cast %322 : vector<1x1x70x70xf32> to vector<70x70xf32>
      %324 = vector.broadcast %321 : f32 to vector<70x70xf32>
      %325 = arith.mulf %324, %323 : vector<70x70xf32>
      %326 = arith.addf %319, %325 : vector<70x70xf32>
      %c6_202 = arith.constant 6 : index
      %327 = arith.index_cast %arg8 : i32 to index
      %328 = memref.load %arg2[%c6_202, %327] : memref<18x32xf32, #tpu.memory_space<smem>>
      %c0_203 = arith.constant 0 : index
      %c12_204 = arith.constant 12 : index
      %c0_205 = arith.constant 0 : index
      %c0_206 = arith.constant 0 : index
      %329 = vector.load %arg1[%c0_203, %c12_204, %c0_205, %c0_206] : memref<1x32x71x71xf32, #tpu.memory_space<vmem>>, vector<1x1x70x70xf32>
      %330 = vector.shape_cast %329 : vector<1x1x70x70xf32> to vector<70x70xf32>
      %331 = vector.broadcast %328 : f32 to vector<70x70xf32>
      %332 = arith.mulf %331, %330 : vector<70x70xf32>
      %333 = arith.addf %326, %332 : vector<70x70xf32>
      %c7_207 = arith.constant 7 : index
      %334 = arith.index_cast %arg8 : i32 to index
      %335 = memref.load %arg2[%c7_207, %334] : memref<18x32xf32, #tpu.memory_space<smem>>
      %c0_208 = arith.constant 0 : index
      %c28 = arith.constant 28 : index
      %c0_209 = arith.constant 0 : index
      %c0_210 = arith.constant 0 : index
      %336 = vector.load %arg1[%c0_208, %c28, %c0_209, %c0_210] : memref<1x32x71x71xf32, #tpu.memory_space<vmem>>, vector<1x1x70x70xf32>
      %337 = vector.shape_cast %336 : vector<1x1x70x70xf32> to vector<70x70xf32>
      %338 = vector.broadcast %335 : f32 to vector<70x70xf32>
      %339 = arith.mulf %338, %337 : vector<70x70xf32>
      %340 = arith.addf %333, %339 : vector<70x70xf32>
      %c8_211 = arith.constant 8 : index
      %341 = arith.index_cast %arg8 : i32 to index
      %342 = memref.load %arg2[%c8_211, %341] : memref<18x32xf32, #tpu.memory_space<smem>>
      %c0_212 = arith.constant 0 : index
      %c13_213 = arith.constant 13 : index
      %c0_214 = arith.constant 0 : index
      %c0_215 = arith.constant 0 : index
      %343 = vector.load %arg1[%c0_212, %c13_213, %c0_214, %c0_215] : memref<1x32x71x71xf32, #tpu.memory_space<vmem>>, vector<1x1x70x70xf32>
      %344 = vector.shape_cast %343 : vector<1x1x70x70xf32> to vector<70x70xf32>
      %345 = vector.broadcast %342 : f32 to vector<70x70xf32>
      %346 = arith.mulf %345, %344 : vector<70x70xf32>
      %347 = arith.addf %340, %346 : vector<70x70xf32>
      %c9_216 = arith.constant 9 : index
      %348 = arith.index_cast %arg8 : i32 to index
      %349 = memref.load %arg2[%c9_216, %348] : memref<18x32xf32, #tpu.memory_space<smem>>
      %c0_217 = arith.constant 0 : index
      %c29 = arith.constant 29 : index
      %c0_218 = arith.constant 0 : index
      %c0_219 = arith.constant 0 : index
      %350 = vector.load %arg1[%c0_217, %c29, %c0_218, %c0_219] : memref<1x32x71x71xf32, #tpu.memory_space<vmem>>, vector<1x1x70x70xf32>
      %351 = vector.shape_cast %350 : vector<1x1x70x70xf32> to vector<70x70xf32>
      %352 = vector.broadcast %349 : f32 to vector<70x70xf32>
      %353 = arith.mulf %352, %351 : vector<70x70xf32>
      %354 = arith.addf %347, %353 : vector<70x70xf32>
      %c10_220 = arith.constant 10 : index
      %355 = arith.index_cast %arg8 : i32 to index
      %356 = memref.load %arg2[%c10_220, %355] : memref<18x32xf32, #tpu.memory_space<smem>>
      %c0_221 = arith.constant 0 : index
      %c14_222 = arith.constant 14 : index
      %c0_223 = arith.constant 0 : index
      %c0_224 = arith.constant 0 : index
      %357 = vector.load %arg1[%c0_221, %c14_222, %c0_223, %c0_224] : memref<1x32x71x71xf32, #tpu.memory_space<vmem>>, vector<1x1x70x70xf32>
      %358 = vector.shape_cast %357 : vector<1x1x70x70xf32> to vector<70x70xf32>
      %359 = vector.broadcast %356 : f32 to vector<70x70xf32>
      %360 = arith.mulf %359, %358 : vector<70x70xf32>
      %361 = arith.addf %354, %360 : vector<70x70xf32>
      %c11_225 = arith.constant 11 : index
      %362 = arith.index_cast %arg8 : i32 to index
      %363 = memref.load %arg2[%c11_225, %362] : memref<18x32xf32, #tpu.memory_space<smem>>
      %c0_226 = arith.constant 0 : index
      %c30 = arith.constant 30 : index
      %c0_227 = arith.constant 0 : index
      %c0_228 = arith.constant 0 : index
      %364 = vector.load %arg1[%c0_226, %c30, %c0_227, %c0_228] : memref<1x32x71x71xf32, #tpu.memory_space<vmem>>, vector<1x1x70x70xf32>
      %365 = vector.shape_cast %364 : vector<1x1x70x70xf32> to vector<70x70xf32>
      %366 = vector.broadcast %363 : f32 to vector<70x70xf32>
      %367 = arith.mulf %366, %365 : vector<70x70xf32>
      %368 = arith.addf %361, %367 : vector<70x70xf32>
      %c12_229 = arith.constant 12 : index
      %369 = arith.index_cast %arg8 : i32 to index
      %370 = memref.load %arg2[%c12_229, %369] : memref<18x32xf32, #tpu.memory_space<smem>>
      %c0_230 = arith.constant 0 : index
      %c0_231 = arith.constant 0 : index
      %c1_232 = arith.constant 1 : index
      %c0_233 = arith.constant 0 : index
      %371 = vector.load %arg1[%c0_230, %c0_231, %c1_232, %c0_233] : memref<1x32x71x71xf32, #tpu.memory_space<vmem>>, vector<1x1x70x70xf32>
      %372 = vector.shape_cast %371 : vector<1x1x70x70xf32> to vector<70x70xf32>
      %373 = vector.broadcast %370 : f32 to vector<70x70xf32>
      %374 = arith.mulf %373, %372 : vector<70x70xf32>
      %375 = arith.addf %368, %374 : vector<70x70xf32>
      %c13_234 = arith.constant 13 : index
      %376 = arith.index_cast %arg8 : i32 to index
      %377 = memref.load %arg2[%c13_234, %376] : memref<18x32xf32, #tpu.memory_space<smem>>
      %c0_235 = arith.constant 0 : index
      %c16_236 = arith.constant 16 : index
      %c1_237 = arith.constant 1 : index
      %c0_238 = arith.constant 0 : index
      %378 = vector.load %arg1[%c0_235, %c16_236, %c1_237, %c0_238] : memref<1x32x71x71xf32, #tpu.memory_space<vmem>>, vector<1x1x70x70xf32>
      %379 = vector.shape_cast %378 : vector<1x1x70x70xf32> to vector<70x70xf32>
      %380 = vector.broadcast %377 : f32 to vector<70x70xf32>
      %381 = arith.mulf %380, %379 : vector<70x70xf32>
      %382 = arith.addf %375, %381 : vector<70x70xf32>
      %c14_239 = arith.constant 14 : index
      %383 = arith.index_cast %arg8 : i32 to index
      %384 = memref.load %arg2[%c14_239, %383] : memref<18x32xf32, #tpu.memory_space<smem>>
      %c0_240 = arith.constant 0 : index
      %c1_241 = arith.constant 1 : index
      %c1_242 = arith.constant 1 : index
      %c0_243 = arith.constant 0 : index
      %385 = vector.load %arg1[%c0_240, %c1_241, %c1_242, %c0_243] : memref<1x32x71x71xf32, #tpu.memory_space<vmem>>, vector<1x1x70x70xf32>
      %386 = vector.shape_cast %385 : vector<1x1x70x70xf32> to vector<70x70xf32>
      %387 = vector.broadcast %384 : f32 to vector<70x70xf32>
      %388 = arith.mulf %387, %386 : vector<70x70xf32>
      %389 = arith.addf %382, %388 : vector<70x70xf32>
      %c15_244 = arith.constant 15 : index
      %390 = arith.index_cast %arg8 : i32 to index
      %391 = memref.load %arg2[%c15_244, %390] : memref<18x32xf32, #tpu.memory_space<smem>>
      %c0_245 = arith.constant 0 : index
      %c17_246 = arith.constant 17 : index
      %c1_247 = arith.constant 1 : index
      %c0_248 = arith.constant 0 : index
      %392 = vector.load %arg1[%c0_245, %c17_246, %c1_247, %c0_248] : memref<1x32x71x71xf32, #tpu.memory_space<vmem>>, vector<1x1x70x70xf32>
      %393 = vector.shape_cast %392 : vector<1x1x70x70xf32> to vector<70x70xf32>
      %394 = vector.broadcast %391 : f32 to vector<70x70xf32>
      %395 = arith.mulf %394, %393 : vector<70x70xf32>
      %396 = arith.addf %389, %395 : vector<70x70xf32>
      %c16_249 = arith.constant 16 : index
      %397 = arith.index_cast %arg8 : i32 to index
      %398 = memref.load %arg2[%c16_249, %397] : memref<18x32xf32, #tpu.memory_space<smem>>
      %c0_250 = arith.constant 0 : index
      %c2_251 = arith.constant 2 : index
      %c1_252 = arith.constant 1 : index
      %c0_253 = arith.constant 0 : index
      %399 = vector.load %arg1[%c0_250, %c2_251, %c1_252, %c0_253] : memref<1x32x71x71xf32, #tpu.memory_space<vmem>>, vector<1x1x70x70xf32>
      %400 = vector.shape_cast %399 : vector<1x1x70x70xf32> to vector<70x70xf32>
      %401 = vector.broadcast %398 : f32 to vector<70x70xf32>
      %402 = arith.mulf %401, %400 : vector<70x70xf32>
      %403 = arith.addf %396, %402 : vector<70x70xf32>
      %c17_254 = arith.constant 17 : index
      %404 = arith.index_cast %arg8 : i32 to index
      %405 = memref.load %arg2[%c17_254, %404] : memref<18x32xf32, #tpu.memory_space<smem>>
      %c0_255 = arith.constant 0 : index
      %c18_256 = arith.constant 18 : index
      %c1_257 = arith.constant 1 : index
      %c0_258 = arith.constant 0 : index
      %406 = vector.load %arg1[%c0_255, %c18_256, %c1_257, %c0_258] : memref<1x32x71x71xf32, #tpu.memory_space<vmem>>, vector<1x1x70x70xf32>
      %407 = vector.shape_cast %406 : vector<1x1x70x70xf32> to vector<70x70xf32>
      %408 = vector.broadcast %405 : f32 to vector<70x70xf32>
      %409 = arith.mulf %408, %407 : vector<70x70xf32>
      %410 = arith.addf %403, %409 : vector<70x70xf32>
      %cst_259 = arith.constant 0.000000e+00 : f32
      %411 = vector.broadcast %cst_259 : f32 to vector<70x70xf32>
      %412 = arith.maximumf %410, %411 : vector<70x70xf32>
      %c4_i32_260 = arith.constant 4 : i32
      %413 = arith.muli %arg8, %c4_i32_260 : i32
      %c2_i32 = arith.constant 2 : i32
      %414 = arith.addi %413, %c2_i32 : i32
      %c0_i32_261 = arith.constant 0 : i32
      %415 = arith.addi %414, %c0_i32_261 : i32
      %416 = arith.index_cast %415 : i32 to index
      %c0_262 = arith.constant 0 : index
      %c0_263 = arith.constant 0 : index
      %417 = vector.load %arg7[%416, %c0_262, %c0_263] : memref<128x70x70xf32, #tpu.memory_space<vmem>>, vector<1x70x70xf32>
      %418 = vector.shape_cast %417 : vector<1x70x70xf32> to vector<70x70xf32>
      %419 = vector.shape_cast %412 : vector<70x70xf32> to vector<1x70x70xf32>
      tpu.vector_store %arg7[%416, %c0_262, %c0_263], %419 {strides = array<i32>} : memref<128x70x70xf32, #tpu.memory_space<vmem>>, vector<1x70x70xf32>,
      %420 = vector.broadcast %11 : f32 to vector<70x70xf32>
      %c0_264 = arith.constant 0 : index
      %421 = arith.index_cast %arg8 : i32 to index
      %422 = memref.load %arg2[%c0_264, %421] : memref<18x32xf32, #tpu.memory_space<smem>>
      %c0_265 = arith.constant 0 : index
      %c10_266 = arith.constant 10 : index
      %c0_267 = arith.constant 0 : index
      %c0_268 = arith.constant 0 : index
      %423 = vector.load %arg1[%c0_265, %c10_266, %c0_267, %c0_268] : memref<1x32x71x71xf32, #tpu.memory_space<vmem>>, vector<1x1x70x70xf32>
      %424 = vector.shape_cast %423 : vector<1x1x70x70xf32> to vector<70x70xf32>
      %425 = vector.broadcast %422 : f32 to vector<70x70xf32>
      %426 = arith.mulf %425, %424 : vector<70x70xf32>
      %427 = arith.addf %420, %426 : vector<70x70xf32>
      %c1_269 = arith.constant 1 : index
      %428 = arith.index_cast %arg8 : i32 to index
      %429 = memref.load %arg2[%c1_269, %428] : memref<18x32xf32, #tpu.memory_space<smem>>
      %c0_270 = arith.constant 0 : index
      %c26_271 = arith.constant 26 : index
      %c0_272 = arith.constant 0 : index
      %c0_273 = arith.constant 0 : index
      %430 = vector.load %arg1[%c0_270, %c26_271, %c0_272, %c0_273] : memref<1x32x71x71xf32, #tpu.memory_space<vmem>>, vector<1x1x70x70xf32>
      %431 = vector.shape_cast %430 : vector<1x1x70x70xf32> to vector<70x70xf32>
      %432 = vector.broadcast %429 : f32 to vector<70x70xf32>
      %433 = arith.mulf %432, %431 : vector<70x70xf32>
      %434 = arith.addf %427, %433 : vector<70x70xf32>
      %c2_274 = arith.constant 2 : index
      %435 = arith.index_cast %arg8 : i32 to index
      %436 = memref.load %arg2[%c2_274, %435] : memref<18x32xf32, #tpu.memory_space<smem>>
      %c0_275 = arith.constant 0 : index
      %c11_276 = arith.constant 11 : index
      %c0_277 = arith.constant 0 : index
      %c0_278 = arith.constant 0 : index
      %437 = vector.load %arg1[%c0_275, %c11_276, %c0_277, %c0_278] : memref<1x32x71x71xf32, #tpu.memory_space<vmem>>, vector<1x1x70x70xf32>
      %438 = vector.shape_cast %437 : vector<1x1x70x70xf32> to vector<70x70xf32>
      %439 = vector.broadcast %436 : f32 to vector<70x70xf32>
      %440 = arith.mulf %439, %438 : vector<70x70xf32>
      %441 = arith.addf %434, %440 : vector<70x70xf32>
      %c3_279 = arith.constant 3 : index
      %442 = arith.index_cast %arg8 : i32 to index
      %443 = memref.load %arg2[%c3_279, %442] : memref<18x32xf32, #tpu.memory_space<smem>>
      %c0_280 = arith.constant 0 : index
      %c27_281 = arith.constant 27 : index
      %c0_282 = arith.constant 0 : index
      %c0_283 = arith.constant 0 : index
      %444 = vector.load %arg1[%c0_280, %c27_281, %c0_282, %c0_283] : memref<1x32x71x71xf32, #tpu.memory_space<vmem>>, vector<1x1x70x70xf32>
      %445 = vector.shape_cast %444 : vector<1x1x70x70xf32> to vector<70x70xf32>
      %446 = vector.broadcast %443 : f32 to vector<70x70xf32>
      %447 = arith.mulf %446, %445 : vector<70x70xf32>
      %448 = arith.addf %441, %447 : vector<70x70xf32>
      %c4_284 = arith.constant 4 : index
      %449 = arith.index_cast %arg8 : i32 to index
      %450 = memref.load %arg2[%c4_284, %449] : memref<18x32xf32, #tpu.memory_space<smem>>
      %c0_285 = arith.constant 0 : index
      %c8_286 = arith.constant 8 : index
      %c0_287 = arith.constant 0 : index
      %c1_288 = arith.constant 1 : index
      %451 = vector.load %arg1[%c0_285, %c8_286, %c0_287, %c1_288] : memref<1x32x71x71xf32, #tpu.memory_space<vmem>>, vector<1x1x70x70xf32>
      %452 = vector.shape_cast %451 : vector<1x1x70x70xf32> to vector<70x70xf32>
      %453 = vector.broadcast %450 : f32 to vector<70x70xf32>
      %454 = arith.mulf %453, %452 : vector<70x70xf32>
      %455 = arith.addf %448, %454 : vector<70x70xf32>
      %c5_289 = arith.constant 5 : index
      %456 = arith.index_cast %arg8 : i32 to index
      %457 = memref.load %arg2[%c5_289, %456] : memref<18x32xf32, #tpu.memory_space<smem>>
      %c0_290 = arith.constant 0 : index
      %c24_291 = arith.constant 24 : index
      %c0_292 = arith.constant 0 : index
      %c1_293 = arith.constant 1 : index
      %458 = vector.load %arg1[%c0_290, %c24_291, %c0_292, %c1_293] : memref<1x32x71x71xf32, #tpu.memory_space<vmem>>, vector<1x1x70x70xf32>
      %459 = vector.shape_cast %458 : vector<1x1x70x70xf32> to vector<70x70xf32>
      %460 = vector.broadcast %457 : f32 to vector<70x70xf32>
      %461 = arith.mulf %460, %459 : vector<70x70xf32>
      %462 = arith.addf %455, %461 : vector<70x70xf32>
      %c6_294 = arith.constant 6 : index
      %463 = arith.index_cast %arg8 : i32 to index
      %464 = memref.load %arg2[%c6_294, %463] : memref<18x32xf32, #tpu.memory_space<smem>>
      %c0_295 = arith.constant 0 : index
      %c14_296 = arith.constant 14 : index
      %c0_297 = arith.constant 0 : index
      %c0_298 = arith.constant 0 : index
      %465 = vector.load %arg1[%c0_295, %c14_296, %c0_297, %c0_298] : memref<1x32x71x71xf32, #tpu.memory_space<vmem>>, vector<1x1x70x70xf32>
      %466 = vector.shape_cast %465 : vector<1x1x70x70xf32> to vector<70x70xf32>
      %467 = vector.broadcast %464 : f32 to vector<70x70xf32>
      %468 = arith.mulf %467, %466 : vector<70x70xf32>
      %469 = arith.addf %462, %468 : vector<70x70xf32>
      %c7_299 = arith.constant 7 : index
      %470 = arith.index_cast %arg8 : i32 to index
      %471 = memref.load %arg2[%c7_299, %470] : memref<18x32xf32, #tpu.memory_space<smem>>
      %c0_300 = arith.constant 0 : index
      %c30_301 = arith.constant 30 : index
      %c0_302 = arith.constant 0 : index
      %c0_303 = arith.constant 0 : index
      %472 = vector.load %arg1[%c0_300, %c30_301, %c0_302, %c0_303] : memref<1x32x71x71xf32, #tpu.memory_space<vmem>>, vector<1x1x70x70xf32>
      %473 = vector.shape_cast %472 : vector<1x1x70x70xf32> to vector<70x70xf32>
      %474 = vector.broadcast %471 : f32 to vector<70x70xf32>
      %475 = arith.mulf %474, %473 : vector<70x70xf32>
      %476 = arith.addf %469, %475 : vector<70x70xf32>
      %c8_304 = arith.constant 8 : index
      %477 = arith.index_cast %arg8 : i32 to index
      %478 = memref.load %arg2[%c8_304, %477] : memref<18x32xf32, #tpu.memory_space<smem>>
      %c0_305 = arith.constant 0 : index
      %c15_306 = arith.constant 15 : index
      %c0_307 = arith.constant 0 : index
      %c0_308 = arith.constant 0 : index
      %479 = vector.load %arg1[%c0_305, %c15_306, %c0_307, %c0_308] : memref<1x32x71x71xf32, #tpu.memory_space<vmem>>, vector<1x1x70x70xf32>
      %480 = vector.shape_cast %479 : vector<1x1x70x70xf32> to vector<70x70xf32>
      %481 = vector.broadcast %478 : f32 to vector<70x70xf32>
      %482 = arith.mulf %481, %480 : vector<70x70xf32>
      %483 = arith.addf %476, %482 : vector<70x70xf32>
      %c9_309 = arith.constant 9 : index
      %484 = arith.index_cast %arg8 : i32 to index
      %485 = memref.load %arg2[%c9_309, %484] : memref<18x32xf32, #tpu.memory_space<smem>>
      %c0_310 = arith.constant 0 : index
      %c31 = arith.constant 31 : index
      %c0_311 = arith.constant 0 : index
      %c0_312 = arith.constant 0 : index
      %486 = vector.load %arg1[%c0_310, %c31, %c0_311, %c0_312] : memref<1x32x71x71xf32, #tpu.memory_space<vmem>>, vector<1x1x70x70xf32>
      %487 = vector.shape_cast %486 : vector<1x1x70x70xf32> to vector<70x70xf32>
      %488 = vector.broadcast %485 : f32 to vector<70x70xf32>
      %489 = arith.mulf %488, %487 : vector<70x70xf32>
      %490 = arith.addf %483, %489 : vector<70x70xf32>
      %c10_313 = arith.constant 10 : index
      %491 = arith.index_cast %arg8 : i32 to index
      %492 = memref.load %arg2[%c10_313, %491] : memref<18x32xf32, #tpu.memory_space<smem>>
      %c0_314 = arith.constant 0 : index
      %c12_315 = arith.constant 12 : index
      %c0_316 = arith.constant 0 : index
      %c1_317 = arith.constant 1 : index
      %493 = vector.load %arg1[%c0_314, %c12_315, %c0_316, %c1_317] : memref<1x32x71x71xf32, #tpu.memory_space<vmem>>, vector<1x1x70x70xf32>
      %494 = vector.shape_cast %493 : vector<1x1x70x70xf32> to vector<70x70xf32>
      %495 = vector.broadcast %492 : f32 to vector<70x70xf32>
      %496 = arith.mulf %495, %494 : vector<70x70xf32>
      %497 = arith.addf %490, %496 : vector<70x70xf32>
      %c11_318 = arith.constant 11 : index
      %498 = arith.index_cast %arg8 : i32 to index
      %499 = memref.load %arg2[%c11_318, %498] : memref<18x32xf32, #tpu.memory_space<smem>>
      %c0_319 = arith.constant 0 : index
      %c28_320 = arith.constant 28 : index
      %c0_321 = arith.constant 0 : index
      %c1_322 = arith.constant 1 : index
      %500 = vector.load %arg1[%c0_319, %c28_320, %c0_321, %c1_322] : memref<1x32x71x71xf32, #tpu.memory_space<vmem>>, vector<1x1x70x70xf32>
      %501 = vector.shape_cast %500 : vector<1x1x70x70xf32> to vector<70x70xf32>
      %502 = vector.broadcast %499 : f32 to vector<70x70xf32>
      %503 = arith.mulf %502, %501 : vector<70x70xf32>
      %504 = arith.addf %497, %503 : vector<70x70xf32>
      %c12_323 = arith.constant 12 : index
      %505 = arith.index_cast %arg8 : i32 to index
      %506 = memref.load %arg2[%c12_323, %505] : memref<18x32xf32, #tpu.memory_space<smem>>
      %c0_324 = arith.constant 0 : index
      %c2_325 = arith.constant 2 : index
      %c1_326 = arith.constant 1 : index
      %c0_327 = arith.constant 0 : index
      %507 = vector.load %arg1[%c0_324, %c2_325, %c1_326, %c0_327] : memref<1x32x71x71xf32, #tpu.memory_space<vmem>>, vector<1x1x70x70xf32>
      %508 = vector.shape_cast %507 : vector<1x1x70x70xf32> to vector<70x70xf32>
      %509 = vector.broadcast %506 : f32 to vector<70x70xf32>
      %510 = arith.mulf %509, %508 : vector<70x70xf32>
      %511 = arith.addf %504, %510 : vector<70x70xf32>
      %c13_328 = arith.constant 13 : index
      %512 = arith.index_cast %arg8 : i32 to index
      %513 = memref.load %arg2[%c13_328, %512] : memref<18x32xf32, #tpu.memory_space<smem>>
      %c0_329 = arith.constant 0 : index
      %c18_330 = arith.constant 18 : index
      %c1_331 = arith.constant 1 : index
      %c0_332 = arith.constant 0 : index
      %514 = vector.load %arg1[%c0_329, %c18_330, %c1_331, %c0_332] : memref<1x32x71x71xf32, #tpu.memory_space<vmem>>, vector<1x1x70x70xf32>
      %515 = vector.shape_cast %514 : vector<1x1x70x70xf32> to vector<70x70xf32>
      %516 = vector.broadcast %513 : f32 to vector<70x70xf32>
      %517 = arith.mulf %516, %515 : vector<70x70xf32>
      %518 = arith.addf %511, %517 : vector<70x70xf32>
      %c14_333 = arith.constant 14 : index
      %519 = arith.index_cast %arg8 : i32 to index
      %520 = memref.load %arg2[%c14_333, %519] : memref<18x32xf32, #tpu.memory_space<smem>>
      %c0_334 = arith.constant 0 : index
      %c3_335 = arith.constant 3 : index
      %c1_336 = arith.constant 1 : index
      %c0_337 = arith.constant 0 : index
      %521 = vector.load %arg1[%c0_334, %c3_335, %c1_336, %c0_337] : memref<1x32x71x71xf32, #tpu.memory_space<vmem>>, vector<1x1x70x70xf32>
      %522 = vector.shape_cast %521 : vector<1x1x70x70xf32> to vector<70x70xf32>
      %523 = vector.broadcast %520 : f32 to vector<70x70xf32>
      %524 = arith.mulf %523, %522 : vector<70x70xf32>
      %525 = arith.addf %518, %524 : vector<70x70xf32>
      %c15_338 = arith.constant 15 : index
      %526 = arith.index_cast %arg8 : i32 to index
      %527 = memref.load %arg2[%c15_338, %526] : memref<18x32xf32, #tpu.memory_space<smem>>
      %c0_339 = arith.constant 0 : index
      %c19_340 = arith.constant 19 : index
      %c1_341 = arith.constant 1 : index
      %c0_342 = arith.constant 0 : index
      %528 = vector.load %arg1[%c0_339, %c19_340, %c1_341, %c0_342] : memref<1x32x71x71xf32, #tpu.memory_space<vmem>>, vector<1x1x70x70xf32>
      %529 = vector.shape_cast %528 : vector<1x1x70x70xf32> to vector<70x70xf32>
      %530 = vector.broadcast %527 : f32 to vector<70x70xf32>
      %531 = arith.mulf %530, %529 : vector<70x70xf32>
      %532 = arith.addf %525, %531 : vector<70x70xf32>
      %c16_343 = arith.constant 16 : index
      %533 = arith.index_cast %arg8 : i32 to index
      %534 = memref.load %arg2[%c16_343, %533] : memref<18x32xf32, #tpu.memory_space<smem>>
      %c0_344 = arith.constant 0 : index
      %c0_345 = arith.constant 0 : index
      %c1_346 = arith.constant 1 : index
      %c1_347 = arith.constant 1 : index
      %535 = vector.load %arg1[%c0_344, %c0_345, %c1_346, %c1_347] : memref<1x32x71x71xf32, #tpu.memory_space<vmem>>, vector<1x1x70x70xf32>
      %536 = vector.shape_cast %535 : vector<1x1x70x70xf32> to vector<70x70xf32>
      %537 = vector.broadcast %534 : f32 to vector<70x70xf32>
      %538 = arith.mulf %537, %536 : vector<70x70xf32>
      %539 = arith.addf %532, %538 : vector<70x70xf32>
      %c17_348 = arith.constant 17 : index
      %540 = arith.index_cast %arg8 : i32 to index
      %541 = memref.load %arg2[%c17_348, %540] : memref<18x32xf32, #tpu.memory_space<smem>>
      %c0_349 = arith.constant 0 : index
      %c16_350 = arith.constant 16 : index
      %c1_351 = arith.constant 1 : index
      %c1_352 = arith.constant 1 : index
      %542 = vector.load %arg1[%c0_349, %c16_350, %c1_351, %c1_352] : memref<1x32x71x71xf32, #tpu.memory_space<vmem>>, vector<1x1x70x70xf32>
      %543 = vector.shape_cast %542 : vector<1x1x70x70xf32> to vector<70x70xf32>
      %544 = vector.broadcast %541 : f32 to vector<70x70xf32>
      %545 = arith.mulf %544, %543 : vector<70x70xf32>
      %546 = arith.addf %539, %545 : vector<70x70xf32>
      %cst_353 = arith.constant 0.000000e+00 : f32
      %547 = vector.broadcast %cst_353 : f32 to vector<70x70xf32>
      %548 = arith.maximumf %546, %547 : vector<70x70xf32>
      %c4_i32_354 = arith.constant 4 : i32
      %549 = arith.muli %arg8, %c4_i32_354 : i32
      %c2_i32_355 = arith.constant 2 : i32
      %550 = arith.addi %549, %c2_i32_355 : i32
      %c1_i32_356 = arith.constant 1 : i32
      %551 = arith.addi %550, %c1_i32_356 : i32
      %552 = arith.index_cast %551 : i32 to index
      %c0_357 = arith.constant 0 : index
      %c0_358 = arith.constant 0 : index
      %553 = vector.load %arg7[%552, %c0_357, %c0_358] : memref<128x70x70xf32, #tpu.memory_space<vmem>>, vector<1x70x70xf32>
      %554 = vector.shape_cast %553 : vector<1x70x70xf32> to vector<70x70xf32>
      %555 = vector.shape_cast %548 : vector<70x70xf32> to vector<1x70x70xf32>
      tpu.vector_store %arg7[%552, %c0_357, %c0_358], %555 {strides = array<i32>} : memref<128x70x70xf32, #tpu.memory_space<vmem>>, vector<1x70x70xf32>,
    }
    %c32_i32_0 = arith.constant 32 : i32
    %c0 = arith.constant 0 : index
    %1 = memref.load %arg5[%c0] : memref<1xf32, #tpu.memory_space<smem>>
    %2 = vector.broadcast %1 : f32 to vector<69x69xf32>
    %c0_i32_1 = arith.constant 0 : i32
    %c32_i32_2 = arith.constant 32 : i32
    %3 = arith.addi %c0_i32_1, %c32_i32_2 : i32
    %c1_i32_3 = arith.constant 1 : i32
    %4 = scf.for %arg8 = %c0_i32_1 to %3 step %c1_i32_3 iter_args(%arg9 = %2) -> (vector<69x69xf32>)  : i32 {
      %c0_8 = arith.constant 0 : index
      %10 = arith.index_cast %arg8 : i32 to index
      %11 = memref.load %arg4[%c0_8, %10] : memref<9x32xf32, #tpu.memory_space<smem>>
      %c4_i32 = arith.constant 4 : i32
      %12 = arith.muli %arg8, %c4_i32 : i32
      %c0_i32_9 = arith.constant 0 : i32
      %13 = arith.addi %12, %c0_i32_9 : i32
      %c0_i32_10 = arith.constant 0 : i32
      %14 = arith.addi %13, %c0_i32_10 : i32
      %15 = arith.index_cast %14 : i32 to index
      %c0_11 = arith.constant 0 : index
      %c0_12 = arith.constant 0 : index
      %16 = vector.load %arg7[%15, %c0_11, %c0_12] : memref<128x70x70xf32, #tpu.memory_space<vmem>>, vector<1x69x69xf32>
      %17 = vector.shape_cast %16 : vector<1x69x69xf32> to vector<69x69xf32>
      %18 = vector.broadcast %11 : f32 to vector<69x69xf32>
      %19 = arith.mulf %18, %17 : vector<69x69xf32>
      %20 = arith.addf %arg9, %19 : vector<69x69xf32>
      %c1 = arith.constant 1 : index
      %21 = arith.index_cast %arg8 : i32 to index
      %22 = memref.load %arg4[%c1, %21] : memref<9x32xf32, #tpu.memory_space<smem>>
      %c4_i32_13 = arith.constant 4 : i32
      %23 = arith.muli %arg8, %c4_i32_13 : i32
      %c0_i32_14 = arith.constant 0 : i32
      %24 = arith.addi %23, %c0_i32_14 : i32
      %c1_i32_15 = arith.constant 1 : i32
      %25 = arith.addi %24, %c1_i32_15 : i32
      %26 = arith.index_cast %25 : i32 to index
      %c0_16 = arith.constant 0 : index
      %c0_17 = arith.constant 0 : index
      %27 = vector.load %arg7[%26, %c0_16, %c0_17] : memref<128x70x70xf32, #tpu.memory_space<vmem>>, vector<1x69x69xf32>
      %28 = vector.shape_cast %27 : vector<1x69x69xf32> to vector<69x69xf32>
      %29 = vector.broadcast %22 : f32 to vector<69x69xf32>
      %30 = arith.mulf %29, %28 : vector<69x69xf32>
      %31 = arith.addf %20, %30 : vector<69x69xf32>
      %c2 = arith.constant 2 : index
      %32 = arith.index_cast %arg8 : i32 to index
      %33 = memref.load %arg4[%c2, %32] : memref<9x32xf32, #tpu.memory_space<smem>>
      %c4_i32_18 = arith.constant 4 : i32
      %34 = arith.muli %arg8, %c4_i32_18 : i32
      %c0_i32_19 = arith.constant 0 : i32
      %35 = arith.addi %34, %c0_i32_19 : i32
      %c0_i32_20 = arith.constant 0 : i32
      %36 = arith.addi %35, %c0_i32_20 : i32
      %37 = arith.index_cast %36 : i32 to index
      %c0_21 = arith.constant 0 : index
      %c1_22 = arith.constant 1 : index
      %38 = vector.load %arg7[%37, %c0_21, %c1_22] : memref<128x70x70xf32, #tpu.memory_space<vmem>>, vector<1x69x69xf32>
      %39 = vector.shape_cast %38 : vector<1x69x69xf32> to vector<69x69xf32>
      %40 = vector.broadcast %33 : f32 to vector<69x69xf32>
      %41 = arith.mulf %40, %39 : vector<69x69xf32>
      %42 = arith.addf %31, %41 : vector<69x69xf32>
      %c3 = arith.constant 3 : index
      %43 = arith.index_cast %arg8 : i32 to index
      %44 = memref.load %arg4[%c3, %43] : memref<9x32xf32, #tpu.memory_space<smem>>
      %c4_i32_23 = arith.constant 4 : i32
      %45 = arith.muli %arg8, %c4_i32_23 : i32
      %c2_i32 = arith.constant 2 : i32
      %46 = arith.addi %45, %c2_i32 : i32
      %c0_i32_24 = arith.constant 0 : i32
      %47 = arith.addi %46, %c0_i32_24 : i32
      %48 = arith.index_cast %47 : i32 to index
      %c0_25 = arith.constant 0 : index
      %c0_26 = arith.constant 0 : index
      %49 = vector.load %arg7[%48, %c0_25, %c0_26] : memref<128x70x70xf32, #tpu.memory_space<vmem>>, vector<1x69x69xf32>
      %50 = vector.shape_cast %49 : vector<1x69x69xf32> to vector<69x69xf32>
      %51 = vector.broadcast %44 : f32 to vector<69x69xf32>
      %52 = arith.mulf %51, %50 : vector<69x69xf32>
      %53 = arith.addf %42, %52 : vector<69x69xf32>
      %c4 = arith.constant 4 : index
      %54 = arith.index_cast %arg8 : i32 to index
      %55 = memref.load %arg4[%c4, %54] : memref<9x32xf32, #tpu.memory_space<smem>>
      %c4_i32_27 = arith.constant 4 : i32
      %56 = arith.muli %arg8, %c4_i32_27 : i32
      %c2_i32_28 = arith.constant 2 : i32
      %57 = arith.addi %56, %c2_i32_28 : i32
      %c1_i32_29 = arith.constant 1 : i32
      %58 = arith.addi %57, %c1_i32_29 : i32
      %59 = arith.index_cast %58 : i32 to index
      %c0_30 = arith.constant 0 : index
      %c0_31 = arith.constant 0 : index
      %60 = vector.load %arg7[%59, %c0_30, %c0_31] : memref<128x70x70xf32, #tpu.memory_space<vmem>>, vector<1x69x69xf32>
      %61 = vector.shape_cast %60 : vector<1x69x69xf32> to vector<69x69xf32>
      %62 = vector.broadcast %55 : f32 to vector<69x69xf32>
      %63 = arith.mulf %62, %61 : vector<69x69xf32>
      %64 = arith.addf %53, %63 : vector<69x69xf32>
      %c5 = arith.constant 5 : index
      %65 = arith.index_cast %arg8 : i32 to index
      %66 = memref.load %arg4[%c5, %65] : memref<9x32xf32, #tpu.memory_space<smem>>
      %c4_i32_32 = arith.constant 4 : i32
      %67 = arith.muli %arg8, %c4_i32_32 : i32
      %c2_i32_33 = arith.constant 2 : i32
      %68 = arith.addi %67, %c2_i32_33 : i32
      %c0_i32_34 = arith.constant 0 : i32
      %69 = arith.addi %68, %c0_i32_34 : i32
      %70 = arith.index_cast %69 : i32 to index
      %c0_35 = arith.constant 0 : index
      %c1_36 = arith.constant 1 : index
      %71 = vector.load %arg7[%70, %c0_35, %c1_36] : memref<128x70x70xf32, #tpu.memory_space<vmem>>, vector<1x69x69xf32>
      %72 = vector.shape_cast %71 : vector<1x69x69xf32> to vector<69x69xf32>
      %73 = vector.broadcast %66 : f32 to vector<69x69xf32>
      %74 = arith.mulf %73, %72 : vector<69x69xf32>
      %75 = arith.addf %64, %74 : vector<69x69xf32>
      %c6 = arith.constant 6 : index
      %76 = arith.index_cast %arg8 : i32 to index
      %77 = memref.load %arg4[%c6, %76] : memref<9x32xf32, #tpu.memory_space<smem>>
      %c4_i32_37 = arith.constant 4 : i32
      %78 = arith.muli %arg8, %c4_i32_37 : i32
      %c0_i32_38 = arith.constant 0 : i32
      %79 = arith.addi %78, %c0_i32_38 : i32
      %c0_i32_39 = arith.constant 0 : i32
      %80 = arith.addi %79, %c0_i32_39 : i32
      %81 = arith.index_cast %80 : i32 to index
      %c1_40 = arith.constant 1 : index
      %c0_41 = arith.constant 0 : index
      %82 = vector.load %arg7[%81, %c1_40, %c0_41] : memref<128x70x70xf32, #tpu.memory_space<vmem>>, vector<1x69x69xf32>
      %83 = vector.shape_cast %82 : vector<1x69x69xf32> to vector<69x69xf32>
      %84 = vector.broadcast %77 : f32 to vector<69x69xf32>
      %85 = arith.mulf %84, %83 : vector<69x69xf32>
      %86 = arith.addf %75, %85 : vector<69x69xf32>
      %c7 = arith.constant 7 : index
      %87 = arith.index_cast %arg8 : i32 to index
      %88 = memref.load %arg4[%c7, %87] : memref<9x32xf32, #tpu.memory_space<smem>>
      %c4_i32_42 = arith.constant 4 : i32
      %89 = arith.muli %arg8, %c4_i32_42 : i32
      %c0_i32_43 = arith.constant 0 : i32
      %90 = arith.addi %89, %c0_i32_43 : i32
      %c1_i32_44 = arith.constant 1 : i32
      %91 = arith.addi %90, %c1_i32_44 : i32
      %92 = arith.index_cast %91 : i32 to index
      %c1_45 = arith.constant 1 : index
      %c0_46 = arith.constant 0 : index
      %93 = vector.load %arg7[%92, %c1_45, %c0_46] : memref<128x70x70xf32, #tpu.memory_space<vmem>>, vector<1x69x69xf32>
      %94 = vector.shape_cast %93 : vector<1x69x69xf32> to vector<69x69xf32>
      %95 = vector.broadcast %88 : f32 to vector<69x69xf32>
      %96 = arith.mulf %95, %94 : vector<69x69xf32>
      %97 = arith.addf %86, %96 : vector<69x69xf32>
      %c8 = arith.constant 8 : index
      %98 = arith.index_cast %arg8 : i32 to index
      %99 = memref.load %arg4[%c8, %98] : memref<9x32xf32, #tpu.memory_space<smem>>
      %c4_i32_47 = arith.constant 4 : i32
      %100 = arith.muli %arg8, %c4_i32_47 : i32
      %c0_i32_48 = arith.constant 0 : i32
      %101 = arith.addi %100, %c0_i32_48 : i32
      %c0_i32_49 = arith.constant 0 : i32
      %102 = arith.addi %101, %c0_i32_49 : i32
      %103 = arith.index_cast %102 : i32 to index
      %c1_50 = arith.constant 1 : index
      %c1_51 = arith.constant 1 : index
      %104 = vector.load %arg7[%103, %c1_50, %c1_51] : memref<128x70x70xf32, #tpu.memory_space<vmem>>, vector<1x69x69xf32>
      %105 = vector.shape_cast %104 : vector<1x69x69xf32> to vector<69x69xf32>
      %106 = vector.broadcast %99 : f32 to vector<69x69xf32>
      %107 = arith.mulf %106, %105 : vector<69x69xf32>
      %108 = arith.addf %97, %107 : vector<69x69xf32>
      scf.yield %108 : vector<69x69xf32>
    }
    %c32_i32_4 = arith.constant 32 : i32
    %cst = arith.constant 0.000000e+00 : f32
    %5 = vector.broadcast %cst : f32 to vector<69x69xf32>
    %6 = arith.maximumf %4, %5 : vector<69x69xf32>
    %c0_5 = arith.constant 0 : index
    %c0_6 = arith.constant 0 : index
    %c0_7 = arith.constant 0 : index
    %7 = vector.load %arg6[%c0_5, %c0_6, %c0_7] : memref<1x69x69xf32, #tpu.memory_space<vmem>>, vector<1x69x69xf32>
    %8 = vector.shape_cast %7 : vector<1x69x69xf32> to vector<69x69xf32>
    %9 = vector.shape_cast %6 : vector<69x69xf32> to vector<1x69x69xf32>
    tpu.vector_store %arg6[%c0_5, %c0_6, %c0_7], %9 {strides = array<i32>} : memref<1x69x69xf32, #tpu.memory_space<vmem>>, vector<1x69x69xf32>,
    return
  }
  func.func @transform_0(%arg0: i32) -> (i32, i32, i32, i32) {
    %c0_i32 = arith.constant 0 : i32
    %c0_i32_0 = arith.constant 0 : i32
    %c0_i32_1 = arith.constant 0 : i32
    %c0_i32_2 = arith.constant 0 : i32
    return %arg0, %c0_i32, %c0_i32_0, %c0_i32_1 : i32, i32, i32, i32
  }
  func.func @transform_1(%arg0: i32) -> (i32, i32) {
    %c0_i32 = arith.constant 0 : i32
    %c0_i32_0 = arith.constant 0 : i32
    %c0_i32_1 = arith.constant 0 : i32
    return %c0_i32, %c0_i32_0 : i32, i32
  }
  func.func @transform_2(%arg0: i32) -> i32 {
    %c0_i32 = arith.constant 0 : i32
    %c0_i32_0 = arith.constant 0 : i32
    return %c0_i32 : i32
  }
  func.func @transform_3(%arg0: i32) -> (i32, i32) {
    %c0_i32 = arith.constant 0 : i32
    %c0_i32_0 = arith.constant 0 : i32
    %c0_i32_1 = arith.constant 0 : i32
    return %c0_i32, %c0_i32_0 : i32, i32
  }
  func.func @transform_4(%arg0: i32) -> i32 {
    %c0_i32 = arith.constant 0 : i32
    %c0_i32_0 = arith.constant 0 : i32
    return %c0_i32 : i32
  }
  func.func @transform_5(%arg0: i32) -> (i32, i32, i32) {
    %c0_i32 = arith.constant 0 : i32
    %c0_i32_0 = arith.constant 0 : i32
    %c0_i32_1 = arith.constant 0 : i32
    return %arg0, %c0_i32, %c0_i32_0 : i32, i32, i32
  }
}

module attributes {stable_mosaic.version = 11 : i64} {
  func.func @_head_kernel(%arg0: memref<2x4761xf32, #tpu.memory_space<vmem>>, %arg1: memref<2x1xf32, #tpu.memory_space<vmem>>, %arg2: memref<1x16xf32, #tpu.memory_space<vmem>>, %arg3: memref<1x16xf32, #tpu.memory_space<vmem>>, %arg4: memref<16x8xf32, #tpu.memory_space<vmem>>, %arg5: memref<1x8xf32, #tpu.memory_space<vmem>>, %arg6: memref<4761x256xbf16, #tpu.memory_space<vmem>>, %arg7: memref<8x256xf32, #tpu.memory_space<vmem>>, %arg8: memref<1x256xf32, #tpu.memory_space<vmem>>, %arg9: memref<256x128xf32, #tpu.memory_space<vmem>>, %arg10: memref<1x128xf32, #tpu.memory_space<vmem>>, %arg11: memref<128x3xf32, #tpu.memory_space<vmem>>, %arg12: memref<1x3xf32, #tpu.memory_space<vmem>>, %arg13: memref<2x3xf32, #tpu.memory_space<vmem>>) attributes {dimension_semantics = [], scalar_prefetch = 0 : i64, scratch_operands = 0 : i64, tpu.core_type = #tpu.core_type<tc>} {
    %c0 = arith.constant 0 : index
    %c0_0 = arith.constant 0 : index
    %0 = vector.load %arg1[%c0, %c0_0] : memref<2x1xf32, #tpu.memory_space<vmem>>, vector<2x1xf32>
    %c0_1 = arith.constant 0 : index
    %c0_2 = arith.constant 0 : index
    %1 = vector.load %arg2[%c0_1, %c0_2] : memref<1x16xf32, #tpu.memory_space<vmem>>, vector<1x16xf32>
    %2 = vector.broadcast %0 : vector<2x1xf32> to vector<2x16xf32>
    %3 = vector.broadcast %1 : vector<1x16xf32> to vector<2x16xf32>
    %4 = arith.mulf %2, %3 : vector<2x16xf32>
    %c0_3 = arith.constant 0 : index
    %c0_4 = arith.constant 0 : index
    %5 = vector.load %arg3[%c0_3, %c0_4] : memref<1x16xf32, #tpu.memory_space<vmem>>, vector<1x16xf32>
    %6 = vector.broadcast %5 : vector<1x16xf32> to vector<2x16xf32>
    %7 = arith.addf %4, %6 : vector<2x16xf32>
    %cst = arith.constant 0.000000e+00 : f32
    %8 = vector.broadcast %cst : f32 to vector<2x16xf32>
    %9 = arith.maximumf %7, %8 : vector<2x16xf32>
    %c0_5 = arith.constant 0 : index
    %c0_6 = arith.constant 0 : index
    %10 = vector.load %arg4[%c0_5, %c0_6] : memref<16x8xf32, #tpu.memory_space<vmem>>, vector<16x8xf32>
    %cst_7 = arith.constant dense<0.000000e+00> : vector<2x8xf32>
    %11 = tpu.matmul %9, %10, %cst_7 {dimension_numbers = #tpu.dot_dimension_numbers<[1], [0], [0], [1], [0, 0, 1, 1], [], []>} : vector<2x16xf32>, vector<16x8xf32>, vector<2x8xf32> -> vector<2x8xf32>
    %c0_8 = arith.constant 0 : index
    %c0_9 = arith.constant 0 : index
    %12 = vector.load %arg5[%c0_8, %c0_9] : memref<1x8xf32, #tpu.memory_space<vmem>>, vector<1x8xf32>
    %13 = vector.broadcast %12 : vector<1x8xf32> to vector<2x8xf32>
    %14 = arith.addf %11, %13 : vector<2x8xf32>
    %cst_10 = arith.constant 0.000000e+00 : f32
    %15 = vector.broadcast %cst_10 : f32 to vector<2x8xf32>
    %16 = arith.maximumf %14, %15 : vector<2x8xf32>
    %c0_11 = arith.constant 0 : index
    %c0_12 = arith.constant 0 : index
    %17 = vector.load %arg0[%c0_11, %c0_12] : memref<2x4761xf32, #tpu.memory_space<vmem>>, vector<2x4761xf32>
    %18 = arith.truncf %17 : vector<2x4761xf32> to vector<2x4761xbf16>
    %c0_13 = arith.constant 0 : index
    %c0_14 = arith.constant 0 : index
    %19 = vector.load %arg6[%c0_13, %c0_14] : memref<4761x256xbf16, #tpu.memory_space<vmem>>, vector<4761x256xbf16>
    %cst_15 = arith.constant dense<0.000000e+00> : vector<2x256xf32>
    %20 = tpu.matmul %18, %19, %cst_15 {dimension_numbers = #tpu.dot_dimension_numbers<[1], [0], [0], [1], [0, 0, 1, 1], [], []>} : vector<2x4761xbf16>, vector<4761x256xbf16>, vector<2x256xf32> -> vector<2x256xf32>
    %c0_16 = arith.constant 0 : index
    %c0_17 = arith.constant 0 : index
    %21 = vector.load %arg7[%c0_16, %c0_17] : memref<8x256xf32, #tpu.memory_space<vmem>>, vector<8x256xf32>
    %cst_18 = arith.constant dense<0.000000e+00> : vector<2x256xf32>
    %22 = tpu.matmul %16, %21, %cst_18 {dimension_numbers = #tpu.dot_dimension_numbers<[1], [0], [0], [1], [0, 0, 1, 1], [], []>} : vector<2x8xf32>, vector<8x256xf32>, vector<2x256xf32> -> vector<2x256xf32>
    %23 = arith.addf %20, %22 : vector<2x256xf32>
    %c0_19 = arith.constant 0 : index
    %c0_20 = arith.constant 0 : index
    %24 = vector.load %arg8[%c0_19, %c0_20] : memref<1x256xf32, #tpu.memory_space<vmem>>, vector<1x256xf32>
    %25 = vector.broadcast %24 : vector<1x256xf32> to vector<2x256xf32>
    %26 = arith.addf %23, %25 : vector<2x256xf32>
    %cst_21 = arith.constant 0.000000e+00 : f32
    %27 = vector.broadcast %cst_21 : f32 to vector<2x256xf32>
    %28 = arith.maximumf %26, %27 : vector<2x256xf32>
    %c0_22 = arith.constant 0 : index
    %c0_23 = arith.constant 0 : index
    %29 = vector.load %arg9[%c0_22, %c0_23] : memref<256x128xf32, #tpu.memory_space<vmem>>, vector<256x128xf32>
    %cst_24 = arith.constant dense<0.000000e+00> : vector<2x128xf32>
    %30 = tpu.matmul %28, %29, %cst_24 {dimension_numbers = #tpu.dot_dimension_numbers<[1], [0], [0], [1], [0, 0, 1, 1], [], []>} : vector<2x256xf32>, vector<256x128xf32>, vector<2x128xf32> -> vector<2x128xf32>
    %c0_25 = arith.constant 0 : index
    %c0_26 = arith.constant 0 : index
    %31 = vector.load %arg10[%c0_25, %c0_26] : memref<1x128xf32, #tpu.memory_space<vmem>>, vector<1x128xf32>
    %32 = vector.broadcast %31 : vector<1x128xf32> to vector<2x128xf32>
    %33 = arith.addf %30, %32 : vector<2x128xf32>
    %cst_27 = arith.constant 0.000000e+00 : f32
    %34 = vector.broadcast %cst_27 : f32 to vector<2x128xf32>
    %35 = arith.maximumf %33, %34 : vector<2x128xf32>
    %c0_28 = arith.constant 0 : index
    %c0_29 = arith.constant 0 : index
    %36 = vector.load %arg11[%c0_28, %c0_29] : memref<128x3xf32, #tpu.memory_space<vmem>>, vector<128x3xf32>
    %cst_30 = arith.constant dense<0.000000e+00> : vector<2x3xf32>
    %37 = tpu.matmul %35, %36, %cst_30 {dimension_numbers = #tpu.dot_dimension_numbers<[1], [0], [0], [1], [0, 0, 1, 1], [], []>} : vector<2x128xf32>, vector<128x3xf32>, vector<2x3xf32> -> vector<2x3xf32>
    %c0_31 = arith.constant 0 : index
    %c0_32 = arith.constant 0 : index
    %38 = vector.load %arg12[%c0_31, %c0_32] : memref<1x3xf32, #tpu.memory_space<vmem>>, vector<1x3xf32>
    %39 = vector.broadcast %38 : vector<1x3xf32> to vector<2x3xf32>
    %40 = arith.addf %37, %39 : vector<2x3xf32>
    %c0_33 = arith.constant 0 : index
    %c0_34 = arith.constant 0 : index
    %41 = vector.load %arg13[%c0_33, %c0_34] : memref<2x3xf32, #tpu.memory_space<vmem>>, vector<2x3xf32>
    tpu.vector_store %arg13[%c0_33, %c0_34], %40 {strides = array<i32>} : memref<2x3xf32, #tpu.memory_space<vmem>>, vector<2x3xf32>,
    return
  }
}

</mosaic_0001>

<bundles_post_ra>
// kernel: aggregation_forward.2
= control target key start
LH: loop header
LB: loop body
LE: loop exit
PB: predicated region body
PF: predicated region fallthrough
CT: control target
= control target key end

     0   :  { %s8561_s0 = inlined_call_operand.vmem [shape: f32[2,32,71,71], index: 0, kind: input, shape index: {}]   ;;  %s8562_s1 = inlined_call_operand.vmem [shape: f32[18,32], index: 1, kind: input, shape index: {}]   ;;  %s8563_s2 = inlined_call_operand.vmem [shape: f32[32], index: 2, kind: input, shape index: {}]   ;;  %s8564_s3 = inlined_call_operand.vmem [shape: f32[9,32], index: 3, kind: input, shape index: {}]   ;;  %s8565_s4 = inlined_call_operand.<no memory space> [shape: f32[1], index: 4, kind: input, shape index: {}]   ;;  %s8566_s5 = inlined_call_operand.vmem [shape: f32[2,69,69], index: 5, kind: output, shape index: {}]  }
   0x1   :  { %10 = sst [smem:[#allocation3]] %s8565_s4 }
   0x2   :  { %11 = vsyncpa [#allocation5], 0 }
   0x3   :  { %12 = vsyncpa [#allocation7], 0  ;;  %s4646_s20 = smov 0  }
   0x4 LB: > { %s183_s23 = sshll.u32 %s8563_s2, 4  ;;  %s3539_s24 = sadd.s32 4294967295, %s4560_s20   ;;  %s4560_s20 = sphi %s4646_s20, %s18_s20   ;;  %s184_s23 = int_to_ptr.vmem [resolvable:$true] %s183_s23 }
   0x5   : > { %p3541_p0 = scmp.ge.s32.totalorder %s4560_s20, 1  ;;  %p159_p1 = scmp.lt.s32.totalorder %s4560_s20, 3 }
   0x6   : > { %p4344_p2 = scmp.eq.s32.totalorder %s3539_s24, 0  ;;  %s170_s27 = sshll.u32 %s8562_s1, 4  ;;  %s171_s27 = int_to_ptr.vmem [resolvable:$true] %s170_s27 }
   0x7   : > { %p4657_p3 = pnand %p3541_p0, %p159_p1  ;;  %s192_s30 = sshll.u32 %s8564_s3, 4  ;;  %s193_s30 = int_to_ptr.vmem [resolvable:$true] %s192_s30 }
   0x8   : > { %s4606_s6 = smov [#allocation6]   ;;  %s4607_s7 = smov [#allocation4]  }
   0x9   : > { %p4334_p4 = pneg %p4657_p3  ;;  %s4608_s8 = smov 128  }
   0xa   : > { %s4609_s9 = smov 8   ;;  %s4610_s10 = smov [#allocation8]  }
   0xb   : > { %p4335_p5 = pnand %p4344_p2, %p4334_p4  ;;  %219 = sbr.rel (%p4657_p3) target bundleno = 807 (0x327), region = 40 }
   0xd   : > { %4340 = dma.vmem_to_smem (!%p4335_p5), %s184_s23, 16, %s4606_s6, [#allocation7]  }
   0xe   : > { %4337 = dma.vmem_to_smem (!%p4335_p5), %s171_s27, 384, %s4607_s7, [#allocation5], %s4608_s8, %s4608_s8, %s4609_s9  }
   0xf   : > { %4343 = dma.vmem_to_smem (!%p4335_p5), %s193_s30, 256, %s4610_s10, [#allocation7], %s4608_s8, %s4608_s8, %s4609_s9  }
  0x10   : > { %4551 = dma.done.wait (%p4344_p2), [#allocation5], 384  }
  0x11   : > { %4553 = vsyncadd (%p4344_p2), [#allocation5], 4294966912 }
  0x12   : > { %4555 = dma.done.wait (%p4344_p2), [#allocation7], 272  }
  0x13   : > { %4557 = vsyncadd (%p4344_p2), [#allocation7], 4294967024 }
  0x14   : > { %236 = sfence }
  0x15   : > { %p259_p6 = scmp.lt.s32.totalorder %s3539_s24, 1  ;;  %s4686_s19 = smov 0  }
  0x17   : > { %s9220_s24 = smov (!%p259_p6, %s3539_s24), 1 }
  0x18   : > { %s4320_s11 = smul.u32 2304, %s9220_s24 }
  0x19   : > { %s4321_s12 = smul.u32 72, %s9220_s24 }
  0x1a   : > { %s4679_s15 = scalar_lea.vmem %s8561_s0, %s4320_s11 }
  0x1b   : > { %s4684_s18 = scalar_lea.vmem %s8566_s5, %s4321_s12 }
  0x1c LB: >> { %s306_s21 = sshra.s32 %s4564_s19, 7  ;;  %s4693_s22 = sand.u32 127, %s4564_s19  ;;  %v1017_v0 = vld [vmem:[%s4679_s15 + $0x20] sm:$0xff]  ;;  %v1015_v1 = vld [vmem:[%s4679_s15 + $0x10] sm:$0xff]  ;;  %v1018_v7 = vld [vmem:[%s4679_s15 + $0x28] sm:$0xff]  ;;  %vm883_vm0 = vcmask 572416   ;;  %s4564_s19 = sphi %s4686_s19, %s274_s19  }
  0x1d   : >> { %s4695_s23 = sshll.u32 %s306_s21, 7  ;;  %v1013_v2 = vld [vmem:[%s4679_s15] sm:$0xff]  ;;  %s8631_s26 = smov 127   ;;  %v1016_v8 = vld [vmem:[%s4679_s15 + $0x18] sm:$0xff]  ;;  %v1014_v9 = vld [vmem:[%s4679_s15 + $0x8] sm:$0xff]  ;;  %vm892_vm1 = vcmask 570368  }
  0x1e   : >> { %s4277_s24 = sadd.s32 512, %s4695_s23  ;;  %s4279_s27 = sadd.s32 640, %s4695_s23  ;;  %v1021_v13 = vld [vmem:[%s4679_s15 + $0x40] sm:$0x3f]  ;;  %v1020_v14 = vld [vmem:[%s4679_s15 + $0x38] sm:$0xff]  ;;  %v1019_v15 = vld [vmem:[%s4679_s15 + $0x30] sm:$0xff] }
  0x1f   : >> { %s4699_s4 = sadd.s32 %s4277_s24, %s4693_s22  ;;  %s4713_s28 = sadd.s32 %s4279_s27, %s4693_s22  ;;  %v3762_v19 = vld [vmem:[%s4679_s15 + $0x490] sm:$0xff]  ;;  %v3761_v21 = vld [vmem:[%s4679_s15 + $0x488] sm:$0xff]  ;;  %v3760_v22 = vld [vmem:[%s4679_s15 + $0x480] sm:$0xff] }
  0x20   : >> { %s1012_s25 = sld [smem:[#allocation4 + %s4699_s4]]  ;;  %v3765_v26 = vld [vmem:[%s4679_s15 + $0x4a8] sm:$0xff]  ;;  %v3764_v27 = vld [vmem:[%s4679_s15 + $0x4a0] sm:$0xff]  ;;  %v3763_v28 = vld [vmem:[%s4679_s15 + $0x498] sm:$0xff]  ;;  %s4289_s30 = sadd.s32 1280, %s4695_s23 }
  0x21   : >> { %s1077_s29 = sld [smem:[#allocation4 + %s4713_s28]]  ;;  %s4736_s6 = sadd.s32 %s4289_s30, %s4693_s22  ;;  %v3768_v32 = vld [vmem:[%s4679_s15 + $0x4c0] sm:$0x3f]  ;;  %v3767_v33 = vld [vmem:[%s4679_s15 + $0x4b8] sm:$0xff]  ;;  %v3766_v34 = vld [vmem:[%s4679_s15 + $0x4b0] sm:$0xff] }
  0x22   : >> { %s1260_s7 = sld [smem:[#allocation4 + %s4736_s6]]  ;;  %v4749_v38 = vld [vmem:[%s4679_s15 + $0x130] sm:$0xff]  ;;  %v4752_v40 = vld [vmem:[%s4679_s15 + $0x128] sm:$0xff]  ;;  %v4755_v41 = vld [vmem:[%s4679_s15 + $0x120] sm:$0xff]  ;;  %s4291_s9 = sadd.s32 1408, %s4695_s23 }
  0x23   : >> { %8672 = vst [vmem:[#allocation11_spill] sm:$0xff] %v4749_v38  ;;  %v4764_v45 = vld [vmem:[%s4679_s15 + $0x148] sm:$0xff]  ;;  %s1775_s8 = sld [smem:[#allocation4 + %s4699_s4]]  ;;  %v4768_v46 = vld [vmem:[%s4679_s15 + $0x140] sm:$0xff]  ;;  %v4771_v47 = vld [vmem:[%s4679_s15 + $0x138] sm:$0xff]  ;;  %s4779_s11 = sadd.s32 %s4291_s9, %s4693_s22 }
  0x24   : >> { %8673 = vst [vmem:[#allocation12_spill] sm:$0xff] %v4752_v40  ;;  %s412_s10 = sld [smem:[#allocation4 + %s4699_s4]]  ;;  %v4786_v51 = vld [vmem:[%s4679_s15 + $0x2d0] sm:$0xff]  ;;  %v3813_v52 = vld [vmem:[%s4679_s15 + $0x160] sm:$0x3f]  ;;  %v4795_v53 = vld [vmem:[%s4679_s15 + $0x2d8] sm:$0xff] }
  0x25   : >> { %8674 = vst [vmem:[#allocation13_spill] sm:$0xff] %v4755_v41  ;;  %s4782_s12 = sld [smem:[#allocation4 + %s4713_s28]]  ;;  %v4803_v55 = vld [vmem:[%s4679_s15 + $0x158] sm:$0xff]  ;;  %v4806_v56 = vld [vmem:[%s4679_s15 + $0x150] sm:$0xff]  ;;  %v4809_v57 = vld [vmem:[%s4679_s15 + $0x2e0] sm:$0xff]  ;;  %s4271_s21 = sadd.s32 128, %s4695_s23 }
  0x26   : >> { %v1022_v3 = vstv %s1012_s25  ;;  %8675 = vst [vmem:[#allocation14_spill] sm:$0xff] %v4764_v45  ;;  %s4792_s13 = sld [smem:[#allocation4 + %s4779_s11]]  ;;  %v4812_v58 = vld [vmem:[%s4679_s15 + $0x2e8] sm:$0xff]  ;;  %v4815_v59 = vld [vmem:[%s4679_s15 + $0x2f0] sm:$0xff]  ;;  %v4818_v60 = vld [vmem:[%s4679_s15 + $0x2f8] sm:$0xff]  ;;  %s4273_s24 = sadd.s32 256, %s4695_s23 }
  0x27   : >> { %v1027_v4 = vmul.f32 %v1022_v3, %v1017_v0  ;;  %v1025_v5 = vmul.f32 %v1022_v3, %v1015_v1  ;;  %v1023_v6 = vmul.f32 %v1022_v3, %v1013_v2  ;;  %v1028_v10 = vmul.f32 %v1022_v3, %v1018_v7  ;;  %8676 = vst [vmem:[#allocation15_spill] sm:$0xff] %v4768_v46  ;;  %s4800_s14 = sld [smem:[#allocation4 + %s4713_s28]]  ;;  %v4821_v61 = vld [vmem:[%s4679_s15 + $0x300] sm:$0xff]  ;;  %v4824_v62 = vld [vmem:[%s4679_s15 + $0x308] sm:$0xff]  ;;  %v4830_v0 = vld [vmem:[%s4679_s15 + $0x90] sm:$0xff]  ;;  %s4275_s27 = sadd.s32 384, %s4695_s23 }
  0x28   : >> { %v1026_v11 = vmul.f32 %v1022_v3, %v1016_v8  ;;  %v1024_v12 = vmul.f32 %v1022_v3, %v1014_v9  ;;  %v1031_v16 = vmul.f32 %v1022_v3, %v1021_v13  ;;  %v1030_v17 = vmul.f32 %v1022_v3, %v1020_v14  ;;  %8677 = vst [vmem:[#allocation16_spill] sm:$0xff] %v4771_v47  ;;  %s4827_s16 = sld [smem:[#allocation4 + %s4736_s6]]  ;;  %v4833_v1 = vld [vmem:[%s4679_s15 + $0x98] sm:$0xff]  ;;  %v4836_v2 = vld [vmem:[%s4679_s15 + $0xa0] sm:$0xff]  ;;  %v4850_v8 = vld [vmem:[%s4679_s15 + $0xb0] sm:$0xff]  ;;  %s5069_s9 = sadd.s32 %s4275_s27, %s4693_s22 }
  0x29   : >> { %1049 = vrot.lane.b32.xlu2 %v1027_v4, %s8631_s26  ;;  %1045 = vrot.lane.b32.xlu1 %v1025_v5, %s8631_s26  ;;  %v1029_v18 = vmul.f32 %v1022_v3, %v1019_v15  ;;  %v1087_v20 = vstv %s1077_s29  ;;  %v1270_v39 = vstv %s1260_s7  ;;  %8679 = vst [vmem:[#allocation18_spill] sm:$0xff] %v4803_v55  ;;  %s4895_s17 = sld [smem:[#allocation4 + %s4736_s6]]  ;;  %s5040_s7 = sadd.s32 %s4271_s21, %s4693_s22 }
  0x2a   : >> { %1041 = vrot.lane.b32.xlu0 %v1023_v6, %s8631_s26  ;;  %v1090_v23 = vmul.f32 %v3762_v19, %v1087_v20  ;;  %v1089_v24 = vmul.f32 %v3761_v21, %v1087_v20  ;;  %v1088_v25 = vmul.f32 %v3760_v22, %v1087_v20  ;;  %v1093_v29 = vmul.f32 %v3765_v26, %v1087_v20  ;;  %v4839_v3 = vld [vmem:[%s4679_s15 + $0xa8] sm:$0xff]  ;;  %v4853_v9 = vld [vmem:[%s4679_s15 + $0xb8] sm:$0xff]  ;;  %v4886_v19 = vld [vmem:[%s4679_s15 + $0x510] sm:$0xff]  ;;  %s4977_s25 = sld [smem:[#allocation4 + %s4779_s11]]  ;;  %s4281_s27 = sadd.s32 768, %s4695_s23 }
  0x2b   : >> { %v1092_v30 = vmul.f32 %v3764_v27, %v1087_v20  ;;  %v1091_v31 = vmul.f32 %v3763_v28, %v1087_v20  ;;  %v1096_v35 = vmul.f32 %v3768_v32, %v1087_v20  ;;  %v1095_v36 = vmul.f32 %v3767_v33, %v1087_v20  ;;  %8680 = vst [vmem:[#allocation19_spill] sm:$0xff] %v4806_v56  ;;  %v3590_v15 = vld [vmem:[%s4679_s15 + $0xc8] sm:$0xff]  ;;  %v4914_v26 = vld [vmem:[%s4679_s15 + $0x520] sm:$0xff]  ;;  %v4920_v28 = vld [vmem:[%s4679_s15 + $0x530] sm:$0xff]  ;;  %s5012_s29 = sld [smem:[#allocation4 + %s4564_s19]] }
  0x2c   : >> { %v1094_v37 = vmul.f32 %v3766_v34, %v1087_v20  ;;  %v1273_v42 = vmul.f32 %v4749_v38, %v1270_v39  ;;  %v1272_v43 = vmul.f32 %v4752_v40, %v1270_v39  ;;  %v1271_v44 = vmul.f32 %v4755_v41, %v1270_v39  ;;  %v4889_v20 = vld [vmem:[%s4679_s15 + $0x518] sm:$0xff]  ;;  %v4917_v27 = vld [vmem:[%s4679_s15 + $0x528] sm:$0xff]  ;;  %s5037_s30 = sld [smem:[#allocation4 + %s4779_s11]] }
  0x2d   : >> { %v1276_v48 = vmul.f32 %v4764_v45, %v1270_v39  ;;  %v1275_v49 = vmul.f32 %v4768_v46, %v1270_v39  ;;  %v1274_v50 = vmul.f32 %v4771_v47, %v1270_v39  ;;  %v4797_v54 = vstv %s1775_s8  ;;  %s5066_s8 = sadd.s32 %s4273_s24, %s4693_s22  ;;  %v3994_v38 = vld [vmem:[%s4679_s15 + $0x8a8] sm:$0xff]  ;;  %v3746_v40 = vld [vmem:[%s4679_s15 + $0xf8] sm:$0xff] }
  0x2e   : >> { %8678 = vst [vmem:[#allocation17_spill] sm:$0xff] %v4797_v54  ;;  %v1279_v63 = vmul.f32 %v3813_v52, %v1270_v39  ;;  %v4843_v4 = vmul.f32 %v4786_v51, %v4797_v54  ;;  %v4845_v5 = vstv %s412_s10  ;;  %v1278_v6 = vmul.f32 %v4803_v55, %v1270_v39  ;;  %v4983_v52 = vld [vmem:[%s4679_s15 + $0x5a0] sm:$0xff]  ;;  %s5094_s10 = sld [smem:[#allocation6 + %s4564_s19]]  ;;  %v3660_v55 = vld [vmem:[%s4679_s15 + $0x668] sm:$0xff] }
  0x2f   : >> { %8682 = vst [vmem:[#allocation21_spill] sm:$0xff] %v4845_v5  ;;  %v1277_v7 = vmul.f32 %v4806_v56, %v1270_v39  ;;  %v4866_v13 = vmul.f32 %v4812_v58, %v4797_v54  ;;  %v4870_v14 = vmul.f32 %v4815_v59, %v4797_v54  ;;  %v4892_v21 = vstv %s4782_s12  ;;  %s4301_s12 = sadd.s32 2048, %s4695_s23  ;;  %v3992_v56 = vld [vmem:[%s4679_s15 + $0x898] sm:$0xff] }
  0x30   : >> { %8681 = vst [vmem:[#allocation20_spill] sm:$0xff] %v4843_v4  ;;  %v4899_v22 = vmul.f32 %v4830_v0, %v4845_v5  ;;  %v4934_v32 = vmul.f32 %v4850_v8, %v4845_v5  ;;  %v4938_v33 = vmul.f32 %v4853_v9, %v4845_v5  ;;  %v4955_v39 = vstv %s4792_s13  ;;  %s5116_s13 = sld [smem:[#allocation4 + %s5040_s7]] }
  0x31   : >> { %1051 = vrot.lane.b32.xlu2 %v1028_v10, %s8631_s26  ;;  %1047 = vrot.lane.b32.xlu1 %v1026_v11, %s8631_s26  ;;  %v3589_v10 = vld [vmem:[%s4679_s15 + $0xc0] sm:$0xff]  ;;  %v4858_v11 = vmul.f32 %v4795_v53, %v4797_v54  ;;  %8685 = vst [vmem:[#allocation24_spill] sm:$0xff] %v4866_v13  ;;  %v5029_v13 = vld [vmem:[%s4679_s15 + $0x1b0] sm:$0xff] }
  0x32   : >> { %1043 = vrot.lane.b32.xlu0 %v1024_v12, %s8631_s26  ;;  %v4862_v12 = vmul.f32 %v4809_v57, %v4797_v54  ;;  %8686 = vst [vmem:[#allocation25_spill] sm:$0xff] %v4870_v14  ;;  %v4941_v34 = vmul.f32 %v3589_v10, %v4845_v5  ;;  %v5026_v14 = vld [vmem:[%s4679_s15 + $0x788] sm:$0xff] }
  0x33   : >> { %8683 = vst [vmem:[#allocation22_spill] sm:$0xff] %v4858_v11 }
  0x34   : >> { %8684 = vst [vmem:[#allocation23_spill] sm:$0xff] %v4862_v12  ;;  %v5032_v12 = vstv %s4827_s16  ;;  %s5156_s16 = sld [smem:[#allocation4 + %s5069_s9]] }
  0x35   : >> { %8690 = vst [vmem:[#allocation29_spill] sm:$0xff] %v4892_v21 }
  0x36   : >> { %8691 = vst [vmem:[#allocation30_spill] sm:$0xff] %v4899_v22  ;;  %v5113_v22 = vstv %s4895_s17  ;;  %s5159_s17 = sadd.s32 %s4301_s12, %s4693_s22  ;;  %s4283_s12 = sadd.s32 896, %s4695_s23 }
  0x37   : >> { %8695 = vst [vmem:[#allocation34_spill] sm:$0xff] %v4934_v32  ;;  %v3978_v32 = vld [vmem:[%s4679_s15 + $0x3f0] sm:$0xff]  ;;  %s5187_s21 = sld [smem:[#allocation4 + %s5159_s17]] }
  0x38   : >> { %8696 = vst [vmem:[#allocation35_spill] sm:$0xff] %v4938_v33  ;;  %v3650_v33 = vld [vmem:[%s4679_s15 + $0x1e8] sm:$0xff]  ;;  %s5256_s24 = sld [smem:[#allocation4 + %s5159_s17]] }
  0x39   : >> { %1057 = vrot.lane.b32.xlu2 %v1031_v16, %s8631_s26  ;;  %1055 = vrot.lane.b32.xlu1 %v1030_v17, %s8631_s26  ;;  %v4875_v16 = vmul.f32 %v4818_v60, %v4797_v54  ;;  %v4879_v17 = vmul.f32 %v4821_v61, %v4797_v54  ;;  %8697 = vst [vmem:[#allocation36_spill] sm:$0xff] %v4941_v34  ;;  %v5088_v34 = vld [vmem:[%s4679_s15 + $0x1d8] sm:$0xff] }
  0x3a   : >> { %1053 = vrot.lane.b32.xlu0 %v1029_v18, %s8631_s26  ;;  %v4883_v18 = vmul.f32 %v4824_v62, %v4797_v54  ;;  %8704 = vst [vmem:[#allocation43_spill] sm:$0xff] %v4983_v52  ;;  %v5009_v54 = vld [vmem:[%s4679_s15 + $0x778] sm:$0xff] }
  0x3b   : >> { %8687 = vst [vmem:[#allocation26_spill] sm:$0xff] %v4875_v16  ;;  %v5023_v16 = vld [vmem:[%s4679_s15 + $0x780] sm:$0xff] }
  0x3c   : >> { %8688 = vst [vmem:[#allocation27_spill] sm:$0xff] %v4879_v17 }
  0x3d   : >> { %8689 = vst [vmem:[#allocation28_spill] sm:$0xff] %v4883_v18 }
  0x3e   : >> { %8711 = vst [vmem:[#allocation50_spill] sm:$0xff] %v5032_v12 }
  0x3f   : >> { %8721 = vst [vmem:[#allocation60_spill] sm:$0xff] %v5113_v22 }
  0x41   : >> { %1110 = vrot.lane.b32.xlu2 %v1090_v23, %s8631_s26  ;;  %1108 = vrot.lane.b32.xlu1 %v1089_v24, %s8631_s26  ;;  %v4903_v23 = vmul.f32 %v4833_v1, %v4845_v5  ;;  %v4907_v24 = vmul.f32 %v4836_v2, %v4845_v5 }
  0x42   : >> { %1106 = vrot.lane.b32.xlu0 %v1088_v25, %s8631_s26  ;;  %v4911_v25 = vmul.f32 %v4839_v3, %v4845_v5 }
  0x43   : >> { %8692 = vst [vmem:[#allocation31_spill] sm:$0xff] %v4903_v23  ;;  %v3982_v23 = vld [vmem:[%s4679_s15 + $0x410] sm:$0xff] }
  0x44   : >> { %8693 = vst [vmem:[#allocation32_spill] sm:$0xff] %v4907_v24  ;;  %v3981_v24 = vld [vmem:[%s4679_s15 + $0x408] sm:$0xff] }
  0x45   : >> { %8694 = vst [vmem:[#allocation33_spill] sm:$0xff] %v4911_v25  ;;  %v3980_v25 = vld [vmem:[%s4679_s15 + $0x400] sm:$0xff] }
  0x49   : >> { %1116 = vrot.lane.b32.xlu2 %v1093_v29, %s8631_s26  ;;  %1114 = vrot.lane.b32.xlu1 %v1092_v30, %s8631_s26  ;;  %v4923_v29 = vld [vmem:[%s4679_s15 + $0x538] sm:$0xff]  ;;  %v4926_v30 = vld [vmem:[%s4679_s15 + $0x750] sm:$0xff] }
  0x4a   : >> { %1112 = vrot.lane.b32.xlu0 %v1091_v31, %s8631_s26  ;;  %v4929_v31 = vld [vmem:[%s4679_s15 + $0x758] sm:$0xff]  ;;  %v5000_v10 = vmul.f32 %v4923_v29, %v4892_v21 }
  0x4c   : >> { %8708 = vst [vmem:[#allocation47_spill] sm:$0xff] %v5000_v10  ;;  %v3646_v10 = vld [vmem:[%s4679_s15 + $0x1c8] sm:$0xff] }
  0x51   : >> { %1122 = vrot.lane.b32.xlu2 %v1096_v35, %s8631_s26  ;;  %1120 = vrot.lane.b32.xlu1 %v1095_v36, %s8631_s26  ;;  %v4944_v35 = vld [vmem:[%s4679_s15 + $0x540] sm:$0xff]  ;;  %v4947_v36 = vld [vmem:[%s4679_s15 + $0x548] sm:$0xff] }
  0x52   : >> { %1118 = vrot.lane.b32.xlu0 %v1094_v37, %s8631_s26  ;;  %v4952_v37 = vld [vmem:[%s4679_s15 + $0x5b0] sm:$0xff]  ;;  %v5016_v18 = vmul.f32 %v4944_v35, %v4892_v21  ;;  %v5020_v17 = vmul.f32 %v4947_v36, %v4892_v21 }
  0x53   : >> { %8698 = vst [vmem:[#allocation37_spill] sm:$0xff] %v4952_v37  ;;  %v1338_v11 = vmul.f32 %v4952_v37, %v4955_v39  ;;  %v3983_v37 = vld [vmem:[%s4679_s15 + $0x418] sm:$0xff] }
  0x54   : >> { %8709 = vst [vmem:[#allocation48_spill] sm:$0xff] %v5016_v18  ;;  %v5054_v18 = vld [vmem:[%s4679_s15 + $0x1c0] sm:$0xff] }
  0x55   : >> { %8710 = vst [vmem:[#allocation49_spill] sm:$0xff] %v5020_v17  ;;  %v5051_v17 = vld [vmem:[%s4679_s15 + $0x1b8] sm:$0xff] }
  0x59   : >> { %1293 = vrot.lane.b32.xlu2 %v1273_v42, %s8631_s26  ;;  %1291 = vrot.lane.b32.xlu1 %v1272_v43, %s8631_s26  ;;  %v4960_v42 = vmul.f32 %v3590_v15, %v4845_v5  ;;  %v4964_v43 = vmul.f32 %v4886_v19, %v4892_v21  ;;  %v5003_v15 = vld [vmem:[%s4679_s15 + $0x768] sm:$0xff]  ;;  %v5006_v5 = vld [vmem:[%s4679_s15 + $0x770] sm:$0xff] }
  0x5a   : >> { %1289 = vrot.lane.b32.xlu0 %v1271_v44, %s8631_s26  ;;  %v4968_v44 = vmul.f32 %v4889_v20, %v4892_v21 }
  0x5b   : >> { %8699 = vst [vmem:[#allocation38_spill] sm:$0xff] %v4960_v42 }
  0x5c   : >> { %8700 = vst [vmem:[#allocation39_spill] sm:$0xff] %v4964_v43 }
  0x5d   : >> { %8701 = vst [vmem:[#allocation40_spill] sm:$0xff] %v4968_v44 }
  0x61   : >> { %1299 = vrot.lane.b32.xlu2 %v1276_v48, %s8631_s26  ;;  %1297 = vrot.lane.b32.xlu1 %v1275_v49, %s8631_s26  ;;  %v4971_v48 = vld [vmem:[%s4679_s15 + $0x760] sm:$0xff]  ;;  %v4974_v49 = vstv %s4800_s14  ;;  %s5137_s14 = sld [smem:[#allocation4 + %s5066_s8]] }
  0x62   : >> { %1295 = vrot.lane.b32.xlu0 %v1274_v50, %s8631_s26  ;;  %8702 = vst [vmem:[#allocation41_spill] sm:$0xff] %v4974_v49  ;;  %v4980_v50 = vld [vmem:[%s4679_s15 + $0x5a8] sm:$0xff]  ;;  %v5048_v4 = vmul.f32 %v4929_v31, %v4974_v49  ;;  %v5077_v44 = vmul.f32 %v5003_v15, %v4974_v49  ;;  %v5081_v43 = vmul.f32 %v5006_v5, %v4974_v49 }
  0x63   : >> { %8703 = vst [vmem:[#allocation42_spill] sm:$0xff] %v4980_v50  ;;  %v5085_v42 = vmul.f32 %v5009_v54, %v4974_v49 }
  0x64   : >> { %8713 = vst [vmem:[#allocation52_spill] sm:$0xff] %v5048_v4  ;;  %v5073_v4 = vmul.f32 %v4971_v48, %v4974_v49 }
  0x65   : >> { %8715 = vst [vmem:[#allocation54_spill] sm:$0xff] %v5077_v44  ;;  %v5099_v44 = vmul.f32 %v5023_v16, %v4974_v49 }
  0x66   : >> { %8714 = vst [vmem:[#allocation53_spill] sm:$0xff] %v5073_v4  ;;  %v3979_v4 = vld [vmem:[%s4679_s15 + $0x3f8] sm:$0xff] }
  0x67   : >> { %8716 = vst [vmem:[#allocation55_spill] sm:$0xff] %v5081_v43  ;;  %v5103_v43 = vmul.f32 %v5026_v14, %v4974_v49 }
  0x68   : >> { %8717 = vst [vmem:[#allocation56_spill] sm:$0xff] %v5085_v42  ;;  %v5107_v42 = vmul.f32 %v5029_v13, %v5032_v12 }
  0x69   : >> { %1305 = vrot.lane.b32.xlu2 %v1279_v63, %s8631_s26  ;;  %1303 = vrot.lane.b32.xlu1 %v1278_v6, %s8631_s26  ;;  %v4988_v63 = vmul.f32 %v4914_v26, %v4892_v21  ;;  %v4992_v6 = vmul.f32 %v4917_v27, %v4892_v21  ;;  %8718 = vst [vmem:[#allocation57_spill] sm:$0xff] %v5099_v44 }
  0x6a   : >> { %1301 = vrot.lane.b32.xlu0 %v1277_v7, %s8631_s26  ;;  %v4996_v7 = vmul.f32 %v4920_v28, %v4892_v21  ;;  %v5044_v21 = vmul.f32 %v4926_v30, %v4974_v49  ;;  %8719 = vst [vmem:[#allocation58_spill] sm:$0xff] %v5103_v43  ;;  %v5120_v44 = vmul.f32 %v5051_v17, %v5032_v12 }
  0x6b   : >> { %8705 = vst [vmem:[#allocation44_spill] sm:$0xff] %v4988_v63  ;;  %v1337_v63 = vmul.f32 %v4980_v50, %v4955_v39  ;;  %v5124_v49 = vmul.f32 %v5054_v18, %v5032_v12  ;;  %v5127_v43 = vmul.f32 %v3646_v10, %v5032_v12  ;;  %v3984_v50 = vld [vmem:[%s4679_s15 + $0x420] sm:$0xff] }
  0x6c   : >> { %8706 = vst [vmem:[#allocation45_spill] sm:$0xff] %v4992_v6  ;;  %v3649_v6 = vld [vmem:[%s4679_s15 + $0x1e0] sm:$0xff] }
  0x6d   : >> { %8707 = vst [vmem:[#allocation46_spill] sm:$0xff] %v4996_v7  ;;  %v3647_v7 = vld [vmem:[%s4679_s15 + $0x1d0] sm:$0xff]  ;;  %v5144_v10 = vmul.f32 %v3649_v6, %v5032_v12  ;;  %v5162_v6 = vmul.f32 %v3978_v32, %v5113_v22  ;;  %v5181_v32 = vld [vmem:[%s4679_s15 + $0x5c0] sm:$0xff] }
  0x6e   : >> { %8712 = vst [vmem:[#allocation51_spill] sm:$0xff] %v5044_v21  ;;  %v1336_v21 = vmul.f32 %v4983_v52, %v4955_v39  ;;  %v3985_v52 = vld [vmem:[%s4679_s15 + $0x428] sm:$0xff]  ;;  %v1340_v45 = vmul.f32 %v5181_v32, %v4955_v39 }
  0x6f   : >> { %8720 = vst [vmem:[#allocation59_spill] sm:$0xff] %v5107_v42  ;;  %v5130_v42 = vmul.f32 %v3647_v7, %v5032_v12  ;;  %v5147_v7 = vmul.f32 %v3650_v33, %v5032_v12  ;;  %v5165_v33 = vmul.f32 %v3979_v4, %v5113_v22  ;;  %v5190_v4 = vmul.f32 %v3981_v24, %v5113_v22  ;;  %v3987_v24 = vld [vmem:[%s4679_s15 + $0x870] sm:$0xff] }
  0x70   : >> { %8722 = vst [vmem:[#allocation61_spill] sm:$0xff] %v5120_v44  ;;  %v3659_v44 = vld [vmem:[%s4679_s15 + $0x660] sm:$0xff] }
  0x71   : >> { %8723 = vst [vmem:[#allocation62_spill] sm:$0xff] %v5124_v49  ;;  %1358 = vrot.lane.b32.xlu2 %v1338_v11, %s8631_s26  ;;  %v5141_v49 = vmul.f32 %v5088_v34, %v5032_v12  ;;  %1356 = vrot.lane.b32.xlu1 %v1337_v63, %s8631_s26  ;;  %v5153_v11 = vld [vmem:[%s4679_s15 + $0x5c8] sm:$0xff]  ;;  %v5168_v63 = vmul.f32 %v3980_v25, %v5113_v22  ;;  %v5174_v12 = vld [vmem:[%s4679_s15 + $0x638] sm:$0xff] }
  0x72   : >> { %8724 = vst [vmem:[#allocation63_spill] sm:$0xff] %v5127_v43  ;;  %1354 = vrot.lane.b32.xlu0 %v1336_v21, %s8631_s26  ;;  %v5171_v21 = vld [vmem:[%s4679_s15 + $0x630] sm:$0xff]  ;;  %v5193_v25 = vmul.f32 %v3982_v23, %v5113_v22  ;;  %v5205_v43 = vld [vmem:[%s4679_s15 + $0x658] sm:$0xff] }
  0x73   : >> { %8725 = vst [vmem:[#allocation64_spill] sm:$0xff] %v5130_v42  ;;  %v3656_v42 = vld [vmem:[%s4679_s15 + $0x648] sm:$0xff]  ;;  %v3988_v23 = vld [vmem:[%s4679_s15 + $0x878] sm:$0xff] }
  0x74   : >> { %8726 = vst [vmem:[#allocation65_spill] sm:$0xff] %v5141_v49  ;;  %v5202_v49 = vld [vmem:[%s4679_s15 + $0x640] sm:$0xff] }
  0x75   : >> { %8727 = vst [vmem:[#allocation66_spill] sm:$0xff] %v5144_v10  ;;  %v5178_v10 = vstv %s4977_s25  ;;  %s5291_s25 = sld [smem:[#allocation4 + %s5159_s17]] }
  0x76   : >> { %8728 = vst [vmem:[#allocation67_spill] sm:$0xff] %v5147_v7  ;;  %v3657_v7 = vld [vmem:[%s4679_s15 + $0x650] sm:$0xff]  ;;  %v5240_v46 = vmul.f32 %v5202_v49, %v5178_v10  ;;  %v5250_v47 = vmul.f32 %v5205_v43, %v5178_v10 }
  0x77   : >> { %8729 = vst [vmem:[#allocation68_spill] sm:$0xff] %v5153_v11 }
  0x78   : >> { %8730 = vst [vmem:[#allocation69_spill] sm:$0xff] %v5162_v6  ;;  %v5184_v6 = vld [vmem:[%s4679_s15 + $0x5b8] sm:$0xff] }
  0x79   : >> { %8731 = vst [vmem:[#allocation70_spill] sm:$0xff] %v5165_v33  ;;  %v5199_v33 = vmul.f32 %v3984_v50, %v5113_v22  ;;  %v1341_v50 = vmul.f32 %v5153_v11, %v4955_v39  ;;  %v1339_v11 = vmul.f32 %v5184_v6, %v4955_v39  ;;  %1362 = vrot.lane.b32.xlu1 %v1340_v45, %s8631_s26 }
  0x7a   : >> { %8732 = vst [vmem:[#allocation71_spill] sm:$0xff] %v5168_v63  ;;  %v5196_v63 = vmul.f32 %v3983_v37, %v5113_v22  ;;  %v5216_v37 = vstv %s5037_s30  ;;  %s5406_s30 = sadd.s32 %s4281_s27, %s4693_s22  ;;  %s4285_s27 = sadd.s32 1024, %s4695_s23 }
  0x7b   : >> { %8733 = vst [vmem:[#allocation72_spill] sm:$0xff] %v5178_v10  ;;  %v5277_v41 = vmul.f32 %v3988_v23, %v5216_v37  ;;  %1364 = vrot.lane.b32.xlu2 %v1341_v50, %s8631_s26  ;;  %1360 = vrot.lane.b32.xlu0 %v1339_v11, %s8631_s26  ;;  %v5305_v50 = vstv %s5156_s16  ;;  %s5465_s16 = sadd.s32 %s4283_s12, %s4693_s22  ;;  %s5575_s12 = sadd.s32 %s4285_s27, %s4693_s22 }
  0x7c   : >> { %8734 = vst [vmem:[#allocation73_spill] sm:$0xff] %v5181_v32  ;;  %v3993_v32 = vld [vmem:[%s4679_s15 + $0x8a0] sm:$0xff]  ;;  %s5779_s27 = sld [smem:[#allocation4 + %s5575_s12]] }
  0x7d   : >> { %8735 = vst [vmem:[#allocation74_spill] sm:$0xff] %v5184_v6  ;;  %v3822_v6 = vld [vmem:[%s4679_s15 + $0x5e0] sm:$0x3f] }
  0x7e   : >> { %8736 = vst [vmem:[#allocation75_spill] sm:$0xff] %v5190_v4  ;;  %v5211_v4 = vmul.f32 %v3985_v52, %v5113_v22  ;;  %v5229_v52 = vmul.f32 %v5174_v12, %v5178_v10  ;;  %v3990_v22 = vld [vmem:[%s4679_s15 + $0x888] sm:$0xff]  ;;  %v1344_v45 = vmul.f32 %v3822_v6, %v4955_v39 }
  0x7f   : >> { %8737 = vst [vmem:[#allocation76_spill] sm:$0xff] %v5193_v25  ;;  %v3989_v25 = vld [vmem:[%s4679_s15 + $0x880] sm:$0xff] }
  0x80   : >> { %8738 = vst [vmem:[#allocation77_spill] sm:$0xff] %v5196_v63  ;;  %v5225_v63 = vmul.f32 %v5171_v21, %v5178_v10 }
  0x81   : >> { %8739 = vst [vmem:[#allocation78_spill] sm:$0xff] %v5199_v33  ;;  %v5221_v33 = vstv %s5012_s29  ;;  %s4303_s29 = sadd.s32 2176, %s4695_s23 }
  0x82   : >> { %8740 = vst [vmem:[#allocation79_spill] sm:$0xff] %v5211_v4  ;;  %v3991_v4 = vld [vmem:[%s4679_s15 + $0x890] sm:$0xff]  ;;  %v910_v6 = vmul.f32 %v4853_v9, %v5221_v33 }
  0x83   : >> { %8741 = vst [vmem:[#allocation80_spill] sm:$0xff] %v5216_v37  ;;  %v5297_v23 = vmul.f32 %v3991_v4, %v5216_v37  ;;  %v5317_v4 = vstv %s5187_s21  ;;  %1370 = vrot.lane.b32.xlu2 %v1344_v45, %s8631_s26  ;;  %v4025_v45 = vld [vmem:[%s4679_s15 + $0xa1] sm:$0xff] }
  0x84   : >> { %8742 = vst [vmem:[#allocation81_spill] sm:$0xff] %v5225_v63  ;;  %v5243_v63 = vmul.f32 %v3656_v42, %v5178_v10  ;;  %v5262_v42 = vmul.f32 %v3660_v55, %v5178_v10  ;;  %v5280_v55 = vmul.f32 %v3989_v25, %v5216_v37  ;;  %v5302_v25 = vstv %s5137_s14 }
  0x85   : >> { %8743 = vst [vmem:[#allocation82_spill] sm:$0xff] %v5229_v52  ;;  %v5246_v52 = vmul.f32 %v3657_v7, %v5178_v10  ;;  %v5265_v7 = vmul.f32 %v3987_v24, %v5216_v37  ;;  %v5285_v24 = vstv %s5094_s10  ;;  %v5352_v9 = vmul.f32 %v4815_v59, %v5317_v4  ;;  %s5419_s10 = sadd.s32 %s4303_s29, %s4693_s22  ;;  %s4287_s29 = sadd.s32 1152, %s4695_s23 }
  0x86   : >> { %8744 = vst [vmem:[#allocation83_spill] sm:$0xff] %v5240_v46  ;;  %v5259_v46 = vmul.f32 %v3659_v44, %v5178_v10  ;;  %v3755_v44 = vld [vmem:[%s4679_s15 + $0x578] sm:$0xff]  ;;  %v5288_v10 = vstv %s5116_s13  ;;  %v5372_v59 = vmul.f32 %v4818_v60, %v5317_v4  ;;  %s5439_s13 = sld [smem:[#allocation4 + %s5406_s30]] }
  0x87   : >> { %8745 = vst [vmem:[#allocation84_spill] sm:$0xff] %v5243_v63  ;;  %v909_v63 = vmul.f32 %v4850_v8, %v5221_v33  ;;  %v5294_v8 = vmul.f32 %v3990_v22, %v5216_v37  ;;  %v5314_v22 = vmul.f32 %v3994_v38, %v5216_v37  ;;  %v4023_v60 = vld [vmem:[%s4679_s15 + $0x91] sm:$0xff]  ;;  %s5457_s14 = sld [smem:[#allocation4 + %s5419_s10]] }
  0x88   : >> { %8746 = vst [vmem:[#allocation85_spill] sm:$0xff] %v5246_v52  ;;  %v5268_v52 = vld [vmem:[%s4679_s15 + $0x5d8] sm:$0xff]  ;;  %s5476_s21 = sld [smem:[#allocation4 + %s5419_s10]] }
  0x89   : >> { %8747 = vst [vmem:[#allocation86_spill] sm:$0xff] %v5250_v47  ;;  %v5271_v47 = vld [vmem:[%s4679_s15 + $0x5d0] sm:$0xff]  ;;  %v1343_v11 = vmul.f32 %v5268_v52, %v4955_v39 }
  0x8a   : >> { %8748 = vst [vmem:[#allocation87_spill] sm:$0xff] %v5259_v46  ;;  %v1342_v38 = vmul.f32 %v5271_v47, %v4955_v39  ;;  %v5344_v39 = vmul.f32 %v4809_v57, %v5317_v4  ;;  %v3744_v46 = vld [vmem:[%s4679_s15 + $0xe8] sm:$0xff] }
  0x8b   : >> { %8749 = vst [vmem:[#allocation88_spill] sm:$0xff] %v5262_v42  ;;  %1368 = vrot.lane.b32.xlu1 %v1343_v11, %s8631_s26  ;;  %v4026_v11 = vld [vmem:[%s4679_s15 + $0xa9] sm:$0xff]  ;;  %v3750_v42 = vld [vmem:[%s4679_s15 + $0x118] sm:$0x3f] }
  0x8c   : >> { %8750 = vst [vmem:[#allocation89_spill] sm:$0xff] %v5265_v7  ;;  %1366 = vrot.lane.b32.xlu0 %v1342_v38, %s8631_s26  ;;  %v4027_v38 = vld [vmem:[%s4679_s15 + $0xb1] sm:$0xff] }
  0x8d   : >> { %8751 = vst [vmem:[#allocation90_spill] sm:$0xff] %v5268_v52 }
  0x8e   : >> { %8752 = vst [vmem:[#allocation91_spill] sm:$0xff] %v5277_v41  ;;  %v5311_v41 = vmul.f32 %v3993_v32, %v5216_v37  ;;  %v938_v32 = vmul.f32 %v4920_v28, %v5288_v10  ;;  %v5340_v28 = vmul.f32 %v4795_v53, %v5317_v4  ;;  %v5361_v53 = vld [vmem:[%s4679_s15 + $0x248] sm:$0xff] }
  0x8f   : >> { %8753 = vst [vmem:[#allocation92_spill] sm:$0xff] %v5280_v55  ;;  %v5308_v55 = vmul.f32 %v3992_v56, %v5216_v37  ;;  %v918_v56 = vadd.f32 %v909_v63, %v5285_v24  ;;  %v968_v37 = vmul.f32 %v3746_v40, %v5302_v25  ;;  %v5336_v63 = vmul.f32 %v4786_v51, %v5317_v4  ;;  %v5355_v51 = vld [vmem:[%s4679_s15 + $0x250] sm:$0xff] }
  0x90   : >> { %8754 = vst [vmem:[#allocation93_spill] sm:$0xff] %v5285_v24  ;;  %v5348_v40 = vmul.f32 %v4812_v58, %v5317_v4  ;;  %v907_v58 = vmul.f32 %v4836_v2, %v5221_v33  ;;  %v4024_v2 = vld [vmem:[%s4679_s15 + $0x99] sm:$0xff] }
  0x91   : >> { %8755 = vst [vmem:[#allocation94_spill] sm:$0xff] %v5294_v8 }
  0x92   : >> { %8756 = vst [vmem:[#allocation95_spill] sm:$0xff] %v5297_v23  ;;  %v936_v23 = vmul.f32 %v4914_v26, %v5288_v10  ;;  %v4029_v26 = vld [vmem:[%s4679_s15 + $0xc1] sm:$0xff] }
  0x93   : >> { %8757 = vst [vmem:[#allocation96_spill] sm:$0xff] %v5308_v55  ;;  %v916_v55 = vadd.f32 %v907_v58, %v5285_v24 }
  0x94   : >> { %8758 = vst [vmem:[#allocation97_spill] sm:$0xff] %v5311_v41  ;;  %v3732_v41 = vld [vmem:[%s4679_s15 + $0xd0] sm:$0x3f] }
  0x95   : >> { %8759 = vst [vmem:[#allocation98_spill] sm:$0xff] %v5314_v22  ;;  %v5330_v22 = vmul.f32 %v3755_v44, %v5305_v50  ;;  %v5358_v44 = vstv %s5256_s24  ;;  %v913_v57 = vmul.f32 %v3732_v41, %v5221_v33  ;;  %v5385_v41 = vmul.f32 %v4824_v62, %v5317_v4  ;;  %s5500_s24 = sld [smem:[#allocation4 + %s5465_s16]] }
  0x96   : >> { %8760 = vst [vmem:[#allocation99_spill] sm:$0xff] %v5317_v4  ;;  %v1521_v62 = vmul.f32 %v5355_v51, %v5358_v44 }
  0x97   : >> { %8761 = vst [vmem:[#allocation100_spill] sm:$0xff] %v5336_v63  ;;  %v905_v63 = vmul.f32 %v4830_v0, %v5221_v33  ;;  %v939_v0 = vmul.f32 %v4923_v29, %v5288_v10  ;;  %v5408_v29 = vpop.permute.xlu2 %1049 }
  0x98   : >> { %8762 = vst [vmem:[#allocation101_spill] sm:$0xff] %v5340_v28  ;;  %v5364_v28 = vld [vmem:[%s4679_s15 + $0x240] sm:$0xff]  ;;  %1541 = vrot.lane.b32.xlu2 %v1521_v62, %s8631_s26 }
  0x99   : >> { %8763 = vst [vmem:[#allocation102_spill] sm:$0xff] %v5344_v39  ;;  %v3741_v39 = vld [vmem:[%s4679_s15 + $0x550] sm:$0x3f]  ;;  %v3867_v62 = vld [vmem:[%s4679_s15 + $0x280] sm:$0x3f] }
  0x9a   : >> { %8764 = vst [vmem:[#allocation103_spill] sm:$0xff] %v5348_v40  ;;  %v947_v40 = vadd.f32 %v938_v32, %v918_v56  ;;  %v919_v56 = vadd.f32 %v910_v6, %v5285_v24  ;;  %v1520_v32 = vmul.f32 %v5361_v53, %v5358_v44  ;;  %v1519_v6 = vmul.f32 %v5364_v28, %v5358_v44 }
  0x9b   : >> { %8765 = vst [vmem:[#allocation104_spill] sm:$0xff] %v5352_v9  ;;  %v5376_v9 = vmul.f32 %v4821_v61, %v5317_v4  ;;  %v5390_v61 = vstv %s5291_s25  ;;  %v3747_v4 = vld [vmem:[%s4679_s15 + $0x100] sm:$0xff]  ;;  %s5520_s25 = sld [smem:[#allocation4 + %s5419_s10]] }
  0x9c   : >> { %8766 = vst [vmem:[#allocation105_spill] sm:$0xff] %v5372_v59  ;;  %v942_v59 = vmul.f32 %v3741_v39, %v5288_v10  ;;  %v977_v8 = vadd.f32 %v968_v37, %v947_v40  ;;  %v5422_v7 = vmul.f32 %v4023_v60, %v5390_v61  ;;  %v914_v39 = vadd.f32 %v905_v63, %v5285_v24  ;;  %v3742_v63 = vld [vmem:[%s4679_s15 + $0xd8] sm:$0xff] }
  0x9d   : >> { %8767 = vst [vmem:[#allocation106_spill] sm:$0xff] %v5376_v9  ;;  %v922_v9 = vadd.f32 %v913_v57, %v5285_v24  ;;  %v934_v57 = vmul.f32 %v4886_v19, %v5288_v10  ;;  %v5432_v58 = vmul.f32 %v4024_v2, %v5390_v61  ;;  %v5435_v37 = vmul.f32 %v4025_v45, %v5390_v61  ;;  %v3756_v45 = vld [vmem:[%s4679_s15 + $0x580] sm:$0xff] }
  0x9e   : >> { %8768 = vst [vmem:[#allocation107_spill] sm:$0xff] %v5385_v41  ;;  %v4028_v41 = vld [vmem:[%s4679_s15 + $0xb9] sm:$0xff]  ;;  %v948_v40 = vadd.f32 %v939_v0, %v919_v56  ;;  %v969_v60 = vmul.f32 %v3747_v4, %v5302_v25  ;;  %v5444_v19 = vmul.f32 %v4026_v11, %v5390_v61  ;;  %v5447_v52 = vmul.f32 %v4027_v38, %v5390_v61  ;;  %v5454_v56 = vld [vmem:[%s4679_s15 + $0x268] sm:$0xff] }
  0x9f   : >> { %8769 = vst [vmem:[#allocation108_spill] sm:$0xff] %v5390_v61  ;;  %v5450_v2 = vmul.f32 %v4028_v41, %v5390_v61  ;;  %v908_v4 = vmul.f32 %v4839_v3, %v5221_v33  ;;  %v3759_v0 = vld [vmem:[%s4679_s15 + $0x598] sm:$0x3f]  ;;  %v972_v11 = vmul.f32 %v3750_v42, %v5302_v25  ;;  %v945_v38 = vadd.f32 %v936_v23, %v916_v55  ;;  %v3753_v3 = vld [vmem:[%s4679_s15 + $0x568] sm:$0xff] }
  0xa0   : >> { %8770 = vst [vmem:[#allocation109_spill] sm:$0xff] %v5422_v7  ;;  %v4030_v7 = vld [vmem:[%s4679_s15 + $0xc9] sm:$0xff]  ;;  %v966_v41 = vmul.f32 %v3744_v46, %v5302_v25  ;;  %v964_v42 = vmul.f32 %v3742_v63, %v5302_v25  ;;  %v978_v46 = vadd.f32 %v969_v60, %v948_v40  ;;  %v1524_v23 = vmul.f32 %v5454_v56, %v5358_v44  ;;  %v5505_v60 = vpop.permute.xlu2 %1051 }
  0xa1   : >> { %8771 = vst [vmem:[#allocation110_spill] sm:$0xff] %v5432_v58  ;;  %v5479_v55 = vmul.f32 %v4030_v7, %v5390_v61  ;;  %1539 = vrot.lane.b32.xlu1 %v1520_v32, %s8631_s26  ;;  %1537 = vrot.lane.b32.xlu0 %v1519_v6, %s8631_s26  ;;  %v1002_v7 = vmul.f32 %v3759_v0, %v5305_v50  ;;  %v5508_v6 = vld [vmem:[%s4679_s15 + $0x270] sm:$0xff] }
  0xa2   : >> { %8772 = vst [vmem:[#allocation111_spill] sm:$0xff] %v5435_v37  ;;  %v951_v37 = vadd.f32 %v942_v59, %v922_v9  ;;  %v943_v9 = vadd.f32 %v934_v57, %v914_v39  ;;  %v5489_v59 = vld [vmem:[%s4679_s15 + $0x258] sm:$0xff]  ;;  %v937_v40 = vmul.f32 %v4917_v27, %v5288_v10  ;;  %v975_v63 = vadd.f32 %v966_v41, %v945_v38  ;;  %v3745_v0 = vld [vmem:[%s4679_s15 + $0xf0] sm:$0xff] }
  0xa3   : >> { %8773 = vst [vmem:[#allocation112_spill] sm:$0xff] %v5444_v19  ;;  %v3751_v39 = vld [vmem:[%s4679_s15 + $0x558] sm:$0xff]  ;;  %v5525_v41 = vmul.f32 %v3867_v62, %v5358_v44  ;;  %v5548_v62 = vld [vmem:[%s4679_s15 + $0x6c8] sm:$0xff]  ;;  %v3730_v19 = vld [vmem:[%s4679_s15 + $0xc0] sm:$0xff]  ;;  %1547 = vrot.lane.b32.xlu2 %v1524_v23, %s8631_s26 }
  0xa4   : >> { %8774 = vst [vmem:[#allocation113_spill] sm:$0xff] %v5447_v52  ;;  %v5471_v52 = vmul.f32 %v4029_v26, %v5390_v61  ;;  %v5497_v57 = vld [vmem:[%s4679_s15 + $0x278] sm:$0xff]  ;;  %v917_v26 = vadd.f32 %v908_v4, %v5285_v24  ;;  %v981_v32 = vadd.f32 %v972_v11, %v951_v37  ;;  %v906_v4 = vmul.f32 %v4833_v1, %v5221_v33 }
  0xa5   : >> { %8775 = vst [vmem:[#allocation114_spill] sm:$0xff] %v5450_v2  ;;  %v5468_v2 = vadd.f32 %v5330_v22, %v977_v8  ;;  %v999_v8 = vmul.f32 %v3756_v45, %v5305_v50  ;;  %v5486_v22 = vld [vmem:[%s4679_s15 + $0x260] sm:$0xff]  ;;  %v996_v45 = vmul.f32 %v3753_v3, %v5305_v50  ;;  %v1522_v37 = vmul.f32 %v5489_v59, %v5358_v44 }
  0xa6   : >> { %8776 = vst [vmem:[#allocation115_spill] sm:$0xff] %v5454_v56  ;;  %v1523_v27 = vmul.f32 %v5486_v22, %v5358_v44  ;;  %v973_v11 = vadd.f32 %v964_v42, %v943_v9  ;;  %v994_v61 = vmul.f32 %v3751_v39, %v5305_v50  ;;  %v5529_v1 = vmul.f32 %v5497_v57, %v5358_v44  ;;  %v3743_v9 = vld [vmem:[%s4679_s15 + $0xe0] sm:$0xff]  ;;  %v3731_v42 = vld [vmem:[%s4679_s15 + $0xc8] sm:$0xff] }
  0xa7   : >> { %8777 = vst [vmem:[#allocation116_spill] sm:$0xff] %v5471_v52  ;;  %v5522_v38 = vadd.f32 %v999_v8, %v978_v46  ;;  %v5532_v3 = vstv %s5439_s13  ;;  %v5539_v39 = vmul.f32 %v5508_v6, %v5358_v44  ;;  %v5542_v46 = vld [vmem:[%s4679_s15 + $0x6d0] sm:$0xff]  ;;  %v5545_v8 = vstv %s5457_s14  ;;  %v5558_v44 = vld [vmem:[%s4679_s15 + $0x6c0] sm:$0xff]  ;;  %s5589_s13 = sadd.s32 %s4287_s29, %s4693_s22  ;;  %s5617_s14 = sld [smem:[#allocation4 + %s5575_s12]] }
  0xa8   : >> { %8778 = vst [vmem:[#allocation117_spill] sm:$0xff] %v5479_v55  ;;  %v946_v55 = vadd.f32 %v937_v40, %v917_v26  ;;  %v967_v52 = vmul.f32 %v3745_v0, %v5302_v25  ;;  %v5553_v58 = vadd.f32 %v1002_v7, %v981_v32  ;;  %v915_v56 = vadd.f32 %v906_v4, %v5285_v24  ;;  %s5793_s29 = sld [smem:[#allocation4 + %s5589_s13]] }
  0xa9   : >> { %8779 = vst [vmem:[#allocation118_spill] sm:$0xff] %v5486_v22  ;;  %v935_v22 = vmul.f32 %v4889_v20, %v5288_v10  ;;  %v5566_v26 = vmul.f32 %v5054_v18, %v5532_v3  ;;  %v5568_v40 = vadd.f32 %v994_v61, %v973_v11  ;;  %v5571_v7 = vstv %s5476_s21  ;;  %1545 = vrot.lane.b32.xlu1 %v1523_v27, %s8631_s26  ;;  %v4034_v11 = vld [vmem:[%s4679_s15 + $0x521] sm:$0xff]  ;;  %s5633_s21 = sld [smem:[#allocation4 + %s5589_s13]] }
  0xaa   : >> { %8780 = vst [vmem:[#allocation119_spill] sm:$0xff] %v5497_v57  ;;  %v5555_v57 = vadd.f32 %v996_v45, %v975_v63  ;;  %v912_v32 = vmul.f32 %v3731_v42, %v5221_v33  ;;  %v5580_v63 = vmul.f32 %v5542_v46, %v5545_v8  ;;  %v5584_v20 = vmul.f32 %v5548_v62, %v5545_v8 }
  0xab   : >> { %8781 = vst [vmem:[#allocation120_spill] sm:$0xff] %v5508_v6  ;;  %v3754_v6 = vld [vmem:[%s4679_s15 + $0x570] sm:$0xff]  ;;  %v965_v18 = vmul.f32 %v3743_v9, %v5302_v25  ;;  %v911_v61 = vmul.f32 %v3730_v19, %v5221_v33  ;;  %1543 = vrot.lane.b32.xlu0 %v1522_v37, %s8631_s26  ;;  %v5595_v23 = vmul.f32 %v5558_v44, %v5545_v8  ;;  %v5598_v45 = vstv %s5500_s24  ;;  %v5601_v19 = vpop.permute.xlu2 %1057  ;;  %s5698_s24 = sld [smem:[#allocation4 + %s4699_s4]] }
  0xac   : >> { %8782 = vst [vmem:[#allocation121_spill] sm:$0xff] %v5532_v3  ;;  %v976_v0 = vadd.f32 %v967_v52, %v946_v55  ;;  %v997_v33 = vmul.f32 %v3754_v6, %v5305_v50  ;;  %v5605_v4 = vmul.f32 %v4926_v30, %v5571_v7  ;;  %v5609_v27 = vmul.f32 %v4929_v31, %v5571_v7  ;;  %v4032_v52 = vld [vmem:[%s4679_s15 + $0x511] sm:$0xff]  ;;  %v4033_v30 = vld [vmem:[%s4679_s15 + $0x519] sm:$0xff]  ;;  %v4035_v9 = vld [vmem:[%s4679_s15 + $0x529] sm:$0xff]  ;;  %s5721_s4 = sld [smem:[#allocation4 + %s5406_s30]] }
  0xad   : >> { %8783 = vst [vmem:[#allocation122_spill] sm:$0xff] %v5542_v46  ;;  %v5613_v37 = vmul.f32 %v4971_v48, %v5571_v7  ;;  %v944_v55 = vadd.f32 %v935_v22, %v915_v56  ;;  %v5621_v6 = vmul.f32 %v5003_v15, %v5571_v7  ;;  %v5627_v31 = vstv %s5520_s25  ;;  %v4036_v22 = vld [vmem:[%s4679_s15 + $0x531] sm:$0xff]  ;;  %1553 = vrot.lane.b32.xlu2 %v5525_v41, %s8631_s26  ;;  %s5749_s25 = sld [smem:[#allocation4 + %s5465_s16]] }
  0xae   : >> { %8784 = vst [vmem:[#allocation123_spill] sm:$0xff] %v5548_v62  ;;  %v921_v42 = vadd.f32 %v912_v32, %v5285_v24  ;;  %v941_v48 = vmul.f32 %v4947_v36, %v5288_v10  ;;  %v5637_v15 = vmul.f32 %v5006_v5, %v5571_v7  ;;  %v5641_v56 = vmul.f32 %v5009_v54, %v5571_v7  ;;  %v3629_v46 = vld [vmem:[%s4679_s15 + $0x198] sm:$0xff]  ;;  %v3630_v62 = vld [vmem:[%s4679_s15 + $0x1a0] sm:$0xff] }
  0xaf   : >> { %8785 = vst [vmem:[#allocation124_spill] sm:$0xff] %v5558_v44  ;;  %v920_v32 = vadd.f32 %v911_v61, %v5285_v24  ;;  %v940_v36 = vmul.f32 %v4944_v35, %v5288_v10  ;;  %v5655_v5 = vmul.f32 %v5023_v16, %v5571_v7  ;;  %v5659_v54 = vmul.f32 %v5026_v14, %v5571_v7  ;;  %v3752_v35 = vld [vmem:[%s4679_s15 + $0x560] sm:$0xff]  ;;  %v3748_v10 = vld [vmem:[%s4679_s15 + $0x108] sm:$0xff] }
  0xb0   : >> { %8786 = vst [vmem:[#allocation125_spill] sm:$0xff] %v5571_v7  ;;  %v5663_v61 = vmul.f32 %v5088_v34, %v5532_v3  ;;  %v5673_v16 = vmul.f32 %v4033_v30, %v5627_v31  ;;  %v5679_v14 = vmul.f32 %v4035_v9, %v5627_v31  ;;  %v5682_v34 = vmul.f32 %v4036_v22, %v5627_v31  ;;  %v3758_v22 = vld [vmem:[%s4679_s15 + $0x590] sm:$0xff]  ;;  %v3633_v44 = vld [vmem:[%s4679_s15 + $0x5e8] sm:$0xff] }
  0xb1   : >> { %8787 = vst [vmem:[#allocation126_spill] sm:$0xff] %v5598_v45  ;;  %v950_v30 = vadd.f32 %v941_v48, %v921_v42  ;;  %v974_v9 = vadd.f32 %v965_v18, %v944_v55  ;;  %1551 = vrot.lane.b32.xlu1 %v5529_v1, %s8631_s26  ;;  %v5717_v18 = vmul.f32 %v5205_v43, %v5598_v45  ;;  %v3757_v55 = vld [vmem:[%s4679_s15 + $0x588] sm:$0xff]  ;;  %v3777_v48 = vld [vmem:[%s4679_s15 + $0x1f0] sm:$0x3f] }
  0xb2   : >> { %8788 = vst [vmem:[#allocation127_spill] sm:$0xff] %v5605_v4  ;;  %v5723_v1 = vadd.f32 %v997_v33, %v976_v0  ;;  %v1042_v0 = vpop.permute.xlu0 %1041 }
  0xb3   : >> { %8789 = vst [vmem:[#allocation128_spill] sm:$0xff] %v5609_v27  ;;  %v5651_v27 = vadd.f32 %v5408_v29, %v5468_v2  ;;  %v5670_v29 = vmul.f32 %v4032_v52, %v5627_v31  ;;  %v5676_v2 = vmul.f32 %v4034_v11, %v5627_v31  ;;  %v5694_v52 = vld [vmem:[%s4679_s15 + $0x6d8] sm:$0xff]  ;;  %1549 = vrot.lane.b32.xlu0 %v5539_v39, %s8631_s26 }
  0xb4   : >> { %8790 = vst [vmem:[#allocation129_spill] sm:$0xff] %v5613_v37  ;;  %v3749_v37 = vld [vmem:[%s4679_s15 + $0x110] sm:$0xff]  ;;  %v5735_v43 = vmul.f32 %v5694_v52, %v5545_v8 }
  0xb5   : >> { %8791 = vst [vmem:[#allocation130_spill] sm:$0xff] %v5621_v6  ;;  %v4037_v6 = vld [vmem:[%s4679_s15 + $0x539] sm:$0xff]  ;;  %v971_v11 = vmul.f32 %v3749_v37, %v5302_v25  ;;  %1606 = vrot.lane.b32.xlu2 %v5580_v63, %s8631_s26  ;;  %v5825_v63 = vmul.f32 %v5174_v12, %v5598_v45 }
  0xb6   : >> { %8792 = vst [vmem:[#allocation131_spill] sm:$0xff] %v5627_v31  ;;  %v5685_v7 = vmul.f32 %v4037_v6, %v5627_v31  ;;  %v995_v6 = vmul.f32 %v3752_v35, %v5305_v50  ;;  %v5742_v35 = vstv %s5617_s14  ;;  %s5870_s14 = sld [smem:[#allocation4 + %s4564_s19]] }
  0xb7   : >> { %8793 = vst [vmem:[#allocation132_spill] sm:$0xff] %v5637_v15  ;;  %v4039_v15 = vld [vmem:[%s4679_s15 + $0x549] sm:$0xff]  ;;  %v980_v33 = vadd.f32 %v971_v11, %v950_v30  ;;  %v1000_v30 = vmul.f32 %v3757_v55, %v5305_v50  ;;  %v3876_v11 = vld [vmem:[%s4679_s15 + $0x700] sm:$0x3f]  ;;  %v5790_v55 = vstv %s5698_s24  ;;  %s5968_s24 = sld [smem:[#allocation4 + %s5465_s16]] }
  0xb8   : >> { %8794 = vst [vmem:[#allocation133_spill] sm:$0xff] %v5641_v56  ;;  %v4038_v56 = vld [vmem:[%s4679_s15 + $0x541] sm:$0xff]  ;;  %v5713_v41 = vmul.f32 %v4039_v15, %v5627_v31  ;;  %v3786_v15 = vld [vmem:[%s4679_s15 + $0x670] sm:$0x3f]  ;;  %v5844_v12 = vmul.f32 %v5361_v53, %v5790_v55 }
  0xb9   : >> { %8795 = vst [vmem:[#allocation134_spill] sm:$0xff] %v5651_v27  ;;  %v5710_v37 = vmul.f32 %v4038_v56, %v5627_v31  ;;  %v3789_v56 = vld [vmem:[%s4679_s15 + $0x208] sm:$0xff]  ;;  %v5746_v31 = vstv %s5633_s21  ;;  %v5764_v4 = vmul.f32 %v3786_v15, %v5598_v45  ;;  %v5767_v27 = vld [vmem:[%s4679_s15 + $0x6f8] sm:$0xff]  ;;  %v5813_v15 = vadd.f32 %v5601_v19, %v5553_v58  ;;  %1604 = vrot.lane.b32.xlu1 %v5584_v20, %s8631_s26  ;;  %s5915_s21 = sld [smem:[#allocation4 + %s5406_s30]] }
  0xba   : >> { %8796 = vst [vmem:[#allocation135_spill] sm:$0xff] %v5655_v5  ;;  %v5691_v5 = vld [vmem:[%s4679_s15 + $0x6e0] sm:$0xff]  ;;  %v5832_v19 = vmul.f32 %v5029_v13, %v5532_v3  ;;  %v5836_v20 = vmul.f32 %v5171_v21, %v5598_v45  ;;  %v5848_v13 = vmul.f32 %v5364_v28, %v5790_v55  ;;  %v5851_v21 = vstv %s5749_s25  ;;  %s6021_s25 = sld [smem:[#allocation4 + %s4564_s19]] }
  0xbb   : >> { %8797 = vst [vmem:[#allocation136_spill] sm:$0xff] %v5659_v54  ;;  %v5688_v54 = vld [vmem:[%s4679_s15 + $0x6e8] sm:$0xff]  ;;  %v5731_v42 = vmul.f32 %v5691_v5, %v5545_v8  ;;  %1602 = vrot.lane.b32.xlu0 %v5595_v23, %s8631_s26 }
  0xbc   : >> { %8798 = vst [vmem:[#allocation137_spill] sm:$0xff] %v5670_v29  ;;  %v5727_v39 = vmul.f32 %v5688_v54, %v5545_v8  ;;  %v5761_v29 = vmul.f32 %v3777_v48, %v5532_v3 }
  0xbd   : >> { %8799 = vst [vmem:[#allocation138_spill] sm:$0xff] %v5673_v16  ;;  %v1073_v16 = vadd.f32 %v5505_v60, %v5522_v38 }
  0xbe   : >> { %8800 = vst [vmem:[#allocation139_spill] sm:$0xff] %v5676_v2  ;;  %1612 = vrot.lane.b32.xlu2 %v5727_v39, %s8631_s26  ;;  %v3628_v39 = vld [vmem:[%s4679_s15 + $0x190] sm:$0xff] }
  0xbf   : >> { %8801 = vst [vmem:[#allocation140_spill] sm:$0xff] %v5679_v14  ;;  %v5753_v14 = vadd.f32 %v995_v6, %v974_v9  ;;  %v5787_v6 = vmul.f32 %v3876_v11, %v5545_v8 }
  0xc0   : >> { %8802 = vst [vmem:[#allocation141_spill] sm:$0xff] %v5682_v34  ;;  %v970_v34 = vmul.f32 %v3748_v10, %v5302_v25  ;;  %v1111_v25 = vpop.permute.xlu2 %1110  ;;  %v3798_v10 = vld [vmem:[%s4679_s15 + $0x688] sm:$0xff] }
  0xc1   : >> { %8803 = vst [vmem:[#allocation142_spill] sm:$0xff] %v5685_v7  ;;  %v949_v7 = vadd.f32 %v940_v36, %v920_v32  ;;  %v1046_v32 = vpop.permute.xlu1 %1045  ;;  %v1001_v36 = vmul.f32 %v3758_v22, %v5305_v50  ;;  %v3801_v22 = vld [vmem:[%s4679_s15 + $0x6a0] sm:$0xff]  ;;  %v1184_v50 = vmul.f32 %v5202_v49, %v5598_v45  ;;  %v5776_v9 = vmul.f32 %v3798_v10, %v5746_v31  ;;  %v8819_v10 = vld [vmem:[#allocation12_spill] sm:$0xff]  ;;  %v8825_v45 = vld [vmem:[#allocation18_spill] sm:$0xff] }
  0xc2   : >> { %8804 = vst [vmem:[#allocation143_spill] sm:$0xff] %v5688_v54  ;;  %v5796_v49 = vmul.f32 %v3801_v22, %v5746_v31  ;;  %v8821_v22 = vld [vmem:[#allocation16_spill] sm:$0xff]  ;;  %1610 = vrot.lane.b32.xlu1 %v5731_v42, %s8631_s26 }
  0xc3   : >> { %8805 = vst [vmem:[#allocation144_spill] sm:$0xff] %v5691_v5  ;;  %v979_v2 = vadd.f32 %v970_v34, %v949_v7  ;;  %v1214_v34 = vmul.f32 %v3789_v56, %v5742_v35  ;;  %v5784_v38 = vadd.f32 %v1001_v36, %v980_v33  ;;  %v1044_v56 = vpop.permute.xlu0 %1043  ;;  %v8818_v33 = vld [vmem:[#allocation13_spill] sm:$0xff]  ;;  %v5933_v5 = vmul.f32 %v5271_v47, %v5851_v21  ;;  %v8835_v47 = vld [vmem:[#allocation90_spill] sm:$0xff] }
  0xc4   : >> { %8806 = vst [vmem:[#allocation145_spill] sm:$0xff] %v5694_v52  ;;  %v3627_v52 = vld [vmem:[%s4679_s15 + $0x188] sm:$0xff]  ;;  %1608 = vrot.lane.b32.xlu0 %v5735_v43, %s8631_s26 }
  0xc5   : >> { %8807 = vst [vmem:[#allocation146_spill] sm:$0xff] %v5710_v37  ;;  %v1070_v37 = vadd.f32 %v1046_v32, %v5555_v57  ;;  %v5770_v57 = vld [vmem:[%s4679_s15 + $0x6f0] sm:$0xff] }
  0xc6   : >> { %8808 = vst [vmem:[#allocation147_spill] sm:$0xff] %v5713_v41  ;;  %v3792_v41 = vld [vmem:[%s4679_s15 + $0x220] sm:$0xff]  ;;  %v5809_v48 = vmul.f32 %v5770_v57, %v5545_v8  ;;  %1618 = vrot.lane.b32.xlu2 %v5787_v6, %s8631_s26  ;;  %v3944_v6 = vld [vmem:[%s4679_s15 + $0x370] sm:$0xff] }
  0xc7   : >> { %8809 = vst [vmem:[#allocation148_spill] sm:$0xff] %v5742_v35  ;;  %v1135_v7 = vadd.f32 %v1111_v25, %v1070_v37  ;;  %v5782_v60 = vmul.f32 %v3792_v41, %v5742_v35  ;;  %v5801_v41 = vadd.f32 %v1000_v30, %v979_v2  ;;  %v5805_v25 = vmul.f32 %v5767_v27, %v5545_v8 }
  0xc8   : >> { %8810 = vst [vmem:[#allocation149_spill] sm:$0xff] %v5746_v31  ;;  %v5828_v8 = vstv %s5721_s4  ;;  %v1117_v58 = vpop.permute.xlu2 %1116  ;;  %s5984_s4 = sld [smem:[#allocation4 + %s5575_s12]] }
  0xc9   : >> { %8811 = vst [vmem:[#allocation150_spill] sm:$0xff] %v5767_v27  ;;  %v1164_v37 = vadd.f32 %v5566_v26, %v1135_v7  ;;  %v5821_v26 = vmul.f32 %v5051_v17, %v5532_v3  ;;  %v5840_v17 = vmul.f32 %v5355_v51, %v5790_v55  ;;  %v1138_v23 = vadd.f32 %v1117_v58, %v1073_v16  ;;  %v1048_v2 = vpop.permute.xlu1 %1047  ;;  %v8820_v16 = vld [vmem:[#allocation11_spill] sm:$0xff] }
  0xca   : >> { %8812 = vst [vmem:[#allocation151_spill] sm:$0xff] %v5770_v57  ;;  %v5855_v36 = vmul.f32 %v8818_v33, %v5828_v8  ;;  %v5859_v30 = vmul.f32 %v8819_v10, %v5828_v8  ;;  %v5863_v11 = vmul.f32 %v8820_v16, %v5828_v8  ;;  %v5873_v7 = vadd.f32 %v1042_v0, %v5568_v40  ;;  %v8823_v33 = vld [vmem:[#allocation14_spill] sm:$0xff]  ;;  %v8824_v16 = vld [vmem:[#allocation19_spill] sm:$0xff]  ;;  %v8833_v57 = vld [vmem:[#allocation68_spill] sm:$0xff] }
  0xcb   : >> { %8813 = vst [vmem:[#allocation152_spill] sm:$0xff] %v5790_v55  ;;  %v1193_v32 = vadd.f32 %v1184_v50, %v1164_v37  ;;  %v5867_v50 = vmul.f32 %v8821_v22, %v5828_v8  ;;  %v8822_v37 = vld [vmem:[#allocation15_spill] sm:$0xff]  ;;  %v5881_v10 = vmul.f32 %v8823_v33, %v5828_v8  ;;  %v5885_v22 = vmul.f32 %v8824_v16, %v5828_v8  ;;  %v8828_v16 = vld [vmem:[#allocation42_spill] sm:$0xff] }
  0xcc   : >> { %8814 = vst [vmem:[#allocation153_spill] sm:$0xff] %v5825_v63  ;;  %v5877_v58 = vmul.f32 %v8822_v37, %v5828_v8  ;;  %v1167_v31 = vadd.f32 %v5663_v61, %v1138_v23  ;;  %v5890_v35 = vmul.f32 %v8825_v45, %v5828_v8  ;;  %v8826_v40 = vld [vmem:[#allocation43_spill] sm:$0xff]  ;;  %v3623_v37 = vld [vmem:[%s4679_s15 + $0x168] sm:$0xff]  ;;  %v5898_v3 = vstv %s5779_s27  ;;  %v8829_v61 = vld [vmem:[#allocation37_spill] sm:$0xff]  ;;  %1616 = vrot.lane.b32.xlu1 %v5805_v25, %s8631_s26  ;;  %s6075_s27 = sld [smem:[#allocation4 + %s5589_s13]] }
  0xcd   : >> { %8815 = vst [vmem:[#allocation154_spill] sm:$0xff] %v5828_v8  ;;  %v5894_v0 = vmul.f32 %v8826_v40, %v5851_v21  ;;  %v1223_v33 = vadd.f32 %v1214_v34, %v1193_v32  ;;  %v5902_v55 = vmul.f32 %v8828_v16, %v5851_v21  ;;  %v5906_v23 = vmul.f32 %v8829_v61, %v5851_v21  ;;  %v3624_v45 = vld [vmem:[%s4679_s15 + $0x170] sm:$0xff]  ;;  %v3625_v8 = vld [vmem:[%s4679_s15 + $0x178] sm:$0xff]  ;;  %v3626_v27 = vld [vmem:[%s4679_s15 + $0x180] sm:$0xff] }
  0xce   : >> { %8816 = vst [vmem:[#allocation155_spill] sm:$0xff] %v5836_v20  ;;  %v5912_v40 = vstv %s5793_s29  ;;  %v8831_v34 = vld [vmem:[#allocation74_spill] sm:$0xff]  ;;  %v8832_v16 = vld [vmem:[#allocation73_spill] sm:$0xff]  ;;  %v5929_v54 = vmul.f32 %v8833_v57, %v5851_v21  ;;  %v5950_v57 = vmul.f32 %v8835_v47, %v5851_v21  ;;  %v1196_v20 = vadd.f32 %v5717_v18, %v1167_v31  ;;  %v3636_v47 = vld [vmem:[%s4679_s15 + $0x600] sm:$0xff]  ;;  %1614 = vrot.lane.b32.xlu0 %v5809_v48, %s8631_s26  ;;  %s6091_s29 = sld [smem:[#allocation4 + %s5040_s7]] }
  0xcf   : >> { %8817 = vst [vmem:[#allocation156_spill] sm:$0xff] %v5851_v21  ;;  %v5921_v32 = vmul.f32 %v8831_v34, %v5851_v21  ;;  %v5925_v61 = vmul.f32 %v8832_v16, %v5851_v21  ;;  %v5939_v34 = vadd.f32 %v1048_v2, %v5723_v1  ;;  %v5942_v16 = vadd.f32 %v1044_v56, %v5753_v14  ;;  %v3634_v2 = vld [vmem:[%s4679_s15 + $0x5f0] sm:$0xff]  ;;  %v3635_v56 = vld [vmem:[%s4679_s15 + $0x5f8] sm:$0xff]  ;;  %v1054_v21 = vpop.permute.xlu0 %1053  ;;  %v8860_v48 = vld [vmem:[#allocation119_spill] sm:$0xff] }
  0xd0   : >> { %8827 = vst [vmem:[#allocation13_spill] sm:$0xff] %v5898_v3  ;;  %v1123_v1 = vpop.permute.xlu2 %1122  ;;  %v5956_v14 = vmul.f32 %v3623_v37, %v5898_v3  ;;  %v5959_v42 = vmul.f32 %v3624_v45, %v5898_v3  ;;  %v5962_v43 = vmul.f32 %v3625_v8, %v5898_v3  ;;  %v5972_v37 = vadd.f32 %v5776_v9, %v1223_v33  ;;  %v3638_v63 = vld [vmem:[%s4679_s15 + $0x610] sm:$0xff] }
  0xd1   : >> { %8830 = vst [vmem:[#allocation12_spill] sm:$0xff] %v5912_v40  ;;  %v1141_v31 = vadd.f32 %v1123_v1, %v5813_v15  ;;  %v1056_v18 = vpop.permute.xlu1 %1055  ;;  %v5975_v45 = vmul.f32 %v3626_v27, %v5898_v3  ;;  %v5978_v8 = vmul.f32 %v3627_v52, %v5898_v3  ;;  %v5990_v15 = vmul.f32 %v3629_v46, %v5898_v3  ;;  %v3640_v27 = vld [vmem:[%s4679_s15 + $0x620] sm:$0xff] }
  0xd2   : >> { %8834 = vst [vmem:[#allocation11_spill] sm:$0xff] %v5939_v34  ;;  %v3637_v34 = vld [vmem:[%s4679_s15 + $0x608] sm:$0xff]  ;;  %v5993_v9 = vmul.f32 %v3630_v62, %v5898_v3  ;;  %v5997_v52 = vstv %s5870_s14  ;;  %v6000_v33 = vmul.f32 %v3633_v44, %v5912_v40  ;;  %v6003_v1 = vmul.f32 %v3634_v2, %v5912_v40  ;;  %2357 = vrot.lane.b32.xlu2 %v5840_v17, %s8631_s26  ;;  %s6202_s14 = sld [smem:[#allocation4 + %s5066_s8]] }
  0xd3   : >> { %8836 = vst [vmem:[#allocation16_spill] sm:$0xff] %v5959_v42  ;;  %v5987_v42 = vmul.f32 %v3628_v39, %v5898_v3  ;;  %v6006_v39 = vmul.f32 %v3635_v56, %v5912_v40  ;;  %v6009_v46 = vmul.f32 %v3636_v47, %v5912_v40  ;;  %v6012_v62 = vmul.f32 %v3637_v34, %v5912_v40 }
  0xd4   : >> { %8837 = vst [vmem:[#allocation15_spill] sm:$0xff] %v5962_v43  ;;  %v3639_v43 = vld [vmem:[%s4679_s15 + $0x618] sm:$0xff]  ;;  %v6015_v3 = vmul.f32 %v3638_v63, %v5912_v40  ;;  %v1226_v2 = vadd.f32 %v5782_v60, %v1196_v20  ;;  %v1170_v56 = vadd.f32 %v5761_v29, %v1141_v31  ;;  %v6026_v47 = vmul.f32 %v3640_v27, %v5912_v40  ;;  %v3942_v63 = vld [vmem:[%s4679_s15 + $0x360] sm:$0xff]  ;;  %v3943_v31 = vld [vmem:[%s4679_s15 + $0x368] sm:$0xff] }
  0xd5   : >> { %8838 = vst [vmem:[#allocation14_spill] sm:$0xff] %v5997_v52  ;;  %v6018_v44 = vmul.f32 %v3639_v43, %v5912_v40  ;;  %v6030_v34 = vmul.f32 %v5364_v28, %v5997_v52  ;;  %v6040_v60 = vmul.f32 %v5361_v53, %v5997_v52  ;;  %v6044_v29 = vmul.f32 %v5355_v51, %v5997_v52  ;;  %v8852_v20 = vld [vmem:[#allocation118_spill] sm:$0xff]  ;;  %v8855_v51 = vld [vmem:[#allocation115_spill] sm:$0xff] }
  0xd6   : >> { %8839 = vst [vmem:[#allocation19_spill] sm:$0xff] %v6000_v33  ;;  %v6048_v28 = vmul.f32 %v5489_v59, %v5997_v52  ;;  %v6052_v43 = vmul.f32 %v8852_v20, %v5997_v52  ;;  %v3945_v53 = vld [vmem:[%s4679_s15 + $0x378] sm:$0xff]  ;;  %v6058_v27 = vadd.f32 %v1056_v18, %v5784_v38  ;;  %v6066_v59 = vmul.f32 %v8855_v51, %v5997_v52  ;;  %v8857_v20 = vld [vmem:[#allocation120_spill] sm:$0xff]  ;;  %v3948_v51 = vld [vmem:[%s4679_s15 + $0x390] sm:$0xff] }
  0xd7   : >> { %8840 = vst [vmem:[#allocation18_spill] sm:$0xff] %v6003_v1  ;;  %v6070_v40 = vmul.f32 %v8857_v20, %v5997_v52  ;;  %v6078_v38 = vadd.f32 %v1054_v21, %v5801_v41  ;;  %v6082_v18 = vmul.f32 %v8860_v48, %v5997_v52  ;;  %v3951_v20 = vld [vmem:[%s4679_s15 + $0x7e0] sm:$0xff]  ;;  %v6097_v41 = vadd.f32 %v5764_v4, %v1170_v56 }
  0xd8   : >> { %8841 = vst [vmem:[#allocation43_spill] sm:$0xff] %v6006_v39  ;;  %v1294_v25 = vpop.permute.xlu2 %1293  ;;  %2355 = vrot.lane.b32.xlu1 %v5844_v12, %s8631_s26  ;;  %2353 = vrot.lane.b32.xlu0 %v5848_v13, %s8631_s26  ;;  %v3553_v13 = vld [vmem:[%s4679_s15 + $0x480] sm:$0xff] }
  0xd9   : >> { %8842 = vst [vmem:[#allocation42_spill] sm:$0xff] %v6009_v46  ;;  %v1109_v21 = vpop.permute.xlu1 %1108 }
  0xda   : >> { %8843 = vst [vmem:[#allocation37_spill] sm:$0xff] %v6012_v62  ;;  %v1134_v4 = vadd.f32 %v1109_v21, %v5942_v16  ;;  %v3961_v21 = vld [vmem:[%s4679_s15 + $0x3b0] sm:$0xff] }
  0xdb   : >> { %8844 = vst [vmem:[#allocation74_spill] sm:$0xff] %v6015_v3  ;;  %v6034_v3 = vstv %s5915_s21  ;;  %s6213_s21 = sld [smem:[#allocation4 + %s5069_s9]] }
  0xdc   : >> { %8845 = vst [vmem:[#allocation73_spill] sm:$0xff] %v6018_v44  ;;  %v6100_v48 = vmul.f32 %v3942_v63, %v6034_v3  ;;  %v6103_v52 = vmul.f32 %v3943_v31, %v6034_v3  ;;  %v6114_v56 = vmul.f32 %v3944_v6, %v6034_v3  ;;  %v6117_v63 = vmul.f32 %v3945_v53, %v6034_v3  ;;  %v3955_v31 = vld [vmem:[%s4679_s15 + $0x800] sm:$0xff]  ;;  %v3958_v53 = vld [vmem:[%s4679_s15 + $0x818] sm:$0xff] }
  0xdd   : >> { %8846 = vst [vmem:[#allocation68_spill] sm:$0xff] %v6026_v47  ;;  %v6185_v17 = vadd.f32 %v5821_v26, %v1134_v4  ;;  %v6210_v4 = vstv %s6091_s29 }
  0xde   : >> { %8847 = vst [vmem:[#allocation90_spill] sm:$0xff] %v6030_v34  ;;  %v3569_v34 = vld [vmem:[%s4679_s15 + $0x78] sm:$0xff] }
  0xdf   : >> { %8848 = vst [vmem:[#allocation157_spill] sm:$0xff] %v6034_v3 }
  0xe0   : >> { %8849 = vst [vmem:[#allocation158_spill] sm:$0xff] %v6040_v60  ;;  %v3954_v60 = vld [vmem:[%s4679_s15 + $0x7f8] sm:$0xff] }
  0xe1   : >> { %8850 = vst [vmem:[#allocation159_spill] sm:$0xff] %v6044_v29  ;;  %v3953_v29 = vld [vmem:[%s4679_s15 + $0x7f0] sm:$0xff]  ;;  %v6257_v39 = vstv %s6213_s21 }
  0xe2   : >> { %8851 = vst [vmem:[#allocation160_spill] sm:$0xff] %v6048_v28  ;;  %v3947_v28 = vld [vmem:[%s4679_s15 + $0x388] sm:$0xff] }
  0xe3   : >> { %8853 = vst [vmem:[#allocation118_spill] sm:$0xff] %v6052_v43  ;;  %v3946_v43 = vld [vmem:[%s4679_s15 + $0x380] sm:$0xff]  ;;  %v6126_v16 = vmul.f32 %v3947_v28, %v6034_v3 }
  0xe4   : >> { %8854 = vst [vmem:[#allocation161_spill] sm:$0xff] %v6058_v27  ;;  %v3949_v27 = vld [vmem:[%s4679_s15 + $0x398] sm:$0xff] }
  0xe5   : >> { %8856 = vst [vmem:[#allocation115_spill] sm:$0xff] %v6066_v59  ;;  %v6094_v59 = vadd.f32 %v5796_v49, %v1226_v2  ;;  %v6109_v49 = vstv %s5984_s4  ;;  %v6132_v6 = vmul.f32 %v3949_v27, %v6034_v3  ;;  %v3962_v27 = vld [vmem:[%s4679_s15 + $0x3b8] sm:$0xff]  ;;  %s6345_s4 = sld [smem:[#allocation4 + %s5066_s8]] }
  0xe6   : >> { %8858 = vst [vmem:[#allocation120_spill] sm:$0xff] %v6070_v40  ;;  %v6088_v40 = vstv %s5968_s24  ;;  %s6327_s24 = sld [smem:[#allocation4 + %s5040_s7]] }
  0xe7   : >> { %8859 = vst [vmem:[#allocation162_spill] sm:$0xff] %v6078_v38  ;;  %v1107_v38 = vpop.permute.xlu0 %1106  ;;  %v6143_v28 = vmul.f32 %v3951_v20, %v6088_v40 }
  0xe8   : >> { %8861 = vst [vmem:[#allocation119_spill] sm:$0xff] %v6082_v18  ;;  %v3952_v18 = vld [vmem:[%s4679_s15 + $0x7e8] sm:$0xff]  ;;  %v1133_v2 = vadd.f32 %v1107_v38, %v5873_v7  ;;  %v6129_v7 = vmul.f32 %v3948_v51, %v6034_v3 }
  0xe9   : >> { %8862 = vst [vmem:[#allocation163_spill] sm:$0xff] %v6088_v40  ;;  %v3960_v38 = vld [vmem:[%s4679_s15 + $0x3a8] sm:$0xff]  ;;  %v6146_v51 = vmul.f32 %v3952_v18, %v6088_v40  ;;  %v3963_v18 = vld [vmem:[%s4679_s15 + $0x3c0] sm:$0xff] }
  0xea   : >> { %8863 = vst [vmem:[#allocation164_spill] sm:$0xff] %v6094_v59  ;;  %v3957_v59 = vld [vmem:[%s4679_s15 + $0x810] sm:$0xff]  ;;  %v6205_v26 = vmul.f32 %v3963_v18, %v6109_v49 }
  0xeb   : >> { %8864 = vst [vmem:[#allocation165_spill] sm:$0xff] %v6097_v41  ;;  %v3956_v41 = vld [vmem:[%s4679_s15 + $0x808] sm:$0xff] }
  0xec   : >> { %8865 = vst [vmem:[#allocation166_spill] sm:$0xff] %v6100_v48  ;;  %v6164_v20 = vmul.f32 %v3956_v41, %v6088_v40  ;;  %v6179_v41 = vmul.f32 %v3960_v38, %v6109_v49  ;;  %v6199_v38 = vstv %s6075_s27  ;;  %v3568_v48 = vld [vmem:[%s4679_s15 + $0x70] sm:$0xff]  ;;  %s4293_s27 = sadd.s32 1536, %s4695_s23 }
  0xed   : >> { %8866 = vst [vmem:[#allocation167_spill] sm:$0xff] %v6103_v52  ;;  %v6123_v52 = vmul.f32 %v3946_v43, %v6034_v3  ;;  %v278_v43 = vld [vmem:[%s4679_s15] sm:$0xff]  ;;  %v6150_v3 = vstv %s6021_s25  ;;  %s6358_s25 = sld [smem:[#allocation4 + %s5069_s9]]  ;;  %s6594_s29 = sadd.s32 %s4293_s27, %s4693_s22 }
  0xee   : >> { %8867 = vst [vmem:[#allocation168_spill] sm:$0xff] %v6109_v49  ;;  %s6602_s21 = sld [smem:[#allocation4 + %s6594_s29]] }
  0xef   : >> { %8868 = vst [vmem:[#allocation169_spill] sm:$0xff] %v6114_v56 }
  0xf0   : >> { %8869 = vst [vmem:[#allocation170_spill] sm:$0xff] %v6117_v63  ;;  %v6138_v63 = vadd.f32 %v1294_v25, %v5972_v37  ;;  %v6158_v37 = vmul.f32 %v3954_v60, %v6088_v40  ;;  %v6161_v25 = vmul.f32 %v3955_v31, %v6088_v40  ;;  %v6173_v60 = vmul.f32 %v3957_v59, %v6088_v40  ;;  %v285_v59 = vld [vmem:[%s4679_s15 + $0x38] sm:$0xff] }
  0xf1   : >> { %8870 = vst [vmem:[#allocation171_spill] sm:$0xff] %v6123_v52  ;;  %v279_v52 = vld [vmem:[%s4679_s15 + $0x8] sm:$0xff]  ;;  %v6176_v31 = vmul.f32 %v3958_v53, %v6088_v40  ;;  %v6196_v53 = vmul.f32 %v3962_v27, %v6109_v49 }
  0xf2   : >> { %8871 = vst [vmem:[#allocation172_spill] sm:$0xff] %v6126_v16  ;;  %v6155_v16 = vmul.f32 %v3953_v29, %v6088_v40  ;;  %v284_v29 = vld [vmem:[%s4679_s15 + $0x30] sm:$0xff]  ;;  %v289_v12 = vmul.f32 %v6150_v3, %v279_v52 }
  0xf3   : >> { %8872 = vst [vmem:[#allocation173_spill] sm:$0xff] %v6129_v7  ;;  %v281_v7 = vld [vmem:[%s4679_s15 + $0x18] sm:$0xff]  ;;  %v294_v52 = vmul.f32 %v6150_v3, %v284_v29 }
  0xf4   : >> { %8873 = vst [vmem:[#allocation174_spill] sm:$0xff] %v6132_v6  ;;  %v280_v6 = vld [vmem:[%s4679_s15 + $0x10] sm:$0xff]  ;;  %v291_v27 = vmul.f32 %v6150_v3, %v281_v7 }
  0xf5   : >> { %8874 = vst [vmem:[#allocation175_spill] sm:$0xff] %v6138_v63  ;;  %v282_v63 = vld [vmem:[%s4679_s15 + $0x20] sm:$0xff]  ;;  %v303_v29 = vadd.f32 %v294_v52, %v5285_v24 }
  0xf6   : >> { %8875 = vst [vmem:[#allocation176_spill] sm:$0xff] %v6143_v28  ;;  %v292_v40 = vmul.f32 %v6150_v3, %v282_v63  ;;  %v300_v63 = vadd.f32 %v291_v27, %v5285_v24 }
  0xf7   : >> { %8876 = vst [vmem:[#allocation177_spill] sm:$0xff] %v6146_v51  ;;  %v283_v51 = vld [vmem:[%s4679_s15 + $0x28] sm:$0xff] }
  0xf8   : >> { %8877 = vst [vmem:[#allocation178_spill] sm:$0xff] %v6150_v3  ;;  %v293_v18 = vmul.f32 %v6150_v3, %v283_v51  ;;  %v301_v51 = vadd.f32 %v292_v40, %v5285_v24  ;;  %v4453_v40 = vld [vmem:[%s4679_s15 + $0x498] sm:$0xff] }
  0xf9   : >> { %8878 = vst [vmem:[#allocation179_spill] sm:$0xff] %v6155_v16 }
  0xfa   : >> { %8879 = vst [vmem:[#allocation180_spill] sm:$0xff] %v6158_v37  ;;  %v3566_v37 = vld [vmem:[%s4679_s15 + $0x60] sm:$0xff] }
  0xfb   : >> { %8880 = vst [vmem:[#allocation181_spill] sm:$0xff] %v6161_v25  ;;  %v6188_v25 = vadd.f32 %v5832_v19, %v1133_v2  ;;  %v288_v19 = vmul.f32 %v6150_v3, %v278_v43  ;;  %v3554_v2 = vld [vmem:[%s4679_s15 + $0x488] sm:$0xff] }
  0xfc   : >> { %8881 = vst [vmem:[#allocation182_spill] sm:$0xff] %v6164_v20  ;;  %v6182_v20 = vmul.f32 %v3961_v21, %v6109_v49  ;;  %v290_v21 = vmul.f32 %v6150_v3, %v280_v6  ;;  %v3558_v43 = vld [vmem:[%s4679_s15 + $0x4a8] sm:$0xff]  ;;  %v298_v6 = vadd.f32 %v289_v12, %v5285_v24  ;;  %v326_v12 = vmul.f32 %v3554_v2, %v6210_v4  ;;  %v4455_v2 = vld [vmem:[%s4679_s15 + $0x4b0] sm:$0xff] }
  0xfd   : >> { %8882 = vst [vmem:[#allocation183_spill] sm:$0xff] %v6173_v60  ;;  %v3565_v60 = vld [vmem:[%s4679_s15 + $0x58] sm:$0xff]  ;;  %v331_v16 = vmul.f32 %v4455_v2, %v6210_v4  ;;  %v6254_v2 = vstv %s6202_s14  ;;  %s4295_s14 = sadd.s32 1664, %s4695_s23 }
  0xfe   : >> { %8883 = vst [vmem:[#allocation184_spill] sm:$0xff] %v6176_v31  ;;  %v299_v7 = vadd.f32 %v290_v21, %v5285_v24  ;;  %v3563_v21 = vld [vmem:[%s4679_s15 + $0x48] sm:$0xff]  ;;  %v4454_v31 = vld [vmem:[%s4679_s15 + $0x4a0] sm:$0xff] }
  0xff   : >> { %8884 = vst [vmem:[#allocation185_spill] sm:$0xff] %v6179_v41  ;;  %v302_v41 = vadd.f32 %v293_v18, %v5285_v24  ;;  %v328_v18 = vmul.f32 %v4453_v40, %v6210_v4  ;;  %v329_v52 = vmul.f32 %v4454_v31, %v6210_v4  ;;  %v335_v40 = vadd.f32 %v326_v12, %v298_v6  ;;  %v3570_v31 = vld [vmem:[%s4679_s15 + $0x80] sm:$0xff]  ;;  %v3574_v6 = vld [vmem:[%s4679_s15 + $0x4d0] sm:$0xff] }
 0x100   : >> { %8885 = vst [vmem:[#allocation186_spill] sm:$0xff] %v6182_v20  ;;  %v297_v20 = vadd.f32 %v288_v19, %v5285_v24  ;;  %v325_v19 = vmul.f32 %v3553_v13, %v6210_v4  ;;  %v3567_v13 = vld [vmem:[%s4679_s15 + $0x68] sm:$0xff]  ;;  %v340_v62 = vadd.f32 %v331_v16, %v303_v29  ;;  %v3576_v16 = vld [vmem:[%s4679_s15 + $0x4e0] sm:$0xff]  ;;  %v363_v29 = vmul.f32 %v3568_v48, %v6254_v2 }
 0x101   : >> { %8886 = vst [vmem:[#allocation187_spill] sm:$0xff] %v6188_v25  ;;  %v338_v47 = vadd.f32 %v329_v52, %v301_v51  ;;  %v362_v51 = vmul.f32 %v3567_v13, %v6254_v2  ;;  %v3579_v52 = vld [vmem:[%s4679_s15 + $0x4f8] sm:$0xff]  ;;  %v392_v13 = vmul.f32 %v3574_v6, %v6257_v39 }
 0x102   : >> { %8887 = vst [vmem:[#allocation188_spill] sm:$0xff] %v6196_v53  ;;  %v295_v53 = vmul.f32 %v6150_v3, %v285_v59  ;;  %v3564_v3 = vld [vmem:[%s4679_s15 + $0x50] sm:$0xff]  ;;  %v334_v56 = vadd.f32 %v325_v19, %v297_v20  ;;  %v3573_v20 = vld [vmem:[%s4679_s15 + $0x4c8] sm:$0xff]  ;;  %v358_v19 = vmul.f32 %v3563_v21, %v6254_v2  ;;  %v3580_v21 = vld [vmem:[%s4679_s15 + $0x500] sm:$0xff] }
 0x103   : >> { %8888 = vst [vmem:[#allocation189_spill] sm:$0xff] %v6199_v38  ;;  %v359_v12 = vmul.f32 %v3564_v3, %v6254_v2  ;;  %v391_v33 = vmul.f32 %v3573_v20, %v6257_v39 }
 0x104   : >> { %8889 = vst [vmem:[#allocation190_spill] sm:$0xff] %v6205_v26  ;;  %v3555_v26 = vld [vmem:[%s4679_s15 + $0x490] sm:$0xff]  ;;  %v304_v59 = vadd.f32 %v295_v53, %v5285_v24  ;;  %v330_v53 = vmul.f32 %v3558_v43, %v6210_v4  ;;  %v337_v24 = vadd.f32 %v328_v18, %v300_v63  ;;  %v361_v63 = vmul.f32 %v3566_v37, %v6254_v2 }
 0x105   : >> { %8890 = vst [vmem:[#allocation191_spill] sm:$0xff] %v6210_v4  ;;  %v327_v27 = vmul.f32 %v3555_v26, %v6210_v4  ;;  %v4456_v26 = vld [vmem:[%s4679_s15 + $0x4b8] sm:$0xff]  ;;  %v3578_v18 = vld [vmem:[%s4679_s15 + $0x4f0] sm:$0xff]  ;;  %v368_v3 = vadd.f32 %v359_v12, %v335_v40 }
 0x106   : >> { %v332_v28 = vmul.f32 %v4456_v26, %v6210_v4  ;;  %v339_v44 = vadd.f32 %v330_v53, %v302_v41  ;;  %8891 = vst [vmem:[#allocation192_spill] sm:$0xff] %v6254_v2  ;;  %v3575_v41 = vld [vmem:[%s4679_s15 + $0x4d8] sm:$0xff]  ;;  %v367_v53 = vadd.f32 %v358_v19, %v334_v56  ;;  %v371_v4 = vadd.f32 %v362_v51, %v338_v47 }
 0x107   : >> { %v336_v43 = vadd.f32 %v327_v27, %v299_v7  ;;  %8892 = vst [vmem:[#allocation193_spill] sm:$0xff] %v6257_v39  ;;  %v360_v7 = vmul.f32 %v3565_v60, %v6254_v2  ;;  %v365_v27 = vmul.f32 %v3570_v31, %v6254_v2  ;;  %v370_v60 = vadd.f32 %v361_v63, %v337_v24  ;;  %v8893_v19 = vld [vmem:[#allocation30_spill] sm:$0xff] }
 0x108   : >> { %v341_v46 = vadd.f32 %v332_v28, %v304_v59  ;;  %v3577_v28 = vld [vmem:[%s4679_s15 + $0x4e8] sm:$0xff]  ;;  %v364_v59 = vmul.f32 %v3569_v34, %v6254_v2  ;;  %v372_v37 = vadd.f32 %v363_v29, %v339_v44  ;;  %v393_v48 = vmul.f32 %v3575_v41, %v6257_v39  ;;  %v8897_v29 = vld [vmem:[#allocation34_spill] sm:$0xff] }
 0x109   : >> { %v369_v26 = vadd.f32 %v360_v7, %v336_v43  ;;  %v394_v34 = vmul.f32 %v3576_v16, %v6257_v39  ;;  %v395_v31 = vmul.f32 %v3577_v28, %v6257_v39  ;;  %v396_v2 = vmul.f32 %v3578_v18, %v6257_v39  ;;  %v8894_v7 = vld [vmem:[#allocation31_spill] sm:$0xff]  ;;  %v8895_v41 = vld [vmem:[#allocation32_spill] sm:$0xff]  ;;  %v8896_v28 = vld [vmem:[#allocation33_spill] sm:$0xff] }
 0x10a   : >> { %v373_v25 = vadd.f32 %v364_v59, %v340_v62  ;;  %v374_v1 = vadd.f32 %v365_v27, %v341_v46  ;;  %v397_v56 = vmul.f32 %v3579_v52, %v6257_v39  ;;  %v398_v24 = vmul.f32 %v3580_v21, %v6257_v39  ;;  %v8898_v27 = vld [vmem:[#allocation35_spill] sm:$0xff]  ;;  %v8899_v18 = vld [vmem:[#allocation36_spill] sm:$0xff] }
 0x10b   : >> { %v400_v47 = vadd.f32 %v391_v33, %v367_v53  ;;  %v401_v44 = vadd.f32 %v392_v13, %v368_v3  ;;  %v402_v62 = vadd.f32 %v393_v48, %v369_v26  ;;  %v403_v46 = vadd.f32 %v394_v34, %v370_v60  ;;  %v8902_v21 = vld [vmem:[#allocation40_spill] sm:$0xff]  ;;  %v8904_v60 = vld [vmem:[#allocation45_spill] sm:$0xff]  ;;  %v8905_v13 = vld [vmem:[#allocation46_spill] sm:$0xff] }
 0x10c   : >> { %v404_v40 = vadd.f32 %v395_v31, %v371_v4  ;;  %v405_v43 = vadd.f32 %v396_v2, %v372_v37  ;;  %v406_v20 = vadd.f32 %v397_v56, %v373_v25  ;;  %v407_v6 = vadd.f32 %v398_v24, %v374_v1  ;;  %v8900_v4 = vld [vmem:[#allocation38_spill] sm:$0xff]  ;;  %v8901_v25 = vld [vmem:[#allocation39_spill] sm:$0xff]  ;;  %v8903_v3 = vld [vmem:[#allocation44_spill] sm:$0xff] }
 0x10d   : >> { %v433_v12 = vadd.f32 %v8893_v19, %v400_v47  ;;  %v434_v63 = vadd.f32 %v8894_v7, %v401_v44  ;;  %v435_v16 = vadd.f32 %v8895_v41, %v402_v62  ;;  %v436_v51 = vadd.f32 %v8896_v28, %v403_v46  ;;  %v8906_v34 = vld [vmem:[#allocation47_spill] sm:$0xff]  ;;  %v8907_v56 = vld [vmem:[#allocation48_spill] sm:$0xff]  ;;  %v8908_v47 = vld [vmem:[#allocation49_spill] sm:$0xff] }
 0x10e   : >> { %v437_v59 = vadd.f32 %v8897_v29, %v404_v40  ;;  %v438_v33 = vadd.f32 %v8898_v27, %v405_v43  ;;  %v439_v52 = vadd.f32 %v8899_v18, %v406_v20  ;;  %v440_v2 = vadd.f32 %v8900_v4, %v407_v6  ;;  %v3964_v20 = vld [vmem:[%s4679_s15 + $0x3c8] sm:$0xff]  ;;  %v3965_v6 = vld [vmem:[%s4679_s15 + $0x3d0] sm:$0xff]  ;;  %v3966_v41 = vld [vmem:[%s4679_s15 + $0x3d8] sm:$0xff] }
 0x10f   : >> { %v466_v1 = vadd.f32 %v8901_v25, %v433_v12  ;;  %v467_v53 = vadd.f32 %v8902_v21, %v434_v63  ;;  %v468_v26 = vadd.f32 %v8903_v3, %v435_v16  ;;  %v469_v37 = vadd.f32 %v8904_v60, %v436_v51  ;;  %v3967_v16 = vld [vmem:[%s4679_s15 + $0x3e0] sm:$0xff]  ;;  %v3974_v4 = vld [vmem:[%s4679_s15 + $0x850] sm:$0xff] }
 0x110   : >> { %v470_v48 = vadd.f32 %v8905_v13, %v437_v59  ;;  %v471_v31 = vadd.f32 %v8906_v34, %v438_v33  ;;  %v472_v24 = vadd.f32 %v8907_v56, %v439_v52  ;;  %v473_v44 = vadd.f32 %v8908_v47, %v440_v2  ;;  %v3971_v59 = vld [vmem:[%s4679_s15 + $0x838] sm:$0xff]  ;;  %v8911_v33 = vld [vmem:[#allocation153_spill] sm:$0xff]  ;;  %v3973_v52 = vld [vmem:[%s4679_s15 + $0x848] sm:$0xff] }
 0x111   : >> { %v499_v62 = vadd.f32 %v5855_v36, %v466_v1  ;;  %v500_v46 = vadd.f32 %v5859_v30, %v467_v53  ;;  %v501_v40 = vadd.f32 %v5863_v11, %v468_v26  ;;  %v502_v43 = vadd.f32 %v5867_v50, %v469_v37  ;;  %v3969_v36 = vld [vmem:[%s4679_s15 + $0x828] sm:$0xff]  ;;  %v3975_v2 = vld [vmem:[%s4679_s15 + $0x858] sm:$0xff]  ;;  %v3976_v53 = vld [vmem:[%s4679_s15 + $0x860] sm:$0xff] }
 0x112   : >> { %v503_v19 = vadd.f32 %v5877_v58, %v470_v48  ;;  %v504_v12 = vadd.f32 %v5881_v10, %v471_v31  ;;  %v505_v7 = vadd.f32 %v5885_v22, %v472_v24  ;;  %v506_v63 = vadd.f32 %v5890_v35, %v473_v44  ;;  %v8913_v60 = vld [vmem:[#allocation19_spill] sm:$0xff] }
 0x113   : >> { %v532_v30 = vadd.f32 %v5894_v0, %v499_v62  ;;  %v533_v11 = vadd.f32 %v5902_v55, %v500_v46  ;;  %v534_v50 = vadd.f32 %v5906_v23, %v501_v40  ;;  %v535_v58 = vadd.f32 %v5921_v32, %v502_v43  ;;  %v8909_v23 = vld [vmem:[#allocation16_spill] sm:$0xff]  ;;  %v8910_v32 = vld [vmem:[#allocation15_spill] sm:$0xff]  ;;  %v8919_v62 = vld [vmem:[#allocation42_spill] sm:$0xff] }
 0x114   : >> { %v536_v10 = vadd.f32 %v5925_v61, %v503_v19  ;;  %v537_v35 = vadd.f32 %v5929_v54, %v504_v12  ;;  %v538_v22 = vadd.f32 %v5933_v5, %v505_v7  ;;  %v539_v28 = vadd.f32 %v5950_v57, %v506_v63  ;;  %v3970_v57 = vld [vmem:[%s4679_s15 + $0x830] sm:$0xff]  ;;  %v8915_v48 = vld [vmem:[#allocation187_spill] sm:$0xff]  ;;  %v8923_v7 = vld [vmem:[#allocation68_spill] sm:$0xff] }
 0x115   : >> { %v6321_v0 = vmul.f32 %v3964_v20, %v6109_v49  ;;  %v565_v55 = vadd.f32 %v5956_v14, %v532_v30  ;;  %v566_v51 = vadd.f32 %v8909_v23, %v533_v11  ;;  %v567_v29 = vadd.f32 %v8910_v32, %v534_v50  ;;  %v3972_v14 = vld [vmem:[%s4679_s15 + $0x840] sm:$0xff]  ;;  %v8920_v40 = vld [vmem:[#allocation37_spill] sm:$0xff]  ;;  %v8921_v20 = vld [vmem:[#allocation74_spill] sm:$0xff] }
 0x116   : >> { %v6330_v54 = vmul.f32 %v3965_v6, %v6109_v49  ;;  %v6333_v5 = vmul.f32 %v3966_v41, %v6109_v49  ;;  %v6336_v61 = vmul.f32 %v3967_v16, %v6109_v49  ;;  %v6342_v27 = vmul.f32 %v3969_v36, %v6199_v38  ;;  %v8916_v34 = vld [vmem:[#allocation155_spill] sm:$0xff]  ;;  %v8922_v19 = vld [vmem:[#allocation73_spill] sm:$0xff]  ;;  %v8926_v11 = vld [vmem:[#allocation62_spill] sm:$0xff] }
 0x117   : >> { %v6349_v18 = vadd.f32 %v8911_v33, %v6185_v17  ;;  %v568_v25 = vadd.f32 %v5975_v45, %v535_v58  ;;  %v569_v1 = vadd.f32 %v5978_v8, %v536_v10  ;;  %v570_v21 = vadd.f32 %v5987_v42, %v537_v35  ;;  %v8914_v17 = vld [vmem:[#allocation18_spill] sm:$0xff]  ;;  %v8918_v8 = vld [vmem:[#allocation43_spill] sm:$0xff]  ;;  %v8925_v36 = vld [vmem:[#allocation61_spill] sm:$0xff] }
 0x118   : >> { %v571_v3 = vadd.f32 %v5990_v15, %v538_v22  ;;  %v572_v26 = vadd.f32 %v5993_v9, %v539_v28  ;;  %v598_v37 = vadd.f32 %v8913_v60, %v565_v55  ;;  %v599_v13 = vadd.f32 %v8914_v17, %v566_v51  ;;  %v8924_v41 = vld [vmem:[#allocation59_spill] sm:$0xff]  ;;  %v8927_v58 = vld [vmem:[#allocation93_spill] sm:$0xff]  ;;  %v8928_v10 = vld [vmem:[#allocation90_spill] sm:$0xff] }
 0x119   : >> { %8912 = vst [vmem:[#allocation30_spill] sm:$0xff] %v6349_v18  ;;  %v6367_v31 = vadd.f32 %v8916_v34, %v8915_v48  ;;  %v6370_v45 = vmul.f32 %v3970_v57, %v6199_v38  ;;  %v6373_v42 = vmul.f32 %v3971_v59, %v6199_v38  ;;  %v600_v56 = vadd.f32 %v8918_v8, %v567_v29  ;;  %v8929_v22 = vld [vmem:[#allocation158_spill] sm:$0xff]  ;;  %v8930_v55 = vld [vmem:[#allocation159_spill] sm:$0xff]  ;;  %v8931_v51 = vld [vmem:[#allocation160_spill] sm:$0xff] }
 0x11a   : >> { %v6377_v15 = vmul.f32 %v3972_v14, %v6199_v38  ;;  %v6380_v9 = vmul.f32 %v3973_v52, %v6199_v38  ;;  %v6383_v24 = vmul.f32 %v3974_v4, %v6199_v38  ;;  %v6386_v47 = vmul.f32 %v3975_v2, %v6199_v38  ;;  %v8932_v29 = vld [vmem:[#allocation118_spill] sm:$0xff]  ;;  %v8933_v59 = vld [vmem:[#allocation115_spill] sm:$0xff]  ;;  %v8934_v33 = vld [vmem:[#allocation120_spill] sm:$0xff] }
 0x11b   : >> { %8917 = vst [vmem:[#allocation31_spill] sm:$0xff] %v6367_v31  ;;  %v6389_v44 = vmul.f32 %v3976_v53, %v6199_v38  ;;  %v6392_v46 = vadd.f32 %v8919_v62, %v568_v25  ;;  %v6395_v43 = vadd.f32 %v8920_v40, %v569_v1  ;;  %v6398_v6 = vadd.f32 %v8921_v20, %v570_v21  ;;  %v8935_v4 = vld [vmem:[#allocation119_spill] sm:$0xff]  ;;  %v3906_v53 = vld [vmem:[%s4679_s15 + $0x288] sm:$0xff]  ;;  %v8942_v34 = vld [vmem:[#allocation145_spill] sm:$0xff] }
 0x11c   : >> { %v6401_v12 = vadd.f32 %v8922_v19, %v571_v3  ;;  %v6404_v63 = vadd.f32 %v8923_v7, %v572_v26  ;;  %v6407_v16 = vadd.f32 %v8924_v41, %v598_v37  ;;  %v6410_v30 = vadd.f32 %v8925_v36, %v599_v13  ;;  %v3907_v3 = vld [vmem:[%s4679_s15 + $0x290] sm:$0xff]  ;;  %v8939_v26 = vld [vmem:[#allocation124_spill] sm:$0xff]  ;;  %v8940_v37 = vld [vmem:[#allocation123_spill] sm:$0xff] }
 0x11d   : >> { %v6413_v50 = vadd.f32 %v8926_v11, %v600_v56  ;;  %v1679_v35 = vadd.f32 %v8928_v10, %v8927_v58  ;;  %v1680_v28 = vadd.f32 %v8929_v22, %v8927_v58  ;;  %v1681_v23 = vadd.f32 %v8930_v55, %v8927_v58  ;;  %v8941_v13 = vld [vmem:[#allocation122_spill] sm:$0xff]  ;;  %v3909_v62 = vld [vmem:[%s4679_s15 + $0x2a0] sm:$0xff]  ;;  %v3910_v40 = vld [vmem:[%s4679_s15 + $0x2a8] sm:$0xff] }
 0x11e   : >> { %v1682_v32 = vadd.f32 %v8931_v51, %v8927_v58  ;;  %v1683_v57 = vadd.f32 %v8932_v29, %v8927_v58  ;;  %v1684_v14 = vadd.f32 %v8933_v59, %v8927_v58  ;;  %v1685_v52 = vadd.f32 %v8934_v33, %v8927_v58  ;;  %v3908_v56 = vld [vmem:[%s4679_s15 + $0x298] sm:$0xff]  ;;  %v8943_v20 = vld [vmem:[#allocation144_spill] sm:$0xff]  ;;  %v8944_v7 = vld [vmem:[#allocation143_spill] sm:$0xff] }
 0x11f   : >> { %v1686_v2 = vadd.f32 %v8935_v4, %v8927_v58  ;;  %v6432_v25 = vstv %s6327_s24  ;;  %v6435_v1 = vstv %s6345_s4  ;;  %v6438_v21 = vstv %s6358_s25  ;;  %v8945_v36 = vld [vmem:[#allocation151_spill] sm:$0xff]  ;;  %v8946_v10 = vld [vmem:[#allocation150_spill] sm:$0xff]  ;;  %v3911_v55 = vld [vmem:[%s4679_s15 + $0x2b0] sm:$0xff]  ;;  %s6620_s24 = sadd.s32 %s4295_s14, %s4693_s22  ;;  %s6645_s25 = sld [smem:[#allocation4 + %s6594_s29]] }
 0x120   : >> { %8936 = vst [vmem:[#allocation32_spill] sm:$0xff] %v6432_v25  ;;  %v1699_v60 = vmul.f32 %v8939_v26, %v6432_v25  ;;  %v1700_v17 = vmul.f32 %v8940_v37, %v6432_v25  ;;  %v1701_v48 = vmul.f32 %v8941_v13, %v6432_v25  ;;  %v1702_v8 = vmul.f32 %v8942_v34, %v6432_v25  ;;  %v3912_v51 = vld [vmem:[%s4679_s15 + $0x2b8] sm:$0xff]  ;;  %v3913_v29 = vld [vmem:[%s4679_s15 + $0x2c0] sm:$0xff]  ;;  %s6631_s4 = sld [smem:[#allocation4 + %s6620_s24]]  ;;  %v2019_v49 = vld [vmem:[%s4679_s15 + $0x29] sm:$0xff] }
 0x121   : >> { %8937 = vst [vmem:[#allocation33_spill] sm:$0xff] %v6435_v1  ;;  %v1703_v19 = vmul.f32 %v8943_v20, %v6432_v25  ;;  %v1704_v41 = vmul.f32 %v8944_v7, %v6432_v25  ;;  %v1705_v11 = vmul.f32 %v8945_v36, %v6432_v25  ;;  %v1706_v22 = vmul.f32 %v8946_v10, %v6432_v25  ;;  %v3915_v7 = vld [vmem:[%s4679_s15 + $0x708] sm:$0xff]  ;;  %v3916_v36 = vld [vmem:[%s4679_s15 + $0x710] sm:$0xff]  ;;  %s6654_s27 = sld [smem:[#allocation4 + %s6620_s24]] }
 0x122   : >> { %8938 = vst [vmem:[#allocation34_spill] sm:$0xff] %v6438_v21  ;;  %v1708_v59 = vadd.f32 %v1699_v60, %v1679_v35  ;;  %v1709_v33 = vadd.f32 %v1700_v17, %v1680_v28  ;;  %v1710_v4 = vadd.f32 %v1701_v48, %v1681_v23  ;;  %v1711_v26 = vadd.f32 %v1702_v8, %v1682_v32  ;;  %v3917_v28 = vld [vmem:[%s4679_s15 + $0x718] sm:$0xff]  ;;  %v3918_v23 = vld [vmem:[%s4679_s15 + $0x720] sm:$0xff]  ;;  %v3919_v32 = vld [vmem:[%s4679_s15 + $0x728] sm:$0xff]  ;;  %s6660_s14 = sld [smem:[#allocation4 + %s6594_s29]] }
 0x123   : >> { %v1712_v37 = vadd.f32 %v1703_v19, %v1683_v57  ;;  %v1713_v13 = vadd.f32 %v1704_v41, %v1684_v14  ;;  %v1714_v34 = vadd.f32 %v1705_v11, %v1685_v52  ;;  %v1715_v20 = vadd.f32 %v1706_v22, %v1686_v2  ;;  %v3920_v60 = vld [vmem:[%s4679_s15 + $0x730] sm:$0xff]  ;;  %v3921_v17 = vld [vmem:[%s4679_s15 + $0x738] sm:$0xff] }
 0x124   : >> { %v1728_v10 = vmul.f32 %v3906_v53, %v6435_v1  ;;  %v1729_v25 = vmul.f32 %v3907_v3, %v6435_v1  ;;  %v1730_v38 = vmul.f32 %v3908_v56, %v6435_v1  ;;  %v1731_v35 = vmul.f32 %v3909_v62, %v6435_v1  ;;  %v3922_v53 = vld [vmem:[%s4679_s15 + $0x740] sm:$0xff]  ;;  %v3997_v31 = vld [vmem:[%s4679_s15 + $0x489] sm:$0xff] }
 0x125   : >> { %v1732_v57 = vmul.f32 %v3910_v40, %v6435_v1  ;;  %v1733_v14 = vmul.f32 %v3911_v55, %v6435_v1  ;;  %v1734_v52 = vmul.f32 %v3912_v51, %v6435_v1  ;;  %v1735_v2 = vmul.f32 %v3913_v29, %v6435_v1 }
 0x126   : >> { %v1737_v48 = vadd.f32 %v1728_v10, %v1708_v59  ;;  %v1738_v3 = vadd.f32 %v1729_v25, %v1709_v33  ;;  %v1739_v8 = vadd.f32 %v1730_v38, %v1710_v4  ;;  %v1740_v56 = vadd.f32 %v1731_v35, %v1711_v26  ;;  %v8948_v10 = vld [vmem:[#allocation22_spill] sm:$0xff] }
 0x127   : >> { %v1741_v19 = vadd.f32 %v1732_v57, %v1712_v37  ;;  %v1742_v62 = vadd.f32 %v1733_v14, %v1713_v13  ;;  %v1743_v41 = vadd.f32 %v1734_v52, %v1714_v34  ;;  %v1744_v11 = vadd.f32 %v1735_v2, %v1715_v20  ;;  %v8951_v14 = vld [vmem:[#allocation25_spill] sm:$0xff]  ;;  %v8952_v2 = vld [vmem:[#allocation26_spill] sm:$0xff] }
 0x128   : >> { %v1757_v22 = vmul.f32 %v3915_v7, %v6438_v21  ;;  %v1758_v40 = vmul.f32 %v3916_v36, %v6438_v21  ;;  %v1759_v55 = vmul.f32 %v3917_v28, %v6438_v21  ;;  %v1760_v51 = vmul.f32 %v3918_v23, %v6438_v21  ;;  %v8947_v7 = vld [vmem:[#allocation20_spill] sm:$0xff]  ;;  %v8949_v28 = vld [vmem:[#allocation23_spill] sm:$0xff] }
 0x129   : >> { %v1761_v29 = vmul.f32 %v3919_v32, %v6438_v21  ;;  %v1762_v1 = vmul.f32 %v3920_v60, %v6438_v21  ;;  %v1763_v25 = vmul.f32 %v3921_v17, %v6438_v21  ;;  %v1764_v38 = vmul.f32 %v3922_v53, %v6438_v21  ;;  %v8950_v32 = vld [vmem:[#allocation24_spill] sm:$0xff]  ;;  %v8953_v17 = vld [vmem:[#allocation27_spill] sm:$0xff] }
 0x12a   : >> { %v1766_v59 = vadd.f32 %v1757_v22, %v1737_v48  ;;  %v1767_v33 = vadd.f32 %v1758_v40, %v1738_v3  ;;  %v1768_v4 = vadd.f32 %v1759_v55, %v1739_v8  ;;  %v1769_v26 = vadd.f32 %v1760_v51, %v1740_v56  ;;  %v8954_v48 = vld [vmem:[#allocation28_spill] sm:$0xff]  ;;  %v8955_v8 = vld [vmem:[#allocation51_spill] sm:$0xff] }
 0x12b   : >> { %v1770_v37 = vadd.f32 %v1761_v29, %v1741_v19  ;;  %v1771_v13 = vadd.f32 %v1762_v1, %v1742_v62  ;;  %v1772_v34 = vadd.f32 %v1763_v25, %v1743_v41  ;;  %v1773_v20 = vadd.f32 %v1764_v38, %v1744_v11  ;;  %v8956_v56 = vld [vmem:[#allocation52_spill] sm:$0xff]  ;;  %v8957_v62 = vld [vmem:[#allocation53_spill] sm:$0xff]  ;;  %v8958_v11 = vld [vmem:[#allocation54_spill] sm:$0xff] }
 0x12c   : >> { %v1795_v36 = vadd.f32 %v8947_v7, %v1766_v59  ;;  %v1796_v35 = vadd.f32 %v8948_v10, %v1767_v33  ;;  %v1797_v23 = vadd.f32 %v8949_v28, %v1768_v4  ;;  %v1798_v57 = vadd.f32 %v8950_v32, %v1769_v26  ;;  %v8959_v40 = vld [vmem:[#allocation55_spill] sm:$0xff]  ;;  %v8960_v51 = vld [vmem:[#allocation56_spill] sm:$0xff]  ;;  %v8961_v25 = vld [vmem:[#allocation57_spill] sm:$0xff]  ;;  %v1300_v10 = vpop.permute.xlu2 %1299 }
 0x12d   : >> { %v1799_v52 = vadd.f32 %v8951_v14, %v1770_v37  ;;  %v1800_v60 = vadd.f32 %v8952_v2, %v1771_v13  ;;  %v1801_v53 = vadd.f32 %v8953_v17, %v1772_v34  ;;  %v1802_v3 = vadd.f32 %v8954_v48, %v1773_v20  ;;  %v8962_v59 = vld [vmem:[#allocation58_spill] sm:$0xff]  ;;  %v8964_v37 = vld [vmem:[#allocation167_spill] sm:$0xff]  ;;  %v8965_v34 = vld [vmem:[#allocation169_spill] sm:$0xff] }
 0x12e   : >> { %v1824_v1 = vadd.f32 %v8955_v8, %v1795_v36  ;;  %v1825_v19 = vadd.f32 %v8956_v56, %v1796_v35  ;;  %v1826_v41 = vadd.f32 %v8957_v62, %v1797_v23  ;;  %v1827_v22 = vadd.f32 %v8958_v11, %v1798_v57  ;;  %v8963_v4 = vld [vmem:[#allocation166_spill] sm:$0xff]  ;;  %v8967_v35 = vld [vmem:[#allocation171_spill] sm:$0xff]  ;;  %v8968_v23 = vld [vmem:[#allocation172_spill] sm:$0xff] }
 0x12f   : >> { %v1828_v55 = vadd.f32 %v8959_v40, %v1799_v52  ;;  %v1829_v29 = vadd.f32 %v8960_v51, %v1800_v60  ;;  %v1830_v38 = vadd.f32 %v8961_v25, %v1801_v53  ;;  %v1831_v33 = vadd.f32 %v8962_v59, %v1802_v3  ;;  %v8966_v7 = vld [vmem:[#allocation170_spill] sm:$0xff]  ;;  %v8969_v57 = vld [vmem:[#allocation173_spill] sm:$0xff]  ;;  %v8971_v60 = vld [vmem:[#allocation176_spill] sm:$0xff] }
 0x130   : >> { %v1854_v26 = vadd.f32 %v8963_v4, %v1824_v1  ;;  %v1855_v13 = vadd.f32 %v8964_v37, %v1825_v19  ;;  %v1856_v20 = vadd.f32 %v8965_v34, %v1826_v41  ;;  %v1857_v36 = vadd.f32 %v8966_v7, %v1827_v22  ;;  %v8970_v52 = vld [vmem:[#allocation174_spill] sm:$0xff]  ;;  %v8972_v53 = vld [vmem:[#allocation177_spill] sm:$0xff]  ;;  %v8973_v3 = vld [vmem:[#allocation179_spill] sm:$0xff]  ;;  %v1113_v34 = vpop.permute.xlu0 %1112 }
 0x131   : >> { %v1858_v28 = vadd.f32 %v8967_v35, %v1828_v55  ;;  %v1859_v32 = vadd.f32 %v8968_v23, %v1829_v29  ;;  %v1860_v14 = vadd.f32 %v8969_v57, %v1830_v38  ;;  %v1861_v2 = vadd.f32 %v8970_v52, %v1831_v33  ;;  %v8974_v1 = vld [vmem:[#allocation180_spill] sm:$0xff]  ;;  %v8975_v19 = vld [vmem:[#allocation181_spill] sm:$0xff]  ;;  %v8976_v41 = vld [vmem:[#allocation182_spill] sm:$0xff]  ;;  %v1115_v29 = vpop.permute.xlu1 %1114 }
 0x132   : >> { %v1884_v17 = vadd.f32 %v8971_v60, %v1854_v26  ;;  %v1885_v48 = vadd.f32 %v8972_v53, %v1855_v13  ;;  %v1886_v8 = vadd.f32 %v8973_v3, %v1856_v20  ;;  %v1887_v56 = vadd.f32 %v8974_v1, %v1857_v36  ;;  %v8977_v22 = vld [vmem:[#allocation183_spill] sm:$0xff]  ;;  %v8978_v55 = vld [vmem:[#allocation184_spill] sm:$0xff]  ;;  %v8979_v25 = vld [vmem:[#allocation185_spill] sm:$0xff] }
 0x133   : >> { %v1888_v62 = vadd.f32 %v8975_v19, %v1858_v28  ;;  %v1889_v11 = vadd.f32 %v8976_v41, %v1859_v32  ;;  %v1890_v40 = vadd.f32 %v8977_v22, %v1860_v14  ;;  %v1891_v51 = vadd.f32 %v8978_v55, %v1861_v2  ;;  %v8980_v59 = vld [vmem:[#allocation186_spill] sm:$0xff]  ;;  %v8981_v4 = vld [vmem:[#allocation188_spill] sm:$0xff]  ;;  %v8983_v20 = vld [vmem:[#allocation63_spill] sm:$0xff] }
 0x134   : >> { %v1914_v38 = vadd.f32 %v8979_v25, %v1884_v17  ;;  %v1915_v33 = vadd.f32 %v8980_v59, %v1885_v48  ;;  %v1916_v26 = vadd.f32 %v8981_v4, %v1886_v8  ;;  %v8982_v37 = vld [vmem:[#allocation190_spill] sm:$0xff]  ;;  %v634_v7 = vadd.f32 %v8983_v20, %v6392_v46  ;;  %v8984_v36 = vld [vmem:[#allocation64_spill] sm:$0xff]  ;;  %v8985_v32 = vld [vmem:[#allocation65_spill] sm:$0xff] }
 0x135   : >> { %v1917_v13 = vadd.f32 %v8982_v37, %v1887_v56  ;;  %v635_v35 = vadd.f32 %v8984_v36, %v6395_v43  ;;  %v1918_v28 = vadd.f32 %v6321_v0, %v1888_v62  ;;  %v1919_v23 = vadd.f32 %v6330_v54, %v1889_v11  ;;  %v8986_v14 = vld [vmem:[#allocation66_spill] sm:$0xff]  ;;  %v8987_v2 = vld [vmem:[#allocation67_spill] sm:$0xff]  ;;  %v8988_v17 = vld [vmem:[#allocation81_spill] sm:$0xff] }
 0x136   : >> { %v636_v57 = vadd.f32 %v8985_v32, %v6398_v6  ;;  %v637_v52 = vadd.f32 %v8986_v14, %v6401_v12  ;;  %v638_v60 = vadd.f32 %v8987_v2, %v6404_v63  ;;  %v6538_v46 = vadd.f32 %v8988_v17, %v6407_v16  ;;  %v8989_v6 = vld [vmem:[#allocation82_spill] sm:$0xff]  ;;  %v8992_v3 = vld [vmem:[#allocation85_spill] sm:$0xff]  ;;  %v8996_v19 = vld [vmem:[#allocation164_spill] sm:$0xff] }
 0x137   : >> { %v1920_v53 = vadd.f32 %v6333_v5, %v1890_v40  ;;  %v1921_v43 = vadd.f32 %v6336_v61, %v1891_v51  ;;  %v1944_v0 = vadd.f32 %v6342_v27, %v1914_v38  ;;  %v1945_v54 = vadd.f32 %v6370_v45, %v1915_v33  ;;  %v8990_v5 = vld [vmem:[#allocation83_spill] sm:$0xff]  ;;  %v8991_v27 = vld [vmem:[#allocation84_spill] sm:$0xff]  ;;  %v8993_v8 = vld [vmem:[#allocation86_spill] sm:$0xff] }
 0x138   : >> { %v6546_v12 = vadd.f32 %v8989_v6, %v6410_v30  ;;  %v1946_v63 = vadd.f32 %v6373_v42, %v1916_v26  ;;  %v1947_v16 = vadd.f32 %v6377_v15, %v1917_v13  ;;  %v1948_v48 = vadd.f32 %v6380_v9, %v1918_v28  ;;  %v8994_v9 = vld [vmem:[#allocation87_spill] sm:$0xff]  ;;  %v3773_v41 = vld [vmem:[%s4679_s15 + $0x1d0] sm:$0xff]  ;;  %v6577_v11 = vld [vmem:[%s4679_s15 + $0x268] sm:$0xff] }
 0x139   : >> { %v6554_v61 = vadd.f32 %v8990_v5, %v6413_v50  ;;  %v6557_v45 = vadd.f32 %v8991_v27, %v634_v7  ;;  %v6560_v30 = vadd.f32 %v8992_v3, %v635_v35  ;;  %v1949_v42 = vadd.f32 %v6383_v24, %v1919_v23  ;;  %v8995_v50 = vld [vmem:[#allocation88_spill] sm:$0xff]  ;;  %v6580_v22 = vld [vmem:[%s4679_s15 + $0x260] sm:$0xff]  ;;  %v8997_v55 = vld [vmem:[#allocation69_spill] sm:$0xff] }
 0x13a   : >> { %v6564_v15 = vadd.f32 %v8993_v8, %v636_v57  ;;  %v6567_v1 = vadd.f32 %v8994_v9, %v637_v52  ;;  %v6570_v56 = vadd.f32 %v8995_v50, %v638_v60  ;;  %v6573_v62 = vadd.f32 %v1300_v10, %v8996_v19  ;;  %v8998_v25 = vld [vmem:[#allocation70_spill] sm:$0xff]  ;;  %v3772_v59 = vld [vmem:[%s4679_s15 + $0x1c8] sm:$0xff]  ;;  %v6591_v10 = vpop.permute.xlu2 %1305  ;;  %v9003_v35 = vld [vmem:[#allocation77_spill] sm:$0xff]  ;;  %v1121_v60 = vpop.permute.xlu1 %1120 }
 0x13b   : >> { %v1950_v24 = vadd.f32 %v6386_v47, %v1920_v53  ;;  %v1951_v40 = vadd.f32 %v6389_v44, %v1921_v43  ;;  %v1974_v51 = vadd.f32 %v8997_v55, %v1944_v0  ;;  %v1975_v38 = vadd.f32 %v8998_v25, %v1945_v54  ;;  %v6588_v33 = vld [vmem:[%s4679_s15 + $0x258] sm:$0xff]  ;;  %v8999_v47 = vld [vmem:[#allocation71_spill] sm:$0xff]  ;;  %v9001_v13 = vld [vmem:[#allocation76_spill] sm:$0xff] }
 0x13c   : >> { %v3795_v4 = vld [vmem:[%s4679_s15 + $0x238] sm:$0x3f]  ;;  %v1976_v26 = vadd.f32 %v8999_v47, %v1946_v63  ;;  %v9000_v44 = vld [vmem:[#allocation75_spill] sm:$0xff]  ;;  %v1978_v20 = vadd.f32 %v9001_v13, %v1948_v48  ;;  %v1979_v28 = vadd.f32 %v9003_v35, %v1949_v42  ;;  %v9005_v57 = vld [vmem:[#allocation152_spill] sm:$0xff] }
 0x13d   : >> { %v1977_v37 = vadd.f32 %v9000_v44, %v1947_v16  ;;  %v9002_v7 = vld [vmem:[#allocation134_spill] sm:$0xff]  ;;  %v9004_v23 = vld [vmem:[#allocation11_spill] sm:$0xff]  ;;  %v2340_v14 = vmul.f32 %v6577_v11, %v9005_v57  ;;  %v2339_v52 = vmul.f32 %v6580_v22, %v9005_v57  ;;  %v3776_v2 = vld [vmem:[%s4679_s15 + $0x1e8] sm:$0xff]  ;;  %v2338_v54 = vmul.f32 %v6588_v33, %v9005_v57  ;;  %v1119_v16 = vpop.permute.xlu0 %1118 }
 0x13e   : >> { %v1137_v36 = vadd.f32 %v1115_v29, %v9002_v7  ;;  %v1136_v32 = vadd.f32 %v1113_v34, %v9004_v23  ;;  %v9006_v17 = vld [vmem:[#allocation121_spill] sm:$0xff]  ;;  %v3781_v0 = vld [vmem:[%s4679_s15 + $0x648] sm:$0xff]  ;;  %v3775_v63 = vld [vmem:[%s4679_s15 + $0x1e0] sm:$0xff] }
 0x13f   : >> { %v1157_v53 = vmul.f32 %v3773_v41, %v9006_v17  ;;  %v3782_v43 = vld [vmem:[%s4679_s15 + $0x650] sm:$0xff]  ;;  %v1156_v29 = vmul.f32 %v3772_v59, %v9006_v17  ;;  %v9007_v6 = vld [vmem:[#allocation148_spill] sm:$0xff]  ;;  %v9008_v48 = vld [vmem:[#allocation78_spill] sm:$0xff]  ;;  %2363 = vrot.lane.b32.xlu2 %v2340_v14, %s8631_s26  ;;  %2361 = vrot.lane.b32.xlu1 %v2339_v52, %s8631_s26 }
 0x140   : >> { %v1220_v34 = vmul.f32 %v3795_v4, %v9007_v6  ;;  %v1980_v5 = vadd.f32 %v9008_v48, %v1950_v24  ;;  %v9009_v27 = vld [vmem:[#allocation79_spill] sm:$0xff]  ;;  %v9010_v42 = vld [vmem:[#allocation89_spill] sm:$0xff]  ;;  %v3804_v9 = vld [vmem:[%s4679_s15 + $0x6b8] sm:$0x3f]  ;;  %2359 = vrot.lane.b32.xlu0 %v2338_v54, %s8631_s26  ;;  %s6671_s26 = sld [smem:[#allocation4 + %s6620_s24]] }
 0x141   : >> { %v1981_v3 = vadd.f32 %v9009_v27, %v1951_v40  ;;  %v6625_v8 = vadd.f32 %v9010_v42, %v1974_v51  ;;  %v9011_v50 = vld [vmem:[#allocation91_spill] sm:$0xff]  ;;  %v9012_v41 = vld [vmem:[#allocation92_spill] sm:$0xff]  ;;  %v1160_v40 = vmul.f32 %v3776_v2, %v9006_v17  ;;  %v9013_v55 = vld [vmem:[#allocation161_spill] sm:$0xff]  ;;  %v1166_v23 = vadd.f32 %v1157_v53, %v1137_v36 }
 0x142   : >> { %v6634_v19 = vadd.f32 %v9011_v50, %v1975_v38  ;;  %v6637_v24 = vadd.f32 %v9012_v41, %v1976_v26  ;;  %v1140_v51 = vadd.f32 %v1121_v60, %v9013_v55  ;;  %v4096_v25 = vld [vmem:[%s4679_s15 + $0x280] sm:$0x3f]  ;;  %v4095_v59 = vld [vmem:[%s4679_s15 + $0x278] sm:$0xff]  ;;  %v3785_v44 = vld [vmem:[%s4679_s15 + $0x668] sm:$0xff]  ;;  %v1159_v26 = vmul.f32 %v3775_v63, %v9006_v17 }
 0x143   : >> { %v9014_v4 = vld [vmem:[#allocation126_spill] sm:$0xff]  ;;  %v4094_v35 = vld [vmem:[%s4679_s15 + $0x270] sm:$0xff]  ;;  %v1165_v14 = vadd.f32 %v1156_v29, %v1136_v32  ;;  %v9019_v63 = vld [vmem:[#allocation95_spill] sm:$0xff]  ;;  %v2343_v48 = vmul.f32 %v4096_v25, %v9005_v57  ;;  %v2342_v36 = vmul.f32 %v4095_v59, %v9005_v57 }
 0x144   : >> { %v1186_v47 = vmul.f32 %v3782_v43, %v9014_v4  ;;  %v1185_v38 = vmul.f32 %v3781_v0, %v9014_v4  ;;  %v9015_v13 = vld [vmem:[#allocation162_spill] sm:$0xff]  ;;  %v9016_v52 = vld [vmem:[#allocation149_spill] sm:$0xff]  ;;  %v3784_v0 = vld [vmem:[%s4679_s15 + $0x660] sm:$0xff]  ;;  %v1189_v32 = vmul.f32 %v3785_v44, %v9014_v4  ;;  %v1169_v53 = vadd.f32 %v1160_v40, %v1140_v51  ;;  %v6688_v44 = vpop.permute.xlu2 %1358 }
 0x145   : >> { %v1139_v7 = vadd.f32 %v1119_v16, %v9015_v13  ;;  %v1250_v2 = vmul.f32 %v3804_v9, %v9016_v52  ;;  %v9017_v60 = vld [vmem:[#allocation165_spill] sm:$0xff]  ;;  %v9018_v54 = vld [vmem:[#allocation94_spill] sm:$0xff]  ;;  %v6666_v16 = vadd.f32 %v9019_v63, %v1978_v20  ;;  %v2341_v29 = vmul.f32 %v4094_v35, %v9005_v57  ;;  %v3664_v27 = vld [vmem:[%s4679_s15 + $0x248] sm:$0xff] }
 0x146   : >> { %v1229_v43 = vadd.f32 %v1220_v34, %v9017_v60  ;;  %v6663_v17 = vadd.f32 %v9018_v54, %v1977_v37  ;;  %v3663_v34 = vld [vmem:[%s4679_s15 + $0x240] sm:$0xff]  ;;  %v3665_v42 = vld [vmem:[%s4679_s15 + $0x250] sm:$0xff]  ;;  %v6679_v37 = vstv %s6602_s21  ;;  %v9021_v9 = vld [vmem:[#allocation96_spill] sm:$0xff]  ;;  %v1188_v55 = vmul.f32 %v3784_v0, %v9014_v4  ;;  %s9027_s21 = smov 127  }
 0x147   : >> { %9020 = vst [vmem:[#allocation35_spill] sm:$0xff] %v6679_v37  ;;  %v6682_v20 = vadd.f32 %v9021_v9, %v1979_v28  ;;  %v9022_v50 = vld [vmem:[#allocation97_spill] sm:$0xff]  ;;  %v1168_v25 = vadd.f32 %v1159_v26, %v1139_v7  ;;  %v9023_v40 = vld [vmem:[#allocation98_spill] sm:$0xff]  ;;  %v6693_v51 = vadd.f32 %v1186_v47, %v1166_v23  ;;  %v6695_v13 = vadd.f32 %v1185_v38, %v1165_v14  ;;  %v6707_v47 = vld [vmem:[%s4679_s15 + $0x6c0] sm:$0xff]  ;;  %v6765_v9 = vpop.permute.xlu1 %1291 }
 0x148   : >> { %v6685_v41 = vadd.f32 %v9022_v50, %v1980_v5  ;;  %v6691_v57 = vadd.f32 %v9023_v40, %v1981_v3  ;;  %v1259_v28 = vadd.f32 %v1250_v2, %v1229_v43  ;;  %2369 = vrot.lane.b32.xlu2 %v2343_v48, %s9027_s21  ;;  %2367 = vrot.lane.b32.xlu1 %v2342_v36, %s9027_s21  ;;  %v6710_v38 = vstv %s6631_s4  ;;  %v6723_v2 = vld [vmem:[%s4679_s15 + $0x6c8] sm:$0xff]  ;;  %v6767_v50 = vpop.permute.xlu0 %1289  ;;  %s4299_s4 = sadd.s32 1920, %s4695_s23 }
 0x149   : >> { %9025 = vst [vmem:[#allocation38_spill] sm:$0xff] %v6693_v51  ;;  %v688_v5 = vmul.f32 %v3663_v34, %v6679_v37  ;;  %v6701_v4 = vmul.f32 %v3664_v27, %v6679_v37  ;;  %v6704_v3 = vmul.f32 %v3665_v42, %v6679_v37  ;;  %v6715_v7 = vadd.f32 %v1189_v32, %v1169_v53  ;;  %v6726_v60 = vld [vmem:[%s4679_s15 + $0x6d0] sm:$0xff]  ;;  %v3825_v43 = vld [vmem:[%s4679_s15 + $0x2e0] sm:$0xff]  ;;  %v6742_v48 = vld [vmem:[%s4679_s15 + $0x6e8] sm:$0xff] }
 0x14a   : >> { %9024 = vst [vmem:[#allocation36_spill] sm:$0xff] %v6691_v57  ;;  %v6713_v26 = vadd.f32 %v6591_v10, %v1259_v28  ;;  %2365 = vrot.lane.b32.xlu0 %v2341_v29, %s9027_s21  ;;  %v691_v23 = vmul.f32 %v6588_v33, %v6679_v37  ;;  %v692_v14 = vmul.f32 %v6580_v22, %v6679_v37  ;;  %v6729_v10 = vld [vmem:[%s4679_s15 + $0x6d8] sm:$0xff]  ;;  %v6739_v63 = vld [vmem:[%s4679_s15 + $0x6e0] sm:$0xff]  ;;  %v6745_v36 = vld [vmem:[%s4679_s15 + $0x6f0] sm:$0xff] }
 0x14b   : >> { %9026 = vst [vmem:[#allocation39_spill] sm:$0xff] %v6695_v13  ;;  %v6732_v0 = vadd.f32 %v1188_v55, %v1168_v25  ;;  %v693_v33 = vmul.f32 %v6577_v11, %v6679_v37  ;;  %v694_v54 = vmul.f32 %v4094_v35, %v6679_v37  ;;  %v695_v22 = vmul.f32 %v4095_v59, %v6679_v37  ;;  %v6748_v32 = vld [vmem:[%s4679_s15 + $0x6f8] sm:$0xff]  ;;  %v3834_v53 = vld [vmem:[%s4679_s15 + $0x760] sm:$0xff]  ;;  %v2015_v34 = vld [vmem:[%s4679_s15 + $0x9] sm:$0xff] }
 0x14c   : >> { %9028 = vst [vmem:[#allocation40_spill] sm:$0xff] %v6710_v38  ;;  %v2014_v29 = vld [vmem:[%s4679_s15 + $0x1] sm:$0xff]  ;;  %v721_v11 = vmul.f32 %v6707_v47, %v6710_v38  ;;  %v6756_v35 = vstv %s6645_s25  ;;  %v6759_v59 = vstv %s6654_s27  ;;  %v2016_v27 = vld [vmem:[%s4679_s15 + $0x11] sm:$0xff]  ;;  %v722_v55 = vmul.f32 %v6723_v2, %v6710_v38  ;;  %s6923_s27 = sadd.s32 %s4299_s4, %s4693_s22 }
 0x14d   : >> { %9029 = vst [vmem:[#allocation44_spill] sm:$0xff] %v6713_v26  ;;  %v6763_v42 = vstv %s6660_s14  ;;  %v723_v25 = vmul.f32 %v6726_v60, %v6710_v38  ;;  %v724_v40 = vmul.f32 %v6729_v10, %v6710_v38  ;;  %v2017_v28 = vld [vmem:[%s4679_s15 + $0x19] sm:$0xff]  ;;  %v2018_v21 = vld [vmem:[%s4679_s15 + $0x21] sm:$0xff]  ;;  %v6779_v39 = vstv %s6671_s26  ;;  %s6816_s26 = sld [smem:[#allocation4 + %s4713_s28]]  ;;  %s4297_s28 = sadd.s32 1792, %s4695_s23 }
 0x14e   : >> { %9030 = vst [vmem:[#allocation45_spill] sm:$0xff] %v6715_v7  ;;  %v725_v58 = vmul.f32 %v6739_v63, %v6710_v38  ;;  %v726_v37 = vmul.f32 %v6742_v48, %v6710_v38  ;;  %v728_v7 = vmul.f32 %v6748_v32, %v6710_v38  ;;  %v2020_v26 = vld [vmem:[%s4679_s15 + $0x31] sm:$0xff]  ;;  %v2025_v13 = vmul.f32 %v6763_v42, %v2015_v34  ;;  %v4001_v34 = vld [vmem:[%s4679_s15 + $0x4a9] sm:$0xff]  ;;  %s6903_s25 = sadd.s32 %s4297_s28, %s4693_s22  ;;  %s6933_s14 = sld [smem:[#allocation4 + %s6923_s27]] }
 0x14f   : >> { %9031 = vst [vmem:[#allocation46_spill] sm:$0xff] %v6729_v10  ;;  %v1403_v10 = vmul.f32 %v3825_v43, %v6756_v35  ;;  %v2029_v51 = vmul.f32 %v6763_v42, %v2019_v49  ;;  %v3998_v43 = vld [vmem:[%s4679_s15 + $0x491] sm:$0xff]  ;;  %v4003_v49 = vld [vmem:[%s4679_s15 + $0x4b9] sm:$0xff]  ;;  %v698_v18 = vadd.f32 %v6701_v4, %v6546_v12  ;;  %s6912_s23 = sld [smem:[#allocation4 + %s6903_s25]]  ;;  %s3723_s28 = smul.u32 288, %s4564_s19 }
 0x150   : >> { %9032 = vst [vmem:[#allocation47_spill] sm:$0xff] %v6732_v0  ;;  %v727_v0 = vmul.f32 %v6745_v36, %v6710_v38  ;;  %v2027_v38 = vmul.f32 %v6763_v42, %v2017_v28  ;;  %v4002_v28 = vld [vmem:[%s4679_s15 + $0x4b1] sm:$0xff]  ;;  %v2055_v12 = vmul.f32 %v3998_v43, %v6779_v39  ;;  %s6979_s22 = sld [smem:[#allocation4 + %s6903_s25]] }
 0x151   : >> { %9033 = vst [vmem:[#allocation48_spill] sm:$0xff] %v6739_v63  ;;  %v6794_v63 = vmul.f32 %v3834_v53, %v6759_v59  ;;  %v2030_v53 = vmul.f32 %v6763_v42, %v2020_v26  ;;  %v699_v26 = vadd.f32 %v6704_v3, %v6554_v61  ;;  %v3788_v3 = vld [vmem:[%s4679_s15 + $0x200] sm:$0xff]  ;;  %s7149_s4 = sld [smem:[#allocation4 + %s6903_s25]] }
 0x152   : >> { %9034 = vst [vmem:[#allocation49_spill] sm:$0xff] %v6742_v48  ;;  %v2024_v48 = vmul.f32 %v6763_v42, %v2014_v29  ;;  %v3999_v29 = vld [vmem:[%s4679_s15 + $0x499] sm:$0xff]  ;;  %v1213_v43 = vmul.f32 %v3788_v3, %v9007_v6 }
 0x153   : >> { %9035 = vst [vmem:[#allocation16_spill] sm:$0xff] %v6745_v36  ;;  %v2026_v36 = vmul.f32 %v6763_v42, %v2016_v27  ;;  %v697_v27 = vadd.f32 %v688_v5, %v6538_v46  ;;  %v702_v46 = vadd.f32 %v693_v33, %v6564_v15  ;;  %v703_v5 = vadd.f32 %v694_v54, %v6567_v1  ;;  %v9044_v1 = vld [vmem:[#allocation175_spill] sm:$0xff] }
 0x154   : >> { %9036 = vst [vmem:[#allocation15_spill] sm:$0xff] %v6748_v32  ;;  %v2028_v32 = vmul.f32 %v6763_v42, %v2018_v21  ;;  %v1365_v21 = vpop.permute.xlu2 %1364  ;;  %v6834_v4 = vmul.f32 %v3999_v29, %v6779_v39  ;;  %v3828_v29 = vld [vmem:[%s4679_s15 + $0x2f8] sm:$0xff] }
 0x155   : >> { %9037 = vst [vmem:[#allocation153_spill] sm:$0xff] %v6759_v59  ;;  %v4000_v59 = vld [vmem:[%s4679_s15 + $0x4a1] sm:$0xff]  ;;  %v6848_v15 = vadd.f32 %v721_v11, %v697_v27  ;;  %v6864_v11 = vpop.permute.xlu0 %1295  ;;  %v9045_v27 = vld [vmem:[#allocation30_spill] sm:$0xff] }
 0x156   : >> { %9038 = vst [vmem:[#allocation19_spill] sm:$0xff] %v6763_v42  ;;  %v6837_v61 = vmul.f32 %v4000_v59, %v6779_v39  ;;  %v6862_v59 = vpop.permute.xlu1 %1297 }
 0x157   : >> { %9039 = vst [vmem:[#allocation18_spill] sm:$0xff] %v6765_v9  ;;  %v3996_v9 = vld [vmem:[%s4679_s15 + $0x481] sm:$0xff] }
 0x158   : >> { %9040 = vst [vmem:[#allocation187_spill] sm:$0xff] %v6767_v50  ;;  %v2021_v50 = vld [vmem:[%s4679_s15 + $0x39] sm:$0xff]  ;;  %v6812_v57 = vmul.f32 %v3996_v9, %v6779_v39  ;;  %v6827_v9 = vmul.f32 %v3997_v31, %v6779_v39  ;;  %v6843_v31 = vmul.f32 %v4002_v28, %v6779_v39 }
 0x159   : >> { %9041 = vst [vmem:[#allocation155_spill] sm:$0xff] %v6779_v39 }
 0x15a   : >> { %9042 = vst [vmem:[#allocation43_spill] sm:$0xff] %v6794_v63  ;;  %v6806_v63 = vmul.f32 %v6763_v42, %v2021_v50  ;;  %v700_v50 = vadd.f32 %v691_v23, %v6557_v45  ;;  %v701_v42 = vadd.f32 %v692_v14, %v6560_v30  ;;  %v6840_v45 = vmul.f32 %v4001_v34, %v6779_v39 }
 0x15b   : >> { %9043 = vst [vmem:[#allocation42_spill] sm:$0xff] %v6812_v57  ;;  %v704_v57 = vadd.f32 %v695_v22, %v6570_v56  ;;  %v6846_v30 = vmul.f32 %v4003_v49, %v6779_v39  ;;  %v1383_v56 = vadd.f32 %v6688_v44, %v9044_v1  ;;  %v6853_v23 = vadd.f32 %v722_v55, %v698_v18  ;;  %v3787_v22 = vld [vmem:[%s4679_s15 + $0x1f8] sm:$0xff] }
 0x15c   : >> { %v6855_v14 = vadd.f32 %v723_v25, %v699_v26  ;;  %v6857_v33 = vadd.f32 %v724_v40, %v700_v50  ;;  %v6859_v54 = vadd.f32 %v725_v58, %v701_v42  ;;  %v6866_v44 = vadd.f32 %v726_v37, %v702_v46  ;;  %v3791_v37 = vld [vmem:[%s4679_s15 + $0x218] sm:$0xff]  ;;  %v9048_v50 = vld [vmem:[#allocation31_spill] sm:$0xff] }
 0x15d   : >> { %v6868_v18 = vadd.f32 %v727_v0, %v703_v5  ;;  %v6870_v55 = vadd.f32 %v728_v7, %v704_v57  ;;  %v2033_v25 = vadd.f32 %v2024_v48, %v6625_v8  ;;  %v2034_v58 = vadd.f32 %v2025_v13, %v6634_v19  ;;  %v3797_v7 = vld [vmem:[%s4679_s15 + $0x680] sm:$0xff]  ;;  %v3796_v13 = vld [vmem:[%s4679_s15 + $0x678] sm:$0xff] }
 0x15e   : >> { %v2035_v42 = vadd.f32 %v2026_v36, %v6637_v24  ;;  %v2036_v40 = vadd.f32 %v2027_v38, %v6663_v17  ;;  %v1412_v0 = vadd.f32 %v1403_v10, %v1383_v56  ;;  %v2037_v57 = vadd.f32 %v2028_v32, %v6666_v16  ;;  %v3790_v24 = vld [vmem:[%s4679_s15 + $0x210] sm:$0xff]  ;;  %v3837_v32 = vld [vmem:[%s4679_s15 + $0x778] sm:$0xff] }
 0x15f   : >> { %v1212_v8 = vmul.f32 %v3787_v22, %v9007_v6  ;;  %v6884_v19 = vstv %s6816_s26  ;;  %v2038_v17 = vadd.f32 %v2029_v51, %v6682_v20  ;;  %v2039_v10 = vadd.f32 %v2030_v53, %v6685_v41  ;;  %v3800_v51 = vld [vmem:[%s4679_s15 + $0x698] sm:$0xff]  ;;  %v3799_v53 = vld [vmem:[%s4679_s15 + $0x690] sm:$0xff]  ;;  %s6990_s26 = sld [smem:[#allocation4 + %s6923_s27]] }
 0x160   : >> { %v2402_v38 = vmul.f32 %v6726_v60, %v6884_v19  ;;  %v2401_v48 = vmul.f32 %v6723_v2, %v6884_v19  ;;  %v2400_v16 = vmul.f32 %v6707_v47, %v6884_v19  ;;  %v1406_v36 = vmul.f32 %v3828_v29, %v6756_v35  ;;  %v1371_v60 = vpop.permute.xlu2 %1370 }
 0x161   : >> { %v1386_v34 = vadd.f32 %v1365_v21, %v6573_v62  ;;  %v1216_v20 = vmul.f32 %v3791_v37, %v9007_v6  ;;  %v1243_v2 = vmul.f32 %v3797_v7, %v9016_v52  ;;  %v1222_v47 = vadd.f32 %v1213_v43, %v9045_v27  ;;  %v9046_v62 = vld [vmem:[#allocation36_spill] sm:$0xff]  ;;  %v9051_v37 = vld [vmem:[#allocation39_spill] sm:$0xff]  ;;  %v3803_v27 = vld [vmem:[%s4679_s15 + $0x6b0] sm:$0xff] }
 0x162   : >> { %2422 = vrot.lane.b32.xlu2 %v2402_v38, %s9027_s21  ;;  %2420 = vrot.lane.b32.xlu1 %v2401_v48, %s9027_s21  ;;  %v1215_v41 = vmul.f32 %v3790_v24, %v9007_v6  ;;  %v2040_v21 = vadd.f32 %v6806_v63, %v9046_v62  ;;  %v9047_v28 = vld [vmem:[#allocation42_spill] sm:$0xff]  ;;  %v1242_v26 = vmul.f32 %v3796_v13, %v9016_v52  ;;  %v9049_v63 = vld [vmem:[#allocation153_spill] sm:$0xff]  ;;  %v9055_v24 = vld [vmem:[#allocation48_spill] sm:$0xff] }
 0x163   : >> { %v6917_v49 = vadd.f32 %v9047_v28, %v2033_v25  ;;  %v1221_v46 = vadd.f32 %v1212_v8, %v9048_v50  ;;  %2418 = vrot.lane.b32.xlu0 %v2400_v16, %s9027_s21  ;;  %v6926_v5 = vadd.f32 %v6827_v9, %v2034_v58  ;;  %v6928_v1 = vadd.f32 %v2055_v12, %v2035_v42  ;;  %v9050_v25 = vld [vmem:[#allocation38_spill] sm:$0xff]  ;;  %v9052_v8 = vld [vmem:[#allocation43_spill] sm:$0xff]  ;;  %v9054_v58 = vld [vmem:[#allocation49_spill] sm:$0xff] }
 0x164   : >> { %v1435_v56 = vmul.f32 %v3837_v32, %v9049_v63  ;;  %v1246_v3 = vmul.f32 %v3800_v51, %v9016_v52  ;;  %v1415_v22 = vadd.f32 %v1406_v36, %v1386_v34  ;;  %v1225_v43 = vadd.f32 %v1216_v20, %v9050_v25  ;;  %v3831_v38 = vld [vmem:[%s4679_s15 + $0x310] sm:$0x3f]  ;;  %v6948_v36 = vpop.permute.xlu1 %1303  ;;  %v6950_v32 = vpop.permute.xlu0 %1301  ;;  %v9058_v51 = vld [vmem:[#allocation46_spill] sm:$0xff]  ;;  %v3683_v62 = vld [vmem:[%s4679_s15 + $0x288] sm:$0xff] }
 0x165   : >> { %v1245_v29 = vmul.f32 %v3799_v53, %v9016_v52  ;;  %v1224_v7 = vadd.f32 %v1215_v41, %v9051_v37  ;;  %v6939_v9 = vadd.f32 %v9052_v8, %v1412_v0  ;;  %v1252_v12 = vadd.f32 %v1243_v2, %v1222_v47  ;;  %v3840_v48 = vld [vmem:[%s4679_s15 + $0x790] sm:$0x3f]  ;;  %9056 = vst [vmem:[#allocation74_spill] sm:$0xff] %v6948_v36  ;;  %v3793_v47 = vld [vmem:[%s4679_s15 + $0x228] sm:$0xff]  ;;  %v4105_v41 = vld [vmem:[%s4679_s15 + $0x700] sm:$0x3f] }
 0x166   : >> { %v2405_v42 = vmul.f32 %v9054_v58, %v6884_v19  ;;  %v2404_v13 = vmul.f32 %v9055_v24, %v6884_v19  ;;  %v3794_v16 = vld [vmem:[%s4679_s15 + $0x230] sm:$0xff]  ;;  %9057 = vst [vmem:[#allocation73_spill] sm:$0xff] %v6950_v32  ;;  %v6953_v0 = vadd.f32 %v6834_v4, %v2036_v40  ;;  %v6956_v34 = vadd.f32 %v6837_v61, %v2037_v57  ;;  %v9059_v40 = vld [vmem:[#allocation18_spill] sm:$0xff]  ;;  %v9060_v50 = vld [vmem:[#allocation187_spill] sm:$0xff] }
 0x167   : >> { %9053 = vst [vmem:[#allocation37_spill] sm:$0xff] %v6939_v9  ;;  %v1251_v20 = vadd.f32 %v1242_v26, %v1221_v46  ;;  %v2403_v2 = vmul.f32 %v9058_v51, %v6884_v19  ;;  %v6964_v53 = vadd.f32 %v6840_v45, %v2038_v17  ;;  %v6967_v4 = vadd.f32 %v6843_v31, %v2039_v10  ;;  %v3684_v28 = vld [vmem:[%s4679_s15 + $0x290] sm:$0xff]  ;;  %v3685_v26 = vld [vmem:[%s4679_s15 + $0x298] sm:$0xff]  ;;  %v3686_v10 = vld [vmem:[%s4679_s15 + $0x2a0] sm:$0xff] }
 0x168   : >> { %v6970_v61 = vadd.f32 %v6846_v30, %v2040_v21  ;;  %v6973_v57 = vadd.f32 %v9059_v40, %v1252_v12  ;;  %v6984_v45 = vadd.f32 %v1435_v56, %v1415_v22  ;;  %v1255_v31 = vadd.f32 %v1246_v3, %v1225_v43  ;;  %v3687_v30 = vld [vmem:[%s4679_s15 + $0x2a8] sm:$0xff]  ;;  %v3688_v21 = vld [vmem:[%s4679_s15 + $0x2b0] sm:$0xff]  ;;  %v3689_v43 = vld [vmem:[%s4679_s15 + $0x2b8] sm:$0xff]  ;;  %v7023_v24 = vpop.permute.xlu2 %1541 }
 0x169   : >> { %v6982_v46 = vadd.f32 %v9060_v50, %v1251_v20  ;;  %v1254_v17 = vadd.f32 %v1245_v29, %v1224_v7  ;;  %v6995_v25 = vmul.f32 %v3831_v38, %v6756_v35  ;;  %v6998_v56 = vmul.f32 %v3840_v48, %v9049_v63  ;;  %v9064_v3 = vld [vmem:[#allocation44_spill] sm:$0xff]  ;;  %v3690_v12 = vld [vmem:[%s4679_s15 + $0x2c0] sm:$0xff]  ;;  %9069 = vst [vmem:[#allocation160_spill] sm:$0xff] %v7023_v24  ;;  %v3698_v40 = vld [vmem:[%s4679_s15 + $0x730] sm:$0xff] }
 0x16a   : >> { %9061 = vst [vmem:[#allocation68_spill] sm:$0xff] %v6984_v45  ;;  %2428 = vrot.lane.b32.xlu2 %v2405_v42, %s9027_s21  ;;  %2426 = vrot.lane.b32.xlu1 %v2404_v13, %s9027_s21  ;;  %v7001_v22 = vadd.f32 %v1371_v60, %v9064_v3  ;;  %v7005_v29 = vstv %s6912_s23  ;;  %v7008_v37 = vadd.f32 %v6862_v59, %v1255_v31  ;;  %v3693_v58 = vld [vmem:[%s4679_s15 + $0x708] sm:$0xff]  ;;  %v9071_v38 = vld [vmem:[#allocation15_spill] sm:$0xff]  ;;  %s7165_s23 = scalar_lea.vmem [#allocation2], %s3723_s28  ;;  %s7642_s28 = sld [smem:[#allocation4 + %s5069_s9]] }
 0x16b   : >> { %9062 = vst [vmem:[#allocation59_spill] sm:$0xff] %v6995_v25  ;;  %2424 = vrot.lane.b32.xlu0 %v2403_v2, %s9027_s21  ;;  %v7012_v7 = vmul.f32 %v3794_v16, %v9007_v6  ;;  %v7015_v8 = vmul.f32 %v3803_v27, %v9016_v52  ;;  %v7018_v60 = vmul.f32 %v3793_v47, %v9007_v6  ;;  %v3694_v42 = vld [vmem:[%s4679_s15 + $0x710] sm:$0xff]  ;;  %v3695_v16 = vld [vmem:[%s4679_s15 + $0x718] sm:$0xff]  ;;  %v3696_v6 = vld [vmem:[%s4679_s15 + $0x720] sm:$0xff]  ;;  %s2454_s9 = sld [smem:[#allocation4 + %s5406_s30]] }
 0x16c   : >> { %9063 = vst [vmem:[#allocation61_spill] sm:$0xff] %v6998_v56  ;;  %v7026_v59 = vadd.f32 %v6864_v11, %v1254_v17  ;;  %v2408_v13 = vmul.f32 %v4105_v41, %v6884_v19  ;;  %v2407_v48 = vmul.f32 %v9071_v38, %v6884_v19  ;;  %v3697_v20 = vld [vmem:[%s4679_s15 + $0x728] sm:$0xff]  ;;  %v7035_v51 = vstv %s6933_s14  ;;  %v3699_v50 = vld [vmem:[%s4679_s15 + $0x738] sm:$0xff]  ;;  %v3700_v31 = vld [vmem:[%s4679_s15 + $0x740] sm:$0xff]  ;;  %s7184_s14 = sld [smem:[#allocation4 + %s4736_s6]] }
 0x16d   : >> { %9065 = vst [vmem:[#allocation62_spill] sm:$0xff] %v7005_v29  ;;  %v9073_v2 = vld [vmem:[#allocation16_spill] sm:$0xff]  ;;  %v754_v47 = vmul.f32 %v3683_v62, %v7005_v29  ;;  %v755_v11 = vmul.f32 %v3684_v28, %v7005_v29  ;;  %v756_v41 = vmul.f32 %v3685_v26, %v7005_v29  ;;  %v757_v17 = vmul.f32 %v3686_v10, %v7005_v29  ;;  %v4006_v28 = vld [vmem:[%s4679_s15 + $0x51] sm:$0xff]  ;;  %v4007_v26 = vld [vmem:[%s4679_s15 + $0x59] sm:$0xff]  ;;  %s7383_s6 = sld [smem:[#allocation4 + %s4779_s11]] }
 0x16e   : >> { %9066 = vst [vmem:[#allocation90_spill] sm:$0xff] %v7008_v37  ;;  %v2406_v27 = vmul.f32 %v9073_v2, %v6884_v19  ;;  %v758_v3 = vmul.f32 %v3687_v30, %v7005_v29  ;;  %v759_v38 = vmul.f32 %v3688_v21, %v7005_v29  ;;  %v760_v19 = vmul.f32 %v3689_v43, %v7005_v29  ;;  %v4005_v62 = vld [vmem:[%s4679_s15 + $0x49] sm:$0xff]  ;;  %v4008_v30 = vld [vmem:[%s4679_s15 + $0x61] sm:$0xff]  ;;  %v4010_v32 = vld [vmem:[%s4679_s15 + $0x71] sm:$0xff]  ;;  %s7575_s11 = sld [smem:[#allocation4 + %s5159_s17]] }
 0x16f   : >> { %9067 = vst [vmem:[#allocation158_spill] sm:$0xff] %v7015_v8  ;;  %v761_v2 = vmul.f32 %v3690_v12, %v7005_v29  ;;  %v787_v39 = vmul.f32 %v3693_v58, %v7035_v51  ;;  %v788_v24 = vmul.f32 %v3694_v42, %v7035_v51  ;;  %v789_v10 = vmul.f32 %v3695_v16, %v7035_v51  ;;  %v4009_v21 = vld [vmem:[%s4679_s15 + $0x69] sm:$0xff]  ;;  %v4011_v12 = vld [vmem:[%s4679_s15 + $0x79] sm:$0xff]  ;;  %v4012_v29 = vld [vmem:[%s4679_s15 + $0x81] sm:$0xff]  ;;  %v7068_v16 = vpop.permute.xlu1 %1356  ;;  %s7598_s17 = sld [smem:[#allocation4 + %s4564_s19]]  ;;  %s274_s19 = sadd.s32 1, %s4564_s19  }
 0x170   : >> { %9068 = vst [vmem:[#allocation159_spill] sm:$0xff] %v7018_v60  ;;  %v790_v43 = vmul.f32 %v3696_v6, %v7035_v51  ;;  %v791_v36 = vmul.f32 %v3697_v20, %v7035_v51  ;;  %v792_v56 = vmul.f32 %v3698_v40, %v7035_v51  ;;  %v7065_v58 = vstv %s6979_s22  ;;  %v4014_v42 = vld [vmem:[%s4679_s15 + $0x4c9] sm:$0xff]  ;;  %v4015_v20 = vld [vmem:[%s4679_s15 + $0x4d1] sm:$0xff]  ;;  %v4016_v40 = vld [vmem:[%s4679_s15 + $0x4d9] sm:$0xff]  ;;  %s7199_s22 = sld [smem:[#allocation4 + %s6923_s27]]  ;;  %p271_p7 = scmp.ge.s32.totalorder %s274_s19, 32  }
 0x171   : >> { %9070 = vst [vmem:[#allocation118_spill] sm:$0xff] %v7026_v59  ;;  %v7070_v59 = vpop.permute.xlu0 %1354  ;;  %v793_v45 = vmul.f32 %v3699_v50, %v7035_v51  ;;  %v794_v37 = vmul.f32 %v3700_v31, %v7035_v51  ;;  %v7075_v6 = vmul.f32 %v4005_v62, %v7065_v58  ;;  %v4017_v63 = vld [vmem:[%s4679_s15 + $0x4e1] sm:$0xff]  ;;  %v7081_v9 = vstv %s6990_s26  ;;  %v4018_v31 = vld [vmem:[%s4679_s15 + $0x4e9] sm:$0xff]  ;;  %v4019_v62 = vld [vmem:[%s4679_s15 + $0x4f1] sm:$0xff]  ;;  %s7608_s26 = sld [smem:[#allocation4 + %s5040_s7]] }
 0x172   : >> { %9072 = vst [vmem:[#allocation115_spill] sm:$0xff] %v7035_v51  ;;  %2434 = vrot.lane.b32.xlu2 %v2408_v13, %s9027_s21  ;;  %2432 = vrot.lane.b32.xlu1 %v2407_v48, %s9027_s21  ;;  %v7086_v8 = vmul.f32 %v4006_v28, %v7065_v58  ;;  %v7089_v60 = vmul.f32 %v4007_v26, %v7065_v58  ;;  %s7631_s7 = sld [smem:[#allocation4 + %s5066_s8]] }
 0x173   : >> { %9074 = vst [vmem:[#allocation120_spill] sm:$0xff] %v7065_v58  ;;  %v7092_v50 = vmul.f32 %v4008_v30, %v7065_v58  ;;  %2430 = vrot.lane.b32.xlu0 %v2406_v27, %s9027_s21  ;;  %v7098_v51 = vmul.f32 %v4009_v21, %v7065_v58  ;;  %v7101_v13 = vmul.f32 %v4010_v32, %v7065_v58  ;;  %s7785_s8 = sld [smem:[#allocation4 + %s5419_s10]] }
 0x174   : >> { %v7104_v48 = vmul.f32 %v4011_v12, %v7065_v58  ;;  %v7107_v28 = vmul.f32 %v4012_v29, %v7065_v58  ;;  %v7110_v26 = vmul.f32 %v4014_v42, %v7081_v9  ;;  %v7113_v30 = vmul.f32 %v4015_v20, %v7081_v9  ;;  %v7129_v58 = vpop.permute.xlu2 %1547  ;;  %s2483_s10 = sld [smem:[#allocation4 + %s5465_s16]] }
 0x175   : >> { %v7116_v27 = vmul.f32 %v4016_v40, %v7081_v9  ;;  %v7119_v21 = vmul.f32 %v4017_v63, %v7081_v9  ;;  %v7122_v32 = vmul.f32 %v4018_v31, %v7081_v9  ;;  %v7125_v12 = vmul.f32 %v4019_v62, %v7081_v9  ;;  %s2542_s30 = sld [smem:[#allocation4 + %s5589_s13]] }
 0x176   : >> { %v763_v29 = vadd.f32 %v754_v47, %v6848_v15  ;;  %v764_v42 = vadd.f32 %v755_v11, %v6853_v23  ;;  %v765_v20 = vadd.f32 %v756_v41, %v6855_v14  ;;  %v766_v40 = vadd.f32 %v757_v17, %v6857_v33  ;;  %s2702_s16 = sld [smem:[#allocation4 + %s6594_s29]] }
 0x177   : >> { %v767_v63 = vadd.f32 %v758_v3, %v6859_v54  ;;  %v768_v31 = vadd.f32 %v759_v38, %v6866_v44  ;;  %v769_v52 = vadd.f32 %v760_v19, %v6868_v18  ;;  %v770_v62 = vadd.f32 %v761_v2, %v6870_v55  ;;  %v7137_v41 = vpop.permute.xlu1 %1362  ;;  %v9075_v44 = vld [vmem:[#allocation100_spill] sm:$0xff]  ;;  %v9076_v18 = vld [vmem:[#allocation101_spill] sm:$0xff]  ;;  %s2760_s13 = sld [smem:[#allocation4 + %s6903_s25]] }
 0x178   : >> { %v796_v25 = vadd.f32 %v787_v39, %v763_v29  ;;  %v797_v15 = vadd.f32 %v788_v24, %v764_v42  ;;  %v798_v23 = vadd.f32 %v789_v10, %v765_v20  ;;  %v799_v47 = vadd.f32 %v790_v43, %v766_v40  ;;  %v9077_v39 = vld [vmem:[#allocation102_spill] sm:$0xff]  ;;  %v9078_v24 = vld [vmem:[#allocation103_spill] sm:$0xff]  ;;  %v9079_v2 = vld [vmem:[#allocation104_spill] sm:$0xff]  ;;  %s7982_s29 = sld [smem:[#allocation4 + %s6923_s27]] }
 0x179   : >> { %v800_v11 = vadd.f32 %v791_v36, %v767_v63  ;;  %v801_v14 = vadd.f32 %v792_v56, %v768_v31  ;;  %v7139_v33 = vpop.permute.xlu0 %1360  ;;  %v802_v54 = vadd.f32 %v793_v45, %v769_v52  ;;  %v803_v17 = vadd.f32 %v794_v37, %v770_v62  ;;  %v9080_v43 = vld [vmem:[#allocation105_spill] sm:$0xff]  ;;  %v4020_v56 = vld [vmem:[%s4679_s15 + $0x4f9] sm:$0xff]  ;;  %v4021_v29 = vld [vmem:[%s4679_s15 + $0x501] sm:$0xff] }
 0x17a   : >> { %v829_v3 = vadd.f32 %v9075_v44, %v796_v25  ;;  %v830_v38 = vadd.f32 %v9076_v18, %v797_v15  ;;  %v831_v55 = vadd.f32 %v9077_v39, %v798_v23  ;;  %v832_v19 = vadd.f32 %v9078_v24, %v799_v47  ;;  %v9081_v42 = vld [vmem:[#allocation106_spill] sm:$0xff]  ;;  %v9082_v45 = vld [vmem:[#allocation107_spill] sm:$0xff]  ;;  %v9084_v40 = vld [vmem:[#allocation128_spill] sm:$0xff] }
 0x17b   : >> { %v833_v10 = vadd.f32 %v9079_v2, %v800_v11  ;;  %v834_v36 = vadd.f32 %v9080_v43, %v801_v14  ;;  %v835_v52 = vadd.f32 %v9081_v42, %v802_v54  ;;  %v836_v37 = vadd.f32 %v9082_v45, %v803_v17  ;;  %v9083_v25 = vld [vmem:[#allocation127_spill] sm:$0xff]  ;;  %v9085_v31 = vld [vmem:[#allocation129_spill] sm:$0xff]  ;;  %v9086_v15 = vld [vmem:[#allocation130_spill] sm:$0xff] }
 0x17c   : >> { %v862_v20 = vadd.f32 %v9083_v25, %v829_v3  ;;  %v863_v63 = vadd.f32 %v9084_v40, %v830_v38  ;;  %v864_v62 = vadd.f32 %v9085_v31, %v831_v55  ;;  %v865_v23 = vadd.f32 %v9086_v15, %v832_v19  ;;  %v9087_v47 = vld [vmem:[#allocation132_spill] sm:$0xff]  ;;  %v9088_v44 = vld [vmem:[#allocation133_spill] sm:$0xff]  ;;  %v9089_v18 = vld [vmem:[#allocation135_spill] sm:$0xff] }
 0x17d   : >> { %v866_v11 = vadd.f32 %v9087_v47, %v833_v10  ;;  %v867_v14 = vadd.f32 %v9088_v44, %v834_v36  ;;  %v868_v39 = vadd.f32 %v9089_v18, %v835_v52  ;;  %v9090_v24 = vld [vmem:[#allocation136_spill] sm:$0xff]  ;;  %v2117_v17 = vmul.f32 %v4020_v56, %v7081_v9  ;;  %v7171_v36 = vpop.permute.xlu2 %1553  ;;  %v9093_v25 = vld [vmem:[#allocation111_spill] sm:$0xff]  ;;  %v9098_v47 = vld [vmem:[#allocation117_spill] sm:$0xff] }
 0x17e   : >> { %v869_v2 = vadd.f32 %v9090_v24, %v836_v37  ;;  %v871_v43 = vmax.f32 %v862_v20, 0.0  ;;  %v872_v54 = vmax.f32 %v863_v63, 0.0  ;;  %v2118_v3 = vmul.f32 %v4021_v29, %v7081_v9  ;;  %v9094_v20 = vld [vmem:[#allocation112_spill] sm:$0xff]  ;;  %v9095_v63 = vld [vmem:[#allocation113_spill] sm:$0xff]  ;;  %v9100_v18 = vld [vmem:[#allocation138_spill] sm:$0xff] }
 0x17f   : >> { %v873_v38 = vmax.f32 %v864_v62, 0.0  ;;  %v874_v42 = vmax.f32 %v865_v23, 0.0  ;;  %v875_v55 = vmax.f32 %v866_v11, 0.0  ;;  %v876_v45 = vmax.f32 %v867_v14, 0.0  ;;  %v9096_v62 = vld [vmem:[#allocation114_spill] sm:$0xff]  ;;  %v7226_v23 = vld [vmem:[%s4679_s15 + $0x328] sm:$0xff] }
 0x180   : >> { %v877_v19 = vmax.f32 %v868_v39, 0.0  ;;  %884 = vst.msk [vmem:[%s7165_s23] sm:$0xff] %vm883_vm0, %v871_v43  ;;  %v2091_v10 = vadd.f32 %v7075_v6, %v6917_v49  ;;  %v2092_v56 = vadd.f32 %v7086_v8, %v6926_v5  ;;  %v2093_v29 = vadd.f32 %v7089_v60, %v6928_v1  ;;  %v9099_v44 = vld [vmem:[#allocation137_spill] sm:$0xff]  ;;  %v9101_v24 = vld [vmem:[#allocation139_spill] sm:$0xff]  ;;  %v9102_v43 = vld [vmem:[#allocation140_spill] sm:$0xff] }
 0x181   : >> { %885 = vst.msk [vmem:[%s7165_s23 + $0x8] sm:$0xff] %vm883_vm0, %v872_v54  ;;  %v2094_v52 = vadd.f32 %v7092_v50, %v6953_v0  ;;  %v2095_v37 = vadd.f32 %v7098_v51, %v6956_v34  ;;  %v878_v49 = vmax.f32 %v869_v2, 0.0  ;;  %v2096_v6 = vadd.f32 %v7101_v13, %v6964_v53  ;;  %v7194_v0 = vpop.permute.xlu1 %1368  ;;  %v7196_v8 = vpop.permute.xlu0 %1366 }
 0x182   : >> { %886 = vst.msk [vmem:[%s7165_s23 + $0x10] sm:$0xff] %vm883_vm0, %v873_v38  ;;  %v2097_v5 = vadd.f32 %v7104_v48, %v6967_v4  ;;  %v2098_v1 = vadd.f32 %v7107_v28, %v6970_v61  ;;  %v2120_v34 = vadd.f32 %v7110_v26, %v2091_v10  ;;  %v2121_v53 = vadd.f32 %v7113_v30, %v2092_v56  ;;  %v9091_v28 = vld [vmem:[#allocation109_spill] sm:$0xff]  ;;  %v9092_v30 = vld [vmem:[#allocation110_spill] sm:$0xff] }
 0x183   : >> { %887 = vst.msk [vmem:[%s7165_s23 + $0x18] sm:$0xff] %vm883_vm0, %v874_v42  ;;  %v2122_v60 = vadd.f32 %v7116_v27, %v2093_v29  ;;  %v2123_v4 = vadd.f32 %v7119_v21, %v2094_v52  ;;  %v7208_v51 = vstv %s7149_s4  ;;  %v2124_v61 = vadd.f32 %v7122_v32, %v2095_v37  ;;  %v9104_v38 = vld [vmem:[#allocation142_spill] sm:$0xff]  ;;  %v7242_v52 = vld [vmem:[%s4679_s15 + $0x2d0] sm:$0xff] }
 0x184   : >> { %888 = vst.msk [vmem:[%s7165_s23 + $0x20] sm:$0xff] %vm883_vm0, %v875_v55  ;;  %v2125_v50 = vadd.f32 %v7125_v12, %v2096_v6  ;;  %v2126_v13 = vadd.f32 %v2117_v17, %v2097_v5  ;;  %v2127_v48 = vadd.f32 %v2118_v3, %v2098_v1  ;;  %v2149_v26 = vadd.f32 %v9091_v28, %v2120_v34  ;;  %v9097_v12 = vld [vmem:[#allocation116_spill] sm:$0xff]  ;;  %v9103_v17 = vld [vmem:[#allocation141_spill] sm:$0xff]  ;;  %v9105_v55 = vld [vmem:[#allocation146_spill] sm:$0xff] }
 0x185   : >> { %889 = vst.msk [vmem:[%s7165_s23 + $0x28] sm:$0xff] %vm883_vm0, %v876_v45  ;;  %v2150_v27 = vadd.f32 %v9092_v30, %v2121_v53  ;;  %v2151_v21 = vadd.f32 %v9093_v25, %v2122_v60  ;;  %v2152_v40 = vadd.f32 %v9094_v20, %v2123_v4  ;;  %v2153_v31 = vadd.f32 %v9095_v63, %v2124_v61  ;;  %v7239_v29 = vld [vmem:[%s4679_s15 + $0x2d8] sm:$0xff]  ;;  %v4144_v37 = vld [vmem:[%s4679_s15 + $0x370] sm:$0xff]  ;;  %v9107_v34 = vld [vmem:[#allocation147_spill] sm:$0xff] }
 0x186   : >> { %890 = vst.msk [vmem:[%s7165_s23 + $0x30] sm:$0xff] %vm883_vm0, %v877_v19  ;;  %v2154_v32 = vadd.f32 %v9096_v62, %v2125_v50  ;;  %v2155_v15 = vadd.f32 %v9097_v12, %v2126_v13  ;;  %v2156_v11 = vadd.f32 %v9098_v47, %v2127_v48  ;;  %v2178_v14 = vadd.f32 %v9099_v44, %v2149_v26  ;;  %v9106_v6 = vld [vmem:[#allocation45_spill] sm:$0xff]  ;;  %v4143_v4 = vld [vmem:[%s4679_s15 + $0x368] sm:$0xff]  ;;  %v4142_v61 = vld [vmem:[%s4679_s15 + $0x360] sm:$0xff]  ;;  %v7258_v13 = vpop.permute.xlu2 %1606 }
 0x187   : >> { %891 = vst.msk [vmem:[%s7165_s23 + $0x38] sm:$0xff] %vm883_vm0, %v878_v49  ;;  %v2179_v39 = vadd.f32 %v9100_v18, %v2150_v27  ;;  %v2180_v2 = vadd.f32 %v9101_v24, %v2151_v21  ;;  %v2181_v54 = vadd.f32 %v9102_v43, %v2152_v40  ;;  %v2182_v3 = vadd.f32 %v9103_v17, %v2153_v31  ;;  %v7256_v50 = vld [vmem:[%s4679_s15 + $0x340] sm:$0xff]  ;;  %v3802_v48 = vld [vmem:[%s4679_s15 + $0x6a8] sm:$0xff]  ;;  %v7285_v62 = vld [vmem:[%s4679_s15 + $0x758] sm:$0xff] }
 0x188   : >> { %v2183_v42 = vadd.f32 %v9104_v38, %v2154_v32  ;;  %v2184_v45 = vadd.f32 %v9105_v55, %v2155_v15  ;;  %v2187_v19 = vmax.f32 %v2178_v14, 0.0  ;;  %v7246_v49 = vstv %s7184_s14  ;;  %v7267_v27 = vld [vmem:[%s4679_s15 + $0x7a8] sm:$0xff]  ;;  %v7288_v32 = vld [vmem:[%s4679_s15 + $0x750] sm:$0xff]  ;;  %v9113_v24 = vld [vmem:[#allocation159_spill] sm:$0xff] }
 0x189   : >> { %v2188_v10 = vmax.f32 %v2179_v39, 0.0  ;;  %v2189_v56 = vmax.f32 %v2180_v2, 0.0  ;;  %v1228_v5 = vadd.f32 %v7012_v7, %v9106_v6  ;;  %v1462_v1 = vmul.f32 %v7226_v23, %v7208_v51  ;;  %v7278_v63 = vpop.permute.xlu1 %1539  ;;  %v7280_v31 = vpop.permute.xlu0 %1537  ;;  %9108 = vst [vmem:[#allocation119_spill] sm:$0xff] %v7288_v32  ;;  %v7297_v47 = vld [vmem:[%s4679_s15 + $0x2f0] sm:$0xff]  ;;  %v9112_v39 = vld [vmem:[#allocation47_spill] sm:$0xff]  ;;  %v7311_v43 = vld [vmem:[%s4679_s15 + $0x2e8] sm:$0xff] }
 0x18a   : >> { %v2185_v53 = vadd.f32 %v9107_v34, %v2156_v11  ;;  %v2190_v60 = vmax.f32 %v2181_v54, 0.0  ;;  %v7262_v28 = vstv %s7199_s22  ;;  %v2191_v26 = vmax.f32 %v2182_v3, 0.0  ;;  %4043 = vst.msk [vmem:[%s7165_s23 + $0x90] sm:$0xff] %vm883_vm0, %v2187_v19  ;;  %v9110_v11 = vld [vmem:[#allocation59_spill] sm:$0xff]  ;;  %v9111_v14 = vld [vmem:[#allocation149_spill] sm:$0xff]  ;;  %v9115_v54 = vld [vmem:[#allocation158_spill] sm:$0xff] }
 0x18b   : >> { %v2192_v7 = vmax.f32 %v2183_v42, 0.0  ;;  %v2193_v30 = vmax.f32 %v2184_v45, 0.0  ;;  %4044 = vst.msk [vmem:[%s7165_s23 + $0x98] sm:$0xff] %vm883_vm0, %v2188_v10  ;;  %v1402_v25 = vmul.f32 %v7239_v29, %v6756_v35  ;;  %v1382_v21 = vadd.f32 %v7068_v16, %v6973_v57  ;;  %v7308_v2 = vld [vmem:[%s4679_s15 + $0x7c0] sm:$0xff]  ;;  %v9116_v3 = vld [vmem:[#allocation37_spill] sm:$0xff]  ;;  %v4147_v42 = vld [vmem:[%s4679_s15 + $0x388] sm:$0xff] }
 0x18c   : >> { %v1401_v20 = vmul.f32 %v7242_v52, %v6756_v35  ;;  %v2585_v40 = vmul.f32 %v4144_v37, %v7246_v49  ;;  %4045 = vst.msk [vmem:[%s7165_s23 + $0xa0] sm:$0xff] %vm883_vm0, %v2189_v56  ;;  %v1381_v57 = vadd.f32 %v7070_v59, %v6982_v46  ;;  %v2584_v16 = vmul.f32 %v4143_v4, %v7246_v49  ;;  %v9117_v55 = vld [vmem:[#allocation153_spill] sm:$0xff]  ;;  %v9118_v56 = vld [vmem:[#allocation90_spill] sm:$0xff]  ;;  %v4146_v6 = vld [vmem:[%s4679_s15 + $0x380] sm:$0xff] }
 0x18d   : >> { %v2583_v12 = vmul.f32 %v4142_v61, %v7246_v49  ;;  %v1465_v15 = vmul.f32 %v7256_v50, %v7208_v51  ;;  %9109 = vst [vmem:[#allocation124_spill] sm:$0xff] %v7297_v47  ;;  %v1418_v44 = vadd.f32 %v9110_v11, %v7001_v22  ;;  %v1248_v18 = vmul.f32 %v3802_v48, %v9111_v14  ;;  %v7340_v61 = vld [vmem:[%s4679_s15 + $0x770] sm:$0xff]  ;;  %v9124_v11 = vld [vmem:[#allocation74_spill] sm:$0xff] }
 0x18e   : >> { %v1227_v46 = vadd.f32 %v9113_v24, %v9112_v39  ;;  %v2194_v59 = vmax.f32 %v2185_v53, 0.0  ;;  %4046 = vst.msk [vmem:[%s7165_s23 + $0xa8] sm:$0xff] %vm883_vm0, %v2190_v60  ;;  %2605 = vrot.lane.b32.xlu2 %v2585_v40, %s9027_s21  ;;  %v1258_v17 = vadd.f32 %v9115_v54, %v1228_v5  ;;  %v1492_v22 = vmul.f32 %v7267_v27, %v7262_v28  ;;  %v4145_v5 = vld [vmem:[%s4679_s15 + $0x378] sm:$0xff]  ;;  %v9119_v60 = vld [vmem:[#allocation68_spill] sm:$0xff] }
 0x18f   : >> { %9114 = vst [vmem:[#allocation123_spill] sm:$0xff] %v7311_v43  ;;  %v1471_v38 = vadd.f32 %v1462_v1, %v9116_v3  ;;  %2603 = vrot.lane.b32.xlu1 %v2584_v16, %s9027_s21  ;;  %2601 = vrot.lane.b32.xlu0 %v2583_v12, %s9027_s21  ;;  %v1431_v45 = vmul.f32 %v7285_v62, %v9117_v55  ;;  %v7351_v40 = vld [vmem:[%s4679_s15 + $0x768] sm:$0xff]  ;;  %v3849_v12 = vld [vmem:[%s4679_s15 + $0x358] sm:$0x3f] }
 0x190   : >> { %4047 = vst.msk [vmem:[%s7165_s23 + $0xb0] sm:$0xff] %vm883_vm0, %v2191_v26  ;;  %v1430_v19 = vmul.f32 %v7288_v32, %v9117_v55  ;;  %v1405_v10 = vmul.f32 %v7297_v47, %v6756_v35  ;;  %v1385_v37 = vadd.f32 %v7137_v41, %v9118_v56  ;;  %v1411_v1 = vadd.f32 %v1402_v25, %v1382_v21  ;;  %v9121_v26 = vld [vmem:[#allocation118_spill] sm:$0xff]  ;;  %v9122_v25 = vld [vmem:[#allocation61_spill] sm:$0xff]  ;;  %v7362_v24 = vld [vmem:[%s4679_s15 + $0x308] sm:$0xff] }
 0x191   : >> { %4048 = vst.msk [vmem:[%s7165_s23 + $0xb8] sm:$0xff] %vm883_vm0, %v2192_v7  ;;  %v1410_v34 = vadd.f32 %v1401_v20, %v1381_v57  ;;  %v1495_v53 = vmul.f32 %v7308_v2, %v7262_v28  ;;  %v1474_v4 = vadd.f32 %v1465_v15, %v9119_v60  ;;  %v1257_v48 = vadd.f32 %v1248_v18, %v1227_v46  ;;  %v3858_v15 = vld [vmem:[%s4679_s15 + $0x7d8] sm:$0x3f]  ;;  %v9125_v18 = vld [vmem:[#allocation73_spill] sm:$0xff]  ;;  %v1613_v46 = vpop.permute.xlu2 %1612  ;;  %v7395_v60 = vld [vmem:[%s4679_s15 + $0x780] sm:$0xff] }
 0x192   : >> { %4049 = vst.msk [vmem:[%s7165_s23 + $0xc0] sm:$0xff] %vm883_vm0, %v2193_v30  ;;  %v1404_v41 = vmul.f32 %v7311_v43, %v6756_v35  ;;  %v1384_v7 = vadd.f32 %v7139_v33, %v9121_v26  ;;  %v2588_v30 = vmul.f32 %v4147_v42, %v7246_v49  ;;  %v1447_v21 = vadd.f32 %v9122_v25, %v1418_v44  ;;  %v7366_v42 = vld [vmem:[%s4679_s15 + $0x788] sm:$0xff]  ;;  %v9152_v43 = vld [vmem:[#allocation115_spill] sm:$0xff] }
 0x193   : >> { %9120 = vst [vmem:[#allocation122_spill] sm:$0xff] %v7340_v61  ;;  %v1501_v20 = vadd.f32 %v1492_v22, %v1471_v38  ;;  %v2587_v57 = vmul.f32 %v4146_v6, %v7246_v49  ;;  %v2586_v16 = vmul.f32 %v4145_v5, %v7246_v49  ;;  %v1323_v14 = vadd.f32 %v9124_v11, %v1258_v17  ;;  %v7369_v17 = vld [vmem:[%s4679_s15 + $0x320] sm:$0xff]  ;;  %v7385_v5 = vpop.permute.xlu1 %1545  ;;  %v9166_v32 = vld [vmem:[#allocation168_spill] sm:$0xff] }
 0x194   : >> { %4050 = vst.msk [vmem:[%s7165_s23 + $0xc8] sm:$0xff] %vm883_vm0, %v2194_v59  ;;  %v1322_v39 = vadd.f32 %v9125_v18, %v1257_v48  ;;  %v1434_v33 = vmul.f32 %v7340_v61, %v9117_v55  ;;  %v1414_v44 = vadd.f32 %v1405_v10, %v1385_v37  ;;  %v9127_v59 = vld [vmem:[#allocation160_spill] sm:$0xff]  ;;  %v1440_v22 = vadd.f32 %v1431_v45, %v1411_v1  ;;  %v7377_v45 = vld [vmem:[%s4679_s15 + $0x300] sm:$0xff]  ;;  %v7387_v1 = vpop.permute.xlu0 %1543 }
 0x195   : >> { %9123 = vst [vmem:[#allocation145_spill] sm:$0xff] %v7351_v40  ;;  %v1566_v54 = vadd.f32 %v9127_v59, %v1501_v20  ;;  %v1439_v3 = vadd.f32 %v1430_v19, %v1410_v34  ;;  %v1504_v38 = vadd.f32 %v1495_v53, %v1474_v4  ;;  %v1433_v56 = vmul.f32 %v7351_v40, %v9117_v55  ;;  %v7380_v19 = vld [vmem:[%s4679_s15 + $0x318] sm:$0xff]  ;;  %v4150_v4 = vld [vmem:[%s4679_s15 + $0x3a0] sm:$0x3f]  ;;  %v3932_v40 = vld [vmem:[%s4679_s15 + $0x310] sm:$0x3f] }
 0x196   : >> { %9126 = vst [vmem:[#allocation144_spill] sm:$0xff] %v7362_v24  ;;  %v1413_v6 = vadd.f32 %v1404_v41, %v1384_v7  ;;  %2611 = vrot.lane.b32.xlu2 %v2588_v30, %s9027_s21  ;;  %v1468_v10 = vmul.f32 %v3849_v12, %v7208_v51  ;;  %v1498_v37 = vmul.f32 %v3858_v15, %v7262_v28  ;;  %v4149_v7 = vld [vmem:[%s4679_s15 + $0x398] sm:$0xff]  ;;  %v4148_v30 = vld [vmem:[%s4679_s15 + $0x390] sm:$0xff]  ;;  %v7413_v12 = vld [vmem:[%s4679_s15 + $0x7a0] sm:$0xff] }
 0x197   : >> { %9128 = vst [vmem:[#allocation143_spill] sm:$0xff] %v7366_v42  ;;  %v1569_v34 = vadd.f32 %v7129_v58, %v1504_v38  ;;  %2609 = vrot.lane.b32.xlu1 %v2587_v57, %s9027_s21  ;;  %2607 = vrot.lane.b32.xlu0 %v2586_v16, %s9027_s21  ;;  %v1408_v53 = vmul.f32 %v7362_v24, %v6756_v35  ;;  %v7407_v20 = vld [vmem:[%s4679_s15 + $0x338] sm:$0xff]  ;;  %v7418_v15 = vld [vmem:[%s4679_s15 + $0x330] sm:$0xff] }
 0x198   : >> { %9129 = vst [vmem:[#allocation151_spill] sm:$0xff] %v7377_v45  ;;  %v1631_v48 = vadd.f32 %v7258_v13, %v1566_v54  ;;  %v1443_v41 = vadd.f32 %v1434_v33, %v1414_v44  ;;  %v1437_v26 = vmul.f32 %v7366_v42, %v9117_v55  ;;  %v1388_v58 = vadd.f32 %v7194_v0, %v1323_v14  ;;  %v7435_v38 = vld [vmem:[%s4679_s15 + $0x7b8] sm:$0xff]  ;;  %v9141_v24 = vld [vmem:[#allocation13_spill] sm:$0xff] }
 0x199   : >> { %9130 = vst [vmem:[#allocation150_spill] sm:$0xff] %v7380_v19  ;;  %v1461_v25 = vmul.f32 %v7369_v17, %v7208_v51  ;;  %v1407_v57 = vmul.f32 %v7377_v45, %v6756_v35  ;;  %v1387_v13 = vadd.f32 %v7196_v8, %v1322_v39  ;;  %v1460_v0 = vmul.f32 %v7380_v19, %v7208_v51  ;;  %v7424_v35 = vld [vmem:[%s4679_s15 + $0x798] sm:$0xff] }
 0x19a   : >> { %9131 = vst [vmem:[#allocation20_spill] sm:$0xff] %v7395_v60  ;;  %v1640_v16 = vmax.f32 %v1631_v48, 0.0  ;;  %v1442_v11 = vadd.f32 %v1433_v56, %v1413_v6  ;;  %v1477_v14 = vadd.f32 %v1468_v10, %v1447_v21  ;;  %v1436_v18 = vmul.f32 %v7395_v60, %v9117_v55  ;;  %v4153_v10 = vld [vmem:[%s4679_s15 + $0x7f0] sm:$0xff]  ;;  %v4152_v48 = vld [vmem:[%s4679_s15 + $0x7e8] sm:$0xff]  ;;  %v3561_v60 = vld [vmem:[%s4679_s15 + $0x4c0] sm:$0x3f] }
 0x19b   : >> { %9132 = vst [vmem:[#allocation22_spill] sm:$0xff] %v7407_v20  ;;  %v2591_v33 = vmul.f32 %v4150_v4, %v7246_v49  ;;  %v2590_v8 = vmul.f32 %v4149_v7, %v7246_v49  ;;  %v2589_v39 = vmul.f32 %v4148_v30, %v7246_v49  ;;  %v1634_v44 = vadd.f32 %v1613_v46, %v1569_v34  ;;  %v7443_v4 = vld [vmem:[%s4679_s15 + $0x7b0] sm:$0xff]  ;;  %v7451_v7 = vpop.permute.xlu2 %1618  ;;  %v4156_v30 = vld [vmem:[%s4679_s15 + $0x808] sm:$0xff] }
 0x19c   : >> { %9133 = vst [vmem:[#allocation23_spill] sm:$0xff] %v7413_v12  ;;  %v1464_v21 = vmul.f32 %v7407_v20, %v7208_v51  ;;  %v1417_v55 = vadd.f32 %v1408_v53, %v1388_v58  ;;  %v1491_v59 = vmul.f32 %v7413_v12, %v7262_v28  ;;  %v1470_v54 = vadd.f32 %v1461_v25, %v1440_v22  ;;  %v4151_v58 = vld [vmem:[%s4679_s15 + $0x7e0] sm:$0xff]  ;;  %v9164_v12 = vld [vmem:[#allocation193_spill] sm:$0xff] }
 0x19d   : >> { %9134 = vst [vmem:[#allocation24_spill] sm:$0xff] %v7418_v15  ;;  %v1463_v49 = vmul.f32 %v7418_v15, %v7208_v51  ;;  %v1416_v56 = vadd.f32 %v1407_v57, %v1387_v13  ;;  %v1490_v46 = vmul.f32 %v7424_v35, %v7262_v28  ;;  %v1469_v6 = vadd.f32 %v1460_v0, %v1439_v3  ;;  %v4155_v0 = vld [vmem:[%s4679_s15 + $0x800] sm:$0xff] }
 0x19e   : >> { %9135 = vst [vmem:[#allocation25_spill] sm:$0xff] %v7424_v35  ;;  %v1643_v34 = vmax.f32 %v1634_v44, 0.0  ;;  %v1507_v53 = vadd.f32 %v1498_v37, %v1477_v14  ;;  %2617 = vrot.lane.b32.xlu2 %v2591_v33, %s9027_s21  ;;  %v7447_v22 = vstv %s7383_s6  ;;  %v1494_v3 = vmul.f32 %v7435_v38, %v7262_v28  ;;  %v4154_v14 = vld [vmem:[%s4679_s15 + $0x7f8] sm:$0xff]  ;;  %v7467_v33 = vpop.permute.xlu1 %1551  ;;  %v3896_v15 = vld [vmem:[%s4679_s15 + $0x280] sm:$0x3f] }
 0x19f   : >> { %3881 = vst.msk [vmem:[%s7165_s23 + $0x58] sm:$0xff] %vm883_vm0, %v1640_v16  ;;  %2615 = vrot.lane.b32.xlu1 %v2590_v8, %s9027_s21  ;;  %2613 = vrot.lane.b32.xlu0 %v2589_v39, %s9027_s21  ;;  %v1473_v37 = vadd.f32 %v1464_v21, %v1443_v41  ;;  %v1500_v57 = vadd.f32 %v1491_v59, %v1470_v54  ;;  %v7469_v8 = vpop.permute.xlu0 %1549  ;;  %v3601_v21 = vld [vmem:[%s4679_s15 + $0x550] sm:$0x3f] }
 0x1a0   : >> { %9136 = vst [vmem:[#allocation26_spill] sm:$0xff] %v7435_v38  ;;  %v7461_v25 = vadd.f32 %v7171_v36, %v1507_v53  ;;  %v1493_v13 = vmul.f32 %v7443_v4, %v7262_v28  ;;  %v1472_v16 = vadd.f32 %v1463_v49, %v1442_v11  ;;  %v7471_v41 = vadd.f32 %v1437_v26, %v1417_v55  ;;  %v3611_v11 = vld [vmem:[%s4679_s15 + $0x160] sm:$0x3f]  ;;  %v3631_v55 = vld [vmem:[%s4679_s15 + $0x1a8] sm:$0x3f] }
 0x1a1   : >> { %9137 = vst [vmem:[#allocation27_spill] sm:$0xff] %v7443_v4  ;;  %v7473_v39 = vadd.f32 %v1436_v18, %v1416_v56  ;;  %v1499_v36 = vadd.f32 %v1490_v46, %v1469_v6  ;;  %v2650_v44 = vmul.f32 %v4153_v10, %v7447_v22  ;;  %v3621_v59 = vld [vmem:[%s4679_s15 + $0x5e0] sm:$0x3f]  ;;  %v7480_v54 = vadd.f32 %v7278_v63, %v1500_v57  ;;  %v3641_v56 = vld [vmem:[%s4679_s15 + $0x628] sm:$0x3f] }
 0x1a2   : >> { %3884 = vst.msk [vmem:[%s7165_s23 + $0x70] sm:$0xff] %vm883_vm0, %v1643_v34  ;;  %v2649_v49 = vmul.f32 %v4152_v48, %v7447_v22  ;;  %v2648_v26 = vmul.f32 %v4151_v58, %v7447_v22  ;;  %v7485_v18 = vmul.f32 %v4156_v30, %v7447_v22  ;;  %v3651_v46 = vld [vmem:[%s4679_s15 + $0x1f0] sm:$0x3f]  ;;  %v1503_v10 = vadd.f32 %v1494_v3, %v1473_v37  ;;  %v3671_v48 = vld [vmem:[%s4679_s15 + $0x280] sm:$0x3f]  ;;  %v9139_v3 = vld [vmem:[#allocation154_spill] sm:$0xff] }
 0x1a3   : >> { %v7491_v6 = vadd.f32 %v7280_v31, %v1499_v36  ;;  %v7494_v34 = vmul.f32 %v4155_v0, %v7447_v22  ;;  %v7497_v63 = vmul.f32 %v4154_v14, %v7447_v22  ;;  %v3661_v53 = vld [vmem:[%s4679_s15 + $0x670] sm:$0x3f]  ;;  %v3681_v58 = vld [vmem:[%s4679_s15 + $0x700] sm:$0x3f]  ;;  %v1502_v30 = vadd.f32 %v1493_v13, %v1472_v16  ;;  %v9140_v0 = vld [vmem:[#allocation156_spill] sm:$0xff] }
 0x1a4   : >> { %v286_v57 = vld [vmem:[%s4679_s15 + $0x40] sm:$0x3f]  ;;  %v9138_v31 = vld [vmem:[#allocation29_spill] sm:$0xff]  ;;  %v7508_v37 = vmul.f32 %v3611_v11, %v9139_v3  ;;  %v7511_v45 = vmul.f32 %v3621_v59, %v9140_v0  ;;  %v3691_v14 = vld [vmem:[%s4679_s15 + $0x2c8] sm:$0x3f]  ;;  %v7515_v42 = vadd.f32 %v7385_v5, %v1503_v10  ;;  %v7518_v13 = vmul.f32 %v3631_v55, %v9141_v24 }
 0x1a5   : >> { %v7505_v36 = vmul.f32 %v3601_v21, %v9138_v31  ;;  %v9142_v16 = vld [vmem:[#allocation12_spill] sm:$0xff]  ;;  %v9143_v21 = vld [vmem:[#allocation50_spill] sm:$0xff]  ;;  %v3711_v3 = vld [vmem:[%s4679_s15 + $0x310] sm:$0x3f]  ;;  %v7534_v5 = vadd.f32 %v7387_v1, %v1502_v30 }
 0x1a6   : >> { %v7521_v4 = vmul.f32 %v3641_v56, %v9142_v16  ;;  %v7524_v31 = vmul.f32 %v3651_v46, %v9143_v21  ;;  %v3701_v11 = vld [vmem:[%s4679_s15 + $0x748] sm:$0x3f]  ;;  %v3721_v59 = vld [vmem:[%s4679_s15 + $0x790] sm:$0x3f]  ;;  %2670 = vrot.lane.b32.xlu2 %v2650_v44, %s9027_s21  ;;  %v9146_v10 = vld [vmem:[#allocation35_spill] sm:$0xff] }
 0x1a7   : >> { %v7530_v0 = vld [vmem:[%s4679_s15 + $0x350] sm:$0xff]  ;;  %v3571_v24 = vld [vmem:[%s4679_s15 + $0x88] sm:$0x3f]  ;;  %v7541_v46 = vmul.f32 %v3671_v48, %v9146_v10  ;;  %2668 = vrot.lane.b32.xlu1 %v2649_v49, %s9027_s21  ;;  %2666 = vrot.lane.b32.xlu0 %v2648_v26, %s9027_s21  ;;  %v9148_v1 = vld [vmem:[#allocation62_spill] sm:$0xff]  ;;  %v7561_v49 = vmul.f32 %v3701_v11, %v9152_v43 }
 0x1a8   : >> { %9144 = vst [vmem:[#allocation28_spill] sm:$0xff] %v7530_v0  ;;  %v9145_v55 = vld [vmem:[#allocation72_spill] sm:$0xff]  ;;  %v7551_v44 = vmul.f32 %v3691_v14, %v9148_v1  ;;  %v9149_v30 = vld [vmem:[#allocation178_spill] sm:$0xff]  ;;  %v9154_v38 = vld [vmem:[#allocation99_spill] sm:$0xff] }
 0x1a9   : >> { %v7538_v56 = vmul.f32 %v3661_v53, %v9145_v55  ;;  %v9147_v16 = vld [vmem:[#allocation40_spill] sm:$0xff]  ;;  %v3941_v53 = vld [vmem:[%s4679_s15 + $0x790] sm:$0x3f]  ;;  %v296_v48 = vmul.f32 %v9149_v30, %v286_v57  ;;  %v9150_v55 = vld [vmem:[#allocation191_spill] sm:$0xff]  ;;  %9153 = vst [vmem:[#allocation52_spill] sm:$0xff] %v7561_v49  ;;  %v7564_v26 = vmul.f32 %v3711_v3, %v9154_v38  ;;  %v1637_v57 = vadd.f32 %v7451_v7, %v7461_v25  ;;  %v7572_v30 = vpop.permute.xlu2 %2357 }
 0x1aa   : >> { %v7544_v21 = vmul.f32 %v3681_v58, %v9147_v16  ;;  %v333_v58 = vmul.f32 %v3561_v60, %v9150_v55  ;;  %v7557_v10 = vld [vmem:[%s4679_s15 + $0x348] sm:$0xff]  ;;  %v9156_v14 = vld [vmem:[#allocation125_spill] sm:$0xff]  ;;  %v3950_v20 = vld [vmem:[%s4679_s15 + $0x3a0] sm:$0x3f]  ;;  %v1605_v60 = vpop.permute.xlu1 %1604 }
 0x1ab   : >> { %9151 = vst [vmem:[#allocation51_spill] sm:$0xff] %v7557_v10  ;;  %v3581_v16 = vld [vmem:[%s4679_s15 + $0x508] sm:$0x3f]  ;;  %v7567_v1 = vmul.f32 %v3721_v59, %v9156_v14  ;;  %v9158_v43 = vld [vmem:[#allocation14_spill] sm:$0xff]  ;;  %v9159_v55 = vld [vmem:[#allocation17_spill] sm:$0xff] }
 0x1ac   : >> { %9155 = vst [vmem:[#allocation53_spill] sm:$0xff] %v7564_v26  ;;  %v1678_v11 = vmul.f32 %v3896_v15, %v9158_v43  ;;  %v7579_v61 = vmul.f32 %v3932_v40, %v9159_v55  ;;  %v3959_v38 = vld [vmem:[%s4679_s15 + $0x820] sm:$0x3f]  ;;  %v3968_v3 = vld [vmem:[%s4679_s15 + $0x3e8] sm:$0x3f]  ;;  %v9160_v14 = vld [vmem:[#allocation93_spill] sm:$0xff]  ;;  %v1467_v40 = vmul.f32 %v7530_v0, %v7208_v51 }
 0x1ad   : >> { %9157 = vst [vmem:[#allocation54_spill] sm:$0xff] %v7567_v1  ;;  %v3977_v59 = vld [vmem:[%s4679_s15 + $0x868] sm:$0x3f]  ;;  %v305_v47 = vadd.f32 %v296_v48, %v9160_v14  ;;  %v1603_v1 = vpop.permute.xlu0 %1602  ;;  %v3591_v35 = vld [vmem:[%s4679_s15 + $0xd0] sm:$0x3f]  ;;  %v1646_v15 = vmax.f32 %v1637_v57, 0.0  ;;  %v1466_v48 = vmul.f32 %v7557_v10, %v7208_v51  ;;  %v1630_v57 = vadd.f32 %v1605_v60, %v7480_v54 }
 0x1ae   : >> { %v9161_v7 = vld [vmem:[#allocation192_spill] sm:$0xff]  ;;  %v9162_v26 = vld [vmem:[#allocation41_spill] sm:$0xff]  ;;  %v3905_v0 = vld [vmem:[%s4679_s15 + $0x700] sm:$0x3f]  ;;  %2676 = vrot.lane.b32.xlu2 %v7485_v18, %s9027_s21 }
 0x1af   : >> { %v366_v25 = vmul.f32 %v3571_v24, %v9161_v7  ;;  %v7588_v19 = vmul.f32 %v3941_v53, %v9162_v26  ;;  %v7593_v43 = vld [vmem:[%s4679_s15 + $0x7d0] sm:$0xff]  ;;  %v342_v7 = vadd.f32 %v333_v58, %v305_v47  ;;  %v399_v53 = vmul.f32 %v3581_v16, %v9164_v12  ;;  %v7605_v26 = vld [vmem:[%s4679_s15 + $0x7c8] sm:$0xff]  ;;  %v9165_v51 = vld [vmem:[#allocation163_spill] sm:$0xff]  ;;  %3887 = vst.msk [vmem:[%s7165_s23 + $0x88] sm:$0x3f] %vm892_vm1, %v1646_v15 }
 0x1b0   : >> { %v9163_v24 = vld [vmem:[#allocation157_spill] sm:$0xff]  ;;  %v3914_v49 = vld [vmem:[%s4679_s15 + $0x2c8] sm:$0x3f]  ;;  %v7614_v10 = vmul.f32 %v3959_v38, %v9165_v51  ;;  %v1629_v12 = vadd.f32 %v1603_v1, %v7491_v6  ;;  %v1497_v38 = vmul.f32 %v7593_v43, %v7262_v28  ;;  %v4159_v51 = vld [vmem:[%s4679_s15 + $0x820] sm:$0x3f]  ;;  %v1496_v6 = vmul.f32 %v7605_v26, %v7262_v28  ;;  %2674 = vrot.lane.b32.xlu1 %v7494_v34, %s9027_s21 }
 0x1b1   : >> { %v7601_v55 = vmul.f32 %v3950_v20, %v9163_v24  ;;  %v7617_v20 = vmul.f32 %v3968_v3, %v9166_v32  ;;  %v9167_v47 = vld [vmem:[#allocation189_spill] sm:$0xff]  ;;  %v375_v54 = vadd.f32 %v366_v25, %v342_v7  ;;  %v1639_v32 = vmax.f32 %v1630_v57, 0.0  ;;  %v3923_v3 = vld [vmem:[%s4679_s15 + $0x748] sm:$0x3f]  ;;  %v4158_v1 = vld [vmem:[%s4679_s15 + $0x818] sm:$0xff]  ;;  %2672 = vrot.lane.b32.xlu0 %v7497_v63, %s9027_s21 }
 0x1b2   : >> { %v7620_v58 = vmul.f32 %v3977_v59, %v9167_v47  ;;  %v3986_v16 = vld [vmem:[%s4679_s15 + $0x430] sm:$0x3f]  ;;  %v1476_v59 = vadd.f32 %v1467_v40, %v7471_v41  ;;  %v1638_v25 = vmax.f32 %v1629_v12, 0.0  ;;  %v1687_v41 = vadd.f32 %v1678_v11, %v9160_v14  ;;  %v9169_v15 = vld [vmem:[#allocation32_spill] sm:$0xff]  ;;  %v1611_v47 = vpop.permute.xlu1 %1610 }
 0x1b3   : >> { %v9168_v60 = vld [vmem:[#allocation21_spill] sm:$0xff]  ;;  %v408_v18 = vadd.f32 %v399_v53, %v375_v54  ;;  %v1707_v28 = vmul.f32 %v3905_v0, %v9169_v15  ;;  %3880 = vst.msk [vmem:[%s7165_s23 + $0x50] sm:$0xff] %vm883_vm0, %v1639_v32  ;;  %v2656_v34 = vmul.f32 %v4159_v51, %v7447_v22  ;;  %v7661_v63 = vstv %s7575_s11  ;;  %v7663_v53 = vpop.permute.xlu2 %2363  ;;  %v9172_v0 = vld [vmem:[#allocation34_spill] sm:$0xff] }
 0x1b4   : >> { %v432_v24 = vmul.f32 %v3591_v35, %v9168_v60  ;;  %v1475_v35 = vadd.f32 %v1466_v48, %v7473_v39  ;;  %v4157_v40 = vld [vmem:[%s4679_s15 + $0x810] sm:$0xff]  ;;  %v9170_v39 = vld [vmem:[#allocation60_spill] sm:$0xff]  ;;  %3879 = vst.msk [vmem:[%s7165_s23 + $0x48] sm:$0xff] %vm883_vm0, %v1638_v25  ;;  %v1765_v54 = vmul.f32 %v3923_v3, %v9172_v0  ;;  %v2655_v51 = vmul.f32 %v4158_v1, %v7447_v22  ;;  %v4066_v0 = vld [vmem:[%s4679_s15 + $0x778] sm:$0xff] }
 0x1b5   : >> { %v7654_v48 = vmul.f32 %v3986_v16, %v9170_v39  ;;  %v9171_v7 = vld [vmem:[#allocation33_spill] sm:$0xff]  ;;  %v1716_v12 = vadd.f32 %v1707_v28, %v1687_v41  ;;  %v1633_v16 = vadd.f32 %v1611_v47, %v7515_v42  ;;  %v1609_v15 = vpop.permute.xlu0 %1608  ;;  %v2654_v25 = vmul.f32 %v4157_v40, %v7447_v22  ;;  %v2819_v1 = vld [vmem:[%s4679_s15 + $0x1] sm:$0xff]  ;;  %v4057_v47 = vld [vmem:[%s4679_s15 + $0x2f8] sm:$0xff] }
 0x1b6   : >> { %v1736_v57 = vmul.f32 %v3914_v49, %v9171_v7  ;;  %v441_v11 = vadd.f32 %v432_v24, %v408_v18  ;;  %v2821_v60 = vld [vmem:[%s4679_s15 + $0x11] sm:$0xff]  ;;  %v2820_v32 = vld [vmem:[%s4679_s15 + $0x9] sm:$0xff]  ;;  %v1506_v49 = vadd.f32 %v1497_v38, %v1476_v59  ;;  %v1632_v24 = vadd.f32 %v1609_v15, %v7534_v5  ;;  %2682 = vrot.lane.b32.xlu2 %v2656_v34, %s9027_s21 }
 0x1b7   : >> { %v1505_v41 = vadd.f32 %v1496_v6, %v1475_v35  ;;  %v1642_v28 = vmax.f32 %v1633_v16, 0.0  ;;  %v2831_v38 = vmul.f32 %v7661_v63, %v2821_v60  ;;  %v7676_v59 = vmul.f32 %v7661_v63, %v2820_v32  ;;  %v4063_v35 = vld [vmem:[%s4679_s15 + $0x760] sm:$0xff]  ;;  %v4069_v16 = vld [vmem:[%s4679_s15 + $0x790] sm:$0x3f] }
 0x1b8   : >> { %v474_v18 = vadd.f32 %v7505_v36, %v441_v11  ;;  %v1745_v3 = vadd.f32 %v1736_v57, %v1716_v12  ;;  %v1571_v42 = vadd.f32 %v7467_v33, %v1506_v49  ;;  %v1641_v22 = vmax.f32 %v1632_v24, 0.0  ;;  %v4054_v36 = vld [vmem:[%s4679_s15 + $0x2e0] sm:$0xff]  ;;  %2680 = vrot.lane.b32.xlu1 %v2655_v51, %s9027_s21 }
 0x1b9   : >> { %v7682_v6 = vstv %s7598_s17  ;;  %v7686_v39 = vstv %s7608_s26  ;;  %v7692_v57 = vstv %s7631_s7  ;;  %2678 = vrot.lane.b32.xlu0 %v2654_v25, %s9027_s21  ;;  %v2829_v34 = vmul.f32 %v7661_v63, %v2819_v1 }
 0x1ba   : >> { %v507_v40 = vadd.f32 %v7508_v37, %v474_v18  ;;  %v1774_v5 = vadd.f32 %v1765_v54, %v1745_v3  ;;  %v2221_v33 = vmul.f32 %v4054_v36, %v7682_v6  ;;  %v2250_v7 = vmul.f32 %v4063_v35, %v7686_v39  ;;  %3883 = vst.msk [vmem:[%s7165_s23 + $0x68] sm:$0xff] %vm883_vm0, %v1642_v28  ;;  %v1617_v49 = vpop.permute.xlu1 %1616 }
 0x1bb   : >> { %v7695_v37 = vstv %s7642_s28  ;;  %v2279_v60 = vmul.f32 %v7226_v23, %v7692_v57  ;;  %v2224_v32 = vmul.f32 %v4057_v47, %v7682_v6  ;;  %3882 = vst.msk [vmem:[%s7165_s23 + $0x60] sm:$0xff] %vm883_vm0, %v1641_v22  ;;  %v7715_v15 = vpop.permute.xlu2 %2369  ;;  %v2282_v24 = vmul.f32 %v7256_v50, %v7692_v57  ;;  %v4078_v22 = vld [vmem:[%s4679_s15 + $0x358] sm:$0x3f]  ;;  %v2022_v47 = vld [vmem:[%s4679_s15 + $0x41] sm:$0x3f] }
 0x1bc   : >> { %v540_v11 = vadd.f32 %v7511_v45, %v507_v40  ;;  %v1803_v12 = vadd.f32 %v7579_v61, %v1774_v5  ;;  %v2230_v54 = vadd.f32 %v2221_v33, %v9160_v14  ;;  %v2253_v45 = vmul.f32 %v4066_v0, %v7686_v39  ;;  %v4060_v61 = vld [vmem:[%s4679_s15 + $0x310] sm:$0x3f] }
 0x1bd   : >> { %v2308_v23 = vmul.f32 %v7267_v27, %v7695_v37  ;;  %v1615_v18 = vpop.permute.xlu0 %1614  ;;  %v2233_v28 = vadd.f32 %v2224_v32, %v9160_v14  ;;  %v2227_v1 = vmul.f32 %v4060_v61, %v7682_v6  ;;  %v2256_v40 = vmul.f32 %v4069_v16, %v7686_v39  ;;  %v3995_v5 = vld [vmem:[%s4679_s15 + $0x8b0] sm:$0x3f]  ;;  %v9173_v32 = vld [vmem:[#allocation80_spill] sm:$0xff]  ;;  %v4087_v61 = vld [vmem:[%s4679_s15 + $0x7d8] sm:$0x3f] }
 0x1be   : >> { %v573_v51 = vadd.f32 %v7518_v13, %v540_v11  ;;  %v1832_v25 = vadd.f32 %v7588_v19, %v1803_v12  ;;  %v2259_v3 = vadd.f32 %v2250_v7, %v2230_v54  ;;  %v1570_v27 = vadd.f32 %v7469_v8, %v1505_v41  ;;  %v4004_v11 = vld [vmem:[%s4679_s15 + $0x4c1] sm:$0x3f]  ;;  %2851 = vrot.lane.b32.xlu2 %v2831_v38, %s9027_s21  ;;  %v2824_v0 = vld [vmem:[%s4679_s15 + $0x29] sm:$0xff]  ;;  %v2822_v38 = vld [vmem:[%s4679_s15 + $0x19] sm:$0xff] }
 0x1bf   : >> { %v2311_v50 = vmul.f32 %v7308_v2, %v7695_v37  ;;  %v2262_v35 = vadd.f32 %v2253_v45, %v2233_v28  ;;  %v2236_v33 = vadd.f32 %v2227_v1, %v9160_v14  ;;  %v1636_v7 = vadd.f32 %v1617_v49, %v1571_v42  ;;  %v2823_v54 = vld [vmem:[%s4679_s15 + $0x21] sm:$0xff] }
 0x1c0   : >> { %v606_v13 = vadd.f32 %v7521_v4, %v573_v51  ;;  %v1862_v19 = vadd.f32 %v7601_v55, %v1832_v25  ;;  %v2288_v36 = vadd.f32 %v2279_v60, %v2259_v3  ;;  %v2285_v8 = vmul.f32 %v4078_v22, %v7692_v57  ;;  %2849 = vrot.lane.b32.xlu1 %v7676_v59, %s9027_s21  ;;  %v9174_v49 = vld [vmem:[#allocation19_spill] sm:$0xff]  ;;  %v4022_v59 = vld [vmem:[%s4679_s15 + $0x509] sm:$0x3f] }
 0x1c1   : >> { %v1635_v55 = vadd.f32 %v1615_v18, %v1570_v27  ;;  %v2291_v2 = vadd.f32 %v2282_v24, %v2262_v35  ;;  %v2265_v42 = vadd.f32 %v2256_v40, %v2236_v33  ;;  %v1645_v60 = vmax.f32 %v1636_v7, 0.0  ;;  %2847 = vrot.lane.b32.xlu0 %v2829_v34, %s9027_s21  ;;  %v9175_v25 = vld [vmem:[#allocation155_spill] sm:$0xff]  ;;  %v4013_v24 = vld [vmem:[%s4679_s15 + $0x89] sm:$0x3f]  ;;  %v4031_v34 = vld [vmem:[%s4679_s15 + $0xd1] sm:$0x3f] }
 0x1c2   : >> { %v639_v12 = vadd.f32 %v7524_v31, %v606_v13  ;;  %v1892_v4 = vadd.f32 %v7614_v10, %v1862_v19  ;;  %v2317_v41 = vadd.f32 %v2308_v23, %v2288_v36  ;;  %v2003_v45 = vmul.f32 %v3995_v5, %v9173_v32  ;;  %v7756_v3 = vpop.permute.xlu1 %2355  ;;  %v4040_v13 = vld [vmem:[%s4679_s15 + $0x551] sm:$0x3f]  ;;  %v2827_v36 = vld [vmem:[%s4679_s15 + $0x41] sm:$0x3f]  ;;  %v9176_v7 = vld [vmem:[#allocation120_spill] sm:$0xff] }
 0x1c3   : >> { %v1644_v16 = vmax.f32 %v1635_v55, 0.0  ;;  %v2032_v51 = vmul.f32 %v9174_v49, %v2022_v47  ;;  %v2061_v23 = vmul.f32 %v4004_v11, %v9175_v25  ;;  %v2320_v18 = vadd.f32 %v2311_v50, %v2291_v2  ;;  %3886 = vst.msk [vmem:[%s7165_s23 + $0x80] sm:$0xff] %vm883_vm0, %v1645_v60  ;;  %v9177_v11 = vld [vmem:[#allocation108_spill] sm:$0xff]  ;;  %v2826_v2 = vld [vmem:[%s4679_s15 + $0x39] sm:$0xff]  ;;  %v9183_v25 = vld [vmem:[#allocation53_spill] sm:$0xff] }
 0x1c4   : >> { %v672_v31 = vadd.f32 %v7538_v56, %v639_v12  ;;  %v1922_v10 = vadd.f32 %v7617_v20, %v1892_v4  ;;  %v2382_v56 = vadd.f32 %v7572_v30, %v2317_v41  ;;  %v2423_v20 = vpop.permute.xlu2 %2422  ;;  %v2834_v22 = vmul.f32 %v7661_v63, %v2824_v0  ;;  %v9180_v60 = vld [vmem:[#allocation52_spill] sm:$0xff] }
 0x1c5   : >> { %v2833_v40 = vmul.f32 %v7661_v63, %v2823_v54  ;;  %3885 = vst.msk [vmem:[%s7165_s23 + $0x78] sm:$0xff] %vm883_vm0, %v1644_v16  ;;  %v7766_v30 = vpop.permute.xlu0 %2353  ;;  %v2385_v19 = vadd.f32 %v7663_v53, %v2320_v18  ;;  %v2832_v27 = vmul.f32 %v7661_v63, %v2822_v38  ;;  %v2294_v50 = vadd.f32 %v2285_v8, %v2265_v42  ;;  %v9179_v54 = vld [vmem:[#allocation119_spill] sm:$0xff] }
 0x1c6   : >> { %v705_v28 = vadd.f32 %v7541_v46, %v672_v31  ;;  %v1952_v1 = vadd.f32 %v7620_v58, %v1922_v10  ;;  %v2314_v5 = vmul.f32 %v4087_v61, %v7695_v37  ;;  %v7775_v35 = vadd.f32 %v2423_v20, %v2382_v56  ;;  %2857 = vrot.lane.b32.xlu2 %v2834_v22, %s9027_s21  ;;  %v9181_v10 = vld [vmem:[#allocation23_spill] sm:$0xff]  ;;  %v9182_v61 = vld [vmem:[#allocation150_spill] sm:$0xff] }
 0x1c7   : >> { %v2220_v33 = vmul.f32 %v7239_v29, %v7682_v6  ;;  %v2090_v47 = vmul.f32 %v4013_v24, %v9176_v7  ;;  %v2119_v53 = vmul.f32 %v4022_v59, %v7081_v9  ;;  %v2148_v12 = vmul.f32 %v4031_v34, %v9177_v11  ;;  %v2825_v9 = vld [vmem:[%s4679_s15 + $0x31] sm:$0xff] }
 0x1c8   : >> { %v738_v46 = vadd.f32 %v7544_v21, %v705_v28  ;;  %v1982_v58 = vadd.f32 %v7654_v48, %v1952_v1  ;;  %v2249_v4 = vmul.f32 %v7285_v62, %v7686_v39  ;;  %v9178_v21 = vld [vmem:[#allocation131_spill] sm:$0xff]  ;;  %v2837_v29 = vmul.f32 %v7661_v63, %v2827_v36  ;;  %2855 = vrot.lane.b32.xlu1 %v2833_v40, %s9027_s21  ;;  %v9184_v28 = vld [vmem:[#allocation25_spill] sm:$0xff]  ;;  %v9185_v40 = vld [vmem:[#allocation54_spill] sm:$0xff] }
 0x1c9   : >> { %v2177_v48 = vmul.f32 %v4040_v13, %v9178_v21  ;;  %v2229_v41 = vadd.f32 %v2220_v33, %v9160_v14  ;;  %v2278_v0 = vmul.f32 %v7369_v17, %v7692_v57  ;;  %v2219_v62 = vmul.f32 %v7242_v52, %v7682_v6  ;;  %2853 = vrot.lane.b32.xlu0 %v2832_v27, %s9027_s21 }
 0x1ca   : >> { %v771_v8 = vadd.f32 %v7551_v44, %v738_v46  ;;  %v2012_v55 = vadd.f32 %v2003_v45, %v1982_v58  ;;  %v2248_v42 = vmul.f32 %v9179_v54, %v7686_v39  ;;  %v2323_v45 = vadd.f32 %v2314_v5, %v2294_v50  ;;  %v2362_v49 = vpop.permute.xlu1 %2361  ;;  %v9187_v5 = vld [vmem:[#allocation122_spill] sm:$0xff] }
 0x1cb   : >> { %v2258_v31 = vadd.f32 %v2249_v4, %v2229_v41  ;;  %v2307_v38 = vmul.f32 %v9181_v10, %v7695_v37  ;;  %v2228_v17 = vadd.f32 %v2219_v62, %v9160_v14  ;;  %v2277_v52 = vmul.f32 %v9182_v61, %v7692_v57  ;;  %v4197_v41 = vld [vmem:[%s4679_s15 + $0x489] sm:$0xff]  ;;  %v4196_v62 = vld [vmem:[%s4679_s15 + $0x481] sm:$0xff] }
 0x1cc   : >> { %v804_v44 = vadd.f32 %v9180_v60, %v771_v8  ;;  %v2041_v32 = vadd.f32 %v2032_v51, %v2012_v55  ;;  %v2429_v16 = vpop.permute.xlu2 %2428  ;;  %v2836_v56 = vmul.f32 %v7661_v63, %v2826_v2  ;;  %v2835_v18 = vmul.f32 %v7661_v63, %v2825_v9  ;;  %v4198_v55 = vld [vmem:[%s4679_s15 + $0x491] sm:$0xff]  ;;  %v9190_v9 = vld [vmem:[#allocation123_spill] sm:$0xff] }
 0x1cd   : >> { %v7811_v20 = vpop.permute.xlu0 %2359  ;;  %v2287_v59 = vadd.f32 %v2278_v0, %v2258_v31  ;;  %v2257_v34 = vadd.f32 %v2248_v42, %v2228_v17  ;;  %v2306_v1 = vmul.f32 %v9184_v28, %v7695_v37  ;;  %v7815_v22 = vadd.f32 %v2429_v16, %v2385_v19  ;;  %v9193_v16 = vld [vmem:[#allocation27_spill] sm:$0xff] }
 0x1ce   : >> { %v837_v24 = vadd.f32 %v9183_v25, %v804_v44  ;;  %v2070_v51 = vadd.f32 %v2061_v23, %v2041_v32  ;;  %v9186_v23 = vld [vmem:[#allocation124_spill] sm:$0xff]  ;;  %v2252_v63 = vmul.f32 %v9187_v5, %v7686_v39  ;;  %v2388_v46 = vadd.f32 %v7715_v15, %v2323_v45  ;;  %2863 = vrot.lane.b32.xlu2 %v2837_v29, %s9027_s21  ;;  %v9189_v15 = vld [vmem:[#allocation26_spill] sm:$0xff] }
 0x1cf   : >> { %v2223_v50 = vmul.f32 %v9186_v23, %v7682_v6  ;;  %v2316_v58 = vadd.f32 %v2307_v38, %v2287_v59  ;;  %v2286_v36 = vadd.f32 %v2277_v52, %v2257_v34  ;;  %v7824_v33 = vstv %s7785_s8  ;;  %v9192_v44 = vld [vmem:[#allocation24_spill] sm:$0xff]  ;;  %v9195_v34 = vld [vmem:[#allocation143_spill] sm:$0xff] }
 0x1d0   : >> { %v870_v13 = vadd.f32 %v9185_v40, %v837_v24  ;;  %v2099_v27 = vadd.f32 %v2090_v47, %v2070_v51  ;;  %v9188_v47 = vld [vmem:[#allocation22_spill] sm:$0xff]  ;;  %v2310_v2 = vmul.f32 %v9189_v15, %v7695_v37  ;;  %v2222_v0 = vmul.f32 %v9190_v9, %v7682_v6  ;;  %2861 = vrot.lane.b32.xlu1 %v2836_v56, %s9027_s21  ;;  %v9197_v23 = vld [vmem:[#allocation151_spill] sm:$0xff] }
 0x1d1   : >> { %v2232_v11 = vadd.f32 %v2223_v50, %v9160_v14  ;;  %v2281_v4 = vmul.f32 %v9188_v47, %v7692_v57  ;;  %v2381_v21 = vadd.f32 %v7756_v3, %v2316_v58  ;;  %v2315_v8 = vadd.f32 %v2306_v1, %v2286_v36  ;;  %2859 = vrot.lane.b32.xlu0 %v2835_v18, %s9027_s21  ;;  %v9191_v3 = vld [vmem:[#allocation145_spill] sm:$0xff]  ;;  %v4200_v47 = vld [vmem:[%s4679_s15 + $0x4a1] sm:$0xff] }
 0x1d2   : >> { %v879_v19 = vmax.f32 %v870_v13, 0.0  ;;  %v2128_v7 = vadd.f32 %v2119_v53, %v2099_v27  ;;  %v2251_v54 = vmul.f32 %v9191_v3, %v7686_v39  ;;  %v2231_v60 = vadd.f32 %v2222_v0, %v9160_v14  ;;  %v2368_v45 = vpop.permute.xlu1 %2367  ;;  %v9196_v13 = vld [vmem:[#allocation28_spill] sm:$0xff] }
 0x1d3   : >> { %v2261_v29 = vadd.f32 %v2252_v63, %v2232_v11  ;;  %v2380_v42 = vadd.f32 %v7766_v30, %v2315_v8  ;;  %v2280_v32 = vmul.f32 %v9192_v44, %v7692_v57  ;;  %v2895_v17 = vmul.f32 %v4197_v41, %v7824_v33 }
 0x1d4   : >> { %893 = vst.msk [vmem:[%s7165_s23 + $0x40] sm:$0x3f] %vm892_vm1, %v879_v19  ;;  %v2157_v53 = vadd.f32 %v2148_v12, %v2128_v7  ;;  %v2896_v12 = vmul.f32 %v4198_v55, %v7824_v33  ;;  %v2894_v61 = vmul.f32 %v4196_v62, %v7824_v33  ;;  %v2260_v52 = vadd.f32 %v2251_v54, %v2231_v60  ;;  %v2435_v25 = vpop.permute.xlu2 %2434  ;;  %v9199_v7 = vld [vmem:[#allocation51_spill] sm:$0xff] }
 0x1d5   : >> { %v2290_v10 = vadd.f32 %v2281_v4, %v2261_v29  ;;  %v2366_v38 = vpop.permute.xlu0 %2365  ;;  %v2309_v30 = vmul.f32 %v9193_v16, %v7695_v37  ;;  %v7853_v56 = vadd.f32 %v2435_v25, %v2388_v46  ;;  %v2255_v28 = vmul.f32 %v9195_v34, %v7686_v39  ;;  %v9198_v46 = vld [vmem:[#allocation20_spill] sm:$0xff]  ;;  %v4199_v4 = vld [vmem:[%s4679_s15 + $0x499] sm:$0xff]  ;;  %v4202_v29 = vld [vmem:[%s4679_s15 + $0x4b1] sm:$0xff] }
 0x1d6   : >> { %v2186_v31 = vadd.f32 %v2177_v48, %v2157_v53  ;;  %v9194_v48 = vld [vmem:[#allocation144_spill] sm:$0xff]  ;;  %v2289_v59 = vadd.f32 %v2280_v32, %v2260_v52  ;;  %v2284_v27 = vmul.f32 %v9196_v13, %v7692_v57  ;;  %v2225_v50 = vmul.f32 %v9197_v23, %v7682_v6  ;;  %2916 = vrot.lane.b32.xlu2 %v2896_v12, %s9027_s21  ;;  %v4108_v25 = vld [vmem:[%s4679_s15 + $0x400] sm:$0xff]  ;;  %v4111_v13 = vld [vmem:[%s4679_s15 + $0x418] sm:$0xff] }
 0x1d7   : >> { %v2319_v51 = vadd.f32 %v2310_v2, %v2290_v10  ;;  %v2226_v18 = vmul.f32 %v9194_v48, %v7682_v6  ;;  %v2313_v63 = vmul.f32 %v7593_v43, %v7695_v37  ;;  %v2254_v58 = vmul.f32 %v9198_v46, %v7686_v39  ;;  %v4117_v34 = vld [vmem:[%s4679_s15 + $0x880] sm:$0xff] }
 0x1d8   : >> { %v2195_v24 = vmax.f32 %v2186_v31, 0.0  ;;  %v2318_v5 = vadd.f32 %v2309_v30, %v2289_v59  ;;  %2914 = vrot.lane.b32.xlu1 %v2895_v17, %s9027_s21  ;;  %v2234_v19 = vadd.f32 %v2225_v50, %v9160_v14  ;;  %v2283_v6 = vmul.f32 %v9199_v7, %v7692_v57 }
 0x1d9   : >> { %v2384_v1 = vadd.f32 %v2362_v49, %v2319_v51  ;;  %v2235_v40 = vadd.f32 %v2226_v18, %v9160_v14  ;;  %2912 = vrot.lane.b32.xlu0 %v2894_v61, %s9027_s21  ;;  %v4201_v49 = vld [vmem:[%s4679_s15 + $0x4a9] sm:$0xff]  ;;  %v2312_v39 = vmul.f32 %v7605_v26, %v7695_v37  ;;  %v2898_v57 = vmul.f32 %v4200_v47, %v7824_v33  ;;  %v4204_v37 = vld [vmem:[%s4679_s15 + $0x4c1] sm:$0x3f] }
 0x1da   : >> { %4051 = vst.msk [vmem:[%s7165_s23 + $0xd0] sm:$0x3f] %vm892_vm1, %v2195_v24  ;;  %v2383_v11 = vadd.f32 %v7811_v20, %v2318_v5  ;;  %v2421_v8 = vpop.permute.xlu1 %2420  ;;  %v2263_v55 = vadd.f32 %v2254_v58, %v2234_v19  ;;  %v2899_v15 = vmul.f32 %v4201_v49, %v7824_v33  ;;  %v2897_v20 = vmul.f32 %v4199_v4, %v7824_v33 }
 0x1db   : >> { %v2264_v36 = vadd.f32 %v2255_v28, %v2235_v40  ;;  %v7883_v14 = vadd.f32 %v2421_v8, %v2381_v21  ;;  %v4203_v21 = vld [vmem:[%s4679_s15 + $0x4b9] sm:$0xff]  ;;  %v7920_v24 = vstv %s2454_s9  ;;  %v7931_v28 = vstv %s2483_s10 }
 0x1dc   : >> { %v2292_v9 = vadd.f32 %v2283_v6, %v2263_v55  ;;  %v2901_v32 = vmul.f32 %v4203_v21, %v7824_v33  ;;  %v2467_v48 = vmul.f32 %v4108_v25, %v7920_v24  ;;  %v7950_v19 = vstv %s2542_s30  ;;  %v4129_v8 = vld [vmem:[%s4679_s15 + $0x460] sm:$0xff] }
 0x1dd   : >> { %v2293_v43 = vadd.f32 %v2284_v27, %v2264_v36  ;;  %v2419_v41 = vpop.permute.xlu0 %2418  ;;  %v4126_v27 = vld [vmem:[%s4679_s15 + $0x448] sm:$0xff] }
 0x1de   : >> { %v7887_v0 = vadd.f32 %v2419_v41, %v2380_v42  ;;  %v2321_v62 = vadd.f32 %v2312_v39, %v2292_v9  ;;  %2922 = vrot.lane.b32.xlu2 %v2899_v15, %s9027_s21  ;;  %v2902_v42 = vmul.f32 %v4204_v37, %v7824_v33  ;;  %v2476_v40 = vadd.f32 %v2467_v48, %v7775_v35  ;;  %v4120_v35 = vld [vmem:[%s4679_s15 + $0x898] sm:$0xff]  ;;  %v4135_v36 = vld [vmem:[%s4679_s15 + $0x8c8] sm:$0xff]  ;;  %v4123_v41 = vld [vmem:[%s4679_s15 + $0x8b0] sm:$0x3f] }
 0x1df   : >> { %v2322_v2 = vadd.f32 %v2313_v63, %v2293_v43  ;;  %v2470_v63 = vmul.f32 %v4111_v13, %v7920_v24  ;;  %v2499_v7 = vmul.f32 %v4120_v35, %v7931_v28  ;;  %v2556_v47 = vmul.f32 %v4135_v36, %v7950_v19  ;;  %v4162_v9 = vld [vmem:[%s4679_s15 + $0xa1] sm:$0xff]  ;;  %v4116_v48 = vld [vmem:[%s4679_s15 + $0x878] sm:$0xff]  ;;  %v4180_v35 = vld [vmem:[%s4679_s15 + $0xe9] sm:$0xff] }
 0x1e0   : >> { %2920 = vrot.lane.b32.xlu1 %v2898_v57, %s9027_s21  ;;  %v2386_v26 = vadd.f32 %v2366_v38, %v2321_v62  ;;  %v8000_v36 = vstv %s2760_s13 }
 0x1e1   : >> { %v2387_v53 = vadd.f32 %v2368_v45, %v2322_v2  ;;  %2918 = vrot.lane.b32.xlu0 %v2897_v20, %s9027_s21  ;;  %v2900_v45 = vmul.f32 %v4202_v29, %v7824_v33  ;;  %v2479_v6 = vadd.f32 %v2470_v63, %v7815_v22  ;;  %v4138_v2 = vld [vmem:[%s4679_s15 + $0x8e0] sm:$0xff] }
 0x1e2   : >> { %v2427_v3 = vpop.permute.xlu1 %2426  ;;  %v2559_v21 = vmul.f32 %v4138_v2, %v7950_v19 }
 0x1e3   : >> { %v7895_v54 = vadd.f32 %v2427_v3, %v2384_v1  ;;  %v2496_v1 = vmul.f32 %v4117_v34, %v7931_v28  ;;  %v2508_v39 = vadd.f32 %v2499_v7, %v2479_v6  ;;  %v4132_v3 = vld [vmem:[%s4679_s15 + $0x478] sm:$0x3f]  ;;  %v4115_v7 = vld [vmem:[%s4679_s15 + $0x870] sm:$0xff] }
 0x1e4   : >> { %v2494_v2 = vmul.f32 %v4115_v7, %v7931_v28 }
 0x1e5   : >> { %v2425_v60 = vpop.permute.xlu0 %2424  ;;  %v2505_v5 = vadd.f32 %v2496_v1, %v2476_v40  ;;  %v4141_v1 = vld [vmem:[%s4679_s15 + $0x8f8] sm:$0x3f] }
 0x1e6   : >> { %v7898_v44 = vadd.f32 %v2425_v60, %v2383_v11  ;;  %2928 = vrot.lane.b32.xlu2 %v2902_v42, %s9027_s21  ;;  %v4114_v11 = vld [vmem:[%s4679_s15 + $0x430] sm:$0x3f] }
 0x1e7   : >> { %v2473_v43 = vmul.f32 %v4114_v11, %v7920_v24  ;;  %v2495_v11 = vmul.f32 %v4116_v48, %v7931_v28 }
 0x1e8   : >> { %2926 = vrot.lane.b32.xlu1 %v2901_v32, %s9027_s21  ;;  %v2606_v31 = vpop.permute.xlu2 %2605  ;;  %v4171_v32 = vld [vmem:[%s4679_s15 + $0x521] sm:$0xff] }
 0x1e9   : >> { %2924 = vrot.lane.b32.xlu0 %v2900_v45, %s9027_s21  ;;  %s2512_s21 = sld [smem:[#allocation4 + %s5575_s12]]  ;;  %v2482_v37 = vadd.f32 %v2473_v43, %v7853_v56  ;;  %v4109_v43 = vld [vmem:[%s4679_s15 + $0x408] sm:$0xff] }
 0x1ea   : >> { %v2433_v12 = vpop.permute.xlu1 %2432  ;;  %s2731_s12 = sld [smem:[#allocation4 + %s6620_s24]] }
 0x1eb   : >> { %v7905_v10 = vadd.f32 %v2433_v12, %v2387_v53  ;;  %v7970_v53 = vstv %s2702_s16  ;;  %v4106_v12 = vld [vmem:[%s4679_s15 + $0x3f0] sm:$0xff]  ;;  %s2969_s24 = sld [smem:[#allocation3]] (%p271_p7) }
 0x1ec   : >> { %v2715_v60 = vmul.f32 %v4162_v9, %v7970_v53  ;;  %v2465_v63 = vmul.f32 %v4106_v12, %v7920_v24  ;;  %v4168_v12 = vld [vmem:[%s4679_s15 + $0xd1] sm:$0x3f] }
 0x1ed   : >> { %v2431_v38 = vpop.permute.xlu0 %2430 }
 0x1ee   : >> { %v7907_v17 = vadd.f32 %v2431_v38, %v2386_v26  ;;  %v2502_v26 = vmul.f32 %v4123_v41, %v7931_v28  ;;  %v2474_v9 = vadd.f32 %v2465_v63, %v7887_v0  ;;  %v4183_v63 = vld [vmem:[%s4679_s15 + $0x101] sm:$0xff] }
 0x1ef   : >> { %v7938_v23 = vstv %s2512_s21 }
 0x1f0   : >> { %v7909_v61 = vpop.permute.xlu2 %2611  ;;  %v2526_v46 = vmul.f32 %v4126_v27, %v7938_v23  ;;  %v2529_v57 = vmul.f32 %v4129_v8, %v7938_v23  ;;  %v7979_v45 = vstv %s2731_s12  ;;  %v2511_v38 = vadd.f32 %v2502_v26, %v2482_v37  ;;  %v4189_v26 = vld [vmem:[%s4679_s15 + $0x569] sm:$0xff] }
 0x1f1   : >> { %v2532_v56 = vmul.f32 %v4132_v3, %v7938_v23  ;;  %v8017_v37 = vstv %s7982_s29  ;;  %v4124_v3 = vld [vmem:[%s4679_s15 + $0x438] sm:$0xff] }
 0x1f2   : >> { %v2535_v4 = vadd.f32 %v2526_v46, %v2505_v5  ;;  %v2538_v29 = vadd.f32 %v2529_v57, %v2508_v39  ;;  %v4165_v46 = vld [vmem:[%s4679_s15 + $0xb9] sm:$0xff]  ;;  %v2773_v57 = vmul.f32 %v4180_v35, %v8000_v36 }
 0x1f3   : >> { %v2541_v8 = vadd.f32 %v2532_v56, %v2511_v38  ;;  %v2718_v41 = vmul.f32 %v4165_v46, %v7970_v53  ;;  %v2802_v38 = vmul.f32 %v4189_v26, %v8017_v37 }
 0x1f4   : >> { %v2565_v15 = vadd.f32 %v2556_v47, %v2535_v4  ;;  %v2568_v34 = vadd.f32 %v2559_v21, %v2538_v29  ;;  %v4110_v47 = vld [vmem:[%s4679_s15 + $0x410] sm:$0xff]  ;;  %v2562_v4 = vmul.f32 %v4141_v1, %v7950_v19  ;;  %v4125_v29 = vld [vmem:[%s4679_s15 + $0x440] sm:$0xff] }
 0x1f5   : >> { %v2469_v21 = vmul.f32 %v4110_v47, %v7920_v24  ;;  %v4133_v47 = vld [vmem:[%s4679_s15 + $0x8b8] sm:$0xff] }
 0x1f6   : >> { %v2630_v62 = vadd.f32 %v2606_v31, %v2565_v15  ;;  %v4107_v31 = vld [vmem:[%s4679_s15 + $0x3f8] sm:$0xff]  ;;  %v2633_v6 = vadd.f32 %v7909_v61, %v2568_v34 }
 0x1f7   : >> { %v2466_v5 = vmul.f32 %v4107_v31, %v7920_v24  ;;  %v2478_v35 = vadd.f32 %v2469_v21, %v7895_v54  ;;  %v4192_v21 = vld [vmem:[%s4679_s15 + $0x581] sm:$0xff] }
 0x1f8   : >> { %v7911_v33 = vpop.permute.xlu2 %2617 }
 0x1f9   : >> { %v2475_v61 = vadd.f32 %v2466_v5, %v7883_v14  ;;  %v4118_v14 = vld [vmem:[%s4679_s15 + $0x888] sm:$0xff]  ;;  %v2524_v5 = vmul.f32 %v4124_v3, %v7938_v23 }
 0x1fb   : >> { %v2504_v1 = vadd.f32 %v2495_v11, %v2475_v61  ;;  %v4177_v61 = vld [vmem:[%s4679_s15 + $0x551] sm:$0x3f] }
 0x200   : >> { %v2671_v52 = vpop.permute.xlu2 %2670 }
 0x201   : >> { %v7914_v16 = vpop.permute.xlu1 %2603  ;;  %v7916_v30 = vpop.permute.xlu0 %2601  ;;  %v2695_v42 = vadd.f32 %v2671_v52, %v2630_v62  ;;  %v2744_v52 = vmul.f32 %v4171_v32, %v7979_v45  ;;  %v4174_v62 = vld [vmem:[%s4679_s15 + $0x539] sm:$0xff] }
 0x202   : >> { %v2747_v31 = vmul.f32 %v4174_v62, %v7979_v45  ;;  %v2554_v62 = vmul.f32 %v4133_v47, %v7950_v19  ;;  %v4186_v47 = vld [vmem:[%s4679_s15 + $0x119] sm:$0x3f] }
 0x203   : >> { %v2724_v40 = vadd.f32 %v2715_v60, %v2695_v42  ;;  %v4119_v60 = vld [vmem:[%s4679_s15 + $0x890] sm:$0xff]  ;;  %v2571_v42 = vadd.f32 %v2562_v4, %v2541_v8  ;;  %v2497_v4 = vmul.f32 %v4118_v14, %v7931_v28  ;;  %v4113_v8 = vld [vmem:[%s4679_s15 + $0x428] sm:$0xff] }
 0x204   : >> { %v2498_v46 = vmul.f32 %v4119_v60, %v7931_v28  ;;  %v2472_v3 = vmul.f32 %v4113_v8, %v7920_v24  ;;  %v4122_v60 = vld [vmem:[%s4679_s15 + $0x8a8] sm:$0xff] }
 0x205   : >> { %v2753_v39 = vadd.f32 %v2744_v52, %v2724_v40  ;;  %v2503_v52 = vadd.f32 %v2494_v2, %v2474_v9  ;;  %v2525_v40 = vmul.f32 %v4125_v29, %v7938_v23  ;;  %v2636_v7 = vadd.f32 %v7911_v33, %v2571_v42 }
 0x206   : >> { %v2776_v2 = vmul.f32 %v4183_v63, %v8000_v36  ;;  %v2507_v29 = vadd.f32 %v2498_v46, %v2478_v35 }
 0x207   : >> { %v2782_v56 = vadd.f32 %v2773_v57, %v2753_v39  ;;  %v2721_v39 = vmul.f32 %v4168_v12, %v7970_v53  ;;  %v4127_v57 = vld [vmem:[%s4679_s15 + $0x450] sm:$0xff]  ;;  %v2533_v26 = vadd.f32 %v2524_v5, %v2503_v52 }
 0x208   : >> { %v7923_v51 = vpop.permute.xlu2 %2676  ;;  %v2527_v12 = vmul.f32 %v4127_v57, %v7938_v23 }
 0x209   : >> { %v7926_v18 = vpop.permute.xlu1 %2609  ;;  %v7928_v59 = vpop.permute.xlu0 %2607  ;;  %v2698_v15 = vadd.f32 %v7923_v51, %v2633_v6  ;;  %v2468_v51 = vmul.f32 %v4109_v43, %v7920_v24  ;;  %v4134_v6 = vld [vmem:[%s4679_s15 + $0x8c0] sm:$0xff]  ;;  %v4128_v43 = vld [vmem:[%s4679_s15 + $0x458] sm:$0xff]  ;;  %v2811_v33 = vadd.f32 %v2802_v38, %v2782_v56  ;;  %v4136_v38 = vld [vmem:[%s4679_s15 + $0x8d0] sm:$0xff]  ;;  %v2750_v56 = vmul.f32 %v4177_v61, %v7979_v45 }
 0x20a   : >> { %v2555_v9 = vmul.f32 %v4134_v6, %v7950_v19  ;;  %v2528_v42 = vmul.f32 %v4128_v43, %v7938_v23  ;;  %v2563_v6 = vadd.f32 %v2554_v62, %v2533_v26  ;;  %v2557_v8 = vmul.f32 %v4136_v38, %v7950_v19  ;;  %v4161_v43 = vld [vmem:[%s4679_s15 + $0x99] sm:$0xff] }
 0x20b   : >> { %v2727_v0 = vadd.f32 %v2718_v41, %v2698_v15  ;;  %v2477_v11 = vadd.f32 %v2468_v51, %v7898_v44  ;;  %v4112_v41 = vld [vmem:[%s4679_s15 + $0x420] sm:$0xff]  ;;  %v2534_v44 = vadd.f32 %v2525_v40, %v2504_v1  ;;  %v2805_v40 = vmul.f32 %v4192_v21, %v8017_v37  ;;  %v4195_v26 = vld [vmem:[%s4679_s15 + $0x599] sm:$0x3f] }
 0x20c   : >> { %v4121_v51 = vld [vmem:[%s4679_s15 + $0x8a0] sm:$0xff]  ;;  %v2628_v61 = vadd.f32 %v7916_v30, %v2563_v6  ;;  %v2779_v62 = vmul.f32 %v4186_v47, %v8000_v36  ;;  %v2808_v38 = vmul.f32 %v4195_v26, %v8017_v37 }
 0x20d   : >> { %v2756_v15 = vadd.f32 %v2747_v31, %v2727_v0  ;;  %v2506_v14 = vadd.f32 %v2497_v4, %v2477_v11  ;;  %v2471_v31 = vmul.f32 %v4112_v41, %v7920_v24  ;;  %v4137_v0 = vld [vmem:[%s4679_s15 + $0x8d8] sm:$0xff]  ;;  %v2501_v24 = vmul.f32 %v4122_v60, %v7931_v28  ;;  %v4179_v47 = vld [vmem:[%s4679_s15 + $0xe1] sm:$0xff] }
 0x20e   : >> { %v2500_v35 = vmul.f32 %v4121_v51, %v7931_v28  ;;  %v2558_v4 = vmul.f32 %v4137_v0, %v7950_v19  ;;  %v2537_v11 = vadd.f32 %v2528_v42, %v2507_v29  ;;  %v4170_v29 = vld [vmem:[%s4679_s15 + $0x519] sm:$0xff] }
 0x20f   : >> { %v2785_v5 = vadd.f32 %v2776_v2, %v2756_v15  ;;  %v2481_v15 = vadd.f32 %v2472_v3, %v7905_v10  ;;  %v2480_v57 = vadd.f32 %v2471_v31, %v7907_v17  ;;  %v4131_v2 = vld [vmem:[%s4679_s15 + $0x470] sm:$0xff]  ;;  %v2714_v10 = vmul.f32 %v4161_v43, %v7970_v53 }
 0x210   : >> { %v7940_v50 = vpop.permute.xlu2 %2682  ;;  %v2567_v21 = vadd.f32 %v2558_v4, %v2537_v11  ;;  %v4169_v3 = vld [vmem:[%s4679_s15 + $0x511] sm:$0xff]  ;;  %v4178_v4 = vld [vmem:[%s4679_s15 + $0xd9] sm:$0xff] }
 0x211   : >> { %v7944_v58 = vpop.permute.xlu1 %2615  ;;  %v7946_v49 = vpop.permute.xlu0 %2613  ;;  %v2701_v54 = vadd.f32 %v7940_v50, %v2636_v7  ;;  %v2564_v7 = vadd.f32 %v2555_v9, %v2534_v44  ;;  %v4130_v9 = vld [vmem:[%s4679_s15 + $0x468] sm:$0xff]  ;;  %v2814_v44 = vadd.f32 %v2805_v40, %v2785_v5  ;;  %v2510_v51 = vadd.f32 %v2501_v24, %v2481_v15  ;;  %v4173_v15 = vld [vmem:[%s4679_s15 + $0x531] sm:$0xff] }
 0x212   : >> { %v2509_v42 = vadd.f32 %v2500_v35, %v2480_v57  ;;  %v2530_v31 = vmul.f32 %v4130_v9, %v7938_v23  ;;  %v2743_v40 = vmul.f32 %v4170_v29, %v7979_v45  ;;  %v4163_v24 = vld [vmem:[%s4679_s15 + $0xa9] sm:$0xff]  ;;  %v2632_v35 = vadd.f32 %v7926_v18, %v2567_v21  ;;  %v4166_v29 = vld [vmem:[%s4679_s15 + $0xc1] sm:$0xff] }
 0x213   : >> { %v2730_v52 = vadd.f32 %v2721_v39, %v2701_v54  ;;  %v4160_v39 = vld [vmem:[%s4679_s15 + $0x91] sm:$0xff]  ;;  %v2629_v28 = vadd.f32 %v7914_v16, %v2564_v7  ;;  %v2536_v54 = vadd.f32 %v2527_v12, %v2506_v14  ;;  %v4139_v12 = vld [vmem:[%s4679_s15 + $0x8e8] sm:$0xff]  ;;  %v2716_v18 = vmul.f32 %v4163_v24, %v7970_v53 }
 0x214   : >> { %v2713_v16 = vmul.f32 %v4160_v39, %v7970_v53  ;;  %v4140_v14 = vld [vmem:[%s4679_s15 + $0x8f0] sm:$0xff]  ;;  %v2560_v43 = vmul.f32 %v4139_v12, %v7950_v19  ;;  %v2539_v39 = vadd.f32 %v2530_v31, %v2509_v42  ;;  %v4182_v31 = vld [vmem:[%s4679_s15 + $0xf9] sm:$0xff] }
 0x215   : >> { %v2566_v0 = vadd.f32 %v2557_v8, %v2536_v54  ;;  %v2561_v6 = vmul.f32 %v4140_v14, %v7950_v19  ;;  %v2772_v19 = vmul.f32 %v4179_v47, %v8000_v36  ;;  %v4167_v21 = vld [vmem:[%s4679_s15 + $0xc9] sm:$0xff] }
 0x217   : >> { %v2631_v7 = vadd.f32 %v7928_v59, %v2566_v0 }
 0x218   : >> { %v7960_v55 = vpop.permute.xlu2 %2851 }
 0x219   : >> { %v7964_v20 = vpop.permute.xlu1 %2668  ;;  %v7966_v22 = vpop.permute.xlu0 %2666  ;;  %v2876_v50 = vadd.f32 %v7960_v55, %v2811_v33  ;;  %v2759_v33 = vadd.f32 %v2750_v56, %v2730_v52 }
 0x21a   : >> { %v2694_v17 = vadd.f32 %v7964_v20, %v2629_v28  ;;  %v2693_v30 = vadd.f32 %v7966_v22, %v2628_v61  ;;  %v4164_v22 = vld [vmem:[%s4679_s15 + $0xb1] sm:$0xff] }
 0x21b   : >> { %v2788_v56 = vadd.f32 %v2779_v62, %v2759_v33  ;;  %v4172_v33 = vld [vmem:[%s4679_s15 + $0x529] sm:$0xff] }
 0x21c   : >> { %v2723_v5 = vadd.f32 %v2714_v10, %v2694_v17  ;;  %v2569_v10 = vadd.f32 %v2560_v43, %v2539_v39 }
 0x21d   : >> { %v2817_v28 = vadd.f32 %v2808_v38, %v2788_v56  ;;  %v2720_v38 = vmul.f32 %v4167_v21, %v7970_v53  ;;  %v2719_v56 = vmul.f32 %v4166_v29, %v7970_v53 }
 0x21e   : >> { %v2752_v61 = vadd.f32 %v2743_v40, %v2723_v5  ;;  %v4176_v5 = vld [vmem:[%s4679_s15 + $0x549] sm:$0xff] }
 0x21f   : >> { %v2749_v47 = vmul.f32 %v4176_v5, %v7979_v45 }
 0x220   : >> { %v7987_v25 = vpop.permute.xlu2 %2857  ;;  %v2781_v42 = vadd.f32 %v2772_v19, %v2752_v61 }
 0x221   : >> { %v2879_v60 = vadd.f32 %v7987_v25, %v2814_v44  ;;  %v4188_v44 = vld [vmem:[%s4679_s15 + $0x561] sm:$0xff] }
 0x222   : >> { %v7992_v13 = vpop.permute.xlu1 %2674 }
 0x223   : >> { %v7994_v27 = vpop.permute.xlu0 %2672  ;;  %v2697_v57 = vadd.f32 %v7992_v13, %v2632_v35  ;;  %v4187_v13 = vld [vmem:[%s4679_s15 + $0x559] sm:$0xff] }
 0x224   : >> { %v2696_v59 = vadd.f32 %v7994_v27, %v2631_v7  ;;  %v2746_v27 = vmul.f32 %v4173_v15, %v7979_v45 }
 0x226   : >> { %v2725_v26 = vadd.f32 %v2716_v18, %v2696_v59  ;;  %v4185_v59 = vld [vmem:[%s4679_s15 + $0x111] sm:$0xff] }
 0x228   : >> { %v8024_v32 = vpop.permute.xlu2 %2863 }
 0x229   : >> { %v2882_v9 = vadd.f32 %v8024_v32, %v2817_v28 }
 0x22a   : >> { %v8030_v48 = vpop.permute.xlu1 %2680 }
 0x22b   : >> { %v8032_v34 = vpop.permute.xlu0 %2678 }
 0x230   : >> { %v2917_v1 = vpop.permute.xlu2 %2916 }
 0x231   : >> { %v2941_v63 = vadd.f32 %v2917_v1, %v2876_v50  ;;  %v2531_v50 = vmul.f32 %v4131_v2, %v7938_v23  ;;  %v2742_v23 = vmul.f32 %v4169_v3, %v7979_v45  ;;  %v2771_v2 = vmul.f32 %v4178_v4, %v8000_v36 }
 0x232   : >> { %v8066_v46 = vpop.permute.xlu1 %2849 }
 0x233   : >> { %v8068_v55 = vpop.permute.xlu0 %2847  ;;  %v2950_v41 = vmax.f32 %v2941_v63, 0.0  ;;  %v2722_v63 = vadd.f32 %v2713_v16, %v2693_v30  ;;  %v2540_v8 = vadd.f32 %v2531_v50, %v2510_v51  ;;  %v2745_v30 = vmul.f32 %v4172_v33, %v7979_v45 }
 0x234   : >> { %v2801_v51 = vmul.f32 %v4188_v44, %v8017_v37  ;;  %v2800_v50 = vmul.f32 %v4187_v13, %v8017_v37  ;;  %v4194_v13 = vld [vmem:[%s4679_s15 + $0x591] sm:$0xff] }
 0x235   : >> { %4209 = vst.msk [vmem:[%s7165_s23 + $0xe8] sm:$0xff] %vm883_vm0, %v2950_v41  ;;  %v2717_v41 = vmul.f32 %v4164_v22, %v7970_v53  ;;  %v2751_v54 = vadd.f32 %v2742_v23, %v2722_v63  ;;  %v2570_v62 = vadd.f32 %v2561_v6, %v2540_v8  ;;  %v2634_v22 = vadd.f32 %v7946_v49, %v2569_v10  ;;  %v4175_v23 = vld [vmem:[%s4679_s15 + $0x541] sm:$0xff]  ;;  %v4191_v6 = vld [vmem:[%s4679_s15 + $0x579] sm:$0xff]  ;;  %v4190_v53 = vld [vmem:[%s4679_s15 + $0x571] sm:$0xff] }
 0x236   : >> { %v2754_v40 = vadd.f32 %v2745_v30, %v2725_v26  ;;  %v2775_v63 = vmul.f32 %v4182_v31, %v8000_v36  ;;  %v2810_v7 = vadd.f32 %v2801_v51, %v2781_v42  ;;  %v2748_v4 = vmul.f32 %v4175_v23, %v7979_v45  ;;  %v4184_v45 = vld [vmem:[%s4679_s15 + $0x109] sm:$0xff] }
 0x237   : >> { %v2726_v16 = vadd.f32 %v2717_v41, %v2697_v57  ;;  %v2780_v14 = vadd.f32 %v2771_v2, %v2751_v54  ;;  %v2635_v12 = vadd.f32 %v7944_v58, %v2570_v62  ;;  %v2699_v58 = vadd.f32 %v8032_v34, %v2634_v22  ;;  %v4193_v62 = vld [vmem:[%s4679_s15 + $0x589] sm:$0xff] }
 0x238   : >> { %v2923_v20 = vpop.permute.xlu2 %2922  ;;  %v2804_v43 = vmul.f32 %v4191_v6, %v8017_v37  ;;  %v2778_v54 = vmul.f32 %v4185_v59, %v8000_v36  ;;  %v2777_v33 = vmul.f32 %v4184_v45, %v8000_v36 }
 0x239   : >> { %v2944_v1 = vadd.f32 %v2923_v20, %v2879_v60  ;;  %v4181_v20 = vld [vmem:[%s4679_s15 + $0xf1] sm:$0xff]  ;;  %v2700_v35 = vadd.f32 %v8030_v48, %v2635_v12  ;;  %v2809_v49 = vadd.f32 %v2800_v50, %v2780_v14  ;;  %v2803_v48 = vmul.f32 %v4190_v53, %v8017_v37  ;;  %s8203_s15 = smov (%p271_p7), 0  }
 0x23a   : >> { %v8100_v52 = vpop.permute.xlu1 %2855  ;;  %v2774_v24 = vmul.f32 %v4181_v20, %v8000_v36  ;;  %v2728_v18 = vadd.f32 %v2719_v56, %v2699_v58  ;;  %v2806_v36 = vmul.f32 %v4193_v62, %v8017_v37 }
 0x23b   : >> { %v8102_v25 = vpop.permute.xlu0 %2853  ;;  %v2953_v11 = vmax.f32 %v2944_v1, 0.0  ;;  %v2755_v1 = vadd.f32 %v2746_v27, %v2726_v16  ;;  %v2874_v8 = vadd.f32 %v8068_v55, %v2809_v49  ;;  %v2729_v57 = vadd.f32 %v2720_v38, %v2700_v35 }
 0x23c   : >> { %v2783_v34 = vadd.f32 %v2774_v24, %v2754_v40  ;;  %v2757_v2 = vadd.f32 %v2748_v4, %v2728_v18 }
 0x23d   : >> { %4212 = vst.msk [vmem:[%s7165_s23 + $0x100] sm:$0xff] %vm883_vm0, %v2953_v11  ;;  %v2875_v11 = vadd.f32 %v8066_v46, %v2810_v7  ;;  %v2784_v39 = vadd.f32 %v2775_v63, %v2755_v1  ;;  %v2758_v19 = vadd.f32 %v2749_v47, %v2729_v57 }
 0x23e   : >> { %v2812_v44 = vadd.f32 %v2803_v48, %v2783_v34  ;;  %v2786_v21 = vadd.f32 %v2777_v33, %v2757_v2 }
 0x23f   : >> { %v2787_v26 = vadd.f32 %v2778_v54, %v2758_v19 }
 0x240   : >> { %v2929_v17 = vpop.permute.xlu2 %2928  ;;  %v2877_v27 = vadd.f32 %v8102_v25, %v2812_v44  ;;  %v2815_v14 = vadd.f32 %v2806_v36, %v2786_v21 }
 0x241   : >> { %v2947_v3 = vadd.f32 %v2929_v17, %v2882_v9  ;;  %v2813_v9 = vadd.f32 %v2804_v43, %v2784_v39  ;;  %v2807_v17 = vmul.f32 %v4194_v13, %v8017_v37 }
 0x242   : >> { %v8130_v60 = vpop.permute.xlu1 %2861 }
 0x243   : >> { %v8132_v32 = vpop.permute.xlu0 %2859  ;;  %v2956_v0 = vmax.f32 %v2947_v3, 0.0  ;;  %v2878_v10 = vadd.f32 %v8100_v52, %v2813_v9  ;;  %v2816_v50 = vadd.f32 %v2807_v17, %v2787_v26 }
 0x244   : >> { %v2880_v37 = vadd.f32 %v8132_v32, %v2815_v14 }
 0x245   : >> { %4215 = vst.msk [vmem:[%s7165_s23 + $0x118] sm:$0x3f] %vm892_vm1, %v2956_v0  ;;  %v2881_v52 = vadd.f32 %v8130_v60, %v2816_v50  ;;  %v2970_v60 = vstv (%p271_p7), %s2969_s24  }
 0x246   : > { %v9200_v32 = vmov (%p271_p7), %v2970_v60  ;;  %v9201_v38 = vmov (%p271_p7), %v2970_v60  ;;  %v9202_v56 = vmov (%p271_p7), %v2970_v60  ;;  %v9203_v1 = vmov (%p271_p7), %v2970_v60 }
 0x247   : > { %v9204_v40 = vmov (%p271_p7), %v2970_v60  ;;  %v9205_v5 = vmov (%p271_p7), %v2970_v60  ;;  %v9206_v23 = vmov (%p271_p7), %v2970_v60  ;;  %v9207_v63 = vmov (%p271_p7), %v2970_v60 }
 0x24a   : >> { %v2915_v41 = vpop.permute.xlu1 %2914 }
 0x24b   : >> { %v2913_v15 = vpop.permute.xlu0 %2912  ;;  %v2940_v28 = vadd.f32 %v2915_v41, %v2875_v11 }
 0x24c   : >> { %v2939_v46 = vadd.f32 %v2913_v15, %v2874_v8 }
 0x24d   : >> { %v2949_v61 = vmax.f32 %v2940_v28, 0.0 }
 0x24e   : >> { %v2948_v55 = vmax.f32 %v2939_v46, 0.0 }
 0x24f   : >> { %4208 = vst.msk [vmem:[%s7165_s23 + $0xe0] sm:$0xff] %vm883_vm0, %v2949_v61 }
 0x250   : >> { %4207 = vst.msk [vmem:[%s7165_s23 + $0xd8] sm:$0xff] %vm883_vm0, %v2948_v55 }
 0x252   : >> { %v2921_v16 = vpop.permute.xlu1 %2920 }
 0x253   : >> { %v2919_v30 = vpop.permute.xlu0 %2918  ;;  %v2943_v29 = vadd.f32 %v2921_v16, %v2878_v10 }
 0x254   : >> { %v2942_v3 = vadd.f32 %v2919_v30, %v2877_v27 }
 0x255   : >> { %v2952_v51 = vmax.f32 %v2943_v29, 0.0 }
 0x256   : >> { %v2951_v42 = vmax.f32 %v2942_v3, 0.0 }
 0x257   : >> { %4211 = vst.msk [vmem:[%s7165_s23 + $0xf8] sm:$0xff] %vm883_vm0, %v2952_v51 }
 0x258   : >> { %4210 = vst.msk [vmem:[%s7165_s23 + $0xf0] sm:$0xff] %vm883_vm0, %v2951_v42 }
 0x25a   : >> { %v2927_v25 = vpop.permute.xlu1 %2926 }
 0x25b   : >> { %v2925_v31 = vpop.permute.xlu0 %2924  ;;  %v2946_v20 = vadd.f32 %v2927_v25, %v2881_v52 }
 0x25c   : >> { %v2945_v0 = vadd.f32 %v2925_v31, %v2880_v37  ;;  %273 = sbr.rel (!%p271_p7) target bundleno = 28 (0x1c), region = 136 }
 0x25d   : >> { %v2955_v12 = vmax.f32 %v2946_v20, 0.0 }
 0x25e   : >> { %v2954_v22 = vmax.f32 %v2945_v0, 0.0 }
 0x25f   : >> { %4214 = vst.msk [vmem:[%s7165_s23 + $0x110] sm:$0xff] %vm883_vm0, %v2955_v12 }
 0x260   : >> { %4213 = vst.msk [vmem:[%s7165_s23 + $0x108] sm:$0xff] %vm883_vm0, %v2954_v22 }
 0x261 LB: >> { %s4217_s19 = smul.u32 288, %s4604_s15  ;;  %s3018_s25 = sshra.s32 %s4604_s15, 7  ;;  %s4604_s15 = sphi %s8203_s15, %s2976_s15   ;;  %v4600_v60 = vphi %v2970_v60, %v9218_v60   ;;  %v4596_v63 = vphi %v9207_v63, %v9217_v63   ;;  %v4592_v23 = vphi %v9206_v23, %v9216_v23   ;;  %v4588_v5 = vphi %v9205_v5, %v9215_v5   ;;  %v4584_v40 = vphi %v9204_v40, %v9214_v40   ;;  %v4580_v1 = vphi %v9203_v1, %v9213_v1   ;;  %v4576_v56 = vphi %v9202_v56, %v9212_v56   ;;  %v4572_v38 = vphi %v9201_v38, %v9211_v38   ;;  %v4568_v32 = vphi %v9200_v32, %v9210_v32  }
 0x262   : >> { %s8237_s27 = sshll.u32 %s3018_s25, 7  ;;  %s8240_s4 = sand.u32 127, %s4604_s15 }
 0x263   : >> { %s4307_s23 = sadd.s32 256, %s8237_s27  ;;  %s2986_s22 = sld [smem:[#allocation8 + %s4604_s15]] }
 0x264   : >> { %s3059_s14 = sadd.s32 %s4307_s23, %s8240_s4  ;;  %s4315_s11 = sadd.s32 768, %s8237_s27 }
 0x265   : >> { %s3060_s6 = sld [smem:[#allocation8 + %s3059_s14]]  ;;  %s8247_s17 = sadd.s32 %s4315_s11, %s8240_s4 }
 0x266   : >> { %s8249_s26 = scalar_lea.vmem [#allocation2], %s4217_s19  ;;  %s4305_s7 = sadd.s32 128, %s8237_s27 }
 0x267   : >> { %v2994_v24 = vld [vmem:[%s8249_s26 + $0x20] sm:$0xff]  ;;  %v2992_v35 = vld [vmem:[%s8249_s26 + $0x10] sm:$0xff]  ;;  %s8256_s28 = sadd.s32 %s4305_s7, %s8240_s4  ;;  %s4309_s8 = sadd.s32 384, %s8237_s27  ;;  %v2995_v43 = vld [vmem:[%s8249_s26 + $0x28] sm:$0xff] }
 0x268   : >> { %v2990_v58 = vld [vmem:[%s8249_s26] sm:$0xff]  ;;  %v2993_v39 = vld [vmem:[%s8249_s26 + $0x18] sm:$0xff]  ;;  %s8268_s9 = sadd.s32 %s4309_s8, %s8240_s4  ;;  %s4311_s10 = sadd.s32 512, %s8237_s27  ;;  %v2991_v41 = vld [vmem:[%s8249_s26 + $0x8] sm:$0xff] }
 0x269   : >> { %v2999_v7 = vstv %s2986_s22  ;;  %v2998_v15 = vld [vmem:[%s8249_s26 + $0x40] sm:$0x1f]  ;;  %s8278_s21 = sadd.s32 %s4311_s10, %s8240_s4  ;;  %s4612_s30 = smov 127   ;;  %v2997_v59 = vld [vmem:[%s8249_s26 + $0x38] sm:$0xff]  ;;  %v2996_v45 = vld [vmem:[%s8249_s26 + $0x30] sm:$0xff] }
 0x26a   : >> { %v8258_v6 = vmul.f32 %v2999_v7, %v2994_v24  ;;  %v8260_v53 = vmul.f32 %v2999_v7, %v2992_v35  ;;  %v8262_v47 = vmul.f32 %v2999_v7, %v2990_v58  ;;  %v8271_v48 = vmul.f32 %v2999_v7, %v2995_v43  ;;  %s4317_s16 = sadd.s32 896, %s8237_s27  ;;  %s3248_s12 = sld [smem:[#allocation8 + %s8247_s17]]  ;;  %v3251_v33 = vld [vmem:[%s8249_s26 + $0x11] sm:$0xff]  ;;  %v8313_v62 = vld [vmem:[%s8249_s26 + $0xa0] sm:$0xff]  ;;  %v8331_v29 = vld [vmem:[%s8249_s26 + $0xa8] sm:$0xff] }
 0x26b   : >> { %v3061_v49 = vstv %s3060_s6  ;;  %v8273_v34 = vmul.f32 %v2999_v7, %v2993_v39  ;;  %v8282_v57 = vmul.f32 %v2999_v7, %v2991_v41  ;;  %v8284_v18 = vmul.f32 %v2999_v7, %v2998_v15  ;;  %s8296_s13 = sadd.s32 %s4317_s16, %s8240_s4  ;;  %s4313_s29 = sadd.s32 640, %s8237_s27  ;;  %v8316_v27 = vld [vmem:[%s8249_s26 + $0x98] sm:$0xff]  ;;  %v8319_v17 = vld [vmem:[%s8249_s26 + $0x90] sm:$0xff]  ;;  %v8343_v14 = vld [vmem:[%s8249_s26 + $0xc8] sm:$0xff] }
 0x26c   : >> { %v3066_v4 = vmul.f32 %v3061_v49, %v2994_v24  ;;  %v3064_v11 = vmul.f32 %v3061_v49, %v2992_v35  ;;  %v3062_v8 = vmul.f32 %v3061_v49, %v2990_v58  ;;  %v8290_v28 = vmul.f32 %v2999_v7, %v2997_v59  ;;  %s3188_s24 = sadd.s32 %s4313_s29, %s8240_s4  ;;  %v4239_v26 = vld [vmem:[%s8249_s26 + $0xb8] sm:$0xff]  ;;  %v4238_v21 = vld [vmem:[%s8249_s26 + $0xb0] sm:$0xff]  ;;  %s3119_s25 = sld [smem:[#allocation8 + %s8268_s9]]  ;;  %v8348_v37 = vld [vmem:[%s8249_s26 + $0xc0] sm:$0xff] }
 0x26d   : >> { %v8292_v46 = vmul.f32 %v2999_v7, %v2996_v45  ;;  %v3067_v61 = vmul.f32 %v3061_v49, %v2995_v43  ;;  %v3065_v55 = vmul.f32 %v3061_v49, %v2993_v39  ;;  %v3063_v54 = vmul.f32 %v3061_v49, %v2991_v41  ;;  %s3189_s19 = sld [smem:[#allocation8 + %s3188_s24]]  ;;  %s4319_s23 = sadd.s32 1024, %s8237_s27  ;;  %v8340_v50 = vld [vmem:[%s8249_s26 + $0xd0] sm:$0x1f]  ;;  %v8363_v24 = vld [vmem:[%s8249_s26 + $0x1] sm:$0xff] }
 0x26e   : >> { %3088 = vrot.lane.b32.xlu2 %v3066_v4, %s4612_s30  ;;  %3084 = vrot.lane.b32.xlu1 %v3064_v11, %s4612_s30  ;;  %v3070_v9 = vmul.f32 %v3061_v49, %v2998_v15  ;;  %v3069_v44 = vmul.f32 %v3061_v49, %v2997_v59  ;;  %v3068_v13 = vmul.f32 %v3061_v49, %v2996_v45  ;;  %s3311_s14 = sadd.s32 %s4319_s23, %s8240_s4  ;;  %v8360_v22 = vld [vmem:[%s8249_s26 + $0x9] sm:$0xff]  ;;  %s3025_s27 = sld [smem:[#allocation8 + %s8256_s28]]  ;;  %v8375_v4 = vld [vmem:[%s8249_s26 + $0x21] sm:$0xff] }
 0x26f   : >> { %3080 = vrot.lane.b32.xlu0 %v3062_v8, %s4612_s30  ;;  %s3312_s22 = sld [smem:[#allocation8 + %s3311_s14]]  ;;  %v8372_v49 = vld [vmem:[%s8249_s26 + $0x29] sm:$0xff]  ;;  %v8378_v11 = vld [vmem:[%s8249_s26 + $0x19] sm:$0xff]  ;;  %v8388_v59 = vld [vmem:[%s8249_s26 + $0x41] sm:$0x1f]  ;;  %s2976_s15 = sadd.s32 1, %s4604_s15  }
 0x270   : >> { %v8304_v19 = vstv %s3248_s12  ;;  %v4225_v41 = vld [vmem:[%s8249_s26 + $0x68] sm:$0xff]  ;;  %v8391_v45 = vld [vmem:[%s8249_s26 + $0x39] sm:$0xff]  ;;  %s3154_s4 = sld [smem:[#allocation8 + %s8278_s21]]  ;;  %p2973_p8 = scmp.ge.s32.totalorder %s2976_s15, 32  }
 0x271   : >> { %v8307_v2 = vmul.f32 %v8304_v19, %v3251_v33  ;;  %s3280_s6 = sld [smem:[#allocation8 + %s8296_s13]]  ;;  %vm3377_vm2 = vcmask (%p2973_p8), 564224   ;;  %vm3386_vm3 = vcmask (%p2973_p8), 561152  }
 0x272   : >> { %v8345_v52 = vstv %s3119_s25 }
 0x273   : >> { %v3190_v10 = vstv %s3189_s19  ;;  %v8351_v25 = vmul.f32 %v4238_v21, %v8345_v52 }
 0x274   : >> { %v3193_v36 = vmul.f32 %v8313_v62, %v3190_v10  ;;  %v3192_v16 = vmul.f32 %v8316_v27, %v3190_v10  ;;  %v3191_v30 = vmul.f32 %v8319_v17, %v3190_v10  ;;  %v3196_v3 = vmul.f32 %v4239_v26, %v3190_v10 }
 0x275   : >> { %v3195_v51 = vmul.f32 %v4238_v21, %v3190_v10  ;;  %v3194_v42 = vmul.f32 %v8331_v29, %v3190_v10  ;;  %v3199_v31 = vmul.f32 %v8340_v50, %v3190_v10  ;;  %v3198_v20 = vmul.f32 %v8343_v14, %v3190_v10 }
 0x276   : >> { %3090 = vrot.lane.b32.xlu2 %v3067_v61, %s4612_s30  ;;  %3086 = vrot.lane.b32.xlu1 %v3065_v55, %s4612_s30  ;;  %v3197_v0 = vmul.f32 %v8348_v37, %v3190_v10  ;;  %v3313_v12 = vstv %s3312_s22  ;;  %v3038_v15 = vstv %s3025_s27 }
 0x277   : >> { %3082 = vrot.lane.b32.xlu0 %v3063_v54, %s4612_s30  ;;  %v3316_v35 = vmul.f32 %v3313_v12, %v3251_v33  ;;  %v3315_v58 = vmul.f32 %v3313_v12, %v8360_v22  ;;  %v3314_v7 = vmul.f32 %v3313_v12, %v8363_v24  ;;  %v3319_v8 = vmul.f32 %v3313_v12, %v8372_v49  ;;  %v8394_v61 = vld [vmem:[%s8249_s26 + $0x31] sm:$0xff] }
 0x278   : >> { %v3318_v43 = vmul.f32 %v3313_v12, %v8375_v4  ;;  %v3317_v39 = vmul.f32 %v3313_v12, %v8378_v11  ;;  %v3043_v55 = vmul.f32 %v4225_v41, %v3038_v15  ;;  %v3322_v54 = vmul.f32 %v3313_v12, %v8388_v59 }
 0x279   : >> { %v3321_v33 = vmul.f32 %v3313_v12, %v8391_v45 }
 0x27e   : >> { %3096 = vrot.lane.b32.xlu2 %v3070_v9, %s4612_s30  ;;  %3094 = vrot.lane.b32.xlu1 %v3069_v44, %s4612_s30  ;;  %v3013_v9 = vadd.f32 %v4584_v40, %v8258_v6  ;;  %v3320_v44 = vmul.f32 %v3313_v12, %v8394_v61  ;;  %v4229_v6 = vld [vmem:[%s8249_s26 + $0x88] sm:$0x1f] }
 0x27f   : >> { %3092 = vrot.lane.b32.xlu0 %v3068_v13, %s4612_s30  ;;  %v3138_v13 = vmul.f32 %v4239_v26, %v8345_v52  ;;  %v3047_v21 = vmul.f32 %v4229_v6, %v3038_v15  ;;  %v3017_v26 = vadd.f32 %v4568_v32, %v8284_v18  ;;  %v8420_v32 = vstv %s3154_s4 }
 0x280   : >> { %v3052_v10 = vadd.f32 %v3043_v55, %v3013_v9 }
 0x286   : >> { %3213 = vrot.lane.b32.xlu2 %v3193_v36, %s4612_s30  ;;  %3211 = vrot.lane.b32.xlu1 %v3192_v16, %s4612_s30  ;;  %v4226_v36 = vld [vmem:[%s8249_s26 + $0x70] sm:$0xff] }
 0x287   : >> { %3209 = vrot.lane.b32.xlu0 %v3191_v30, %s4612_s30  ;;  %v3044_v16 = vmul.f32 %v4226_v36, %v3038_v15  ;;  %v3014_v30 = vadd.f32 %v4580_v1, %v8271_v48  ;;  %v3009_v1 = vadd.f32 %v4600_v60, %v8262_v47 }
 0x289   : >> { %v3053_v40 = vadd.f32 %v3044_v16, %v3014_v30 }
 0x28e   : >> { %3219 = vrot.lane.b32.xlu2 %v3196_v3, %s4612_s30  ;;  %3217 = vrot.lane.b32.xlu1 %v3195_v51, %s4612_s30  ;;  %v3056_v3 = vadd.f32 %v3047_v21, %v3017_v26  ;;  %v4223_v51 = vld [vmem:[%s8249_s26 + $0x58] sm:$0xff] }
 0x28f   : >> { %3215 = vrot.lane.b32.xlu0 %v3194_v42, %s4612_s30  ;;  %v4221_v42 = vld [vmem:[%s8249_s26 + $0x48] sm:$0xff]  ;;  %v4254_v26 = vld [vmem:[%s8249_s26 + $0x118] sm:$0x1f] }
 0x296   : >> { %3225 = vrot.lane.b32.xlu2 %v3199_v31, %s4612_s30  ;;  %3223 = vrot.lane.b32.xlu1 %v3198_v20, %s4612_s30  ;;  %v3041_v31 = vmul.f32 %v4223_v51, %v3038_v15  ;;  %v3011_v20 = vadd.f32 %v4592_v23, %v8260_v53  ;;  %v3010_v23 = vadd.f32 %v4596_v63, %v8282_v57 }
 0x297   : >> { %3221 = vrot.lane.b32.xlu0 %v3197_v0, %s4612_s30  ;;  %v3039_v0 = vmul.f32 %v4221_v42, %v3038_v15  ;;  %v3015_v57 = vadd.f32 %v4576_v56, %v8292_v46  ;;  %v3176_v56 = vmul.f32 %v4254_v26, %v8420_v32  ;;  %v4248_v42 = vld [vmem:[%s8249_s26 + $0xe8] sm:$0xff] }
 0x298   : >> { %v3050_v48 = vadd.f32 %v3041_v31, %v3011_v20  ;;  %v4246_v31 = vld [vmem:[%s8249_s26 + $0xd8] sm:$0xff] }
 0x299   : >> { %v3048_v12 = vadd.f32 %v3039_v0, %v3009_v1 }
 0x29e   : >> { %3336 = vrot.lane.b32.xlu2 %v3316_v35, %s4612_s30  ;;  %3334 = vrot.lane.b32.xlu1 %v3315_v58, %s4612_s30  ;;  %v4224_v35 = vld [vmem:[%s8249_s26 + $0x60] sm:$0xff]  ;;  %v4222_v58 = vld [vmem:[%s8249_s26 + $0x50] sm:$0xff] }
 0x29f   : >> { %3332 = vrot.lane.b32.xlu0 %v3314_v7, %s4612_s30  ;;  %v3042_v18 = vmul.f32 %v4224_v35, %v3038_v15  ;;  %v3012_v7 = vadd.f32 %v4588_v5, %v8273_v34  ;;  %v3016_v34 = vadd.f32 %v4572_v38, %v8290_v28  ;;  %v3141_v38 = vmul.f32 %v8340_v50, %v8345_v52 }
 0x2a0   : >> { %v3133_v50 = vmul.f32 %v8319_v17, %v8345_v52  ;;  %v3264_v17 = vmul.f32 %v8304_v19, %v8372_v49 }
 0x2a1   : >> { %v3051_v60 = vadd.f32 %v3042_v18, %v3012_v7 }
 0x2a6   : >> { %3342 = vrot.lane.b32.xlu2 %v3319_v8, %s4612_s30  ;;  %3340 = vrot.lane.b32.xlu1 %v3318_v43, %s4612_s30  ;;  %v3040_v8 = vmul.f32 %v4222_v58, %v3038_v15  ;;  %v4250_v43 = vld [vmem:[%s8249_s26 + $0xf8] sm:$0xff]  ;;  %v3168_v58 = vmul.f32 %v4246_v31, %v8420_v32 }
 0x2a7   : >> { %3338 = vrot.lane.b32.xlu0 %v3317_v39, %s4612_s30  ;;  %v3172_v41 = vmul.f32 %v4250_v43, %v8420_v32  ;;  %v8457_v43 = vstv %s3280_s6 }
 0x2a8   : >> { %v3049_v39 = vadd.f32 %v3040_v8, %v3010_v23  ;;  %v4260_v8 = vld [vmem:[%s8249_s26 + $0x59] sm:$0xff]  ;;  %v4249_v23 = vld [vmem:[%s8249_s26 + $0xf0] sm:$0xff] }
 0x2ae   : >> { %3348 = vrot.lane.b32.xlu2 %v3322_v54, %s4612_s30  ;;  %3346 = vrot.lane.b32.xlu1 %v3321_v33, %s4612_s30  ;;  %v4228_v54 = vld [vmem:[%s8249_s26 + $0x80] sm:$0xff]  ;;  %v4227_v33 = vld [vmem:[%s8249_s26 + $0x78] sm:$0xff] }
 0x2af   : >> { %3344 = vrot.lane.b32.xlu0 %v3320_v44, %s4612_s30  ;;  %v4251_v44 = vld [vmem:[%s8249_s26 + $0x100] sm:$0xff]  ;;  %v3046_v5 = vmul.f32 %v4228_v54, %v3038_v15  ;;  %v3045_v63 = vmul.f32 %v4227_v33, %v3038_v15 }
 0x2b0   : >> { %v3173_v30 = vmul.f32 %v4251_v44, %v8420_v32  ;;  %v3134_v44 = vmul.f32 %v8316_v27, %v8345_v52 }
 0x2b1   : >> { %v8438_v36 = vadd.f32 %v3046_v5, %v3016_v34  ;;  %v3171_v5 = vmul.f32 %v4249_v23, %v8420_v32 }
 0x2c8   : >> { %v3089_v53 = vpop.permute.xlu2 %3088 }
 0x2c9   : >> { %v3111_v47 = vadd.f32 %v3089_v53, %v3052_v10 }
 0x2cb   : >> { %v3146_v55 = vadd.f32 %v8351_v25, %v3111_v47  ;;  %v8440_v25 = vadd.f32 %v3045_v63, %v3015_v57  ;;  %v4263_v47 = vld [vmem:[%s8249_s26 + $0x71] sm:$0xff] }
 0x2cd   : >> { %v8431_v9 = vadd.f32 %v3172_v41, %v3146_v55  ;;  %v3293_v41 = vmul.f32 %v4260_v8, %v8457_v43  ;;  %v4247_v55 = vld [vmem:[%s8249_s26 + $0xe0] sm:$0xff] }
 0x2d0   : >> { %v3091_v10 = vpop.permute.xlu2 %3090 }
 0x2d1   : >> { %v3112_v16 = vadd.f32 %v3091_v10, %v3053_v40  ;;  %v3135_v40 = vmul.f32 %v8313_v62, %v8345_v52 }
 0x2d3   : >> { %v3147_v6 = vadd.f32 %v3138_v13, %v3112_v16  ;;  %v3169_v16 = vmul.f32 %v4247_v55, %v8420_v32 }
 0x2d5   : >> { %v3182_v21 = vadd.f32 %v3173_v30, %v3147_v6 }
 0x2d8   : >> { %v3097_v28 = vpop.permute.xlu2 %3096 }
 0x2d9   : >> { %v3115_v15 = vadd.f32 %v3097_v28, %v3056_v3  ;;  %v3170_v3 = vmul.f32 %v4248_v42, %v8420_v32 }
 0x2db   : >> { %v3150_v46 = vadd.f32 %v3141_v38, %v3115_v15 }
 0x2dd   : >> { %v3185_v51 = vadd.f32 %v3176_v56, %v3150_v46  ;;  %v4266_v56 = vld [vmem:[%s8249_s26 + $0x89] sm:$0x1f]  ;;  %v4253_v46 = vld [vmem:[%s8249_s26 + $0x110] sm:$0xff] }
 0x2e0   : >> { %v3214_v13 = vpop.permute.xlu2 %3213  ;;  %v3085_v20 = vpop.permute.xlu1 %3084 }
 0x2e1   : >> { %v3109_v0 = vadd.f32 %v3085_v20, %v3050_v48  ;;  %v3081_v1 = vpop.permute.xlu0 %3080  ;;  %v3136_v48 = vmul.f32 %v8331_v29, %v8345_v52  ;;  %v3296_v29 = vmul.f32 %v4263_v47, %v8457_v43 }
 0x2e2   : >> { %v3107_v35 = vadd.f32 %v3081_v1, %v3048_v12 }
 0x2e3   : >> { %v3144_v18 = vadd.f32 %v3135_v40, %v3109_v0  ;;  %v3139_v40 = vmul.f32 %v8348_v37, %v8345_v52  ;;  %v3260_v37 = vmul.f32 %v8304_v19, %v8360_v22 }
 0x2e4   : >> { %v3142_v7 = vadd.f32 %v3133_v50, %v3107_v35  ;;  %v3299_v50 = vmul.f32 %v4266_v56, %v8457_v43 }
 0x2e5   : >> { %v3179_v62 = vadd.f32 %v3170_v3, %v3144_v18  ;;  %v3175_v3 = vmul.f32 %v4253_v46, %v8420_v32 }
 0x2e6   : >> { %v3177_v53 = vadd.f32 %v3168_v58, %v3142_v7 }
 0x2e7   : >> { %v3238_v12 = vadd.f32 %v3214_v13, %v3179_v62 }
 0x2e8   : >> { %v3220_v54 = vpop.permute.xlu2 %3219  ;;  %v3087_v33 = vpop.permute.xlu1 %3086 }
 0x2e9   : >> { %v3241_v34 = vadd.f32 %v3220_v54, %v3182_v21  ;;  %v3110_v63 = vadd.f32 %v3087_v33, %v3051_v60  ;;  %v3083_v57 = vpop.permute.xlu0 %3082  ;;  %v3270_v49 = vadd.f32 %v8307_v2, %v3238_v12  ;;  %v3267_v60 = vmul.f32 %v8304_v19, %v8388_v59  ;;  %v4252_v21 = vld [vmem:[%s8249_s26 + $0x108] sm:$0xff] }
 0x2ea   : >> { %v3108_v10 = vadd.f32 %v3083_v57, %v3049_v39  ;;  %v3140_v2 = vmul.f32 %v8343_v14, %v8345_v52  ;;  %v3174_v14 = vmul.f32 %v4252_v21, %v8420_v32  ;;  %v4259_v52 = vld [vmem:[%s8249_s26 + $0x51] sm:$0xff]  ;;  %v4262_v33 = vld [vmem:[%s8249_s26 + $0x69] sm:$0xff] }
 0x2eb   : >> { %v3273_v30 = vadd.f32 %v3264_v17, %v3241_v34  ;;  %v3145_v6 = vadd.f32 %v3136_v48, %v3110_v63  ;;  %v3302_v26 = vadd.f32 %v3293_v41, %v3270_v49  ;;  %v3292_v17 = vmul.f32 %v4259_v52, %v8457_v43 }
 0x2ec   : >> { %v3143_v38 = vadd.f32 %v3134_v44, %v3108_v10  ;;  %v3263_v44 = vmul.f32 %v8304_v19, %v8375_v4  ;;  %v3262_v34 = vmul.f32 %v8304_v19, %v8378_v11  ;;  %v3295_v49 = vmul.f32 %v4262_v33, %v8457_v43 }
 0x2ed   : >> { %v3305_v27 = vadd.f32 %v3296_v29, %v3273_v30  ;;  %v3180_v28 = vadd.f32 %v3171_v5, %v3145_v6  ;;  %v4261_v5 = vld [vmem:[%s8249_s26 + $0x61] sm:$0xff] }
 0x2ee   : >> { %v3178_v15 = vadd.f32 %v3169_v16, %v3143_v38  ;;  %v3294_v10 = vmul.f32 %v4261_v5, %v8457_v43  ;;  %v3266_v38 = vmul.f32 %v8304_v19, %v8391_v45 }
 0x2f0   : >> { %v3226_v42 = vpop.permute.xlu2 %3225  ;;  %v3095_v39 = vpop.permute.xlu1 %3094 }
 0x2f1   : >> { %v3244_v31 = vadd.f32 %v3226_v42, %v3185_v51  ;;  %v3114_v13 = vadd.f32 %v3095_v39, %v8438_v36  ;;  %v3093_v20 = vpop.permute.xlu0 %3092  ;;  %v4258_v36 = vld [vmem:[%s8249_s26 + $0x49] sm:$0xff] }
 0x2f2   : >> { %v3113_v59 = vadd.f32 %v3093_v20, %v8440_v25  ;;  %v3259_v25 = vmul.f32 %v8304_v19, %v8363_v24  ;;  %v3291_v41 = vmul.f32 %v4258_v36, %v8457_v43 }
 0x2f3   : >> { %v3276_v0 = vadd.f32 %v3267_v60, %v3244_v31  ;;  %v3149_v1 = vadd.f32 %v3140_v2, %v3114_v13 }
 0x2f4   : >> { %v3148_v35 = vadd.f32 %v3139_v40, %v3113_v59 }
 0x2f5   : >> { %v3308_v58 = vadd.f32 %v3299_v50, %v3276_v0  ;;  %v3184_v18 = vadd.f32 %v3175_v3, %v3149_v1 }
 0x2f6   : >> { %v3183_v7 = vadd.f32 %v3174_v14, %v3148_v35 }
 0x2f8   : >> { %v3337_v51 = vpop.permute.xlu2 %3336  ;;  %v3212_v8 = vpop.permute.xlu1 %3211 }
 0x2f9   : >> { %v8493_v23 = vadd.f32 %v3337_v51, %v3302_v26   ;;  %v3237_v32 = vadd.f32 %v3212_v8, %v3178_v15  ;;  %v3210_v47 = vpop.permute.xlu0 %3209  ;;  %v4265_v26 = vld [vmem:[%s8249_s26 + $0x81] sm:$0xff]  ;;  %v4264_v15 = vld [vmem:[%s8249_s26 + $0x79] sm:$0xff] }
 0x2fa   : >> { %v3236_v48 = vadd.f32 %v3210_v47, %v3177_v53  ;;  %v3297_v21 = vmul.f32 %v4264_v15, %v8457_v43 }
 0x2fb   : >> { %v9208_v62 = vmov %v8493_v23  ;;  %v3269_v12 = vadd.f32 %v3260_v37, %v3237_v32 }
 0x2fc   : >> { %v3268_v55 = vadd.f32 %v3259_v25, %v3236_v48 }
 0x2fd   : >> { %v3301_v54 = vadd.f32 %v3292_v17, %v3269_v12 }
 0x2fe   : >> { %v3300_v22 = vadd.f32 %v3291_v41, %v3268_v55 }
 0x300   : >> { %v3343_v24 = vpop.permute.xlu2 %3342  ;;  %v3218_v23 = vpop.permute.xlu1 %3217 }
 0x301   : >> { %v8503_v1 = vadd.f32 %v3343_v24, %v3305_v27   ;;  %v3240_v63 = vadd.f32 %v3218_v23, %v8431_v9  ;;  %v3216_v57 = vpop.permute.xlu0 %3215  ;;  %v3265_v9 = vmul.f32 %v8304_v19, %v8394_v61  ;;  %v9216_v23 = vmov %v9208_v62 }
 0x302   : >> { %v3239_v29 = vadd.f32 %v3216_v57, %v3180_v28  ;;  %v3298_v28 = vmul.f32 %v4265_v26, %v8457_v43 }
 0x303   : >> { %v9209_v53 = vmov %v8503_v1  ;;  %v3272_v16 = vadd.f32 %v3263_v44, %v3240_v63 }
 0x304   : >> { %v3271_v30 = vadd.f32 %v3262_v34, %v3239_v29  ;;  %v3373_v37 = vmax.f32 (%p2973_p8), %v9209_v53, 0.0 }
 0x305   : >> { %v3304_v4 = vadd.f32 %v3295_v49, %v3272_v16 }
 0x306   : >> { %v3303_v6 = vadd.f32 %v3294_v10, %v3271_v30  ;;  %3383 = vst.msk [vmem:[%s4684_s18 + $0x28] sm:$0xff] (%p2973_p8), %vm3377_vm2, %v3373_v37 }
 0x308   : >> { %v3349_v11 = vpop.permute.xlu2 %3348  ;;  %v3224_v27 = vpop.permute.xlu1 %3223 }
 0x309   : >> { %v3367_v46 = vadd.f32 %v3349_v11, %v3308_v58   ;;  %v3243_v56 = vadd.f32 %v3224_v27, %v3184_v18  ;;  %v3222_v60 = vpop.permute.xlu0 %3221  ;;  %v3370_v18 = vmax.f32 (%p2973_p8), %v9208_v62, 0.0 }
 0x30a   : >> { %v3242_v2 = vadd.f32 %v3222_v60, %v3183_v7 }
 0x30b   : >> { %v3275_v42 = vadd.f32 %v3266_v38, %v3243_v56  ;;  %v9210_v32 = vmov %v3367_v46  ;;  %3380 = vst.msk [vmem:[%s4684_s18 + $0x10] sm:$0xff] (%p2973_p8), %vm3377_vm2, %v3370_v18  ;;  %v3376_v8 = vmax.f32 (%p2973_p8), %v3367_v46, 0.0 }
 0x30c   : >> { %v3274_v39 = vadd.f32 %v3265_v9, %v3242_v2 }
 0x30d   : >> { %v3307_v40 = vadd.f32 %v3298_v28, %v3275_v42  ;;  %3387 = vst.msk [vmem:[%s4684_s18 + $0x40] sm:$0x1f] (%p2973_p8), %vm3386_vm3, %v3376_v8 }
 0x30e   : >> { %v3306_v31 = vadd.f32 %v3297_v21, %v3274_v39 }
 0x310   : >> { %v3335_v13 = vpop.permute.xlu1 %3334 }
 0x311   : >> { %v3360_v45 = vadd.f32 %v3335_v13, %v3301_v54   ;;  %v3333_v20 = vpop.permute.xlu0 %3332 }
 0x312   : >> { %v3359_v50 = vadd.f32 %v3333_v20, %v3300_v22  }
 0x313   : >> { %v9217_v63 = vmov %v3360_v45  ;;  %v3369_v58 = vmax.f32 (%p2973_p8), %v3360_v45, 0.0 }
 0x314   : >> { %v9218_v60 = vmov %v3359_v50  ;;  %v3368_v43 = vmax.f32 (%p2973_p8), %v3359_v50, 0.0 }
 0x315   : > { %3379 = vst.msk [vmem:[%s4684_s18 + $0x8] sm:$0xff] (%p2973_p8), %vm3377_vm2, %v3369_v58 }
 0x316   : > { %3378 = vst.msk [vmem:[%s4684_s18] sm:$0xff] (%p2973_p8), %vm3377_vm2, %v3368_v43 }
 0x318   : >> { %v3341_v3 = vpop.permute.xlu1 %3340 }
 0x319   : >> { %v3363_v59 = vadd.f32 %v3341_v3, %v3304_v4   ;;  %v3339_v14 = vpop.permute.xlu0 %3338 }
 0x31a   : >> { %v3362_v19 = vadd.f32 %v3339_v14, %v3303_v6  }
 0x31b   : > { %v3372_v52 = vmax.f32 (%p2973_p8), %v3363_v59, 0.0 }
 0x31c   : >> { %v9215_v5 = vmov %v3362_v19  ;;  %v3371_v7 = vmax.f32 (%p2973_p8), %v3362_v19, 0.0 }
 0x31d   : > { %3382 = vst.msk [vmem:[%s4684_s18 + $0x20] sm:$0xff] (%p2973_p8), %vm3377_vm2, %v3372_v52 }
 0x31e   : > { %3381 = vst.msk [vmem:[%s4684_s18 + $0x18] sm:$0xff] (%p2973_p8), %vm3377_vm2, %v3371_v7 }
 0x320   : >> { %v3347_v61 = vpop.permute.xlu1 %3346  ;;  %2975 = sbr.rel (!%p2973_p8) target bundleno = 609 (0x261), region = 147 }
 0x321   : >> { %v3366_v0 = vadd.f32 %v3347_v61, %v3307_v40   ;;  %v3345_v1 = vpop.permute.xlu0 %3344  ;;  %v9214_v40 = vmov %v3363_v59 }
 0x322   : >> { %v3365_v35 = vadd.f32 %v3345_v1, %v3306_v31   ;;  %v9213_v1 = vmov %v9209_v53 }
 0x323   : >> { %v9211_v38 = vmov %v3366_v0  ;;  %v3375_v51 = vmax.f32 (%p2973_p8), %v3366_v0, 0.0 }
 0x324   : >> { %v9212_v56 = vmov %v3365_v35  ;;  %v3374_v36 = vmax.f32 (%p2973_p8), %v3365_v35, 0.0 }
 0x325   : > { %3385 = vst.msk [vmem:[%s4684_s18 + $0x38] sm:$0xff] %vm3377_vm2, %v3375_v51 }
 0x326   : > { %3384 = vst.msk [vmem:[%s4684_s18 + $0x30] sm:$0xff] %vm3377_vm2, %v3374_v36 }
 0x327 PF: > { %s18_s20 = sadd.s32 1, %s4560_s20  }
 0x328   : > { %p15_p9 = scmp.ge.s32.totalorder %s18_s20, 4  }
 0x32a   :  { %17 = sbr.rel (!%p15_p9) target bundleno = 4 (0x4), region = 158 }
 0x32f   :  { %3409 = vsyncpa [#allocation5], 1 }
 0x330   :  { %3411 = vsyncpa [#allocation5 + $0x1], 1 }
 0x331   :  { %3412 = vsyncpa [#allocation7], 1 }

// kernel: aggregation_forward.3
= control target key start
LH: loop header
LB: loop body
LE: loop exit
PB: predicated region body
PF: predicated region fallthrough
CT: control target
= control target key end

     0   :  { %v8026_v1 = vmov 0   ;;  %s12209_s0 = inlined_call_operand.vmem [shape: f32[2,4761], index: 0, kind: input, shape index: {}]   ;;  %s12210_s1 = inlined_call_operand.vmem [shape: f32[2,1], index: 1, kind: input, shape index: {}]   ;;  %s12211_s2 = inlined_call_operand.vmem [shape: f32[1,16], index: 2, kind: input, shape index: {}]   ;;  %s12212_s3 = inlined_call_operand.vmem [shape: f32[1,16], index: 3, kind: input, shape index: {}]   ;;  %s12213_s4 = inlined_call_operand.vmem [shape: f32[16,8], index: 4, kind: input, shape index: {}]   ;;  %s12214_s5 = inlined_call_operand.vmem [shape: f32[1,8], index: 5, kind: input, shape index: {}]   ;;  %s12215_s6 = inlined_call_operand.vmem [shape: bf16[4761,256], index: 6, kind: input, shape index: {}]   ;;  %s12216_s7 = inlined_call_operand.vmem [shape: f32[8,256], index: 7, kind: input, shape index: {}]   ;;  %s12217_s8 = inlined_call_operand.vmem [shape: f32[1,256], index: 8, kind: input, shape index: {}]   ;;  %s12218_s9 = inlined_call_operand.vmem [shape: f32[256,128], index: 9, kind: input, shape index: {}]   ;;  %s12219_s10 = inlined_call_operand.vmem [shape: f32[1,128], index: 10, kind: input, shape index: {}]   ;;  %s12220_s11 = inlined_call_operand.vmem [shape: f32[128,3], index: 11, kind: input, shape index: {}]   ;;  %s12221_s12 = inlined_call_operand.vmem [shape: f32[1,3], index: 12, kind: input, shape index: {}]   ;;  %s12222_s13 = inlined_call_operand.hbm [shape: f32[2,3], index: 13, kind: output, shape index: {}]  }
   0x1   :  { %v46_v0 = vld [vmem:[%s12210_s1] sm:$0x3]  ;;  %7994 = vset.pattern.permute.xlu0 %v8026_v1 }
   0x2   :  { %50 = vperm.xlu0 %7994, %v46_v0  }
   0x3   :  { %18 = vsyncpa [#allocation3], 0  ;;  %v64_v2 = vld [vmem:[%s12213_s4 + $0x8] sm:$0xff]  ;;  %v63_v3 = vld [vmem:[%s12213_s4] sm:$0xff]  ;;  %vm69_vm0 = vcmask 130048   ;;  %vm837_vm1 = vcmask 64512  }
   0x4   :  { %87 = vmatpush.msra.mxu0 %v64_v2  ;;  %v5067_v4 = vld [vmem:[%s12215_s6 + $0x70] sm:$0xf]  ;;  %v7410_v5 = vld [vmem:[%s12215_s6 + $0x74] sm:$0xf0]  ;;  %v5059_v6 = vld [vmem:[%s12215_s6 + $0x60] sm:$0xf] }
   0x5   :  { %v5068_v7 = vor.u32 %v7410_v5, %v5067_v4  ;;  %v7408_v8 = vld [vmem:[%s12215_s6 + $0x64] sm:$0xf0]  ;;  %v5051_v10 = vld [vmem:[%s12215_s6 + $0x50] sm:$0xf]  ;;  %v7406_v11 = vld [vmem:[%s12215_s6 + $0x54] sm:$0xf0] }
   0x6   :  { %88 = vmatpush.msra.mxu0 %v63_v3  ;;  %v5060_v9 = vor.u32 %v7408_v8, %v5059_v6  ;;  %v835_v12 = vld [vmem:[%s12216_s7] sm:$0xff]  ;;  %v836_v13 = vld [vmem:[%s12216_s7 + $0x8] sm:$0xff]  ;;  %v5131_v14 = vld [vmem:[%s12215_s6 + $0xf0] sm:$0xf]  ;;  %v5052_v19 = vor.u32 %v7406_v11, %v5051_v10  ;;  %vm3863_vm2 = vcmask 1043456   ;;  %vm3864_vm3 = vcmask 1044480  }
   0x7   :  { %3873 = vmatpush.bf16.msra.mxu3 %v5068_v7  ;;  %856 = vmatpush.msra.mxu1 %v835_v12  ;;  %v7426_v15 = vld [vmem:[%s12215_s6 + $0xf4] sm:$0xf0]  ;;  %v5195_v17 = vld [vmem:[%s12215_s6 + $0x170] sm:$0xf]  ;;  %v5043_v20 = vld [vmem:[%s12215_s6 + $0x40] sm:$0xf] }
   0x8   :  { %876 = vmatpush.msra.mxu2 %v836_v13  ;;  %v5132_v16 = vor.u32 %v7426_v15, %v5131_v14  ;;  %v7442_v18 = vld [vmem:[%s12215_s6 + $0x174] sm:$0xf0]  ;;  %v5123_v22 = vld [vmem:[%s12215_s6 + $0xe0] sm:$0xf]  ;;  %v7424_v23 = vld [vmem:[%s12215_s6 + $0xe4] sm:$0xf0] }
   0x9   :  { %v5196_v21 = vor.u32 %v7442_v18, %v5195_v17  ;;  %v7404_v24 = vld [vmem:[%s12215_s6 + $0x44] sm:$0xf0]  ;;  %v5124_v25 = vor.u32 %v7424_v23, %v5123_v22  ;;  %v5187_v26 = vld [vmem:[%s12215_s6 + $0x160] sm:$0xf]  ;;  %v5115_v29 = vld [vmem:[%s12215_s6 + $0xd0] sm:$0xf] }
   0xa   :  { %3886 = vmatpush.bf16.msrb.mxu1 %v5132_v16  ;;  %v7440_v27 = vld [vmem:[%s12215_s6 + $0x164] sm:$0xf0]  ;;  %v7422_v30 = vld [vmem:[%s12215_s6 + $0xd4] sm:$0xf0]  ;;  %v5179_v31 = vld [vmem:[%s12215_s6 + $0x150] sm:$0xf]  ;;  %v5044_v34 = vor.u32 %v7404_v24, %v5043_v20 }
   0xb   :  { %3874 = vmatpush.bf16.msra.mxu3 %v5060_v9  ;;  %3899 = vmatpush.bf16.msrb.mxu2 %v5196_v21  ;;  %v5188_v28 = vor.u32 %v7440_v27, %v5187_v26  ;;  %v7438_v32 = vld [vmem:[%s12215_s6 + $0x154] sm:$0xf0]  ;;  %v5259_v33 = vld [vmem:[%s12215_s6 + $0x1f0] sm:$0xf]  ;;  %v5116_v38 = vor.u32 %v7422_v30, %v5115_v29  ;;  %v5107_v40 = vld [vmem:[%s12215_s6 + $0xc0] sm:$0xf] }
   0xc   :  { %v7458_v35 = vld [vmem:[%s12215_s6 + $0x1f4] sm:$0xf0]  ;;  %v5035_v36 = vld [vmem:[%s12215_s6 + $0x30] sm:$0xf]  ;;  %v5180_v41 = vor.u32 %v7438_v32, %v5179_v31  ;;  %v7420_v42 = vld [vmem:[%s12215_s6 + $0xc4] sm:$0xf0] }
   0xd   :  { %v7402_v37 = vld [vmem:[%s12215_s6 + $0x34] sm:$0xf0]  ;;  %v5260_v39 = vor.u32 %v7458_v35, %v5259_v33  ;;  %v5251_v43 = vld [vmem:[%s12215_s6 + $0x1e0] sm:$0xf]  ;;  %v7456_v44 = vld [vmem:[%s12215_s6 + $0x1e4] sm:$0xf0]  ;;  %v5108_v51 = vor.u32 %v7420_v42, %v5107_v40 }
   0xe   :  { %3887 = vmatpush.bf16.msrb.mxu1 %v5124_v25  ;;  %v5171_v45 = vld [vmem:[%s12215_s6 + $0x140] sm:$0xf]  ;;  %v7436_v46 = vld [vmem:[%s12215_s6 + $0x144] sm:$0xf0]  ;;  %v5252_v47 = vor.u32 %v7456_v44, %v5251_v43  ;;  %v5036_v48 = vor.u32 %v7402_v37, %v5035_v36  ;;  %v5243_v52 = vld [vmem:[%s12215_s6 + $0x1d0] sm:$0xf] }
   0xf   :  { %3875 = vmatpush.bf16.msra.mxu3 %v5052_v19  ;;  %3900 = vmatpush.bf16.msrb.mxu2 %v5188_v28  ;;  %v5027_v49 = vld [vmem:[%s12215_s6 + $0x20] sm:$0xf]  ;;  %v7400_v50 = vld [vmem:[%s12215_s6 + $0x24] sm:$0xf0]  ;;  %v7454_v53 = vld [vmem:[%s12215_s6 + $0x1d4] sm:$0xf0]  ;;  %v5172_v54 = vor.u32 %v7436_v46, %v5171_v45 }
  0x10   :  { %3912 = vmatpush.bf16.msrb.mxu0 %v5260_v39  ;;  %v5099_v55 = vld [vmem:[%s12215_s6 + $0xb0] sm:$0xf]  ;;  %v7418_v56 = vld [vmem:[%s12215_s6 + $0xb4] sm:$0xf0]  ;;  %v5244_v59 = vor.u32 %v7454_v53, %v5243_v52  ;;  %v5028_v60 = vor.u32 %v7400_v50, %v5027_v49  ;;  %v5235_v61 = vld [vmem:[%s12215_s6 + $0x1c0] sm:$0xf] }
  0x11   :  { %v5163_v57 = vld [vmem:[%s12215_s6 + $0x130] sm:$0xf]  ;;  %v7434_v58 = vld [vmem:[%s12215_s6 + $0x134] sm:$0xf0]  ;;  %v7452_v62 = vld [vmem:[%s12215_s6 + $0x1c4] sm:$0xf0]  ;;  %v5100_v1 = vor.u32 %v7418_v56, %v5099_v55 }
  0x12   :  { %3888 = vmatpush.bf16.msrb.mxu1 %v5116_v38  ;;  %v5019_v63 = vld [vmem:[%s12215_s6 + $0x10] sm:$0xf]  ;;  %v7398_v0 = vld [vmem:[%s12215_s6 + $0x14] sm:$0xf0]  ;;  %v94_v2 = vld [vmem:[%s12209_s0] sm:$0xff]  ;;  %v5164_v3 = vor.u32 %v7434_v58, %v5163_v57  ;;  %v5236_v9 = vor.u32 %v7452_v62, %v5235_v61  ;;  %vm3859_vm4 = vcmask 203776  }
  0x13   :  { %3876 = vmatpush.bf16.msra.mxu3 %v5044_v34  ;;  %3901 = vmatpush.bf16.msrb.mxu2 %v5180_v41  ;;  %v5091_v4 = vld [vmem:[%s12215_s6 + $0xa0] sm:$0xf]  ;;  %v7416_v5 = vld [vmem:[%s12215_s6 + $0xa4] sm:$0xf0]  ;;  %114 = vst [vmem:[#allocation1] ss:$4 sm:$0xff] %v94_v2  ;;  %v5020_v10 = vor.u32 %v7398_v0, %v5019_v63 }
  0x14   :  { %3913 = vmatpush.bf16.msrb.mxu0 %v5252_v47  ;;  %v7995_v6 = vld [vmem:[%s12211_s2] ss:$0 sm:$0xff]  ;;  %v7432_v8 = vld [vmem:[%s12215_s6 + $0x124] sm:$0xf0]  ;;  %v5092_v14 = vor.u32 %v7416_v5, %v5091_v4  ;;  %v5323_v16 = vld [vmem:[%s12215_s6 + $0x270] sm:$0xf] }
  0x15   :  { %v5155_v7 = vld [vmem:[%s12215_s6 + $0x120] sm:$0xf]  ;;  %v7396_v13 = vld [vmem:[%s12215_s6 + $0x4] sm:$0xf0]  ;;  %v7474_v17 = vld [vmem:[%s12215_s6 + $0x274] sm:$0xf0] }
  0x16   :  { %3889 = vmatpush.bf16.msrb.mxu1 %v5108_v51  ;;  %v7996_v11 = vld [vmem:[%s12212_s3] ss:$0 sm:$0xff]  ;;  %v5156_v18 = vor.u32 %v7432_v8, %v5155_v7  ;;  %v5324_v22 = vor.u32 %v7474_v17, %v5323_v16  ;;  %v7472_v25 = vld [vmem:[%s12215_s6 + $0x264] sm:$0xf0]  ;;  %v5307_v29 = vld [vmem:[%s12215_s6 + $0x250] sm:$0xf] }
  0x17   :  { %3877 = vmatpush.bf16.msra.mxu3 %v5036_v48  ;;  %3902 = vmatpush.bf16.msrb.mxu2 %v5172_v54  ;;  %v5011_v12 = vld [vmem:[%s12215_s6] sm:$0xf]  ;;  %v7470_v30 = vld [vmem:[%s12215_s6 + $0x254] sm:$0xf0]  ;;  %v7468_v33 = vld [vmem:[%s12215_s6 + $0x244] sm:$0xf0] }
  0x18   :  { %3914 = vmatpush.bf16.msrb.mxu0 %v5244_v59  ;;  %v5012_v20 = vor.u32 %v7396_v13, %v5011_v12  ;;  %v5315_v24 = vld [vmem:[%s12215_s6 + $0x260] sm:$0xf]  ;;  %v5308_v31 = vor.u32 %v7470_v30, %v5307_v29  ;;  %v5291_v35 = vld [vmem:[%s12215_s6 + $0x230] sm:$0xf]  ;;  %v7466_v36 = vld [vmem:[%s12215_s6 + $0x234] sm:$0xf0] }
  0x19   :  { %v5316_v28 = vor.u32 %v7472_v25, %v5315_v24  ;;  %v5299_v32 = vld [vmem:[%s12215_s6 + $0x240] sm:$0xf]  ;;  %v5292_v37 = vor.u32 %v7466_v36, %v5291_v35  ;;  %v5083_v38 = vld [vmem:[%s12215_s6 + $0x90] sm:$0xf]  ;;  %v7414_v39 = vld [vmem:[%s12215_s6 + $0x94] sm:$0xf0] }
  0x1a   :  { %3890 = vmatpush.bf16.msrb.mxu1 %v5100_v1  ;;  %v117_v23 = vld.sshfl [vmem:[#allocation1] sm:$0xff pattern:$0x73625140]  ;;  %v5300_v34 = vor.u32 %v7468_v33, %v5299_v32  ;;  %v5147_v40 = vld [vmem:[%s12215_s6 + $0x110] sm:$0xf]  ;;  %v5084_v41 = vor.u32 %v7414_v39, %v5083_v38  ;;  %s8028_s21 = smov [#allocation2]  }
  0x1b   :  { %3878 = vmatpush.bf16.msra.mxu3 %v5028_v60  ;;  %3903 = vmatpush.bf16.msrb.mxu2 %v5164_v3  ;;  %v8279_v27 = vpack.c.bf16 %v117_v23, %v117_v23  ;;  %v7430_v42 = vld [vmem:[%s12215_s6 + $0x114] sm:$0xf0]  ;;  %v5227_v43 = vld [vmem:[%s12215_s6 + $0x1b0] sm:$0xf]  ;;  %v5283_v47 = vld [vmem:[%s12215_s6 + $0x220] sm:$0xf] }
  0x1c   :  { %3915 = vmatpush.bf16.msrb.mxu0 %v5236_v9  ;;  %v7450_v44 = vld [vmem:[%s12215_s6 + $0x1b4] sm:$0xf0]  ;;  %v5148_v45 = vor.u32 %v7430_v42, %v5147_v40  ;;  %v7464_v48 = vld [vmem:[%s12215_s6 + $0x224] sm:$0xf0]  ;;  %v5075_v50 = vld [vmem:[%s12215_s6 + $0x80] sm:$0xf] }
  0x1d   :  { %v5228_v46 = vor.u32 %v7450_v44, %v5227_v43  ;;  %v5284_v49 = vor.u32 %v7464_v48, %v5283_v47  ;;  %v7412_v51 = vld [vmem:[%s12215_s6 + $0x84] sm:$0xf0]  ;;  %v5139_v52 = vld [vmem:[%s12215_s6 + $0x100] sm:$0xf]  ;;  %v5275_v59 = vld [vmem:[%s12215_s6 + $0x210] sm:$0xf] }
  0x1e   :  { %3891 = vmatpush.bf16.msrb.mxu1 %v5092_v14  ;;  %v5076_v53 = vor.u32 %v7412_v51, %v5075_v50  ;;  %v7428_v54 = vld [vmem:[%s12215_s6 + $0x104] sm:$0xf0]  ;;  %v5219_v55 = vld [vmem:[%s12215_s6 + $0x1a0] sm:$0xf]  ;;  %v7462_v60 = vld [vmem:[%s12215_s6 + $0x214] sm:$0xf0] }
  0x1f   :  { %3879 = vmatpush.bf16.msra.mxu3 %v5020_v10  ;;  %3904 = vmatpush.bf16.msrb.mxu2 %v5156_v18  ;;  %v7448_v56 = vld [vmem:[%s12215_s6 + $0x1a4] sm:$0xf0]  ;;  %v5140_v57 = vor.u32 %v7428_v54, %v5139_v52  ;;  %v5276_v61 = vor.u32 %v7462_v60, %v5275_v59  ;;  %v5211_v62 = vld [vmem:[%s12215_s6 + $0x190] sm:$0xf]  ;;  %v7446_v63 = vld [vmem:[%s12215_s6 + $0x194] sm:$0xf0] }
  0x20   :  { %3916 = vmatpush.bf16.msrb.mxu0 %v5228_v46  ;;  %v5220_v58 = vor.u32 %v7448_v56, %v5219_v55  ;;  %v5267_v0 = vld [vmem:[%s12215_s6 + $0x200] sm:$0xf]  ;;  %v5212_v1 = vor.u32 %v7446_v63, %v5211_v62  ;;  %v7460_v2 = vld [vmem:[%s12215_s6 + $0x204] sm:$0xf0]  ;;  %v5579_v4 = vld [vmem:[%s12215_s6 + $0x470] sm:$0xf] }
  0x21   :  { %v5268_v3 = vor.u32 %v7460_v2, %v5267_v0  ;;  %v7538_v5 = vld [vmem:[%s12215_s6 + $0x474] sm:$0xf0]  ;;  %v5203_v8 = vld [vmem:[%s12215_s6 + $0x180] sm:$0xf]  ;;  %v7444_v9 = vld [vmem:[%s12215_s6 + $0x184] sm:$0xf0] }
  0x22   :  { %3892 = vmatpush.bf16.msrb.mxu1 %v5084_v41  ;;  %v5580_v7 = vor.u32 %v7538_v5, %v5579_v4  ;;  %v5204_v10 = vor.u32 %v7444_v9, %v5203_v8  ;;  %v7522_v12 = vld [vmem:[%s12215_s6 + $0x3f4] sm:$0xf0]  ;;  %v5571_v14 = vld [vmem:[%s12215_s6 + $0x460] sm:$0xf]  ;;  %v7532_v35 = vld [vmem:[%s12215_s6 + $0x444] sm:$0xf0] }
  0x23   :  { %3880 = vmatpush.bf16.msra.mxu3 %v5012_v20  ;;  %3905 = vmatpush.bf16.msrb.mxu2 %v5148_v45  ;;  %v8387_v17 = vld.sshfl [vmem:[#allocation1 + $0x8] sm:$0xff pattern:$0x73625140]  ;;  %v8389_v18 = vld.sshfl [vmem:[#allocation1 + $0x10] sm:$0xff pattern:$0x73625140] }
  0x24   :  { %3917 = vmatpush.bf16.msrb.mxu0 %v5220_v58  ;;  %v7520_v20 = vld [vmem:[%s12215_s6 + $0x3e4] sm:$0xf0]  ;;  %v7534_v24 = vld [vmem:[%s12215_s6 + $0x454] sm:$0xf0]  ;;  %v5547_v39 = vld [vmem:[%s12215_s6 + $0x430] sm:$0xf] }
  0x25   :  { %v120_v29 = vld.sshfl [vmem:[#allocation1 + $0x18] sm:$0xff pattern:$0x73625140]  ;;  %v7516_v38 = vld [vmem:[%s12215_s6 + $0x3c4] sm:$0xf0]  ;;  %s4995_s22 = sshll.u32 %s8028_s21, 4  ;;  %s4996_s22 = int_to_ptr.vmem [resolvable:$true] %s4995_s22 }
  0x26   :  { %3881 = vmatmul.bf16.vlgmr.msra.gmra.mxu3 %v8279_v27  ;;  %3893 = vmatpush.bf16.msrb.mxu1 %v5076_v53  ;;  %v8408_v30 = vpack.c.bf16 %v120_v29, %v120_v29  ;;  %v7518_v32 = vld [vmem:[%s12215_s6 + $0x3d4] sm:$0xf0]  ;;  %v5483_v43 = vld [vmem:[%s12215_s6 + $0x3b0] sm:$0xf]  ;;  %v5539_v45 = vld [vmem:[%s12215_s6 + $0x420] sm:$0xf] }
  0x27   :  { %3925 = vmatpush.bf16.msrb.mxu3 %v5324_v22  ;;  %3906 = vmatpush.bf16.msrb.mxu2 %v5140_v57  ;;  %v7530_v40 = vld [vmem:[%s12215_s6 + $0x434] sm:$0xf0]  ;;  %v7528_v46 = vld [vmem:[%s12215_s6 + $0x424] sm:$0xf0]  ;;  %v7997_v47 = vld [vmem:[%s12214_s5] ss:$0 sm:$0xff] }
  0x28   :  { %3918 = vmatpush.bf16.msrb.mxu0 %v5212_v1  ;;  %v5548_v42 = vor.u32 %v7530_v40, %v5547_v39  ;;  %v7514_v44 = vld [vmem:[%s12215_s6 + $0x3b4] sm:$0xf0]  ;;  %v5387_v50 = vld [vmem:[%s12215_s6 + $0x2f0] sm:$0xf]  ;;  %v5475_v54 = vld [vmem:[%s12215_s6 + $0x3a0] sm:$0xf] }
  0x29   :  { %v5484_v48 = vor.u32 %v7514_v44, %v5483_v43  ;;  %v7490_v51 = vld [vmem:[%s12215_s6 + $0x2f4] sm:$0xf0]  ;;  %v5451_v52 = vld [vmem:[%s12215_s6 + $0x370] sm:$0xf]  ;;  %v7512_v56 = vld [vmem:[%s12215_s6 + $0x3a4] sm:$0xf0] }
  0x2a   :  { %v7506_v53 = vld [vmem:[%s12215_s6 + $0x374] sm:$0xf0]  ;;  %v5531_v57 = vld [vmem:[%s12215_s6 + $0x410] sm:$0xf]  ;;  %v5476_v60 = vor.u32 %v7512_v56, %v5475_v54  ;;  %v5379_v63 = vld [vmem:[%s12215_s6 + $0x2e0] sm:$0xf] }
  0x2b   :  { %3926 = vmatpush.bf16.msrb.mxu3 %v5316_v28  ;;  %v96_v28 = vld [vmem:[%s12209_s0 + $0x10] sm:$0xff]  ;;  %v7526_v58 = vld [vmem:[%s12215_s6 + $0x414] sm:$0xf0]  ;;  %v5452_v62 = vor.u32 %v7506_v53, %v5451_v52  ;;  %v7488_v0 = vld [vmem:[%s12215_s6 + $0x2e4] sm:$0xf0]  ;;  %vm4988_vm5 = vcmask 17408  }
  0x2c   :  { %3919 = vmatpush.bf16.msrb.mxu0 %v5204_v10  ;;  %125 = vst [vmem:[#allocation1] ss:$4 sm:$0xff] %v96_v28  ;;  %v5443_v1 = vld [vmem:[%s12215_s6 + $0x360] sm:$0xf]  ;;  %v5532_v4 = vor.u32 %v7526_v58, %v5531_v57  ;;  %v5467_v5 = vld [vmem:[%s12215_s6 + $0x390] sm:$0xf]  ;;  %v8531_v28 = vpack.c.bf16 %v8389_v18, %v8389_v18 }
  0x2d   :  { %v7524_v8 = vld [vmem:[%s12215_s6 + $0x404] sm:$0xf0]  ;;  %v5371_v9 = vld [vmem:[%s12215_s6 + $0x2d0] sm:$0xf]  ;;  %v5363_v29 = vld [vmem:[%s12215_s6 + $0x2c0] sm:$0xf] }
  0x2e   :  { %v5771_v18 = vld [vmem:[%s12215_s6 + $0x5f0] sm:$0xf]  ;;  %v7600_v39 = vld [vmem:[%s12215_s6 + $0x664] sm:$0xf0]  ;;  %v97_v43 = vld [vmem:[%s12209_s0 + $0x18] sm:$0xff] }
  0x2f   :  { %3927 = vmatpush.bf16.msrb.mxu3 %v5308_v31  ;;  %v5499_v31 = vld [vmem:[%s12215_s6 + $0x3d0] sm:$0xf]  ;;  %v7500_v40 = vld [vmem:[%s12215_s6 + $0x344] sm:$0xf0]  ;;  %v7598_v53 = vld [vmem:[%s12215_s6 + $0x654] sm:$0xf0] }
  0x30   :  { %v5500_v33 = vor.u32 %v7518_v32, %v5499_v31  ;;  %v7484_v31 = vld [vmem:[%s12215_s6 + $0x2c4] sm:$0xf0]  ;;  %v5427_v32 = vld [vmem:[%s12215_s6 + $0x340] sm:$0xf]  ;;  %v5819_v52 = vld [vmem:[%s12215_s6 + $0x650] sm:$0xf] }
  0x31   :  { %v7482_v54 = vld [vmem:[%s12215_s6 + $0x2b4] sm:$0xf0]  ;;  %v5820_v58 = vor.u32 %v7598_v53, %v5819_v52  ;;  %v5635_v52 = vld [vmem:[%s12215_s6 + $0x4e0] sm:$0xf]  ;;  %v7552_v53 = vld [vmem:[%s12215_s6 + $0x4e4] sm:$0xf0] }
  0x32   :  { %v7498_v56 = vld [vmem:[%s12215_s6 + $0x334] sm:$0xf0] }
  0x33   :  { %3928 = vmatpush.bf16.msrb.mxu3 %v5300_v34  ;;  %v5555_v34 = vld [vmem:[%s12215_s6 + $0x440] sm:$0xf] }
  0x34   :  { %v5556_v36 = vor.u32 %v7532_v35, %v5555_v34 }
  0x37   :  { %3929 = vmatpush.bf16.msrb.mxu3 %v5292_v37  ;;  %v5491_v37 = vld [vmem:[%s12215_s6 + $0x3c0] sm:$0xf] }
  0x38   :  { %v5492_v41 = vor.u32 %v7516_v38, %v5491_v37  ;;  %v7586_v37 = vld [vmem:[%s12215_s6 + $0x5f4] sm:$0xf0]  ;;  %v5827_v38 = vld [vmem:[%s12215_s6 + $0x660] sm:$0xf] }
  0x3b   :  { %3930 = vmatpush.bf16.msrb.mxu3 %v5284_v49  ;;  %v5540_v49 = vor.u32 %v7528_v46, %v5539_v45  ;;  %v5828_v45 = vor.u32 %v7600_v39, %v5827_v38  ;;  %v5707_v39 = vld [vmem:[%s12215_s6 + $0x570] sm:$0xf] }
  0x3f   :  { %3931 = vmatpush.bf16.msrb.mxu3 %v5276_v61  ;;  %v5388_v61 = vor.u32 %v7490_v51, %v5387_v50  ;;  %v5428_v50 = vor.u32 %v7500_v40, %v5427_v32  ;;  %v5355_v51 = vld [vmem:[%s12215_s6 + $0x2b0] sm:$0xf]  ;;  %v5331_v32 = vld [vmem:[%s12215_s6 + $0x280] sm:$0xf]  ;;  %v7570_v40 = vld [vmem:[%s12215_s6 + $0x574] sm:$0xf0] }
  0x43   :  { %3932 = vmatpush.bf16.msrb.mxu3 %v5268_v3  ;;  %v7504_v3 = vld [vmem:[%s12215_s6 + $0x364] sm:$0xf0] }
  0x47   :  { %3977 = vmatpush.bf16.msra.mxu3 %v5580_v7  ;;  %v5523_v7 = vld [vmem:[%s12215_s6 + $0x400] sm:$0xf] }
  0x74   :  { %v51_v15 = vpop.permute.xlu0 %50 }
  0x75   :  { %v56_v19 = vmul.f32 %v7995_v6, %v51_v15  ;;  %v95_v6 = vld [vmem:[%s12209_s0 + $0x8] sm:$0xff] }
  0x76   :  { %116 = vst [vmem:[#allocation1 + $0x20] ss:$4 sm:$0xff] %v95_v6  ;;  %v7536_v15 = vld [vmem:[%s12215_s6 + $0x464] sm:$0xf0]  ;;  %v7510_v6 = vld [vmem:[%s12215_s6 + $0x394] sm:$0xf0] }
  0x77   :  { %v61_v21 = vadd.f32 %v7996_v11, %v56_v19  ;;  %v5515_v11 = vld [vmem:[%s12215_s6 + $0x3f0] sm:$0xf]  ;;  %v5572_v16 = vor.u32 %v7536_v15, %v5571_v14  ;;  %v5507_v19 = vld [vmem:[%s12215_s6 + $0x3e0] sm:$0xf]  ;;  %v5468_v10 = vor.u32 %v7510_v6, %v5467_v5  ;;  %v7602_v15 = vld [vmem:[%s12215_s6 + $0x674] sm:$0xf0] }
  0x78   :  { %v5516_v13 = vor.u32 %v7522_v12, %v5515_v11  ;;  %v5508_v23 = vor.u32 %v7520_v20, %v5507_v19  ;;  %v5380_v11 = vor.u32 %v7488_v0, %v5379_v63  ;;  %v5444_v12 = vor.u32 %v7504_v3, %v5443_v1  ;;  %v5835_v14 = vld [vmem:[%s12215_s6 + $0x670] sm:$0xf]  ;;  %v7502_v19 = vld [vmem:[%s12215_s6 + $0x354] sm:$0xf0]  ;;  %v5347_v1 = vld [vmem:[%s12215_s6 + $0x2a0] sm:$0xf] }
  0x79   :  { %v62_v26 = vmax.f32 %v61_v21, 0.0  ;;  %v5563_v21 = vld [vmem:[%s12215_s6 + $0x450] sm:$0xf]  ;;  %3978 = vmatpush.bf16.msra.mxu3 %v5572_v16  ;;  %v5524_v20 = vor.u32 %v7524_v8, %v5523_v7  ;;  %v5356_v63 = vor.u32 %v7482_v54, %v5355_v51  ;;  %v5411_v3 = vld [vmem:[%s12215_s6 + $0x320] sm:$0xf]  ;;  %v5708_v51 = vor.u32 %v7570_v40, %v5707_v39 }
  0x7a   :  { %v5435_v16 = vld [vmem:[%s12215_s6 + $0x350] sm:$0xf]  ;;  %v5747_v7 = vld [vmem:[%s12215_s6 + $0x5c0] sm:$0xf]  ;;  %v7580_v8 = vld [vmem:[%s12215_s6 + $0x5c4] sm:$0xf0] }
  0x7b   :  { %5006 = vmatmul.msk.f32.vlgmr.msra.gmra.mxu0 %vm69_vm0, %v62_v26  ;;  %v5564_v26 = vor.u32 %v7534_v24, %v5563_v21  ;;  %v5459_v21 = vld [vmem:[%s12215_s6 + $0x380] sm:$0xf]  ;;  %v7508_v24 = vld [vmem:[%s12215_s6 + $0x384] sm:$0xf0] }
  0x7c   :  { %3964 = vmatpush.bf16.msra.mxu0 %v5516_v13  ;;  %v7486_v13 = vld [vmem:[%s12215_s6 + $0x2d4] sm:$0xf0]  ;;  %v5460_v34 = vor.u32 %v7508_v24, %v5459_v21  ;;  %v5739_v21 = vld [vmem:[%s12215_s6 + $0x5b0] sm:$0xf]  ;;  %v7592_v24 = vld [vmem:[%s12215_s6 + $0x624] sm:$0xf0] }
  0x7d   :  { %v121_v22 = vld.sshfl [vmem:[#allocation1 + $0x20] sm:$0xff pattern:$0x73625140]  ;;  %3979 = vmatpush.bf16.msra.mxu3 %v5564_v26  ;;  %v8527_v26 = vpack.c.bf16 %v8387_v17, %v8387_v17  ;;  %v8544_v17 = vld.sshfl [vmem:[#allocation1 + $0x30] sm:$0xff pattern:$0x73625140]  ;;  %v5372_v35 = vor.u32 %v7486_v13, %v5371_v9 }
  0x7e   :  { %v8403_v25 = vpack.c.bf16 %v121_v22, %v121_v22  ;;  %v5836_v22 = vor.u32 %v7602_v15, %v5835_v14  ;;  %v124_v44 = vld.sshfl [vmem:[#allocation1 + $0x38] sm:$0xff pattern:$0x73625140]  ;;  %v5803_v9 = vld [vmem:[%s12215_s6 + $0x630] sm:$0xf] }
  0x7f   :  { %v8566_v46 = vpack.c.bf16 %v124_v44, %v124_v44  ;;  %v5339_v13 = vld [vmem:[%s12215_s6 + $0x290] sm:$0xf]  ;;  %v7478_v14 = vld [vmem:[%s12215_s6 + $0x294] sm:$0xf0]  ;;  %v7576_v44 = vld [vmem:[%s12215_s6 + $0x5a4] sm:$0xf0] }
  0x80   :  { %3933 = vmatmul.bf16.vlgmr.msrb.gmra.mxu3 %v8403_v25  ;;  %3965 = vmatpush.bf16.msra.mxu0 %v5508_v23  ;;  %v127_v23 = vld.sshfl [vmem:[#allocation1] sm:$0xff pattern:$0x73625140]  ;;  %v5403_v15 = vld [vmem:[%s12215_s6 + $0x310] sm:$0xf] }
  0x81   :  { %3980 = vmatpush.bf16.msra.mxu3 %v5556_v36  ;;  %v5436_v36 = vor.u32 %v7502_v19, %v5435_v16  ;;  %v7494_v16 = vld [vmem:[%s12215_s6 + $0x314] sm:$0xf0]  ;;  %v5748_v19 = vor.u32 %v7580_v8, %v5747_v7  ;;  %v5699_v54 = vld [vmem:[%s12215_s6 + $0x560] sm:$0xf] }
  0x83   :  { %3920 = vmatmul.bf16.vlgmr.msrb.gmra.mxu0 %v8408_v30 }
  0x84   :  { %3966 = vmatpush.bf16.msra.mxu0 %v5500_v33  ;;  %v8542_v33 = vld.sshfl [vmem:[#allocation1 + $0x28] sm:$0xff pattern:$0x73625140] }
  0x85   :  { %3981 = vmatpush.bf16.msra.mxu3 %v5548_v42  ;;  %v5772_v42 = vor.u32 %v7586_v37, %v5771_v18  ;;  %126 = vst [vmem:[#allocation1 + $0x20] ss:$4 sm:$0xff] %v97_v43  ;;  %v5395_v18 = vld [vmem:[%s12215_s6 + $0x300] sm:$0xf]  ;;  %v7554_v37 = vld [vmem:[%s12215_s6 + $0x4f4] sm:$0xf0] }
  0x86   :  { %v5731_v43 = vld [vmem:[%s12215_s6 + $0x5a0] sm:$0xf] }
  0x88   :  { %3967 = vmatpush.bf16.msra.mxu0 %v5492_v41  ;;  %v8561_v41 = vpack.c.bf16 %v127_v23, %v127_v23  ;;  %v5795_v23 = vld [vmem:[%s12215_s6 + $0x620] sm:$0xf] }
  0x89   :  { %3982 = vmatpush.bf16.msra.mxu3 %v5540_v49  ;;  %v5364_v49 = vor.u32 %v7484_v31, %v5363_v29  ;;  %v5340_v29 = vor.u32 %v7478_v14, %v5339_v13  ;;  %v5404_v31 = vor.u32 %v7494_v16, %v5403_v15  ;;  %v7548_v13 = vld [vmem:[%s12215_s6 + $0x4c4] sm:$0xf0]  ;;  %v5683_v14 = vld [vmem:[%s12215_s6 + $0x540] sm:$0xf] }
  0x8a   :  { %v8759_v15 = vld.sshfl [vmem:[#allocation1 + $0x8] sm:$0xff pattern:$0x73625140]  ;;  %v8761_v16 = vld.sshfl [vmem:[#allocation1 + $0x10] sm:$0xff pattern:$0x73625140] }
  0x8c   :  { %3968 = vmatpush.bf16.msra.mxu0 %v5484_v48  ;;  %v7584_v48 = vld [vmem:[%s12215_s6 + $0x5e4] sm:$0xf0]  ;;  %v131_v8 = vld.sshfl [vmem:[#allocation1 + $0x20] sm:$0xff pattern:$0x73625140] }
  0x8d   :  { %3983 = vmatpush.bf16.msra.mxu3 %v5532_v4  ;;  %v7496_v4 = vld [vmem:[%s12215_s6 + $0x324] sm:$0xf0] }
  0x90   :  { %3969 = vmatpush.bf16.msra.mxu0 %v5476_v60  ;;  %v7582_v60 = vld [vmem:[%s12215_s6 + $0x5d4] sm:$0xf0] }
  0x91   :  { %3984 = vmatpush.bf16.msra.mxu3 %v5524_v20 }
  0x94   :  { %3970 = vmatpush.bf16.msra.mxu0 %v5468_v10  ;;  %3985 = vmatmul.bf16.vlgmr.msra.gmra.mxu3 %v8561_v41  ;;  %v7594_v10 = vld [vmem:[%s12215_s6 + $0x634] sm:$0xf0] }
  0x95   :  { %4029 = vmatpush.bf16.msrb.mxu3 %v5836_v22  ;;  %v5804_v20 = vor.u32 %v7594_v10, %v5803_v9  ;;  %v7578_v22 = vld [vmem:[%s12215_s6 + $0x5b4] sm:$0xf0]  ;;  %v5715_v10 = vld [vmem:[%s12215_s6 + $0x580] sm:$0xf] }
  0x96   :  { %v5740_v38 = vor.u32 %v7578_v22, %v5739_v21  ;;  %v7650_v22 = vld [vmem:[%s12215_s6 + $0x7f4] sm:$0xf0] }
  0x98   :  { %3971 = vmatpush.bf16.msra.mxu0 %v5460_v34  ;;  %v7476_v34 = vld [vmem:[%s12215_s6 + $0x284] sm:$0xf0] }
  0x99   :  { %4030 = vmatpush.bf16.msrb.mxu3 %v5828_v45  ;;  %v5787_v45 = vld [vmem:[%s12215_s6 + $0x610] sm:$0xf] }
  0x9b   :  { %3972 = vmatmul.bf16.vlgmr.msra.gmra.mxu0 %v8566_v46 }
  0x9c   :  { %4016 = vmatpush.bf16.msrb.mxu0 %v5772_v42  ;;  %v5796_v42 = vor.u32 %v7592_v24, %v5795_v23  ;;  %v6083_v23 = vld [vmem:[%s12215_s6 + $0x860] sm:$0xf]  ;;  %v7664_v24 = vld [vmem:[%s12215_s6 + $0x864] sm:$0xf0] }
  0x9d   :  { %4031 = vmatpush.bf16.msrb.mxu3 %v5820_v58  ;;  %v5723_v58 = vld [vmem:[%s12215_s6 + $0x590] sm:$0xf] }
  0xf8   :  { %v90_v55 = vpop.f32.mrf.mxu0 }
  0xf9   :  { %v91_v59 = vadd.f32 %v7997_v47, %v90_v55  ;;  %v5763_v47 = vld [vmem:[%s12215_s6 + $0x5e0] sm:$0xf]  ;;  %v5419_v55 = vld [vmem:[%s12215_s6 + $0x330] sm:$0xf] }
  0xfa   :  { %v5764_v57 = vor.u32 %v7584_v48, %v5763_v47  ;;  %v5420_v0 = vor.u32 %v7498_v56, %v5419_v55  ;;  %v7590_v47 = vld [vmem:[%s12215_s6 + $0x614] sm:$0xf0]  ;;  %v5332_v48 = vor.u32 %v7476_v34, %v5331_v32  ;;  %v7568_v55 = vld [vmem:[%s12215_s6 + $0x564] sm:$0xf0]  ;;  %v5732_v56 = vor.u32 %v7576_v44, %v5731_v43  ;;  %v98_v34 = vld [vmem:[%s12209_s0 + $0x20] sm:$0xff] }
  0xfb   :  { %v93_v2 = vmax.f32 %v91_v59, 0.0  ;;  %v5755_v59 = vld [vmem:[%s12215_s6 + $0x5d0] sm:$0xf]  ;;  %v7662_v44 = vld [vmem:[%s12215_s6 + $0x854] sm:$0xf0] }
  0xfc   :  { %4017 = vmatpush.bf16.msrb.mxu0 %v5764_v57  ;;  %v5756_v5 = vor.u32 %v7582_v60, %v5755_v59  ;;  %v5788_v57 = vor.u32 %v7590_v47, %v5787_v45  ;;  %v8709_v59 = vpack.c.bf16 %v8542_v33, %v8542_v33  ;;  %v8713_v60 = vpack.c.bf16 %v8544_v17, %v8544_v17  ;;  %v5627_v33 = vld [vmem:[%s12215_s6 + $0x4d0] sm:$0xf]  ;;  %v7550_v17 = vld [vmem:[%s12215_s6 + $0x4d4] sm:$0xf0] }
  0xfd   :  { %5007 = vmatmul.msk.f32.vlgmr.msra.gmra.mxu1 %vm837_vm1, %v93_v2  ;;  %5008 = vmatmul.msk.f32.vlgmr.msra.gmra.mxu2 %vm837_vm1, %v93_v2  ;;  %v7480_v2 = vld [vmem:[%s12215_s6 + $0x2a4] sm:$0xf0]  ;;  %v6075_v43 = vld [vmem:[%s12215_s6 + $0x850] sm:$0xf]  ;;  %v7546_v45 = vld [vmem:[%s12215_s6 + $0x4b4] sm:$0xf0] }
  0xfe   :  { %3938 = vmatpush.bf16.msra.mxu1 %v5388_v61  ;;  %3951 = vmatpush.bf16.msra.mxu2 %v5452_v62  ;;  %v5811_v61 = vld [vmem:[%s12215_s6 + $0x640] sm:$0xf]  ;;  %v7596_v62 = vld [vmem:[%s12215_s6 + $0x644] sm:$0xf0]  ;;  %v5675_v47 = vld [vmem:[%s12215_s6 + $0x530] sm:$0xf] }
  0xff   :  { %v5812_v6 = vor.u32 %v7596_v62, %v5811_v61  ;;  %v7574_v61 = vld [vmem:[%s12215_s6 + $0x594] sm:$0xf0]  ;;  %v5779_v62 = vld [vmem:[%s12215_s6 + $0x600] sm:$0xf] }
 0x100   :  { %4018 = vmatpush.bf16.msrb.mxu0 %v5756_v5  ;;  %v7566_v5 = vld [vmem:[%s12215_s6 + $0x554] sm:$0xf0] }
 0x101   :  { %4032 = vmatpush.bf16.msrb.mxu3 %v5812_v6  ;;  %v5724_v6 = vor.u32 %v7574_v61, %v5723_v58  ;;  %v5603_v58 = vld [vmem:[%s12215_s6 + $0x4a0] sm:$0xf]  ;;  %v7544_v61 = vld [vmem:[%s12215_s6 + $0x4a4] sm:$0xf0] }
 0x102   :  { %3939 = vmatpush.bf16.msra.mxu1 %v5380_v11  ;;  %3952 = vmatpush.bf16.msra.mxu2 %v5444_v12  ;;  %v5348_v11 = vor.u32 %v7480_v2, %v5347_v1  ;;  %v5412_v12 = vor.u32 %v7496_v4, %v5411_v3  ;;  %v5700_v1 = vor.u32 %v7568_v55, %v5699_v54  ;;  %v5691_v2 = vld [vmem:[%s12215_s6 + $0x550] sm:$0xf]  ;;  %v7666_v4 = vld [vmem:[%s12215_s6 + $0x874] sm:$0xf0]  ;;  %v6067_v54 = vld [vmem:[%s12215_s6 + $0x840] sm:$0xf] }
 0x103   :  { %v6091_v3 = vld [vmem:[%s12215_s6 + $0x870] sm:$0xf]  ;;  %v5692_v21 = vor.u32 %v7566_v5, %v5691_v2  ;;  %v7660_v55 = vld [vmem:[%s12215_s6 + $0x844] sm:$0xf0] }
 0x104   :  { %4019 = vmatpush.bf16.msrb.mxu0 %v5748_v19  ;;  %v6092_v9 = vor.u32 %v7666_v4, %v6091_v3  ;;  %v6027_v19 = vld [vmem:[%s12215_s6 + $0x7f0] sm:$0xf]  ;;  %v7658_v3 = vld [vmem:[%s12215_s6 + $0x834] sm:$0xf0]  ;;  %v5604_v4 = vor.u32 %v7544_v61, %v5603_v58  ;;  %v6035_v61 = vld [vmem:[%s12215_s6 + $0x800] sm:$0xf] }
 0x105   :  { %3894 = vmatmul.bf16.vlgmr.msrb.gmra.mxu1 %v8527_v26  ;;  %3907 = vmatmul.bf16.vlgmr.msrb.gmra.mxu2 %v8531_v28  ;;  %v6059_v2 = vld [vmem:[%s12215_s6 + $0x830] sm:$0xf]  ;;  %v7638_v58 = vld [vmem:[%s12215_s6 + $0x794] sm:$0xf0] }
 0x106   :  { %3940 = vmatpush.bf16.msra.mxu1 %v5372_v35  ;;  %3953 = vmatpush.bf16.msra.mxu2 %v5436_v36  ;;  %v7492_v35 = vld [vmem:[%s12215_s6 + $0x304] sm:$0xf0]  ;;  %v5643_v36 = vld [vmem:[%s12215_s6 + $0x4f0] sm:$0xf] }
 0x107   :  { %4033 = vmatpush.bf16.msrb.mxu3 %v5804_v20  ;;  %v5628_v20 = vor.u32 %v7550_v17, %v5627_v33  ;;  %v6068_v17 = vor.u32 %v7660_v55, %v6067_v54  ;;  %v5979_v55 = vld [vmem:[%s12215_s6 + $0x790] sm:$0xf] }
 0x108   :  { %4020 = vmatpush.bf16.msrb.mxu0 %v5740_v38  ;;  %v7648_v38 = vld [vmem:[%s12215_s6 + $0x7e4] sm:$0xf0] }
 0x10a   :  { %3941 = vmatpush.bf16.msra.mxu1 %v5364_v49  ;;  %3954 = vmatpush.bf16.msra.mxu2 %v5428_v50  ;;  %v5396_v49 = vor.u32 %v7492_v35, %v5395_v18  ;;  %v5644_v50 = vor.u32 %v7554_v37, %v5643_v36  ;;  %v130_v18 = vld.sshfl [vmem:[#allocation1 + $0x18] sm:$0xff pattern:$0x73625140]  ;;  %v6028_v35 = vor.u32 %v7650_v22, %v6027_v19  ;;  %v6019_v37 = vld [vmem:[%s12215_s6 + $0x7e0] sm:$0xf] }
 0x10b   :  { %4034 = vmatpush.bf16.msrb.mxu3 %v5796_v42  ;;  %v6084_v36 = vor.u32 %v7664_v24, %v6083_v23  ;;  %135 = vst [vmem:[#allocation1] ss:$4 sm:$0xff] %v98_v34  ;;  %v5611_v42 = vld [vmem:[%s12215_s6 + $0x4b0] sm:$0xf]  ;;  %v7656_v19 = vld [vmem:[%s12215_s6 + $0x824] sm:$0xf0] }
 0x10c   :  { %4021 = vmatpush.bf16.msrb.mxu0 %v5732_v56  ;;  %v5612_v56 = vor.u32 %v7546_v45, %v5611_v42  ;;  %v5587_v22 = vld [vmem:[%s12215_s6 + $0x480] sm:$0xf]  ;;  %v7540_v23 = vld [vmem:[%s12215_s6 + $0x484] sm:$0xf0]  ;;  %v7618_v34 = vld [vmem:[%s12215_s6 + $0x6f4] sm:$0xf0] }
 0x10d   :  { %v5651_v24 = vld [vmem:[%s12215_s6 + $0x500] sm:$0xf]  ;;  %v7654_v42 = vld [vmem:[%s12215_s6 + $0x814] sm:$0xf0] }
 0x10e   :  { %3942 = vmatpush.bf16.msra.mxu1 %v5356_v63  ;;  %3955 = vmatpush.bf16.msra.mxu2 %v5420_v0  ;;  %v7588_v63 = vld [vmem:[%s12215_s6 + $0x604] sm:$0xf0]  ;;  %v5636_v0 = vor.u32 %v7552_v53, %v5635_v52  ;;  %v6011_v52 = vld [vmem:[%s12215_s6 + $0x7d0] sm:$0xf]  ;;  %v7646_v53 = vld [vmem:[%s12215_s6 + $0x7d4] sm:$0xf0] }
 0x10f   :  { %4035 = vmatpush.bf16.msrb.mxu3 %v5788_v57  ;;  %v5780_v7 = vor.u32 %v7588_v63, %v5779_v62  ;;  %v5667_v62 = vld [vmem:[%s12215_s6 + $0x520] sm:$0xf]  ;;  %v7560_v63 = vld [vmem:[%s12215_s6 + $0x524] sm:$0xf0]  ;;  %v6012_v33 = vor.u32 %v7646_v53, %v6011_v52 }
 0x110   :  { %4022 = vmatpush.bf16.msrb.mxu0 %v5724_v6  ;;  %v5668_v5 = vor.u32 %v7560_v63, %v5667_v62  ;;  %v5595_v6 = vld [vmem:[%s12215_s6 + $0x490] sm:$0xf]  ;;  %v7632_v52 = vld [vmem:[%s12215_s6 + $0x764] sm:$0xf0] }
 0x111   :  { %v7652_v62 = vld [vmem:[%s12215_s6 + $0x804] sm:$0xf0] }
 0x112   :  { %3943 = vmatpush.bf16.msra.mxu1 %v5348_v11  ;;  %3956 = vmatpush.bf16.msra.mxu2 %v5412_v12  ;;  %v7572_v11 = vld [vmem:[%s12215_s6 + $0x584] sm:$0xf0]  ;;  %v5619_v12 = vld [vmem:[%s12215_s6 + $0x4c0] sm:$0xf] }
 0x113   :  { %4036 = vmatpush.bf16.msrb.mxu3 %v5780_v7  ;;  %v5716_v32 = vor.u32 %v7572_v11, %v5715_v10  ;;  %v5620_v39 = vor.u32 %v7548_v13, %v5619_v12  ;;  %v7542_v7 = vld [vmem:[%s12215_s6 + $0x494] sm:$0xf0]  ;;  %v6060_v11 = vor.u32 %v7658_v3, %v6059_v2  ;;  %v5995_v12 = vld [vmem:[%s12215_s6 + $0x7b0] sm:$0xf]  ;;  %v5980_v3 = vor.u32 %v7638_v58, %v5979_v55  ;;  %v6323_v55 = vld [vmem:[%s12215_s6 + $0xa40] sm:$0xf] }
 0x114   :  { %v7642_v13 = vld [vmem:[%s12215_s6 + $0x7b4] sm:$0xf0]  ;;  %v7724_v58 = vld [vmem:[%s12215_s6 + $0xa44] sm:$0xf0] }
 0x115   :  { %4023 = vmatpush.bf16.msrb.mxu0 %v5716_v32  ;;  %v5899_v32 = vld [vmem:[%s12215_s6 + $0x6f0] sm:$0xf]  ;;  %v7630_v2 = vld [vmem:[%s12215_s6 + $0x754] sm:$0xf0] }
 0x116   :  { %3944 = vmatpush.bf16.msra.mxu1 %v5340_v29  ;;  %3957 = vmatpush.bf16.msra.mxu2 %v5404_v31  ;;  %v7564_v29 = vld [vmem:[%s12215_s6 + $0x544] sm:$0xf0]  ;;  %v8778_v31 = vpack.c.bf16 %v131_v8, %v131_v8  ;;  %v5659_v8 = vld [vmem:[%s12215_s6 + $0x510] sm:$0xf]  ;;  %v5900_v45 = vor.u32 %v7618_v34, %v5899_v32 }
 0x117   :  { %4081 = vmatpush.bf16.msra.mxu3 %v6092_v9  ;;  %v5684_v40 = vor.u32 %v7564_v29, %v5683_v14  ;;  %v7558_v9 = vld [vmem:[%s12215_s6 + $0x514] sm:$0xf0]  ;;  %v6051_v14 = vld [vmem:[%s12215_s6 + $0x820] sm:$0xf]  ;;  %v7556_v29 = vld [vmem:[%s12215_s6 + $0x504] sm:$0xf0] }
 0x118   :  { %4037 = vmatmul.bf16.vlgmr.msrb.gmra.mxu3 %v8778_v31  ;;  %v99_v34 = vld [vmem:[%s12209_s0 + $0x28] sm:$0xff] }
 0x119   :  { %4068 = vmatpush.bf16.msra.mxu0 %v6028_v35  ;;  %v7634_v35 = vld [vmem:[%s12215_s6 + $0x774] sm:$0xf0] }
 0x11a   :  { %3945 = vmatpush.bf16.msra.mxu1 %v5332_v48  ;;  %3958 = vmatpush.bf16.msra.mxu2 %v5396_v49  ;;  %v7562_v48 = vld [vmem:[%s12215_s6 + $0x534] sm:$0xf0]  ;;  %v8808_v49 = vpack.c.bf16 %v130_v18, %v130_v18  ;;  %v5963_v18 = vld [vmem:[%s12215_s6 + $0x770] sm:$0xf] }
 0x11b   :  { %4082 = vmatpush.bf16.msra.mxu3 %v6084_v36  ;;  %v5676_v57 = vor.u32 %v7562_v48, %v5675_v47  ;;  %v5996_v36 = vor.u32 %v7642_v13, %v5995_v12  ;;  %v5964_v47 = vor.u32 %v7634_v35, %v5963_v18  ;;  %v5891_v48 = vld [vmem:[%s12215_s6 + $0x6e0] sm:$0xf]  ;;  %v8974_v12 = vld.sshfl [vmem:[#allocation1 + $0x28] sm:$0xff pattern:$0x73625140] }
 0x11c   :  { %4024 = vmatmul.bf16.vlgmr.msrb.gmra.mxu0 %v8808_v49  ;;  %v8976_v13 = vld.sshfl [vmem:[#allocation1 + $0x30] sm:$0xff pattern:$0x73625140]  ;;  %v134_v18 = vld.sshfl [vmem:[#allocation1 + $0x38] sm:$0xff pattern:$0x73625140] }
 0x11d   :  { %3946 = vmatmul.bf16.vlgmr.msra.gmra.mxu1 %v8709_v59  ;;  %3959 = vmatmul.bf16.vlgmr.msra.gmra.mxu2 %v8713_v60  ;;  %136 = vst [vmem:[#allocation1 + $0x20] ss:$4 sm:$0xff] %v99_v34  ;;  %v7604_v34 = vld [vmem:[%s12215_s6 + $0x684] sm:$0xf0] }
 0x11e   :  { %3990 = vmatpush.bf16.msrb.mxu1 %v5644_v50  ;;  %4003 = vmatpush.bf16.msrb.mxu2 %v5708_v51  ;;  %v6020_v50 = vor.u32 %v7648_v38, %v6019_v37  ;;  %v6076_v51 = vor.u32 %v7662_v44, %v6075_v43  ;;  %v6052_v37 = vor.u32 %v7656_v19, %v6051_v14  ;;  %v5987_v38 = vld [vmem:[%s12215_s6 + $0x7a0] sm:$0xf]  ;;  %v6283_v14 = vld [vmem:[%s12215_s6 + $0x9f0] sm:$0xf] }
 0x11f   :  { %v5588_v43 = vor.u32 %v7540_v23, %v5587_v22  ;;  %v5652_v44 = vor.u32 %v7556_v29, %v5651_v24  ;;  %v6339_v22 = vld [vmem:[%s12215_s6 + $0xa60] sm:$0xf]  ;;  %v7728_v23 = vld [vmem:[%s12215_s6 + $0xa64] sm:$0xf0] }
 0x120   :  { %4069 = vmatpush.bf16.msra.mxu0 %v6020_v50  ;;  %4083 = vmatpush.bf16.msra.mxu3 %v6076_v51  ;;  %v7616_v50 = vld [vmem:[%s12215_s6 + $0x6e4] sm:$0xf0]  ;;  %v5955_v51 = vld [vmem:[%s12215_s6 + $0x760] sm:$0xf] }
 0x121   :  { %v5892_v63 = vor.u32 %v7616_v50, %v5891_v48  ;;  %v7628_v24 = vld [vmem:[%s12215_s6 + $0x744] sm:$0xf0]  ;;  %v7626_v48 = vld [vmem:[%s12215_s6 + $0x734] sm:$0xf0]  ;;  %v9023_v50 = vpack.c.bf16 %v134_v18, %v134_v18  ;;  %v5907_v18 = vld [vmem:[%s12215_s6 + $0x700] sm:$0xf] }
 0x122   :  { %3991 = vmatpush.bf16.msrb.mxu1 %v5636_v0  ;;  %4004 = vmatpush.bf16.msrb.mxu2 %v5700_v1  ;;  %v6003_v0 = vld [vmem:[%s12215_s6 + $0x7c0] sm:$0xf]  ;;  %v7644_v1 = vld [vmem:[%s12215_s6 + $0x7c4] sm:$0xf0] }
 0x123   :  { %v6004_v10 = vor.u32 %v7644_v1, %v6003_v0  ;;  %v6347_v0 = vld [vmem:[%s12215_s6 + $0xa70] sm:$0xf]  ;;  %v7730_v1 = vld [vmem:[%s12215_s6 + $0xa74] sm:$0xf0] }
 0x124   :  { %4070 = vmatpush.bf16.msra.mxu0 %v6012_v33  ;;  %4084 = vmatpush.bf16.msra.mxu3 %v6068_v17  ;;  %v5956_v33 = vor.u32 %v7632_v52, %v5955_v51  ;;  %v5947_v17 = vld [vmem:[%s12215_s6 + $0x750] sm:$0xf] }
 0x126   :  { %3992 = vmatpush.bf16.msrb.mxu1 %v5628_v20  ;;  %4005 = vmatpush.bf16.msrb.mxu2 %v5692_v21  ;;  %v5596_v20 = vor.u32 %v7542_v7, %v5595_v6  ;;  %v5660_v21 = vor.u32 %v7558_v9, %v5659_v8  ;;  %v6348_v6 = vor.u32 %v7730_v1, %v6347_v0  ;;  %v5971_v7 = vld [vmem:[%s12215_s6 + $0x780] sm:$0xf]  ;;  %v7636_v8 = vld [vmem:[%s12215_s6 + $0x784] sm:$0xf0] }
 0x127   :  { %v5875_v9 = vld [vmem:[%s12215_s6 + $0x6c0] sm:$0xf]  ;;  %v5972_v32 = vor.u32 %v7636_v8, %v5971_v7  ;;  %v6324_v0 = vor.u32 %v7724_v58, %v6323_v55  ;;  %v5851_v7 = vld [vmem:[%s12215_s6 + $0x690] sm:$0xf]  ;;  %v7606_v8 = vld [vmem:[%s12215_s6 + $0x694] sm:$0xf0] }
 0x128   :  { %4071 = vmatpush.bf16.msra.mxu0 %v6004_v10  ;;  %4085 = vmatpush.bf16.msra.mxu3 %v6060_v11  ;;  %v7612_v10 = vld [vmem:[%s12215_s6 + $0x6c4] sm:$0xf0]  ;;  %v5939_v11 = vld [vmem:[%s12215_s6 + $0x740] sm:$0xf] }
 0x129   :  { %v6259_v1 = vld [vmem:[%s12215_s6 + $0x9c0] sm:$0xf]  ;;  %v7680_v55 = vld [vmem:[%s12215_s6 + $0x8e4] sm:$0xf0] }
 0x12a   :  { %3993 = vmatpush.bf16.msrb.mxu1 %v5620_v39  ;;  %4006 = vmatpush.bf16.msrb.mxu2 %v5684_v40  ;;  %v7640_v39 = vld [vmem:[%s12215_s6 + $0x7a4] sm:$0xf0]  ;;  %v6043_v40 = vld [vmem:[%s12215_s6 + $0x810] sm:$0xf]  ;;  %v6211_v58 = vld [vmem:[%s12215_s6 + $0x960] sm:$0xf] }
 0x12b   :  { %v5988_v53 = vor.u32 %v7640_v39, %v5987_v38  ;;  %v6044_v54 = vor.u32 %v7654_v42, %v6043_v40  ;;  %v7712_v38 = vld [vmem:[%s12215_s6 + $0x9e4] sm:$0xf0]  ;;  %v5876_v39 = vor.u32 %v7612_v10, %v5875_v9  ;;  %v5940_v40 = vor.u32 %v7628_v24, %v5939_v11  ;;  %v5867_v42 = vld [vmem:[%s12215_s6 + $0x6b0] sm:$0xf]  ;;  %v7622_v10 = vld [vmem:[%s12215_s6 + $0x714] sm:$0xf0] }
 0x12c   :  { %4072 = vmatpush.bf16.msra.mxu0 %v5996_v36  ;;  %4086 = vmatpush.bf16.msra.mxu3 %v6052_v37  ;;  %v6340_v36 = vor.u32 %v7728_v23, %v6339_v22  ;;  %v6275_v37 = vld [vmem:[%s12215_s6 + $0x9e0] sm:$0xf]  ;;  %v5915_v9 = vld [vmem:[%s12215_s6 + $0x710] sm:$0xf]  ;;  %v7720_v22 = vld [vmem:[%s12215_s6 + $0xa24] sm:$0xf0]  ;;  %v5852_v23 = vor.u32 %v7606_v8, %v5851_v7 }
 0x12d   :  { %v6276_v51 = vor.u32 %v7712_v38, %v6275_v37  ;;  %v5916_v24 = vor.u32 %v7622_v10, %v5915_v9  ;;  %v7682_v37 = vld [vmem:[%s12215_s6 + $0x8f4] sm:$0xf0]  ;;  %v6219_v38 = vld [vmem:[%s12215_s6 + $0x970] sm:$0xf] }
 0x12e   :  { %3994 = vmatpush.bf16.msrb.mxu1 %v5612_v56  ;;  %4007 = vmatpush.bf16.msrb.mxu2 %v5676_v57  ;;  %v8924_v56 = vpack.c.bf16 %v8759_v15, %v8759_v15  ;;  %v8928_v57 = vpack.c.bf16 %v8761_v16, %v8761_v16  ;;  %v5883_v15 = vld [vmem:[%s12215_s6 + $0x6d0] sm:$0xf]  ;;  %v7614_v16 = vld [vmem:[%s12215_s6 + $0x6d4] sm:$0xf0] }
 0x12f   :  { %v5884_v19 = vor.u32 %v7614_v16, %v5883_v15  ;;  %v5859_v15 = vld [vmem:[%s12215_s6 + $0x6a0] sm:$0xf]  ;;  %v7608_v16 = vld [vmem:[%s12215_s6 + $0x6a4] sm:$0xf0]  ;;  %v7694_v7 = vld [vmem:[%s12215_s6 + $0x954] sm:$0xf0] }
 0x130   :  { %4073 = vmatpush.bf16.msra.mxu0 %v5988_v53  ;;  %4087 = vmatpush.bf16.msra.mxu3 %v6044_v54  ;;  %v6267_v53 = vld [vmem:[%s12215_s6 + $0x9d0] sm:$0xf]  ;;  %v7710_v54 = vld [vmem:[%s12215_s6 + $0x9d4] sm:$0xf0] }
 0x131   :  { %v141_v10 = vld.sshfl [vmem:[#allocation1 + $0x20] sm:$0xff pattern:$0x73625140] }
 0x132   :  { %3995 = vmatpush.bf16.msrb.mxu1 %v5604_v4  ;;  %4008 = vmatpush.bf16.msrb.mxu2 %v5668_v5  ;;  %v6036_v4 = vor.u32 %v7652_v62, %v6035_v61  ;;  %v137_v5 = vld.sshfl [vmem:[#allocation1] sm:$0xff pattern:$0x73625140] }
 0x133   :  { %v8993_v29 = vpack.c.bf16 %v137_v5, %v137_v5  ;;  %v5860_v5 = vor.u32 %v7608_v16, %v5859_v15  ;;  %v6235_v16 = vld [vmem:[%s12215_s6 + $0x990] sm:$0xf] }
 0x134   :  { %4074 = vmatpush.bf16.msra.mxu0 %v5980_v3  ;;  %4088 = vmatpush.bf16.msra.mxu3 %v6036_v4  ;;  %v6315_v3 = vld [vmem:[%s12215_s6 + $0xa30] sm:$0xf]  ;;  %v7722_v4 = vld [vmem:[%s12215_s6 + $0xa34] sm:$0xf0] }
 0x136   :  { %3996 = vmatpush.bf16.msrb.mxu1 %v5596_v20  ;;  %4009 = vmatpush.bf16.msrb.mxu2 %v5660_v21  ;;  %v5948_v20 = vor.u32 %v7630_v2, %v5947_v17  ;;  %v7714_v21 = vld [vmem:[%s12215_s6 + $0x9f4] sm:$0xf0]  ;;  %v6268_v17 = vor.u32 %v7710_v54, %v6267_v53  ;;  %v7708_v2 = vld [vmem:[%s12215_s6 + $0x9c4] sm:$0xf0]  ;;  %v6147_v54 = vld [vmem:[%s12215_s6 + $0x8e0] sm:$0xf] }
 0x137   :  { %v6284_v35 = vor.u32 %v7714_v21, %v6283_v14  ;;  %4089 = vmatmul.bf16.vlgmr.msra.gmra.mxu3 %v8993_v29  ;;  %v6260_v11 = vor.u32 %v7708_v2, %v6259_v1  ;;  %v6316_v14 = vor.u32 %v7722_v4, %v6315_v3  ;;  %v6307_v21 = vld [vmem:[%s12215_s6 + $0xa20] sm:$0xf]  ;;  %v7716_v1 = vld [vmem:[%s12215_s6 + $0xa04] sm:$0xf0]  ;;  %v6148_v2 = vor.u32 %v7680_v55, %v6147_v54  ;;  %v6203_v4 = vld [vmem:[%s12215_s6 + $0x950] sm:$0xf] }
 0x138   :  { %4133 = vmatpush.bf16.msrb.mxu3 %v6348_v6  ;;  %4075 = vmatpush.bf16.msra.mxu0 %v5972_v32  ;;  %v5843_v32 = vld [vmem:[%s12215_s6 + $0x680] sm:$0xf]  ;;  %v7674_v54 = vld [vmem:[%s12215_s6 + $0x8b4] sm:$0xf0]  ;;  %v6187_v55 = vld [vmem:[%s12215_s6 + $0x930] sm:$0xf] }
 0x13a   :  { %3997 = vmatpush.bf16.msrb.mxu1 %v5588_v43  ;;  %4010 = vmatpush.bf16.msrb.mxu2 %v5652_v44  ;;  %v6331_v43 = vld [vmem:[%s12215_s6 + $0xa50] sm:$0xf]  ;;  %v7726_v44 = vld [vmem:[%s12215_s6 + $0xa54] sm:$0xf0] }
 0x13b   :  { %v6332_v52 = vor.u32 %v7726_v44, %v6331_v43  ;;  %4076 = vmatmul.bf16.vlgmr.msra.gmra.mxu0 %v9023_v50  ;;  %v6243_v43 = vld [vmem:[%s12215_s6 + $0x9a0] sm:$0xf]  ;;  %v7704_v44 = vld [vmem:[%s12215_s6 + $0x9a4] sm:$0xf0] }
 0x13c   :  { %4120 = vmatpush.bf16.msrb.mxu0 %v6284_v35  ;;  %4134 = vmatpush.bf16.msrb.mxu3 %v6340_v36  ;;  %v7620_v35 = vld [vmem:[%s12215_s6 + $0x704] sm:$0xf0]  ;;  %v6155_v36 = vld [vmem:[%s12215_s6 + $0x8f0] sm:$0xf] }
 0x13d   :  { %3998 = vmatmul.bf16.vlgmr.msrb.gmra.mxu1 %v8924_v56  ;;  %4011 = vmatmul.bf16.vlgmr.msrb.gmra.mxu2 %v8928_v57 }
 0x13e   :  { %4042 = vmatpush.bf16.msra.mxu1 %v5900_v45  ;;  %4055 = vmatpush.bf16.msra.mxu2 %v5964_v47  ;;  %v7610_v45 = vld [vmem:[%s12215_s6 + $0x6b4] sm:$0xf0]  ;;  %v5931_v47 = vld [vmem:[%s12215_s6 + $0x730] sm:$0xf] }
 0x13f   :  { %v5868_v61 = vor.u32 %v7610_v45, %v5867_v42  ;;  %v5932_v62 = vor.u32 %v7626_v48, %v5931_v47  ;;  %v6308_v42 = vor.u32 %v7720_v22, %v6307_v21  ;;  %v6299_v45 = vld [vmem:[%s12215_s6 + $0xa10] sm:$0xf]  ;;  %v7718_v47 = vld [vmem:[%s12215_s6 + $0xa14] sm:$0xf0]  ;;  %v5844_v48 = vor.u32 %v7604_v34, %v5843_v32  ;;  %v6595_v32 = vld [vmem:[%s12215_s6 + $0xc60] sm:$0xf] }
 0x140   :  { %4121 = vmatpush.bf16.msrb.mxu0 %v6276_v51  ;;  %4135 = vmatpush.bf16.msrb.mxu3 %v6332_v52  ;;  %v5908_v51 = vor.u32 %v7620_v35, %v5907_v18  ;;  %v6156_v52 = vor.u32 %v7682_v37, %v6155_v36  ;;  %v6300_v15 = vor.u32 %v7718_v47, %v6299_v45  ;;  %v6539_v21 = vld [vmem:[%s12215_s6 + $0xbf0] sm:$0xf]  ;;  %v7792_v34 = vld [vmem:[%s12215_s6 + $0xc64] sm:$0xf0]  ;;  %v6195_v35 = vld [vmem:[%s12215_s6 + $0x940] sm:$0xf] }
 0x141   :  { %v7676_v18 = vld [vmem:[%s12215_s6 + $0x8c4] sm:$0xf0]  ;;  %v9204_v37 = vpack.c.bf16 %v141_v10, %v141_v10 }
 0x142   :  { %4043 = vmatpush.bf16.msra.mxu1 %v5892_v63  ;;  %4056 = vmatpush.bf16.msra.mxu2 %v5956_v33  ;;  %v5923_v63 = vld [vmem:[%s12215_s6 + $0x720] sm:$0xf]  ;;  %v7624_v33 = vld [vmem:[%s12215_s6 + $0x724] sm:$0xf0] }
 0x143   :  { %v5924_v6 = vor.u32 %v7624_v33, %v5923_v63  ;;  %v9139_v63 = vpack.c.bf16 %v8974_v12, %v8974_v12  ;;  %v9143_v33 = vpack.c.bf16 %v8976_v13, %v8976_v13  ;;  %v6139_v12 = vld [vmem:[%s12215_s6 + $0x8d0] sm:$0xf]  ;;  %v7678_v13 = vld [vmem:[%s12215_s6 + $0x8d4] sm:$0xf0]  ;;  %v7692_v36 = vld [vmem:[%s12215_s6 + $0x944] sm:$0xf0] }
 0x144   :  { %4122 = vmatpush.bf16.msrb.mxu0 %v6268_v17  ;;  %4136 = vmatpush.bf16.msrb.mxu3 %v6324_v0  ;;  %v7702_v17 = vld [vmem:[%s12215_s6 + $0x994] sm:$0xf0]  ;;  %v6291_v0 = vld [vmem:[%s12215_s6 + $0xa00] sm:$0xf]  ;;  %v6140_v22 = vor.u32 %v7678_v13, %v6139_v12  ;;  %v7776_v45 = vld [vmem:[%s12215_s6 + $0xbe4] sm:$0xf0] }
 0x145   :  { %v6236_v8 = vor.u32 %v7702_v17, %v6235_v16  ;;  %v6292_v9 = vor.u32 %v7716_v1, %v6291_v0  ;;  %v6523_v16 = vld [vmem:[%s12215_s6 + $0xbd0] sm:$0xf]  ;;  %v7774_v17 = vld [vmem:[%s12215_s6 + $0xbd4] sm:$0xf0]  ;;  %v6115_v12 = vld [vmem:[%s12215_s6 + $0x8a0] sm:$0xf] }
 0x146   :  { %4044 = vmatpush.bf16.msra.mxu1 %v5884_v19  ;;  %4057 = vmatpush.bf16.msra.mxu2 %v5948_v20  ;;  %v6251_v19 = vld [vmem:[%s12215_s6 + $0x9b0] sm:$0xf]  ;;  %v7706_v20 = vld [vmem:[%s12215_s6 + $0x9b4] sm:$0xf0]  ;;  %v6579_v13 = vld [vmem:[%s12215_s6 + $0xc40] sm:$0xf] }
 0x147   :  { %v7772_v10 = vld [vmem:[%s12215_s6 + $0xbc4] sm:$0xf0] }
 0x148   :  { %4123 = vmatpush.bf16.msrb.mxu0 %v6260_v11  ;;  %4137 = vmatpush.bf16.msrb.mxu3 %v6316_v14  ;;  %v6227_v14 = vld [vmem:[%s12215_s6 + $0x980] sm:$0xf] }
 0x14a   :  { %4045 = vmatpush.bf16.msra.mxu1 %v5876_v39  ;;  %4058 = vmatpush.bf16.msra.mxu2 %v5940_v40  ;;  %v7698_v39 = vld [vmem:[%s12215_s6 + $0x974] sm:$0xf0]  ;;  %v6252_v40 = vor.u32 %v7706_v20, %v6251_v19  ;;  %v7700_v19 = vld [vmem:[%s12215_s6 + $0x984] sm:$0xf0]  ;;  %v6131_v20 = vld [vmem:[%s12215_s6 + $0x8c0] sm:$0xf] }
 0x14b   :  { %v6220_v53 = vor.u32 %v7698_v39, %v6219_v38  ;;  %v6228_v38 = vor.u32 %v7700_v19, %v6227_v14  ;;  %v9206_v39 = vpop.f32.mrf.mxu3  ;;  %v6132_v47 = vor.u32 %v7676_v18, %v6131_v20  ;;  %v6107_v19 = vld [vmem:[%s12215_s6 + $0x890] sm:$0xf]  ;;  %v6099_v18 = vld [vmem:[%s12215_s6 + $0x880] sm:$0xf] }
 0x14c   :  { %4124 = vmatpush.bf16.msrb.mxu0 %v6252_v40  ;;  %4138 = vmatpush.bf16.msrb.mxu3 %v6308_v42  ;;  %v6596_v42 = vor.u32 %v7792_v34, %v6595_v32  ;;  %v6571_v20 = vld [vmem:[%s12215_s6 + $0xc30] sm:$0xf] }
 0x14e   :  { %4046 = vmatpush.bf16.msra.mxu1 %v5868_v61  ;;  %4059 = vmatpush.bf16.msra.mxu2 %v5932_v62  ;;  %v7696_v61 = vld [vmem:[%s12215_s6 + $0x964] sm:$0xf0]  ;;  %v6244_v62 = vor.u32 %v7704_v44, %v6243_v43  ;;  %v140_v43 = vld.sshfl [vmem:[#allocation1 + $0x18] sm:$0xff pattern:$0x73625140] }
 0x14f   :  { %v6212_v3 = vor.u32 %v7696_v61, %v6211_v58  ;;  %v6531_v44 = vld [vmem:[%s12215_s6 + $0xbe0] sm:$0xf]  ;;  %v7690_v58 = vld [vmem:[%s12215_s6 + $0x934] sm:$0xf0]  ;;  %v9233_v61 = vpack.c.bf16 %v140_v43, %v140_v43 }
 0x150   :  { %4125 = vmatpush.bf16.msrb.mxu0 %v6244_v62  ;;  %4139 = vmatpush.bf16.msrb.mxu3 %v6300_v15  ;;  %v6532_v62 = vor.u32 %v7776_v45, %v6531_v44  ;;  %v6188_v1 = vor.u32 %v7690_v58, %v6187_v55  ;;  %v6411_v45 = vld [vmem:[%s12215_s6 + $0xaf0] sm:$0xf]  ;;  %v138_v55 = vld.sshfl [vmem:[#allocation1 + $0x8] sm:$0xff pattern:$0x73625140] }
 0x151   :  { %v139_v58 = vld.sshfl [vmem:[#allocation1 + $0x10] sm:$0xff pattern:$0x73625140] }
 0x152   :  { %4047 = vmatpush.bf16.msra.mxu1 %v5860_v5  ;;  %4060 = vmatpush.bf16.msra.mxu2 %v5924_v6  ;;  %v6603_v5 = vld [vmem:[%s12215_s6 + $0xc70] sm:$0xf]  ;;  %v7794_v6 = vld [vmem:[%s12215_s6 + $0xc74] sm:$0xf0] }
 0x153   :  { %v6604_v11 = vor.u32 %v7794_v6, %v6603_v5  ;;  %v7688_v5 = vld [vmem:[%s12215_s6 + $0x924] sm:$0xf0]  ;;  %v3884_v6 = vpop.f32.mrf.mxu3 }
 0x154   :  { %4126 = vmatpush.bf16.msrb.mxu0 %v6236_v8  ;;  %4140 = vmatpush.bf16.msrb.mxu3 %v6292_v9  ;;  %v6515_v9 = vld [vmem:[%s12215_s6 + $0xbc0] sm:$0xf] }
 0x155   :  { %v6516_v32 = vor.u32 %v7772_v10, %v6515_v9  ;;  %v6467_v6 = vld [vmem:[%s12215_s6 + $0xb60] sm:$0xf] }
 0x156   :  { %4048 = vmatpush.bf16.msra.mxu1 %v5852_v23  ;;  %4061 = vmatpush.bf16.msra.mxu2 %v5916_v24  ;;  %v6204_v23 = vor.u32 %v7694_v7, %v6203_v4  ;;  %v7778_v24 = vld [vmem:[%s12215_s6 + $0xbf4] sm:$0xf0]  ;;  %v6179_v4 = vld [vmem:[%s12215_s6 + $0x920] sm:$0xf]  ;;  %v6524_v7 = vor.u32 %v7774_v17, %v6523_v16  ;;  %v7768_v17 = vld [vmem:[%s12215_s6 + $0xba4] sm:$0xf0] }
 0x157   :  { %v6540_v40 = vor.u32 %v7778_v24, %v6539_v21  ;;  %4141 = vmatmul.bf16.vlgmr.msrb.gmra.mxu3 %v9204_v37  ;;  %v6180_v14 = vor.u32 %v7688_v5, %v6179_v4  ;;  %v7786_v21 = vld [vmem:[%s12215_s6 + $0xc34] sm:$0xf0]  ;;  %v6499_v16 = vld [vmem:[%s12215_s6 + $0xba0] sm:$0xf]  ;;  %v7744_v5 = vld [vmem:[%s12215_s6 + $0xae4] sm:$0xf0] }
 0x158   :  { %4185 = vmatpush.bf16.msra.mxu3 %v6604_v11  ;;  %4127 = vmatpush.bf16.msrb.mxu0 %v6228_v38  ;;  %v7686_v24 = vld [vmem:[%s12215_s6 + $0x914] sm:$0xf0]  ;;  %v6572_v34 = vor.u32 %v7786_v21, %v6571_v20  ;;  %v7684_v38 = vld [vmem:[%s12215_s6 + $0x904] sm:$0xf0]  ;;  %v6403_v4 = vld [vmem:[%s12215_s6 + $0xae0] sm:$0xf]  ;;  %v6500_v9 = vor.u32 %v7768_v17, %v6499_v16 }
 0x159   :  { %v6491_v20 = vld [vmem:[%s12215_s6 + $0xb90] sm:$0xf]  ;;  %v7766_v21 = vld [vmem:[%s12215_s6 + $0xb94] sm:$0xf0]  ;;  %v7740_v16 = vld [vmem:[%s12215_s6 + $0xac4] sm:$0xf0] }
 0x15a   :  { %4049 = vmatpush.bf16.msra.mxu1 %v5844_v48  ;;  %4062 = vmatpush.bf16.msra.mxu2 %v5908_v51  ;;  %v6196_v48 = vor.u32 %v7692_v36, %v6195_v35  ;;  %v6123_v51 = vld [vmem:[%s12215_s6 + $0x8b0] sm:$0xf]  ;;  %v7668_v35 = vld [vmem:[%s12215_s6 + $0x884] sm:$0xf0]  ;;  %v6163_v36 = vld [vmem:[%s12215_s6 + $0x900] sm:$0xf] }
 0x15b   :  { %v6124_v0 = vor.u32 %v7674_v54, %v6123_v51  ;;  %4128 = vmatmul.bf16.vlgmr.msrb.gmra.mxu0 %v9233_v61  ;;  %v7746_v51 = vld [vmem:[%s12215_s6 + $0xaf4] sm:$0xf0]  ;;  %v9320_v54 = vpop.f32.mrf.mxu0  ;;  %v6451_v17 = vld [vmem:[%s12215_s6 + $0xb40] sm:$0xf] }
 0x15c   :  { %4172 = vmatpush.bf16.msra.mxu0 %v6540_v40  ;;  %4186 = vmatpush.bf16.msra.mxu3 %v6596_v42  ;;  %v6507_v40 = vld [vmem:[%s12215_s6 + $0xbb0] sm:$0xf]  ;;  %v7770_v42 = vld [vmem:[%s12215_s6 + $0xbb4] sm:$0xf0] }
 0x15d   :  { %4050 = vmatmul.bf16.vlgmr.msra.gmra.mxu1 %v9139_v63  ;;  %4063 = vmatmul.bf16.vlgmr.msra.gmra.mxu2 %v9143_v33 }
 0x15e   :  { %4094 = vmatpush.bf16.msrb.mxu1 %v6156_v52  ;;  %4107 = vmatpush.bf16.msrb.mxu2 %v6220_v53  ;;  %v6587_v52 = vld [vmem:[%s12215_s6 + $0xc50] sm:$0xf]  ;;  %v7790_v53 = vld [vmem:[%s12215_s6 + $0xc54] sm:$0xf0] }
 0x15f   :  { %v6588_v15 = vor.u32 %v7790_v53, %v6587_v52  ;;  %v6475_v52 = vld [vmem:[%s12215_s6 + $0xb70] sm:$0xf]  ;;  %v7762_v53 = vld [vmem:[%s12215_s6 + $0xb74] sm:$0xf0] }
 0x160   :  { %4173 = vmatpush.bf16.msra.mxu0 %v6532_v62  ;;  %v6508_v62 = vor.u32 %v7770_v42, %v6507_v40  ;;  %v7758_v40 = vld [vmem:[%s12215_s6 + $0xb54] sm:$0xf0]  ;;  %v6492_v42 = vor.u32 %v7766_v21, %v6491_v20  ;;  %v6843_v21 = vld [vmem:[%s12215_s6 + $0xe50] sm:$0xf] }
 0x161   :  { %4187 = vmatpush.bf16.msra.mxu3 %v6588_v15 }
 0x162   :  { %4095 = vmatpush.bf16.msrb.mxu1 %v6148_v2  ;;  %4108 = vmatpush.bf16.msrb.mxu2 %v6212_v3  ;;  %v7788_v2 = vld [vmem:[%s12215_s6 + $0xc44] sm:$0xf0] }
 0x163   :  { %v7672_v3 = vld [vmem:[%s12215_s6 + $0x8a4] sm:$0xf0]  ;;  %v6580_v8 = vor.u32 %v7788_v2, %v6579_v13  ;;  %v7782_v13 = vld [vmem:[%s12215_s6 + $0xc14] sm:$0xf0]  ;;  %v6412_v2 = vor.u32 %v7746_v51, %v6411_v45  ;;  %v6387_v51 = vld [vmem:[%s12215_s6 + $0xac0] sm:$0xf] }
 0x164   :  { %v6116_v11 = vor.u32 %v7672_v3, %v6115_v12  ;;  %4174 = vmatpush.bf16.msra.mxu0 %v6524_v7  ;;  %v6555_v12 = vld [vmem:[%s12215_s6 + $0xc10] sm:$0xf]  ;;  %v6476_v3 = vor.u32 %v7762_v53, %v6475_v52  ;;  %v7760_v7 = vld [vmem:[%s12215_s6 + $0xb64] sm:$0xf0] }
 0x165   :  { %4188 = vmatpush.bf16.msra.mxu3 %v6580_v8  ;;  %v9346_v8 = vpop.f32.mrf.mxu3  ;;  %v6556_v10 = vor.u32 %v7782_v13, %v6555_v12  ;;  %v6795_v52 = vld [vmem:[%s12215_s6 + $0xdf0] sm:$0xf] }
 0x166   :  { %4096 = vmatpush.bf16.msrb.mxu1 %v6140_v22  ;;  %4109 = vmatpush.bf16.msrb.mxu2 %v6204_v23  ;;  %v7670_v22 = vld [vmem:[%s12215_s6 + $0x894] sm:$0xf0]  ;;  %v6171_v23 = vld [vmem:[%s12215_s6 + $0x910] sm:$0xf] }
 0x167   :  { %v6108_v43 = vor.u32 %v7670_v22, %v6107_v19  ;;  %v6172_v44 = vor.u32 %v7686_v24, %v6171_v23  ;;  %v9353_v19 = vpack.c.bf16 %v139_v58, %v139_v58  ;;  %v6547_v22 = vld [vmem:[%s12215_s6 + $0xc00] sm:$0xf]  ;;  %v6395_v23 = vld [vmem:[%s12215_s6 + $0xad0] sm:$0xf]  ;;  %v7780_v24 = vld [vmem:[%s12215_s6 + $0xc04] sm:$0xf0] }
 0x168   :  { %4175 = vmatpush.bf16.msra.mxu0 %v6516_v32  ;;  %v6404_v32 = vor.u32 %v7744_v5, %v6403_v4  ;;  %v7842_v58 = vld [vmem:[%s12215_s6 + $0xdf4] sm:$0xf0]  ;;  %v6379_v4 = vld [vmem:[%s12215_s6 + $0xab0] sm:$0xf] }
 0x169   :  { %4189 = vmatpush.bf16.msra.mxu3 %v6572_v34  ;;  %v6468_v34 = vor.u32 %v7760_v7, %v6467_v6  ;;  %v6796_v13 = vor.u32 %v7842_v58, %v6795_v52  ;;  %v7738_v5 = vld [vmem:[%s12215_s6 + $0xab4] sm:$0xf0]  ;;  %v6787_v6 = vld [vmem:[%s12215_s6 + $0xde0] sm:$0xf]  ;;  %v7840_v7 = vld [vmem:[%s12215_s6 + $0xde4] sm:$0xf0] }
 0x16a   :  { %4097 = vmatpush.bf16.msrb.mxu1 %v6132_v47  ;;  %4110 = vmatpush.bf16.msrb.mxu2 %v6196_v48  ;;  %v6563_v47 = vld [vmem:[%s12215_s6 + $0xc20] sm:$0xf]  ;;  %v7784_v48 = vld [vmem:[%s12215_s6 + $0xc24] sm:$0xf0] }
 0x16b   :  { %v6564_v15 = vor.u32 %v7784_v48, %v6563_v47  ;;  %v6483_v47 = vld [vmem:[%s12215_s6 + $0xb80] sm:$0xf]  ;;  %v7764_v48 = vld [vmem:[%s12215_s6 + $0xb84] sm:$0xf0] }
 0x16c   :  { %4176 = vmatpush.bf16.msra.mxu0 %v6508_v62  ;;  %v6851_v62 = vld [vmem:[%s12215_s6 + $0xe60] sm:$0xf] }
 0x16d   :  { %4190 = vmatpush.bf16.msra.mxu3 %v6564_v15  ;;  %v7856_v15 = vld [vmem:[%s12215_s6 + $0xe64] sm:$0xf0]  ;;  %v3936_v12 = vpop.f32.mrf.mxu3 }
 0x16e   :  { %4098 = vmatpush.bf16.msrb.mxu1 %v6124_v0  ;;  %4111 = vmatpush.bf16.msrb.mxu2 %v6188_v1  ;;  %v6100_v0 = vor.u32 %v7668_v35, %v6099_v18  ;;  %v6164_v1 = vor.u32 %v7684_v38, %v6163_v36  ;;  %v7742_v18 = vld [vmem:[%s12215_s6 + $0xad4] sm:$0xf0]  ;;  %v6459_v35 = vld [vmem:[%s12215_s6 + $0xb50] sm:$0xf]  ;;  %v3923_v38 = vpop.f32.mrf.mxu0 }
 0x16f   :  { %v6859_v36 = vld [vmem:[%s12215_s6 + $0xe70] sm:$0xf]  ;;  %v6396_v53 = vor.u32 %v7742_v18, %v6395_v23  ;;  %v7754_v23 = vld [vmem:[%s12215_s6 + $0xb34] sm:$0xf0]  ;;  %v6788_v18 = vor.u32 %v7840_v7, %v6787_v6  ;;  %v6355_v7 = vld [vmem:[%s12215_s6 + $0xa80] sm:$0xf] }
 0x170   :  { %4177 = vmatpush.bf16.msra.mxu0 %v6500_v9  ;;  %v7838_v38 = vld [vmem:[%s12215_s6 + $0xdd4] sm:$0xf0] }
 0x171   :  { %4191 = vmatpush.bf16.msra.mxu3 %v6556_v10  ;;  %v6388_v10 = vor.u32 %v7740_v16, %v6387_v51  ;;  %v7752_v51 = vld [vmem:[%s12215_s6 + $0xb24] sm:$0xf0]  ;;  %v7850_v12 = vld [vmem:[%s12215_s6 + $0xe34] sm:$0xf0] }
 0x172   :  { %4099 = vmatpush.bf16.msrb.mxu1 %v6116_v11  ;;  %4112 = vmatpush.bf16.msrb.mxu2 %v6180_v14  ;;  %v100_v11 = vld [vmem:[%s12209_s0 + $0x30] sm:$0xff]  ;;  %v9351_v14 = vpack.c.bf16 %v138_v55, %v138_v55  ;;  %v6460_v55 = vor.u32 %v7758_v40, %v6459_v35  ;;  %v6835_v40 = vld [vmem:[%s12215_s6 + $0xe40] sm:$0xf] }
 0x173   :  { %145 = vst [vmem:[#allocation1] ss:$4 sm:$0xff] %v100_v11 }
 0x174   :  { %4178 = vmatpush.bf16.msra.mxu0 %v6492_v42  ;;  %v7852_v42 = vld [vmem:[%s12215_s6 + $0xe44] sm:$0xf0] }
 0x176   :  { %4100 = vmatpush.bf16.msrb.mxu1 %v6108_v43  ;;  %4113 = vmatpush.bf16.msrb.mxu2 %v6172_v44  ;;  %v6548_v43 = vor.u32 %v7780_v24, %v6547_v22  ;;  %v7858_v44 = vld [vmem:[%s12215_s6 + $0xe74] sm:$0xf0]  ;;  %v6443_v22 = vld [vmem:[%s12215_s6 + $0xb30] sm:$0xf] }
 0x177   :  { %v6860_v45 = vor.u32 %v7858_v44, %v6859_v36  ;;  %v6779_v36 = vld [vmem:[%s12215_s6 + $0xdd0] sm:$0xf]  ;;  %v6444_v44 = vor.u32 %v7754_v23, %v6443_v22  ;;  %v6419_v23 = vld [vmem:[%s12215_s6 + $0xb00] sm:$0xf] }
 0x178   :  { %4192 = vmatpush.bf16.msra.mxu3 %v6548_v43  ;;  %v6380_v43 = vor.u32 %v7738_v5, %v6379_v4  ;;  %v7750_v4 = vld [vmem:[%s12215_s6 + $0xb14] sm:$0xf0] }
 0x17a   :  { %4101 = vmatpush.bf16.msrb.mxu1 %v6100_v0  ;;  %4114 = vmatpush.bf16.msrb.mxu2 %v6164_v1  ;;  %v7756_v0 = vld [vmem:[%s12215_s6 + $0xb44] sm:$0xf0]  ;;  %v6484_v1 = vor.u32 %v7764_v48, %v6483_v47  ;;  %v858_v9 = vpop.f32.mrf.mxu1  ;;  %v147_v20 = vld.sshfl [vmem:[#allocation1] sm:$0xff pattern:$0x73625140] }
 0x17b   :  { %v6452_v11 = vor.u32 %v7756_v0, %v6451_v17  ;;  %v9438_v24 = vpack.c.bf16 %v147_v20, %v147_v20  ;;  %v7736_v47 = vld [vmem:[%s12215_s6 + $0xaa4] sm:$0xf0]  ;;  %v6435_v48 = vld [vmem:[%s12215_s6 + $0xb20] sm:$0xf]  ;;  %v3883_v58 = vadd.f32 %v9206_v39, %v858_v9  ;;  %v6827_v39 = vld [vmem:[%s12215_s6 + $0xe30] sm:$0xf] }
 0x17c   :  { %4237 = vmatpush.bf16.msrb.mxu3 %v6860_v45  ;;  %4179 = vmatpush.bf16.msra.mxu0 %v6484_v1  ;;  %v6371_v45 = vld [vmem:[%s12215_s6 + $0xaa0] sm:$0xf]  ;;  %v6436_v0 = vor.u32 %v7752_v51, %v6435_v48  ;;  %v6363_v1 = vld [vmem:[%s12215_s6 + $0xa90] sm:$0xf]  ;;  %v6828_v6 = vor.u32 %v7850_v12, %v6827_v39  ;;  %v7732_v9 = vld [vmem:[%s12215_s6 + $0xa84] sm:$0xf0] }
 0x17d   :  { %4102 = vmatmul.bf16.vlgmr.msrb.gmra.mxu1 %v9351_v14  ;;  %4115 = vmatmul.bf16.vlgmr.msrb.gmra.mxu2 %v9353_v19  ;;  %v6372_v17 = vor.u32 %v7736_v47, %v6371_v45  ;;  %v7834_v20 = vld [vmem:[%s12215_s6 + $0xdb4] sm:$0xf0]  ;;  %v6755_v47 = vld [vmem:[%s12215_s6 + $0xda0] sm:$0xf]  ;;  %v7832_v51 = vld [vmem:[%s12215_s6 + $0xda4] sm:$0xf0] }
 0x17e   :  { %4146 = vmatpush.bf16.msra.mxu1 %v6412_v2  ;;  %4159 = vmatpush.bf16.msra.mxu2 %v6476_v3  ;;  %v6852_v2 = vor.u32 %v7856_v15, %v6851_v62  ;;  %v144_v3 = vld.sshfl [vmem:[#allocation1 + $0x38] sm:$0xff pattern:$0x73625140]  ;;  %v6771_v62 = vld [vmem:[%s12215_s6 + $0xdc0] sm:$0xf] }
 0x17f   :  { %4193 = vmatmul.bf16.vlgmr.msra.gmra.mxu3 %v9438_v24  ;;  %v7836_v15 = vld [vmem:[%s12215_s6 + $0xdc4] sm:$0xf0] }
 0x180   :  { %4224 = vmatpush.bf16.msrb.mxu0 %v6796_v13  ;;  %4238 = vmatpush.bf16.msrb.mxu3 %v6852_v2  ;;  %v9471_v52 = vpop.f32.mrf.mxu2  ;;  %v7734_v2 = vld [vmem:[%s12215_s6 + $0xa94] sm:$0xf0]  ;;  %v6772_v5 = vor.u32 %v7836_v15, %v6771_v62  ;;  %v142_v15 = vld.sshfl [vmem:[#allocation1 + $0x28] sm:$0xff pattern:$0x73625140] }
 0x182   :  { %4147 = vmatpush.bf16.msra.mxu1 %v6404_v32  ;;  %4160 = vmatpush.bf16.msra.mxu2 %v6468_v34  ;;  %v9440_v32 = vpack.c.bf16 %v144_v3, %v144_v3  ;;  %v7854_v34 = vld [vmem:[%s12215_s6 + $0xe54] sm:$0xf0]  ;;  %v3895_v16 = vpop.f32.mrf.mxu1  ;;  %v6427_v3 = vld [vmem:[%s12215_s6 + $0xb10] sm:$0xf] }
 0x183   :  { %v6844_v35 = vor.u32 %v7854_v34, %v6843_v21  ;;  %v3896_v13 = vadd.f32 %v3895_v16, %v3883_v58  ;;  %v6364_v21 = vor.u32 %v7734_v2, %v6363_v1  ;;  %v6428_v22 = vor.u32 %v7750_v4, %v6427_v3  ;;  %v6819_v34 = vld [vmem:[%s12215_s6 + $0xe20] sm:$0xf]  ;;  %v143_v16 = vld.sshfl [vmem:[#allocation1 + $0x30] sm:$0xff pattern:$0x73625140] }
 0x184   :  { %4180 = vmatmul.bf16.vlgmr.msra.gmra.mxu0 %v9440_v32  ;;  %v6356_v58 = vor.u32 %v7732_v9, %v6355_v7  ;;  %v7808_v2 = vld [vmem:[%s12215_s6 + $0xce4] sm:$0xf0]  ;;  %v6723_v3 = vld [vmem:[%s12215_s6 + $0xd60] sm:$0xf]  ;;  %v101_v7 = vld [vmem:[%s12209_s0 + $0x38] sm:$0xff] }
 0x185   :  { %4225 = vmatpush.bf16.msrb.mxu0 %v6788_v18  ;;  %4239 = vmatpush.bf16.msrb.mxu3 %v6844_v35  ;;  %v7848_v18 = vld [vmem:[%s12215_s6 + $0xe24] sm:$0xf0]  ;;  %146 = vst [vmem:[#allocation1 + $0x20] ss:$4 sm:$0xff] %v101_v7  ;;  %v7802_v7 = vld [vmem:[%s12215_s6 + $0xcb4] sm:$0xf0] }
 0x186   :  { %4148 = vmatpush.bf16.msra.mxu1 %v6396_v53  ;;  %4161 = vmatpush.bf16.msra.mxu2 %v6460_v55  ;;  %v6780_v53 = vor.u32 %v7838_v38, %v6779_v36  ;;  %v6836_v55 = vor.u32 %v7852_v42, %v6835_v40  ;;  %v7748_v35 = vld [vmem:[%s12215_s6 + $0xb04] sm:$0xf0]  ;;  %v6667_v36 = vld [vmem:[%s12215_s6 + $0xcf0] sm:$0xf]  ;;  %v7810_v38 = vld [vmem:[%s12215_s6 + $0xcf4] sm:$0xf0]  ;;  %v6820_v45 = vor.u32 %v7848_v18, %v6819_v34 }
 0x187   :  { %v6731_v42 = vld [vmem:[%s12215_s6 + $0xd70] sm:$0xf]  ;;  %v6420_v62 = vor.u32 %v7748_v35, %v6419_v23  ;;  %v6668_v39 = vor.u32 %v7810_v38, %v6667_v36  ;;  %v7824_v4 = vld [vmem:[%s12215_s6 + $0xd64] sm:$0xf0]  ;;  %v7806_v36 = vld [vmem:[%s12215_s6 + $0xcd4] sm:$0xf0] }
 0x188   :  { %v3908_v40 = vpop.f32.mrf.mxu2  ;;  %v7844_v23 = vld [vmem:[%s12215_s6 + $0xe04] sm:$0xf0]  ;;  %v6724_v35 = vor.u32 %v7824_v4, %v6723_v3  ;;  %v7115_v38 = vld [vmem:[%s12215_s6 + $0x1070] sm:$0xf] }
 0x189   :  { %4226 = vmatpush.bf16.msrb.mxu0 %v6780_v53  ;;  %4240 = vmatpush.bf16.msrb.mxu3 %v6836_v55  ;;  %v3909_v48 = vadd.f32 %v3908_v40, %v3896_v13  ;;  %v6811_v53 = vld [vmem:[%s12215_s6 + $0xe10] sm:$0xf]  ;;  %v7846_v55 = vld [vmem:[%s12215_s6 + $0xe14] sm:$0xf0]  ;;  %v6659_v13 = vld [vmem:[%s12215_s6 + $0xce0] sm:$0xf] }
 0x18a   :  { %4149 = vmatpush.bf16.msra.mxu1 %v6388_v10  ;;  %4162 = vmatpush.bf16.msra.mxu2 %v6452_v11  ;;  %v9504_v10 = vpop.f32.mrf.mxu0  ;;  %v6763_v11 = vld [vmem:[%s12215_s6 + $0xdb0] sm:$0xf]  ;;  %v6660_v18 = vor.u32 %v7808_v2, %v6659_v13  ;;  %v7922_v40 = vld [vmem:[%s12215_s6 + $0x1074] sm:$0xf0]  ;;  %v6707_v13 = vld [vmem:[%s12215_s6 + $0xd40] sm:$0xf] }
 0x18b   :  { %v3922_v1 = vadd.f32 %v9320_v54, %v3909_v48  ;;  %v6756_v54 = vor.u32 %v7832_v51, %v6755_v47  ;;  %v7116_v48 = vor.u32 %v7922_v40, %v7115_v38  ;;  %v6739_v51 = vld [vmem:[%s12215_s6 + $0xd80] sm:$0xf]  ;;  %v7820_v2 = vld [vmem:[%s12215_s6 + $0xd44] sm:$0xf0] }
 0x18d   :  { %4227 = vmatpush.bf16.msrb.mxu0 %v6772_v5  ;;  %4241 = vmatpush.bf16.msrb.mxu3 %v6828_v6  ;;  %v6812_v5 = vor.u32 %v7846_v55, %v6811_v53  ;;  %v6747_v6 = vld [vmem:[%s12215_s6 + $0xd90] sm:$0xf]  ;;  %v9570_v9 = vadd.f32 %v9346_v8, %v3922_v1  ;;  %v7828_v53 = vld [vmem:[%s12215_s6 + $0xd84] sm:$0xf0]  ;;  %v7107_v1 = vld [vmem:[%s12215_s6 + $0x1060] sm:$0xf] }
 0x18e   :  { %4150 = vmatpush.bf16.msra.mxu1 %v6380_v43  ;;  %4163 = vmatpush.bf16.msra.mxu2 %v6444_v44  ;;  %v7826_v43 = vld [vmem:[%s12215_s6 + $0xd74] sm:$0xf0]  ;;  %v6764_v44 = vor.u32 %v7834_v20, %v6763_v11  ;;  %v9572_v11 = vpack.c.bf16 %v142_v15, %v142_v15  ;;  %v9574_v20 = vpack.c.bf16 %v143_v16, %v143_v16  ;;  %v6651_v8 = vld [vmem:[%s12215_s6 + $0xcd0] sm:$0xf] }
 0x18f   :  { %v6732_v12 = vor.u32 %v7826_v43, %v6731_v42  ;;  %v6715_v42 = vld [vmem:[%s12215_s6 + $0xd50] sm:$0xf]  ;;  %v7822_v43 = vld [vmem:[%s12215_s6 + $0xd54] sm:$0xf0]  ;;  %v6652_v15 = vor.u32 %v7806_v36, %v6651_v8  ;;  %v6740_v3 = vor.u32 %v7828_v53, %v6739_v51  ;;  %v7091_v51 = vld [vmem:[%s12215_s6 + $0x1040] sm:$0xf] }
 0x190   :  { %v7051_v55 = vld [vmem:[%s12215_s6 + $0xff0] sm:$0xf]  ;;  %v6716_v16 = vor.u32 %v7822_v43, %v6715_v42  ;;  %v151_v8 = vld.sshfl [vmem:[#allocation1 + $0x20] sm:$0xff pattern:$0x73625140] }
 0x191   :  { %4228 = vmatpush.bf16.msrb.mxu0 %v6764_v44  ;;  %4242 = vmatpush.bf16.msrb.mxu3 %v6820_v45  ;;  %v3910_v44 = vpop.f32.mrf.mxu2  ;;  %v7818_v36 = vld [vmem:[%s12215_s6 + $0xd34] sm:$0xf0]  ;;  %v9656_v38 = vpack.c.bf16 %v151_v8, %v151_v8  ;;  %v7916_v53 = vld [vmem:[%s12215_s6 + $0x1044] sm:$0xf0] }
 0x192   :  { %4151 = vmatpush.bf16.msra.mxu1 %v6372_v17  ;;  %4164 = vmatpush.bf16.msra.mxu2 %v6436_v0  ;;  %v3897_v17 = vpop.f32.mrf.mxu1  ;;  %v9548_v0 = vpop.f32.mrf.mxu3  ;;  %v7918_v42 = vld [vmem:[%s12215_s6 + $0x1054] sm:$0xf0] }
 0x193   :  { %v3975_v34 = vpop.f32.mrf.mxu0  ;;  %v6643_v17 = vld [vmem:[%s12215_s6 + $0xcc0] sm:$0xf] }
 0x194   :  { %v6708_v34 = vor.u32 %v7820_v2, %v6707_v13  ;;  %v7900_v13 = vld [vmem:[%s12215_s6 + $0xfc4] sm:$0xf0] }
 0x195   :  { %4229 = vmatpush.bf16.msrb.mxu0 %v6756_v54  ;;  %4243 = vmatpush.bf16.msrb.mxu3 %v6812_v5  ;;  %v150_v5 = vld.sshfl [vmem:[#allocation1 + $0x18] sm:$0xff pattern:$0x73625140] }
 0x196   :  { %4152 = vmatpush.bf16.msra.mxu1 %v6364_v21  ;;  %4165 = vmatpush.bf16.msra.mxu2 %v6428_v22  ;;  %v7830_v21 = vld [vmem:[%s12215_s6 + $0xd94] sm:$0xf0]  ;;  %v6803_v22 = vld [vmem:[%s12215_s6 + $0xe00] sm:$0xf]  ;;  %v9658_v40 = vpack.c.bf16 %v150_v5, %v150_v5 }
 0x197   :  { %v6748_v45 = vor.u32 %v7830_v21, %v6747_v6  ;;  %v6804_v47 = vor.u32 %v7844_v23, %v6803_v22  ;;  %v6635_v6 = vld [vmem:[%s12215_s6 + $0xcb0] sm:$0xf]  ;;  %v7043_v21 = vld [vmem:[%s12215_s6 + $0xfe0] sm:$0xf]  ;;  %v7904_v22 = vld [vmem:[%s12215_s6 + $0xfe4] sm:$0xf0] }
 0x198   :  { %v7044_v43 = vor.u32 %v7904_v22, %v7043_v21  ;;  %v7914_v5 = vld [vmem:[%s12215_s6 + $0x1034] sm:$0xf0]  ;;  %v6683_v21 = vld [vmem:[%s12215_s6 + $0xd10] sm:$0xf] }
 0x199   :  { %4230 = vmatpush.bf16.msrb.mxu0 %v6748_v45  ;;  %4244 = vmatpush.bf16.msrb.mxu3 %v6804_v47  ;;  %v7035_v45 = vld [vmem:[%s12215_s6 + $0xfd0] sm:$0xf]  ;;  %v7814_v22 = vld [vmem:[%s12215_s6 + $0xd14] sm:$0xf0] }
 0x19a   :  { %4153 = vmatpush.bf16.msra.mxu1 %v6356_v58  ;;  %4166 = vmatpush.bf16.msra.mxu2 %v6420_v62  ;;  %v7906_v58 = vld [vmem:[%s12215_s6 + $0xff4] sm:$0xf0]  ;;  %v3988_v62 = vpop.f32.mrf.mxu3  ;;  %v3947_v47 = vpop.f32.mrf.mxu1 }
 0x19b   :  { %v7052_v4 = vor.u32 %v7906_v58, %v7051_v55  ;;  %v3948_v55 = vadd.f32 %v3947_v47, %v9570_v9  ;;  %v6636_v58 = vor.u32 %v7802_v7, %v6635_v6  ;;  %v7816_v9 = vld [vmem:[%s12215_s6 + $0xd24] sm:$0xf0]  ;;  %v7798_v7 = vld [vmem:[%s12215_s6 + $0xc94] sm:$0xf0]  ;;  %v6684_v47 = vor.u32 %v7814_v22, %v6683_v21  ;;  %v6915_v21 = vld [vmem:[%s12215_s6 + $0xee0] sm:$0xf] }
 0x19c   :  { %4245 = vmatmul.bf16.vlgmr.msrb.gmra.mxu3 %v9656_v38  ;;  %v7872_v22 = vld [vmem:[%s12215_s6 + $0xee4] sm:$0xf0] }
 0x19d   :  { %4154 = vmatmul.bf16.vlgmr.msra.gmra.mxu1 %v9572_v11  ;;  %4167 = vmatmul.bf16.vlgmr.msra.gmra.mxu2 %v9574_v20 }
 0x19e   :  { %4198 = vmatpush.bf16.msrb.mxu1 %v6668_v39  ;;  %4211 = vmatpush.bf16.msrb.mxu2 %v6732_v12  ;;  %v7920_v39 = vld [vmem:[%s12215_s6 + $0x1064] sm:$0xf0] }
 0x19f   :  { %v7804_v12 = vld [vmem:[%s12215_s6 + $0xcc4] sm:$0xf0]  ;;  %4289 = vmatpush.bf16.msra.mxu3 %v7116_v48  ;;  %v7108_v54 = vor.u32 %v7920_v39, %v7107_v1  ;;  %4231 = vmatpush.bf16.msrb.mxu0 %v6740_v3  ;;  %v7902_v48 = vld [vmem:[%s12215_s6 + $0xfd4] sm:$0xf0]  ;;  %v7092_v39 = vor.u32 %v7916_v53, %v7091_v51  ;;  %v7075_v51 = vld [vmem:[%s12215_s6 + $0x1020] sm:$0xf] }
 0x1a0   :  { %v6644_v23 = vor.u32 %v7804_v12, %v6643_v17  ;;  %v6691_v17 = vld [vmem:[%s12215_s6 + $0xd20] sm:$0xf]  ;;  %v7036_v1 = vor.u32 %v7902_v48, %v7035_v45  ;;  %v3960_v6 = vpop.f32.mrf.mxu2  ;;  %v7912_v53 = vld [vmem:[%s12215_s6 + $0x1024] sm:$0xf0] }
 0x1a1   :  { %v7027_v12 = vld [vmem:[%s12215_s6 + $0xfc0] sm:$0xf]  ;;  %v6692_v3 = vor.u32 %v7816_v9, %v6691_v17  ;;  %v9754_v17 = vpop.f32.mrf.mxu0 }
 0x1a2   :  { %4199 = vmatpush.bf16.msrb.mxu1 %v6660_v18  ;;  %4212 = vmatpush.bf16.msrb.mxu2 %v6724_v35  ;;  %v7099_v18 = vld [vmem:[%s12215_s6 + $0x1050] sm:$0xf]  ;;  %v6675_v48 = vld [vmem:[%s12215_s6 + $0xd00] sm:$0xf] }
 0x1a3   :  { %v6699_v35 = vld [vmem:[%s12215_s6 + $0xd30] sm:$0xf]  ;;  %4276 = vmatpush.bf16.msra.mxu0 %v7052_v4  ;;  %4290 = vmatpush.bf16.msra.mxu3 %v7108_v54  ;;  %v7100_v44 = vor.u32 %v7918_v42, %v7099_v18  ;;  %v6611_v18 = vld [vmem:[%s12215_s6 + $0xc80] sm:$0xf] }
 0x1a4   :  { %v6700_v62 = vor.u32 %v7818_v36, %v6699_v35  ;;  %4232 = vmatmul.bf16.vlgmr.msrb.gmra.mxu0 %v9658_v40  ;;  %v6619_v4 = vld [vmem:[%s12215_s6 + $0xc90] sm:$0xf]  ;;  %v7796_v35 = vld [vmem:[%s12215_s6 + $0xc84] sm:$0xf0]  ;;  %v3949_v36 = vpop.f32.mrf.mxu1 }
 0x1a5   :  { %v7083_v54 = vld [vmem:[%s12215_s6 + $0x1030] sm:$0xf]  ;;  %v6620_v45 = vor.u32 %v7798_v7, %v6619_v4  ;;  %v148_v4 = vld.sshfl [vmem:[#allocation1 + $0x8] sm:$0xff pattern:$0x73625140] }
 0x1a6   :  { %4200 = vmatpush.bf16.msrb.mxu1 %v6652_v15  ;;  %4213 = vmatpush.bf16.msrb.mxu2 %v6716_v16  ;;  %v6627_v15 = vld [vmem:[%s12215_s6 + $0xca0] sm:$0xf]  ;;  %v7800_v16 = vld [vmem:[%s12215_s6 + $0xca4] sm:$0xf0]  ;;  %v7084_v8 = vor.u32 %v7914_v5, %v7083_v54  ;;  %v7019_v42 = vld [vmem:[%s12215_s6 + $0xfb0] sm:$0xf]  ;;  %v9768_v5 = vpop.f32.mrf.mxu3 }
 0x1a7   :  { %4277 = vmatpush.bf16.msra.mxu0 %v7044_v43  ;;  %4291 = vmatpush.bf16.msra.mxu3 %v7100_v44  ;;  %v6628_v2 = vor.u32 %v7800_v16, %v6627_v15  ;;  %v7898_v43 = vld [vmem:[%s12215_s6 + $0xfb4] sm:$0xf0]  ;;  %v6987_v15 = vld [vmem:[%s12215_s6 + $0xf70] sm:$0xf] }
 0x1a8   :  { %v7890_v16 = vld [vmem:[%s12215_s6 + $0xf74] sm:$0xf0]  ;;  %v7020_v9 = vor.u32 %v7898_v43, %v7019_v42  ;;  %v149_v54 = vld.sshfl [vmem:[#allocation1 + $0x10] sm:$0xff pattern:$0x73625140]  ;;  %v102_v42 = vld [vmem:[%s12209_s0 + $0x40] sm:$0xff]  ;;  %v9788_v43 = vpack.c.bf16 %v148_v4, %v148_v4 }
 0x1a9   :  { %v6988_v7 = vor.u32 %v7890_v16, %v6987_v15  ;;  %v7003_v36 = vld [vmem:[%s12215_s6 + $0xf90] sm:$0xf]  ;;  %v7986_v15 = vld [vmem:[%s12215_s6 + $0x1274] sm:$0xf0]  ;;  %155 = vst [vmem:[#allocation1] ss:$4 sm:$0xff] %v102_v42 }
 0x1aa   :  { %4201 = vmatpush.bf16.msrb.mxu1 %v6644_v23  ;;  %4214 = vmatpush.bf16.msrb.mxu2 %v6708_v34  ;;  %v3961_v23 = vadd.f32 %v3960_v6, %v3948_v55  ;;  %v7028_v34 = vor.u32 %v7900_v13, %v7027_v12  ;;  %v6923_v55 = vld [vmem:[%s12215_s6 + $0xef0] sm:$0xf]  ;;  %v7910_v13 = vld [vmem:[%s12215_s6 + $0x1014] sm:$0xf0] }
 0x1ab   :  { %4278 = vmatpush.bf16.msra.mxu0 %v7036_v1  ;;  %4292 = vmatpush.bf16.msra.mxu3 %v7092_v39  ;;  %v7076_v1 = vor.u32 %v7912_v53, %v7075_v51  ;;  %v7011_v39 = vld [vmem:[%s12215_s6 + $0xfa0] sm:$0xf]  ;;  %v7067_v12 = vld [vmem:[%s12215_s6 + $0x1010] sm:$0xf]  ;;  %v6916_v53 = vor.u32 %v7872_v22, %v6915_v21  ;;  %v7970_v4 = vld [vmem:[%s12215_s6 + $0x11f4] sm:$0xf0] }
 0x1ac   :  { %v3974_v44 = vadd.f32 %v9504_v10, %v3961_v23  ;;  %v7812_v10 = vld [vmem:[%s12215_s6 + $0xd04] sm:$0xf0]  ;;  %v6979_v23 = vld [vmem:[%s12215_s6 + $0xf60] sm:$0xf]  ;;  %v6907_v51 = vld [vmem:[%s12215_s6 + $0xed0] sm:$0xf] }
 0x1ad   :  { %v6971_v16 = vld [vmem:[%s12215_s6 + $0xf50] sm:$0xf]  ;;  %v6899_v21 = vld [vmem:[%s12215_s6 + $0xec0] sm:$0xf] }
 0x1ae   :  { %4202 = vmatpush.bf16.msrb.mxu1 %v6636_v58  ;;  %4215 = vmatpush.bf16.msrb.mxu2 %v6700_v62  ;;  %v7874_v58 = vld [vmem:[%s12215_s6 + $0xef4] sm:$0xf0]  ;;  %v9746_v62 = vadd.f32 %v9548_v0, %v3974_v44  ;;  %v7896_v0 = vld [vmem:[%s12215_s6 + $0xfa4] sm:$0xf0]  ;;  %v9790_v44 = vpack.c.bf16 %v149_v54, %v149_v54  ;;  %v4040_v54 = vpop.f32.mrf.mxu3  ;;  %v7363_v22 = vld [vmem:[%s12215_s6 + $0x1260] sm:$0xf] }
 0x1af   :  { %4279 = vmatpush.bf16.msra.mxu0 %v7028_v34  ;;  %4293 = vmatpush.bf16.msra.mxu3 %v7084_v8  ;;  %v6924_v6 = vor.u32 %v7874_v58, %v6923_v55  ;;  %v3962_v34 = vpop.f32.mrf.mxu2  ;;  %v7888_v8 = vld [vmem:[%s12215_s6 + $0xf64] sm:$0xf0]  ;;  %v7870_v55 = vld [vmem:[%s12215_s6 + $0xed4] sm:$0xf0]  ;;  %v7371_v58 = vld [vmem:[%s12215_s6 + $0x1270] sm:$0xf] }
 0x1b0   :  { %v7868_v34 = vld [vmem:[%s12215_s6 + $0xec4] sm:$0xf0]  ;;  %v7347_v54 = vld [vmem:[%s12215_s6 + $0x1240] sm:$0xf] }
 0x1b2   :  { %4203 = vmatpush.bf16.msrb.mxu1 %v6628_v2  ;;  %4216 = vmatpush.bf16.msrb.mxu2 %v6692_v3  ;;  %v6612_v2 = vor.u32 %v7796_v35, %v6611_v18  ;;  %v6676_v3 = vor.u32 %v7812_v10, %v6675_v48  ;;  %v7012_v18 = vor.u32 %v7896_v0, %v7011_v39  ;;  %v7908_v48 = vld [vmem:[%s12215_s6 + $0x1004] sm:$0xf0]  ;;  %v4027_v0 = vpop.f32.mrf.mxu0 }
 0x1b3   :  { %4280 = vmatpush.bf16.msra.mxu0 %v7020_v9  ;;  %4294 = vmatpush.bf16.msra.mxu3 %v7076_v1  ;;  %v7068_v35 = vor.u32 %v7910_v13, %v7067_v12  ;;  %v6980_v10 = vor.u32 %v7888_v8, %v6979_v23  ;;  %v7886_v9 = vld [vmem:[%s12215_s6 + $0xf54] sm:$0xf0]  ;;  %v7372_v12 = vor.u32 %v7986_v15, %v7371_v58  ;;  %v6995_v13 = vld [vmem:[%s12215_s6 + $0xf80] sm:$0xf]  ;;  %v7984_v23 = vld [vmem:[%s12215_s6 + $0x1264] sm:$0xf0] }
 0x1b4   :  { %v6963_v8 = vld [vmem:[%s12215_s6 + $0xf40] sm:$0xf]  ;;  %v7364_v42 = vor.u32 %v7984_v23, %v7363_v22  ;;  %v7355_v15 = vld [vmem:[%s12215_s6 + $0x1250] sm:$0xf]  ;;  %v7982_v0 = vld [vmem:[%s12215_s6 + $0x1254] sm:$0xf0] }
 0x1b5   :  { %v157_v58 = vld.sshfl [vmem:[#allocation1] sm:$0xff pattern:$0x73625140] }
 0x1b6   :  { %4204 = vmatpush.bf16.msrb.mxu1 %v6620_v45  ;;  %4217 = vmatpush.bf16.msrb.mxu2 %v6684_v47  ;;  %v7894_v45 = vld [vmem:[%s12215_s6 + $0xf94] sm:$0xf0]  ;;  %v7059_v47 = vld [vmem:[%s12215_s6 + $0x1000] sm:$0xf] }
 0x1b7   :  { %4281 = vmatpush.bf16.msra.mxu0 %v7012_v18  ;;  %4295 = vmatpush.bf16.msra.mxu3 %v7068_v35  ;;  %v7004_v1 = vor.u32 %v7894_v45, %v7003_v36  ;;  %v7060_v39 = vor.u32 %v7908_v48, %v7059_v47  ;;  %v7884_v18 = vld [vmem:[%s12215_s6 + $0xf44] sm:$0xf0]  ;;  %v154_v45 = vld.sshfl [vmem:[#allocation1 + $0x38] sm:$0xff pattern:$0x73625140] }
 0x1b8   :  { %v6891_v47 = vld [vmem:[%s12215_s6 + $0xeb0] sm:$0xf]  ;;  %v7866_v48 = vld [vmem:[%s12215_s6 + $0xeb4] sm:$0xf0]  ;;  %v6883_v23 = vld [vmem:[%s12215_s6 + $0xea0] sm:$0xf] }
 0x1ba   :  { %4205 = vmatpush.bf16.msrb.mxu1 %v6612_v2  ;;  %4218 = vmatpush.bf16.msrb.mxu2 %v6676_v3  ;;  %v7892_v2 = vld [vmem:[%s12215_s6 + $0xf84] sm:$0xf0]  ;;  %v7307_v3 = vld [vmem:[%s12215_s6 + $0x11f0] sm:$0xf] }
 0x1bb   :  { %4282 = vmatpush.bf16.msra.mxu0 %v7004_v1  ;;  %4296 = vmatpush.bf16.msra.mxu3 %v7060_v39  ;;  %v6996_v35 = vor.u32 %v7892_v2, %v6995_v13  ;;  %v7308_v36 = vor.u32 %v7970_v4, %v7307_v3  ;;  %v9872_v1 = vpack.c.bf16 %v157_v58, %v157_v58  ;;  %v7291_v2 = vld [vmem:[%s12215_s6 + $0x11d0] sm:$0xf]  ;;  %v3999_v3 = vpop.f32.mrf.mxu1  ;;  %v7966_v4 = vld [vmem:[%s12215_s6 + $0x11d4] sm:$0xf0] }
 0x1bc   :  { %v9874_v39 = vpack.c.bf16 %v154_v45, %v154_v45  ;;  %v7356_v13 = vor.u32 %v7982_v0, %v7355_v15  ;;  %v6939_v58 = vld [vmem:[%s12215_s6 + $0xf10] sm:$0xf]  ;;  %v7878_v15 = vld [vmem:[%s12215_s6 + $0xf14] sm:$0xf0] }
 0x1bd   :  { %4206 = vmatmul.bf16.vlgmr.msrb.gmra.mxu1 %v9788_v43  ;;  %4219 = vmatmul.bf16.vlgmr.msrb.gmra.mxu2 %v9790_v44 }
 0x1be   :  { %4250 = vmatpush.bf16.msra.mxu1 %v6924_v6  ;;  %4263 = vmatpush.bf16.msra.mxu2 %v6988_v7  ;;  %v6908_v6 = vor.u32 %v7870_v55, %v6907_v51  ;;  %v6972_v7 = vor.u32 %v7886_v9, %v6971_v16  ;;  %v7299_v51 = vld [vmem:[%s12215_s6 + $0x11e0] sm:$0xf]  ;;  %v6964_v55 = vor.u32 %v7884_v18, %v6963_v8  ;;  %v6955_v16 = vld [vmem:[%s12215_s6 + $0xf30] sm:$0xf]  ;;  %v7882_v9 = vld [vmem:[%s12215_s6 + $0xf34] sm:$0xf0] }
 0x1bf   :  { %4341 = vmatpush.bf16.msrb.mxu3 %v7372_v12  ;;  %4283 = vmatpush.bf16.msra.mxu0 %v6996_v35  ;;  %v6956_v22 = vor.u32 %v7882_v9, %v6955_v16  ;;  %v6947_v8 = vld [vmem:[%s12215_s6 + $0xf20] sm:$0xf]  ;;  %v7292_v18 = vor.u32 %v7966_v4, %v7291_v2  ;;  %v7962_v4 = vld [vmem:[%s12215_s6 + $0x11b4] sm:$0xf0] }
 0x1c0   :  { %4297 = vmatmul.bf16.vlgmr.msra.gmra.mxu3 %v9872_v1 }
 0x1c2   :  { %4251 = vmatpush.bf16.msra.mxu1 %v6916_v53  ;;  %4264 = vmatpush.bf16.msra.mxu2 %v6980_v10  ;;  %v7968_v53 = vld [vmem:[%s12215_s6 + $0x11e4] sm:$0xf0]  ;;  %v6900_v10 = vor.u32 %v7868_v34, %v6899_v21  ;;  %v6892_v21 = vor.u32 %v7866_v48, %v6891_v47  ;;  %v6875_v48 = vld [vmem:[%s12215_s6 + $0xe90] sm:$0xf] }
 0x1c3   :  { %4328 = vmatpush.bf16.msrb.mxu0 %v7308_v36  ;;  %4342 = vmatpush.bf16.msrb.mxu3 %v7364_v42  ;;  %v7300_v12 = vor.u32 %v7968_v53, %v7299_v51  ;;  %v7864_v34 = vld [vmem:[%s12215_s6 + $0xea4] sm:$0xf0]  ;;  %v7283_v36 = vld [vmem:[%s12215_s6 + $0x11c0] sm:$0xf]  ;;  %v7339_v51 = vld [vmem:[%s12215_s6 + $0x1230] sm:$0xf]  ;;  %v4001_v2 = vpop.f32.mrf.mxu1 }
 0x1c4   :  { %4284 = vmatmul.bf16.vlgmr.msra.gmra.mxu0 %v9874_v39  ;;  %v7964_v42 = vld [vmem:[%s12215_s6 + $0x11c4] sm:$0xf0]  ;;  %v6884_v45 = vor.u32 %v7864_v34, %v6883_v23  ;;  %v7978_v53 = vld [vmem:[%s12215_s6 + $0x1234] sm:$0xf0]  ;;  %v7179_v34 = vld [vmem:[%s12215_s6 + $0x10f0] sm:$0xf] }
 0x1c5   :  { %v7284_v9 = vor.u32 %v7964_v42, %v7283_v36  ;;  %v7340_v0 = vor.u32 %v7978_v53, %v7339_v51  ;;  %v7976_v23 = vld [vmem:[%s12215_s6 + $0x1224] sm:$0xf0]  ;;  %v9970_v36 = vpop.f32.mrf.mxu0  ;;  %v7974_v51 = vld [vmem:[%s12215_s6 + $0x1214] sm:$0xf0] }
 0x1c6   :  { %4252 = vmatpush.bf16.msra.mxu1 %v6908_v6  ;;  %4265 = vmatpush.bf16.msra.mxu2 %v6972_v7  ;;  %v7980_v6 = vld [vmem:[%s12215_s6 + $0x1244] sm:$0xf0]  ;;  %v4000_v7 = vadd.f32 %v3999_v3, %v9746_v62  ;;  %v7275_v3 = vld [vmem:[%s12215_s6 + $0x11b0] sm:$0xf] }
 0x1c7   :  { %v7880_v62 = vld [vmem:[%s12215_s6 + $0xf24] sm:$0xf0]  ;;  %4329 = vmatpush.bf16.msrb.mxu0 %v7300_v12  ;;  %4343 = vmatpush.bf16.msrb.mxu3 %v7356_v13  ;;  %v7348_v35 = vor.u32 %v7980_v6, %v7347_v54  ;;  %v6867_v12 = vld [vmem:[%s12215_s6 + $0xe80] sm:$0xf]  ;;  %v7276_v42 = vor.u32 %v7962_v4, %v7275_v3 }
 0x1c8   :  { %v6948_v47 = vor.u32 %v7880_v62, %v6947_v8  ;;  %v7860_v13 = vld [vmem:[%s12215_s6 + $0xe84] sm:$0xf0]  ;;  %v7938_v8 = vld [vmem:[%s12215_s6 + $0x10f4] sm:$0xf0] }
 0x1c9   :  { %v6868_v53 = vor.u32 %v7860_v13, %v6867_v12  ;;  %v7936_v3 = vld [vmem:[%s12215_s6 + $0x10e4] sm:$0xf0]  ;;  %v7235_v12 = vld [vmem:[%s12215_s6 + $0x1160] sm:$0xf] }
 0x1ca   :  { %4253 = vmatpush.bf16.msra.mxu1 %v6900_v10  ;;  %4266 = vmatpush.bf16.msra.mxu2 %v6964_v55  ;;  %v4012_v10 = vpop.f32.mrf.mxu2  ;;  %v7862_v55 = vld [vmem:[%s12215_s6 + $0xe94] sm:$0xf0]  ;;  %v7952_v13 = vld [vmem:[%s12215_s6 + $0x1164] sm:$0xf0] }
 0x1cb   :  { %v4013_v16 = vadd.f32 %v4012_v10, %v4000_v7  ;;  %4330 = vmatpush.bf16.msrb.mxu0 %v7292_v18  ;;  %4344 = vmatpush.bf16.msrb.mxu3 %v7348_v35  ;;  %v6876_v6 = vor.u32 %v7862_v55, %v6875_v48  ;;  %v6940_v7 = vor.u32 %v7878_v15, %v6939_v58  ;;  %v7243_v18 = vld [vmem:[%s12215_s6 + $0x1170] sm:$0xf]  ;;  %v7954_v35 = vld [vmem:[%s12215_s6 + $0x1174] sm:$0xf0]  ;;  %v9984_v15 = vpop.f32.mrf.mxu3 }
 0x1cc   :  { %v7323_v48 = vld [vmem:[%s12215_s6 + $0x1210] sm:$0xf]  ;;  %v152_v55 = vld.sshfl [vmem:[#allocation1 + $0x28] sm:$0xff pattern:$0x73625140] }
 0x1cd   :  { %v4026_v54 = vadd.f32 %v9754_v17, %v4013_v16  ;;  %v7876_v17 = vld [vmem:[%s12215_s6 + $0xf04] sm:$0xf0]  ;;  %v153_v58 = vld.sshfl [vmem:[#allocation1 + $0x30] sm:$0xff pattern:$0x73625140]  ;;  %v7180_v16 = vor.u32 %v7938_v8, %v7179_v34  ;;  %v7236_v8 = vor.u32 %v7952_v13, %v7235_v12 }
 0x1ce   :  { %4254 = vmatpush.bf16.msra.mxu1 %v6892_v21  ;;  %4267 = vmatpush.bf16.msra.mxu2 %v6956_v22  ;;  %v6931_v21 = vld [vmem:[%s12215_s6 + $0xf00] sm:$0xf] }
 0x1cf   :  { %v7331_v22 = vld [vmem:[%s12215_s6 + $0x1220] sm:$0xf]  ;;  %v9962_v62 = vadd.f32 %v9768_v5, %v4026_v54  ;;  %4331 = vmatpush.bf16.msrb.mxu0 %v7284_v9  ;;  %4345 = vmatpush.bf16.msrb.mxu3 %v7340_v0  ;;  %v7960_v5 = vld [vmem:[%s12215_s6 + $0x11a4] sm:$0xf0]  ;;  %v6932_v10 = vor.u32 %v7876_v17, %v6931_v21  ;;  %v7244_v9 = vor.u32 %v7954_v35, %v7243_v18  ;;  %v7259_v21 = vld [vmem:[%s12215_s6 + $0x1190] sm:$0xf] }
 0x1d0   :  { %v7171_v0 = vld [vmem:[%s12215_s6 + $0x10e0] sm:$0xf]  ;;  %v7324_v54 = vor.u32 %v7974_v51, %v7323_v48  ;;  %v7972_v17 = vld [vmem:[%s12215_s6 + $0x1204] sm:$0xf0]  ;;  %v7163_v18 = vld [vmem:[%s12215_s6 + $0x10d0] sm:$0xf] }
 0x1d1   :  { %v7172_v34 = vor.u32 %v7936_v3, %v7171_v0  ;;  %v7934_v35 = vld [vmem:[%s12215_s6 + $0x10d4] sm:$0xf0]  ;;  %v103_v48 = vld [vmem:[%s12209_s0 + $0x48] sm:$0xf]  ;;  %v7457_v51 = vld [vmem:[%s12215_s6 + $0x1f4] sm:$0xf] }
 0x1d2   :  { %4255 = vmatpush.bf16.msra.mxu1 %v6884_v45  ;;  %4268 = vmatpush.bf16.msra.mxu2 %v6948_v47  ;;  %v7332_v45 = vor.u32 %v7976_v23, %v7331_v22  ;;  %v7267_v47 = vld [vmem:[%s12215_s6 + $0x11a0] sm:$0xf]  ;;  %v4014_v2 = vpop.f32.mrf.mxu2  ;;  %v7958_v22 = vld [vmem:[%s12215_s6 + $0x1194] sm:$0xf0]  ;;  %156 = vst [vmem:[#allocation1 + $0x20] ss:$4 sm:$0xff] %v103_v48  ;;  %v7164_v3 = vor.u32 %v7934_v35, %v7163_v18 }
 0x1d3   :  { %4332 = vmatpush.bf16.msrb.mxu0 %v7276_v42  ;;  %v7268_v4 = vor.u32 %v7960_v5, %v7267_v47  ;;  %v7315_v23 = vld [vmem:[%s12215_s6 + $0x1200] sm:$0xf]  ;;  %v7227_v42 = vld [vmem:[%s12215_s6 + $0x1150] sm:$0xf]  ;;  %v7260_v47 = vor.u32 %v7958_v22, %v7259_v21  ;;  %v7956_v0 = vld [vmem:[%s12215_s6 + $0x1184] sm:$0xf0]  ;;  %v4092_v2 = vpop.f32.mrf.mxu3 }
 0x1d4   :  { %4346 = vmatpush.bf16.msrb.mxu3 %v7332_v45  ;;  %v7950_v45 = vld [vmem:[%s12215_s6 + $0x1154] sm:$0xf0]  ;;  %v7316_v5 = vor.u32 %v7972_v17, %v7315_v23  ;;  %v7219_v13 = vld [vmem:[%s12215_s6 + $0x1140] sm:$0xf]  ;;  %v7948_v21 = vld [vmem:[%s12215_s6 + $0x1144] sm:$0xf0] }
 0x1d5   :  { %v7228_v12 = vor.u32 %v7950_v45, %v7227_v42  ;;  %v160_v23 = vld.sshfl [vmem:[#allocation1 + $0x18] sm:$0xff pattern:$0x73625140]  ;;  %v7147_v18 = vld [vmem:[%s12215_s6 + $0x10b0] sm:$0xf]  ;;  %v7220_v48 = vor.u32 %v7948_v21, %v7219_v13 }
 0x1d6   :  { %4256 = vmatpush.bf16.msra.mxu1 %v6876_v6  ;;  %4269 = vmatpush.bf16.msra.mxu2 %v6940_v7  ;;  %v9998_v6 = vpack.c.bf16 %v152_v55, %v152_v55  ;;  %v10000_v7 = vpack.c.bf16 %v153_v58, %v153_v58  ;;  %v7251_v55 = vld [vmem:[%s12215_s6 + $0x1180] sm:$0xf]  ;;  %v7930_v35 = vld [vmem:[%s12215_s6 + $0x10b4] sm:$0xf0]  ;;  %v7423_v45 = vld [vmem:[%s12215_s6 + $0xe4] sm:$0xf] }
 0x1d7   :  { %4333 = vmatpush.bf16.msrb.mxu0 %v7268_v4  ;;  %v7155_v58 = vld [vmem:[%s12215_s6 + $0x10c0] sm:$0xf]  ;;  %v7425_v4 = vld [vmem:[%s12215_s6 + $0xf4] sm:$0xf]  ;;  %v7252_v22 = vor.u32 %v7956_v0, %v7251_v55  ;;  %v5117_v13 = vld [vmem:[%s12215_s6 + $0xd8] sm:$0xf0] }
 0x1d8   :  { %4347 = vmatpush.bf16.msrb.mxu3 %v7324_v54  ;;  %v5133_v54 = vld [vmem:[%s12215_s6 + $0xf8] sm:$0xf0] }
 0x1d9   :  { %v5136_v17 = vor.u32 %v7425_v4, %v5133_v54  ;;  %v161_v55 = vld.sshfl [vmem:[#allocation1 + $0x20] sm:$0xff pattern:$0x73625140]  ;;  %v7148_v54 = vor.u32 %v7930_v35, %v7147_v18 }
 0x1da   :  { %4257 = vmatpush.bf16.msra.mxu1 %v6868_v53  ;;  %4270 = vmatpush.bf16.msra.mxu2 %v6932_v10  ;;  %v4079_v53 = vpop.f32.mrf.mxu0  ;;  %v5261_v10 = vld [vmem:[%s12215_s6 + $0x1f8] sm:$0xf0] }
 0x1db   :  { %4334 = vmatpush.bf16.msrb.mxu0 %v7260_v47  ;;  %v5125_v47 = vld [vmem:[%s12215_s6 + $0xe8] sm:$0xf0]  ;;  %v7946_v53 = vld [vmem:[%s12215_s6 + $0x1134] sm:$0xf0] }
 0x1dc   :  { %4348 = vmatpush.bf16.msrb.mxu3 %v7316_v5  ;;  %v5128_v0 = vor.u32 %v7423_v45, %v5125_v47  ;;  %v7419_v45 = vld [vmem:[%s12215_s6 + $0xc4] sm:$0xf]  ;;  %v5109_v47 = vld [vmem:[%s12215_s6 + $0xc8] sm:$0xf0] }
 0x1dd   :  { %4258 = vmatmul.bf16.vlgmr.msra.gmra.mxu1 %v9998_v6  ;;  %4271 = vmatmul.bf16.vlgmr.msra.gmra.mxu2 %v10000_v7 }
 0x1de   :  { %4302 = vmatpush.bf16.msrb.mxu1 %v7180_v16  ;;  %4315 = vmatpush.bf16.msrb.mxu2 %v7244_v9  ;;  %v7932_v16 = vld [vmem:[%s12215_s6 + $0x10c4] sm:$0xf0]  ;;  %v5264_v9 = vor.u32 %v7457_v51, %v5261_v10  ;;  %v7211_v51 = vld [vmem:[%s12215_s6 + $0x1130] sm:$0xf]  ;;  %v7453_v10 = vld [vmem:[%s12215_s6 + $0x1d4] sm:$0xf] }
 0x1df   :  { %v7156_v5 = vor.u32 %v7932_v16, %v7155_v58  ;;  %4335 = vmatpush.bf16.msrb.mxu0 %v7252_v22  ;;  %v5245_v58 = vld [vmem:[%s12215_s6 + $0x1d8] sm:$0xf0]  ;;  %v10093_v16 = vpack.c.bf16 %v161_v55, %v161_v55  ;;  %v7212_v21 = vor.u32 %v7946_v53, %v7211_v51  ;;  %v7139_v22 = vld [vmem:[%s12215_s6 + $0x10a0] sm:$0xf]  ;;  %v7449_v51 = vld [vmem:[%s12215_s6 + $0x1b4] sm:$0xf] }
 0x1e0   :  { %4406 = vmatpush.bf16.msra.mxu3 %v5264_v9  ;;  %v10088_v9 = vpack.c.bf16 %v160_v23, %v160_v23  ;;  %v5248_v2 = vor.u32 %v7453_v10, %v5245_v58  ;;  %v7928_v23 = vld [vmem:[%s12215_s6 + $0x10a4] sm:$0xf0]  ;;  %v5229_v53 = vld [vmem:[%s12215_s6 + $0x1b8] sm:$0xf0]  ;;  %v4064_v10 = vpop.f32.mrf.mxu2  ;;  %v7926_v55 = vld [vmem:[%s12215_s6 + $0x1094] sm:$0xf0] }
 0x1e1   :  { %4349 = vmatmul.bf16.vlgmr.msrb.gmra.mxu3 %v10093_v16  ;;  %v7195_v58 = vld [vmem:[%s12215_s6 + $0x1110] sm:$0xf] }
 0x1e2   :  { %4303 = vmatpush.bf16.msrb.mxu1 %v7172_v34  ;;  %4316 = vmatpush.bf16.msrb.mxu2 %v7236_v8  ;;  %v7455_v34 = vld [vmem:[%s12215_s6 + $0x1e4] sm:$0xf]  ;;  %v5253_v8 = vld [vmem:[%s12215_s6 + $0x1e8] sm:$0xf0] }
 0x1e3   :  { %v5256_v42 = vor.u32 %v7455_v34, %v5253_v8  ;;  %4380 = vmatpush.bf16.msra.mxu0 %v5136_v17  ;;  %v7451_v17 = vld [vmem:[%s12215_s6 + $0x1c4] sm:$0xf]  ;;  %v7944_v34 = vld [vmem:[%s12215_s6 + $0x1124] sm:$0xf0]  ;;  %v5237_v8 = vld [vmem:[%s12215_s6 + $0x1c8] sm:$0xf0] }
 0x1e4   :  { %4336 = vmatmul.bf16.vlgmr.msrb.gmra.mxu0 %v10088_v9  ;;  %v5240_v35 = vor.u32 %v7451_v17, %v5237_v8  ;;  %v7417_v17 = vld [vmem:[%s12215_s6 + $0xb4] sm:$0xf] }
 0x1e5   :  { %4407 = vmatpush.bf16.msra.mxu3 %v5256_v42  ;;  %v7131_v42 = vld [vmem:[%s12215_s6 + $0x1090] sm:$0xf] }
 0x1e6   :  { %4304 = vmatpush.bf16.msrb.mxu1 %v7164_v3  ;;  %4317 = vmatpush.bf16.msrb.mxu2 %v7228_v12  ;;  %v4051_v3 = vpop.f32.mrf.mxu1  ;;  %v7421_v12 = vld [vmem:[%s12215_s6 + $0xd4] sm:$0xf]  ;;  %v7132_v8 = vor.u32 %v7926_v55, %v7131_v42  ;;  %v7940_v42 = vld [vmem:[%s12215_s6 + $0x1104] sm:$0xf0] }
 0x1e7   :  { %v4052_v4 = vadd.f32 %v4051_v3, %v9962_v62  ;;  %v7203_v62 = vld [vmem:[%s12215_s6 + $0x1120] sm:$0xf]  ;;  %4381 = vmatpush.bf16.msra.mxu0 %v5128_v0  ;;  %v5120_v18 = vor.u32 %v7421_v12, %v5117_v13  ;;  %v7942_v0 = vld [vmem:[%s12215_s6 + $0x1114] sm:$0xf0]  ;;  %v7387_v3 = vld [vmem:[%s12215_s6 + $0x1290] sm:$0xf]  ;;  %v5112_v13 = vor.u32 %v7419_v45, %v5109_v47 }
 0x1e8   :  { %v7990_v12 = vld [vmem:[%s12215_s6 + $0x1294] sm:$0x10]  ;;  %v7447_v45 = vld [vmem:[%s12215_s6 + $0x1a4] sm:$0xf]  ;;  %v5221_v47 = vld [vmem:[%s12215_s6 + $0x1a8] sm:$0xf0] }
 0x1e9   :  { %4408 = vmatpush.bf16.msra.mxu3 %v5248_v2  ;;  %v4065_v2 = vadd.f32 %v4064_v10, %v4052_v4  ;;  %v5069_v10 = vld [vmem:[%s12215_s6 + $0x78] sm:$0xf0]  ;;  %v158_v55 = vld.sshfl [vmem:[#allocation1 + $0x8] sm:$0xff pattern:$0x73625140] }
 0x1ea   :  { %4305 = vmatpush.bf16.msrb.mxu1 %v7156_v5  ;;  %4318 = vmatpush.bf16.msrb.mxu2 %v7220_v48  ;;  %v7140_v5 = vor.u32 %v7928_v23, %v7139_v22  ;;  %v7204_v48 = vor.u32 %v7944_v34, %v7203_v62  ;;  %v8027_v22 = vmov 65535   ;;  %v5101_v62 = vld [vmem:[%s12215_s6 + $0xb8] sm:$0xf0] }
 0x1eb   :  { %4382 = vmatpush.bf16.msra.mxu0 %v5120_v18  ;;  %v3865_v4 = vsel %vm3863_vm2, 4294967295, %v8027_v22  ;;  %v4078_v34 = vadd.f32 %v9970_v36, %v4065_v2  ;;  %v7196_v18 = vor.u32 %v7942_v0, %v7195_v58  ;;  %v7187_v36 = vld [vmem:[%s12215_s6 + $0x1100] sm:$0xf]  ;;  %v10190_v58 = vpop.f32.mrf.mxu0  ;;  %v5104_v0 = vor.u32 %v7417_v17, %v5101_v62 }
 0x1ec   :  { %v5224_v2 = vor.u32 %v7447_v45, %v5221_v47  ;;  %v7188_v22 = vor.u32 %v7940_v42, %v7187_v36  ;;  %v7379_v62 = vld [vmem:[%s12215_s6 + $0x1280] sm:$0xf]  ;;  %v7441_v45 = vld [vmem:[%s12215_s6 + $0x174] sm:$0xf]  ;;  %v10222_v42 = vpack.c.bf16 %v158_v55, %v158_v55  ;;  %v7443_v55 = vld [vmem:[%s12215_s6 + $0x184] sm:$0xf] }
 0x1ed   :  { %4409 = vmatpush.bf16.msra.mxu3 %v5240_v35  ;;  %v7924_v35 = vld [vmem:[%s12215_s6 + $0x1084] sm:$0xf0] }
 0x1ee   :  { %4306 = vmatpush.bf16.msrb.mxu1 %v7148_v54  ;;  %4319 = vmatpush.bf16.msrb.mxu2 %v7212_v21  ;;  %v5232_v54 = vor.u32 %v7449_v51, %v5229_v53  ;;  %v7123_v21 = vld [vmem:[%s12215_s6 + $0x1080] sm:$0xf]  ;;  %v4053_v23 = vpop.f32.mrf.mxu1  ;;  %v10182_v51 = vadd.f32 %v9984_v15, %v4078_v34  ;;  %v10185_v53 = vsel %vm3864_vm3, %v3865_v4, 0  ;;  %v5093_v15 = vld [vmem:[%s12215_s6 + $0xa8] sm:$0xf0] }
 0x1ef   :  { %4383 = vmatpush.bf16.msra.mxu0 %v5112_v13  ;;  %v159_v4 = vld.sshfl [vmem:[#allocation1 + $0x10] sm:$0xff pattern:$0x73625140]  ;;  %v10198_v23 = vpop.f32.mrf.mxu3  ;;  %v7988_v34 = vld [vmem:[%s12215_s6 + $0x1284] sm:$0xf0] }
 0x1f0   :  { %v7445_v13 = vld [vmem:[%s12215_s6 + $0x194] sm:$0xf] }
 0x1f1   :  { %4410 = vmatpush.bf16.msra.mxu3 %v5232_v54 }
 0x1f2   :  { %4307 = vmatpush.bf16.msrb.mxu1 %v7140_v5  ;;  %4320 = vmatpush.bf16.msrb.mxu2 %v7204_v48  ;;  %v7388_v5 = vor.u32 %v7990_v12, %v7387_v3  ;;  %v7409_v48 = vld [vmem:[%s12215_s6 + $0x74] sm:$0xf]  ;;  %v7415_v3 = vld [vmem:[%s12215_s6 + $0xa4] sm:$0xf]  ;;  %v7124_v12 = vor.u32 %v7924_v35, %v7123_v21  ;;  %v4066_v21 = vpop.f32.mrf.mxu2  ;;  %v5061_v35 = vld [vmem:[%s12215_s6 + $0x68] sm:$0xf0] }
 0x1f3   :  { %v5072_v17 = vor.u32 %v7409_v48, %v5069_v10  ;;  %4384 = vmatpush.bf16.msra.mxu0 %v5104_v0  ;;  %v5096_v47 = vor.u32 %v7415_v3, %v5093_v15  ;;  %v5197_v48 = vld [vmem:[%s12215_s6 + $0x178] sm:$0xf0]  ;;  %v7413_v10 = vld [vmem:[%s12215_s6 + $0x94] sm:$0xf]  ;;  %v5205_v0 = vld [vmem:[%s12215_s6 + $0x188] sm:$0xf0] }
 0x1f4   :  { %v3868_v54 = vand.u32 %v7388_v5, %v10185_v53  ;;  %v10224_v5 = vpack.c.bf16 %v159_v4, %v159_v4  ;;  %v5085_v21 = vld [vmem:[%s12215_s6 + $0x98] sm:$0xf0]  ;;  %v7405_v15 = vld [vmem:[%s12215_s6 + $0x54] sm:$0xf] }
 0x1f5   :  { %4411 = vmatpush.bf16.msra.mxu3 %v5224_v2  ;;  %v7380_v2 = vor.u32 %v7988_v34, %v7379_v62  ;;  %v5053_v4 = vld [vmem:[%s12215_s6 + $0x58] sm:$0xf0]  ;;  %v4131_v62 = vpop.f32.mrf.mxu0  ;;  %v5189_v34 = vld [vmem:[%s12215_s6 + $0x168] sm:$0xf0] }
 0x1f6   :  { %4308 = vmatpush.bf16.msrb.mxu1 %v7132_v8  ;;  %4321 = vmatpush.bf16.msrb.mxu2 %v7196_v18  ;;  %v5213_v8 = vld [vmem:[%s12215_s6 + $0x198] sm:$0xf0]  ;;  %v7407_v18 = vld [vmem:[%s12215_s6 + $0x64] sm:$0xf] }
 0x1f7   :  { %v5216_v36 = vor.u32 %v7445_v13, %v5213_v8  ;;  %v5064_v3 = vor.u32 %v7407_v18, %v5061_v35  ;;  %v7439_v13 = vld [vmem:[%s12215_s6 + $0x164] sm:$0xf]  ;;  %4385 = vmatpush.bf16.msra.mxu0 %v5096_v47  ;;  %v5208_v8 = vor.u32 %v7443_v55, %v5205_v0  ;;  %v5077_v35 = vld [vmem:[%s12215_s6 + $0x88] sm:$0xf0]  ;;  %v7489_v47 = vld [vmem:[%s12215_s6 + $0x2f4] sm:$0xf] }
 0x1f8   :  { %v7411_v18 = vld [vmem:[%s12215_s6 + $0x84] sm:$0xf]  ;;  %v5509_v55 = vld [vmem:[%s12215_s6 + $0x3e8] sm:$0xf0]  ;;  %v5192_v0 = vor.u32 %v7439_v13, %v5189_v34  ;;  %v7517_v34 = vld [vmem:[%s12215_s6 + $0x3d4] sm:$0xf] }
 0x1f9   :  { %4412 = vmatpush.bf16.msra.mxu3 %v5216_v36  ;;  %v5389_v36 = vld [vmem:[%s12215_s6 + $0x2f8] sm:$0xf0] }
 0x1fa   :  { %4309 = vmatpush.bf16.msrb.mxu1 %v7124_v12  ;;  %4322 = vmatpush.bf16.msrb.mxu2 %v7188_v22  ;;  %v7521_v12 = vld [vmem:[%s12215_s6 + $0x3f4] sm:$0xf]  ;;  %v5200_v22 = vor.u32 %v7441_v45, %v5197_v48  ;;  %v4144_v48 = vpop.f32.mrf.mxu3 }
 0x1fb   :  { %v162_v48 = vld.sshfl [vmem:[#allocation1 + $0x28] sm:$0xff pattern:$0x73625140] }
 0x1fd   :  { %4310 = vmatmul.bf16.vlgmr.msrb.gmra.mxu1 %v10222_v42  ;;  %4323 = vmatmul.bf16.vlgmr.msrb.gmra.mxu2 %v10224_v5 }
 0x1fe   :  { %4360 = vmatpush.bf16.msra.mxu1 %v3868_v54  ;;  %4367 = vmatpush.bf16.msra.mxu2 %v5072_v17  ;;  %v5088_v54 = vor.u32 %v7413_v10, %v5085_v21  ;;  %v5517_v17 = vld [vmem:[%s12215_s6 + $0x3f8] sm:$0xf0]  ;;  %v5056_v10 = vor.u32 %v7405_v15, %v5053_v4  ;;  %v7519_v21 = vld [vmem:[%s12215_s6 + $0x3e4] sm:$0xf]  ;;  %v7437_v15 = vld [vmem:[%s12215_s6 + $0x154] sm:$0xf] }
 0x1ff   :  { %v5520_v45 = vor.u32 %v7521_v12, %v5517_v17  ;;  %v7403_v12 = vld [vmem:[%s12215_s6 + $0x44] sm:$0xf]  ;;  %v5181_v4 = vld [vmem:[%s12215_s6 + $0x158] sm:$0xf0]  ;;  %4413 = vmatpush.bf16.msra.mxu3 %v5208_v8  ;;  %v5512_v13 = vor.u32 %v7519_v21, %v5509_v55  ;;  %v4103_v21 = vpop.f32.mrf.mxu1 }
 0x200   :  { %4386 = vmatpush.bf16.msra.mxu0 %v5088_v54  ;;  %v7487_v17 = vld [vmem:[%s12215_s6 + $0x2e4] sm:$0xf]  ;;  %v5381_v54 = vld [vmem:[%s12215_s6 + $0x2e8] sm:$0xf0]  ;;  %v5501_v8 = vld [vmem:[%s12215_s6 + $0x3d8] sm:$0xf0] }
 0x201   :  { %v5504_v55 = vor.u32 %v7517_v34, %v5501_v8  ;;  %v7483_v34 = vld [vmem:[%s12215_s6 + $0x2c4] sm:$0xf]  ;;  %v5365_v8 = vld [vmem:[%s12215_s6 + $0x2c8] sm:$0xf0] }
 0x202   :  { %4361 = vmatpush.bf16.msra.mxu1 %v7380_v2  ;;  %4368 = vmatpush.bf16.msra.mxu2 %v5064_v3  ;;  %v5045_v2 = vld [vmem:[%s12215_s6 + $0x48] sm:$0xf0]  ;;  %v5080_v3 = vor.u32 %v7411_v18, %v5077_v35  ;;  %v5184_v18 = vor.u32 %v7437_v15, %v5181_v4  ;;  %v7401_v35 = vld [vmem:[%s12215_s6 + $0x34] sm:$0xf] }
 0x203   :  { %4458 = vmatpush.bf16.msrb.mxu3 %v5520_v45  ;;  %v5048_v62 = vor.u32 %v7403_v12, %v5045_v2  ;;  %v5037_v45 = vld [vmem:[%s12215_s6 + $0x38] sm:$0xf0]  ;;  %v4104_v2 = vadd.f32 %v4103_v21, %v10182_v51  ;;  %v5493_v15 = vld [vmem:[%s12215_s6 + $0x3c8] sm:$0xf0] }
 0x204   :  { %4387 = vmatpush.bf16.msra.mxu0 %v5080_v3  ;;  %4414 = vmatmul.bf16.vlgmr.msra.gmra.mxu3 %v8408_v30  ;;  %v5373_v12 = vld [vmem:[%s12215_s6 + $0x2d8] sm:$0xf0]  ;;  %v5040_v3 = vor.u32 %v7401_v35, %v5037_v45  ;;  %v7515_v30 = vld [vmem:[%s12215_s6 + $0x3c4] sm:$0xf]  ;;  %v5029_v51 = vld [vmem:[%s12215_s6 + $0x28] sm:$0xf0] }
 0x205   :  { %v7513_v35 = vld [vmem:[%s12215_s6 + $0x3b4] sm:$0xf]  ;;  %v5485_v45 = vld [vmem:[%s12215_s6 + $0x3b8] sm:$0xf0] }
 0x206   :  { %4393 = vmatpush.bf16.msrb.mxu1 %v5200_v22  ;;  %v5392_v22 = vor.u32 %v7489_v47, %v5389_v36  ;;  %4369 = vmatpush.bf16.msra.mxu2 %v5056_v10  ;;  %v7435_v47 = vld [vmem:[%s12215_s6 + $0x144] sm:$0xf]  ;;  %v5173_v36 = vld [vmem:[%s12215_s6 + $0x148] sm:$0xf0]  ;;  %v5384_v10 = vor.u32 %v7487_v17, %v5381_v54  ;;  %v5165_v17 = vld [vmem:[%s12215_s6 + $0x138] sm:$0xf0] }
 0x207   :  { %4459 = vmatpush.bf16.msrb.mxu3 %v5512_v13  ;;  %4388 = vmatmul.bf16.vlgmr.msra.gmra.mxu0 %v8527_v26  ;;  %v5176_v4 = vor.u32 %v7435_v47, %v5173_v36  ;;  %v10336_v13 = vpack.c.bf16 %v162_v48, %v162_v48  ;;  %v7433_v26 = vld [vmem:[%s12215_s6 + $0x134] sm:$0xf]  ;;  %v4116_v47 = vpop.f32.mrf.mxu2 }
 0x208   :  { %4432 = vmatpush.bf16.msrb.mxu0 %v5392_v22  ;;  %v7399_v22 = vld [vmem:[%s12215_s6 + $0x24] sm:$0xf]  ;;  %v5168_v36 = vor.u32 %v7433_v26, %v5165_v17  ;;  %v7397_v48 = vld [vmem:[%s12215_s6 + $0x14] sm:$0xf]  ;;  %v4117_v21 = vadd.f32 %v4116_v47, %v4104_v2  ;;  %v5477_v26 = vld [vmem:[%s12215_s6 + $0x3a8] sm:$0xf0] }
 0x209   :  { %v7481_v2 = vld [vmem:[%s12215_s6 + $0x2b4] sm:$0xf] }
 0x20a   :  { %4394 = vmatpush.bf16.msrb.mxu1 %v5192_v0  ;;  %v7485_v0 = vld [vmem:[%s12215_s6 + $0x2d4] sm:$0xf]  ;;  %4370 = vmatpush.bf16.msra.mxu2 %v5048_v62  ;;  %v5496_v62 = vor.u32 %v7515_v30, %v5493_v15  ;;  %v5488_v30 = vor.u32 %v7513_v35, %v5485_v45  ;;  %v5357_v15 = vld [vmem:[%s12215_s6 + $0x2b8] sm:$0xf0]  ;;  %v10404_v45 = vpop.f32.mrf.mxu0 }
 0x20b   :  { %v5376_v54 = vor.u32 %v7485_v0, %v5373_v12  ;;  %4460 = vmatpush.bf16.msrb.mxu3 %v5504_v55  ;;  %v7431_v55 = vld [vmem:[%s12215_s6 + $0x124] sm:$0xf]  ;;  %v5157_v0 = vld [vmem:[%s12215_s6 + $0x128] sm:$0xf0]  ;;  %v5368_v12 = vor.u32 %v7483_v34, %v5365_v8  ;;  %v5149_v8 = vld [vmem:[%s12215_s6 + $0x118] sm:$0xf0]  ;;  %v5360_v47 = vor.u32 %v7481_v2, %v5357_v15 }
 0x20c   :  { %4433 = vmatpush.bf16.msrb.mxu0 %v5384_v10  ;;  %v5021_v10 = vld [vmem:[%s12215_s6 + $0x18] sm:$0xf0]  ;;  %v5160_v17 = vor.u32 %v7431_v55, %v5157_v0  ;;  %v7471_v15 = vld [vmem:[%s12215_s6 + $0x264] sm:$0xf] }
 0x20d   :  { %7393 = vmatmul.msk.bf16.vlgmr.msra.gmra.mxu1 %vm3859_vm4, %v10336_v13  ;;  %v5325_v35 = vld [vmem:[%s12215_s6 + $0x278] sm:$0xf0] }
 0x20e   :  { %4395 = vmatpush.bf16.msrb.mxu1 %v5184_v18  ;;  %4371 = vmatpush.bf16.msra.mxu2 %v5040_v3  ;;  %v5032_v18 = vor.u32 %v7399_v22, %v5029_v51  ;;  %v4105_v3 = vpop.f32.mrf.mxu1  ;;  %v5024_v22 = vor.u32 %v7397_v48, %v5021_v10  ;;  %v7511_v51 = vld [vmem:[%s12215_s6 + $0x3a4] sm:$0xf]  ;;  %v5349_v48 = vld [vmem:[%s12215_s6 + $0x2a8] sm:$0xf0]  ;;  %v5469_v2 = vld [vmem:[%s12215_s6 + $0x398] sm:$0xf0] }
 0x20f   :  { %4461 = vmatpush.bf16.msrb.mxu3 %v5496_v62  ;;  %v7429_v62 = vld [vmem:[%s12215_s6 + $0x114] sm:$0xf]  ;;  %v5141_v3 = vld [vmem:[%s12215_s6 + $0x108] sm:$0xf0] }
 0x210   :  { %4434 = vmatpush.bf16.msrb.mxu0 %v5376_v54  ;;  %v7395_v54 = vld [vmem:[%s12215_s6 + $0x4] sm:$0xf]  ;;  %v5152_v55 = vor.u32 %v7429_v62, %v5149_v8  ;;  %v5341_v62 = vld [vmem:[%s12215_s6 + $0x298] sm:$0xf0] }
 0x211   :  { %v7507_v8 = vld [vmem:[%s12215_s6 + $0x384] sm:$0xf] }
 0x212   :  { %4396 = vmatpush.bf16.msrb.mxu1 %v5176_v4  ;;  %v4130_v4 = vadd.f32 %v10190_v58, %v4117_v21  ;;  %4372 = vmatpush.bf16.msra.mxu2 %v5032_v18  ;;  %v5013_v58 = vld [vmem:[%s12215_s6 + $0x8] sm:$0xf0]  ;;  %v7473_v18 = vld [vmem:[%s12215_s6 + $0x274] sm:$0xf] }
 0x213   :  { %4462 = vmatpush.bf16.msrb.mxu3 %v5488_v30  ;;  %v5016_v10 = vor.u32 %v7395_v54, %v5013_v58  ;;  %v7509_v21 = vld [vmem:[%s12215_s6 + $0x394] sm:$0xf]  ;;  %v5328_v0 = vor.u32 %v7473_v18, %v5325_v35  ;;  %v4118_v30 = vpop.f32.mrf.mxu2  ;;  %v5461_v18 = vld [vmem:[%s12215_s6 + $0x388] sm:$0xf0] }
 0x214   :  { %v10393_v34 = vadd.f32 %v10198_v23, %v4130_v4  ;;  %4435 = vmatpush.bf16.msrb.mxu0 %v5368_v12  ;;  %v7479_v23 = vld [vmem:[%s12215_s6 + $0x2a4] sm:$0xf]  ;;  %v5317_v4 = vld [vmem:[%s12215_s6 + $0x268] sm:$0xf0]  ;;  %v5472_v54 = vor.u32 %v7509_v21, %v5469_v2  ;;  %v7477_v58 = vld [vmem:[%s12215_s6 + $0x294] sm:$0xf]  ;;  %v5464_v30 = vor.u32 %v7507_v8, %v5461_v18 }
 0x215   :  { %v7427_v12 = vld [vmem:[%s12215_s6 + $0x104] sm:$0xf]  ;;  %v5301_v8 = vld [vmem:[%s12215_s6 + $0x248] sm:$0xf0] }
 0x216   :  { %4397 = vmatpush.bf16.msrb.mxu1 %v5168_v36  ;;  %v5480_v36 = vor.u32 %v7511_v51, %v5477_v26  ;;  %4373 = vmatpush.bf16.msra.mxu2 %v5024_v22  ;;  %v7505_v22 = vld [vmem:[%s12215_s6 + $0x374] sm:$0xf]  ;;  %v10433_v51 = vpop.f32.mrf.mxu3  ;;  %v5352_v26 = vor.u32 %v7479_v23, %v5349_v48  ;;  %v5144_v35 = vor.u32 %v7427_v12, %v5141_v3  ;;  %v7503_v21 = vld [vmem:[%s12215_s6 + $0x364] sm:$0xf]  ;;  %v4183_v12 = vpop.f32.mrf.mxu0  ;;  %v5445_v3 = vld [vmem:[%s12215_s6 + $0x368] sm:$0xf0] }
 0x217   :  { %v7585_v23 = vld [vmem:[%s12215_s6 + $0x5f4] sm:$0xf]  ;;  %v7475_v2 = vld [vmem:[%s12215_s6 + $0x284] sm:$0xf] }
 0x218   :  { %4436 = vmatpush.bf16.msrb.mxu0 %v5360_v47  ;;  %4463 = vmatpush.bf16.msrb.mxu3 %v5480_v36  ;;  %v5320_v47 = vor.u32 %v7471_v15, %v5317_v4  ;;  %v7469_v36 = vld [vmem:[%s12215_s6 + $0x254] sm:$0xf]  ;;  %v5333_v15 = vld [vmem:[%s12215_s6 + $0x288] sm:$0xf0] }
 0x219   :  { %v5336_v18 = vor.u32 %v7475_v2, %v5333_v15  ;;  %v7499_v2 = vld [vmem:[%s12215_s6 + $0x344] sm:$0xf]  ;;  %v5429_v15 = vld [vmem:[%s12215_s6 + $0x348] sm:$0xf0] }
 0x21a   :  { %4398 = vmatpush.bf16.msrb.mxu1 %v5160_v17  ;;  %v5453_v17 = vld [vmem:[%s12215_s6 + $0x378] sm:$0xf0]  ;;  %4374 = vmatpush.bf16.msra.mxu2 %v5016_v10 }
 0x21b   :  { %v5456_v48 = vor.u32 %v7505_v22, %v5453_v17  ;;  %v5309_v10 = vld [vmem:[%s12215_s6 + $0x258] sm:$0xf0]  ;;  %v7553_v22 = vld [vmem:[%s12215_s6 + $0x4f4] sm:$0xf]  ;;  %v7583_v17 = vld [vmem:[%s12215_s6 + $0x5e4] sm:$0xf] }
 0x21c   :  { %4437 = vmatpush.bf16.msrb.mxu0 %v5352_v26  ;;  %4464 = vmatpush.bf16.msrb.mxu3 %v5472_v54  ;;  %v5312_v26 = vor.u32 %v7469_v36, %v5309_v10  ;;  %v5765_v54 = vld [vmem:[%s12215_s6 + $0x5e8] sm:$0xf0]  ;;  %v5437_v36 = vld [vmem:[%s12215_s6 + $0x358] sm:$0xf0]  ;;  %v7551_v10 = vld [vmem:[%s12215_s6 + $0x4e4] sm:$0xf] }
 0x21d   :  { %4375 = vmatmul.bf16.vlgmr.msra.gmra.mxu2 %v8279_v27  ;;  %v5645_v27 = vld [vmem:[%s12215_s6 + $0x4f8] sm:$0xf0] }
 0x21e   :  { %4399 = vmatpush.bf16.msrb.mxu1 %v5152_v55  ;;  %4419 = vmatpush.bf16.msrb.mxu2 %v5328_v0  ;;  %v5344_v55 = vor.u32 %v7477_v58, %v5341_v62  ;;  %v5773_v0 = vld [vmem:[%s12215_s6 + $0x5f8] sm:$0xf0]  ;;  %v5448_v58 = vor.u32 %v7503_v21, %v5445_v3  ;;  %v7467_v62 = vld [vmem:[%s12215_s6 + $0x244] sm:$0xf]  ;;  %v5637_v21 = vld [vmem:[%s12215_s6 + $0x4e8] sm:$0xf0] }
 0x21f   :  { %v5776_v4 = vor.u32 %v7585_v23, %v5773_v0  ;;  %v5648_v23 = vor.u32 %v7553_v22, %v5645_v27  ;;  %v7581_v0 = vld [vmem:[%s12215_s6 + $0x5d4] sm:$0xf]  ;;  %v4155_v22 = vpop.f32.mrf.mxu1 }
 0x220   :  { %4438 = vmatpush.bf16.msrb.mxu0 %v5344_v55  ;;  %4465 = vmatpush.bf16.msrb.mxu3 %v5464_v30  ;;  %v5304_v55 = vor.u32 %v7467_v62, %v5301_v8  ;;  %v7465_v3 = vld [vmem:[%s12215_s6 + $0x234] sm:$0xf]  ;;  %v5293_v30 = vld [vmem:[%s12215_s6 + $0x238] sm:$0xf0]  ;;  %v5749_v62 = vld [vmem:[%s12215_s6 + $0x5c8] sm:$0xf0]  ;;  %v5432_v8 = vor.u32 %v7499_v2, %v5429_v15 }
 0x221   :  { %v7495_v2 = vld [vmem:[%s12215_s6 + $0x324] sm:$0xf]  ;;  %v5413_v15 = vld [vmem:[%s12215_s6 + $0x328] sm:$0xf0] }
 0x222   :  { %4400 = vmatpush.bf16.msrb.mxu1 %v5144_v35  ;;  %4420 = vmatpush.bf16.msrb.mxu2 %v5320_v47  ;;  %v4196_v35 = vpop.f32.mrf.mxu3  ;;  %v7501_v47 = vld [vmem:[%s12215_s6 + $0x354] sm:$0xf] }
 0x223   :  { %v5440_v12 = vor.u32 %v7501_v47, %v5437_v36  ;;  %4466 = vmatmul.bf16.vlgmr.msrb.gmra.mxu3 %v8566_v46  ;;  %v7579_v46 = vld [vmem:[%s12215_s6 + $0x5c4] sm:$0xf]  ;;  %v5421_v35 = vld [vmem:[%s12215_s6 + $0x338] sm:$0xf0] }
 0x224   :  { %4510 = vmatpush.bf16.msra.mxu3 %v5776_v4  ;;  %4439 = vmatpush.bf16.msrb.mxu0 %v5336_v18  ;;  %v5640_v4 = vor.u32 %v7551_v10, %v5637_v21  ;;  %v7463_v18 = vld [vmem:[%s12215_s6 + $0x224] sm:$0xf]  ;;  %v5752_v36 = vor.u32 %v7579_v46, %v5749_v62  ;;  %v7577_v21 = vld [vmem:[%s12215_s6 + $0x5b4] sm:$0xf]  ;;  %v5733_v62 = vld [vmem:[%s12215_s6 + $0x5a8] sm:$0xf0] }
 0x225   :  { %4401 = vmatmul.bf16.vlgmr.msrb.gmra.mxu1 %v8531_v28  ;;  %v5757_v28 = vld [vmem:[%s12215_s6 + $0x5d8] sm:$0xf0]  ;;  %v7575_v46 = vld [vmem:[%s12215_s6 + $0x5a4] sm:$0xf] }
 0x226   :  { %4445 = vmatpush.bf16.msra.mxu1 %v5456_v48  ;;  %v5768_v48 = vor.u32 %v7583_v17, %v5765_v54  ;;  %4421 = vmatpush.bf16.msrb.mxu2 %v5312_v26  ;;  %v5760_v27 = vor.u32 %v7581_v0, %v5757_v28  ;;  %v7549_v26 = vld [vmem:[%s12215_s6 + $0x4d4] sm:$0xf]  ;;  %v5629_v17 = vld [vmem:[%s12215_s6 + $0x4d8] sm:$0xf0]  ;;  %v4156_v54 = vadd.f32 %v4155_v22, %v10393_v34  ;;  %v5285_v34 = vld [vmem:[%s12215_s6 + $0x228] sm:$0xf0]  ;;  %v4168_v0 = vpop.f32.mrf.mxu2 }
 0x227   :  { %4440 = vmatmul.bf16.vlgmr.msrb.gmra.mxu0 %v8709_v59  ;;  %v7497_v59 = vld [vmem:[%s12215_s6 + $0x334] sm:$0xf]  ;;  %v5632_v47 = vor.u32 %v7549_v26, %v5629_v17  ;;  %v5288_v10 = vor.u32 %v7463_v18, %v5285_v34  ;;  %v4157_v22 = vpop.f32.mrf.mxu1  ;;  %v5613_v17 = vld [vmem:[%s12215_s6 + $0x4b8] sm:$0xf0]  ;;  %v7459_v18 = vld [vmem:[%s12215_s6 + $0x204] sm:$0xf] }
 0x228   :  { %4484 = vmatpush.bf16.msra.mxu0 %v5648_v23  ;;  %4511 = vmatpush.bf16.msra.mxu3 %v5768_v48  ;;  %v7547_v23 = vld [vmem:[%s12215_s6 + $0x4c4] sm:$0xf]  ;;  %v5621_v48 = vld [vmem:[%s12215_s6 + $0x4c8] sm:$0xf0]  ;;  %v5424_v28 = vor.u32 %v7497_v59, %v5421_v35  ;;  %v7545_v26 = vld [vmem:[%s12215_s6 + $0x4b4] sm:$0xf] }
 0x229   :  { %v7493_v34 = vld [vmem:[%s12215_s6 + $0x314] sm:$0xf]  ;;  %v5405_v35 = vld [vmem:[%s12215_s6 + $0x318] sm:$0xf0]  ;;  %v5573_v22 = vld [vmem:[%s12215_s6 + $0x468] sm:$0xf0] }
 0x22a   :  { %4446 = vmatpush.bf16.msra.mxu1 %v5448_v58  ;;  %4422 = vmatpush.bf16.msrb.mxu2 %v5304_v55  ;;  %v5296_v58 = vor.u32 %v7465_v3, %v5293_v30  ;;  %v5741_v55 = vld [vmem:[%s12215_s6 + $0x5b8] sm:$0xf0]  ;;  %v4169_v30 = vadd.f32 %v4168_v0, %v4156_v54  ;;  %v7573_v0 = vld [vmem:[%s12215_s6 + $0x594] sm:$0xf] }
 0x22b   :  { %v5277_v3 = vld [vmem:[%s12215_s6 + $0x218] sm:$0xf0] }
 0x22c   :  { %4485 = vmatpush.bf16.msra.mxu0 %v5640_v4  ;;  %4512 = vmatpush.bf16.msra.mxu3 %v5760_v27  ;;  %v5624_v4 = vor.u32 %v7547_v23, %v5621_v48  ;;  %v5744_v27 = vor.u32 %v7577_v21, %v5741_v55  ;;  %v4182_v54 = vadd.f32 %v10404_v45, %v4169_v30  ;;  %v5269_v45 = vld [vmem:[%s12215_s6 + $0x208] sm:$0xf0]  ;;  %v10609_v23 = vpop.f32.mrf.mxu0 }
 0x22d   :  { %v5616_v48 = vor.u32 %v7545_v26, %v5613_v17  ;;  %v5605_v21 = vld [vmem:[%s12215_s6 + $0x4a8] sm:$0xf0]  ;;  %v5272_v55 = vor.u32 %v7459_v18, %v5269_v45  ;;  %v10638_v26 = vpop.f32.mrf.mxu3 }
 0x22e   :  { %4447 = vmatpush.bf16.msra.mxu1 %v5440_v12  ;;  %4423 = vmatpush.bf16.msrb.mxu2 %v5296_v58  ;;  %v7461_v12 = vld [vmem:[%s12215_s6 + $0x214] sm:$0xf]  ;;  %v10598_v59 = vadd.f32 %v10433_v51, %v4182_v54  ;;  %v7543_v51 = vld [vmem:[%s12215_s6 + $0x4a4] sm:$0xf]  ;;  %v5397_v30 = vld [vmem:[%s12215_s6 + $0x308] sm:$0xf0] }
 0x22f   :  { %v5280_v58 = vor.u32 %v7461_v12, %v5277_v3  ;;  %v7491_v3 = vld [vmem:[%s12215_s6 + $0x304] sm:$0xf]  ;;  %v5608_v17 = vor.u32 %v7543_v51, %v5605_v21  ;;  %v5709_v54 = vld [vmem:[%s12215_s6 + $0x578] sm:$0xf0]  ;;  %v5717_v18 = vld [vmem:[%s12215_s6 + $0x588] sm:$0xf0] }
 0x230   :  { %4486 = vmatpush.bf16.msra.mxu0 %v5632_v47  ;;  %4513 = vmatpush.bf16.msra.mxu3 %v5752_v36  ;;  %v7537_v47 = vld [vmem:[%s12215_s6 + $0x474] sm:$0xf]  ;;  %v5581_v36 = vld [vmem:[%s12215_s6 + $0x478] sm:$0xf0]  ;;  %v5400_v45 = vor.u32 %v7491_v3, %v5397_v30  ;;  %v5589_v3 = vld [vmem:[%s12215_s6 + $0x488] sm:$0xf0] }
 0x231   :  { %v5584_v12 = vor.u32 %v7537_v47, %v5581_v36  ;;  %v7649_v47 = vld [vmem:[%s12215_s6 + $0x7f4] sm:$0xf]  ;;  %v6029_v21 = vld [vmem:[%s12215_s6 + $0x7f8] sm:$0xf0] }
 0x232   :  { %4448 = vmatpush.bf16.msra.mxu1 %v5432_v8  ;;  %4424 = vmatpush.bf16.msrb.mxu2 %v5288_v10  ;;  %v5416_v8 = vor.u32 %v7495_v2, %v5413_v15  ;;  %v5736_v10 = vor.u32 %v7575_v46, %v5733_v62  ;;  %v4170_v2 = vpop.f32.mrf.mxu2  ;;  %v5725_v15 = vld [vmem:[%s12215_s6 + $0x598] sm:$0xf0]  ;;  %v7541_v46 = vld [vmem:[%s12215_s6 + $0x494] sm:$0xf]  ;;  %v6032_v30 = vor.u32 %v7649_v47, %v6029_v21  ;;  %v7563_v21 = vld [vmem:[%s12215_s6 + $0x544] sm:$0xf] }
 0x233   :  { %v5597_v62 = vld [vmem:[%s12215_s6 + $0x498] sm:$0xf0]  ;;  %v7617_v2 = vld [vmem:[%s12215_s6 + $0x6f4] sm:$0xf] }
 0x234   :  { %4487 = vmatpush.bf16.msra.mxu0 %v5624_v4  ;;  %4514 = vmatpush.bf16.msra.mxu3 %v5744_v27  ;;  %v7535_v4 = vld [vmem:[%s12215_s6 + $0x464] sm:$0xf]  ;;  %v7569_v27 = vld [vmem:[%s12215_s6 + $0x574] sm:$0xf]  ;;  %v5600_v51 = vor.u32 %v7541_v46, %v5597_v62 }
 0x235   :  { %v5712_v36 = vor.u32 %v7569_v27, %v5709_v54  ;;  %v5557_v54 = vld [vmem:[%s12215_s6 + $0x448] sm:$0xf0]  ;;  %v4248_v46 = vpop.f32.mrf.mxu3  ;;  %v7565_v62 = vld [vmem:[%s12215_s6 + $0x554] sm:$0xf] }
 0x236   :  { %4449 = vmatpush.bf16.msra.mxu1 %v5424_v28  ;;  %4425 = vmatpush.bf16.msrb.mxu2 %v5280_v58  ;;  %v5408_v28 = vor.u32 %v7493_v34, %v5405_v35  ;;  %v5728_v58 = vor.u32 %v7573_v0, %v5725_v15  ;;  %v5576_v34 = vor.u32 %v7535_v4, %v5573_v22  ;;  %v7533_v35 = vld [vmem:[%s12215_s6 + $0x454] sm:$0xf]  ;;  %v5701_v0 = vld [vmem:[%s12215_s6 + $0x568] sm:$0xf0]  ;;  %v7647_v4 = vld [vmem:[%s12215_s6 + $0x7e4] sm:$0xf] }
 0x237   :  { %v6021_v22 = vld [vmem:[%s12215_s6 + $0x7e8] sm:$0xf0] }
 0x238   :  { %4488 = vmatpush.bf16.msra.mxu0 %v5616_v48  ;;  %4515 = vmatpush.bf16.msra.mxu3 %v5736_v10  ;;  %v5565_v48 = vld [vmem:[%s12215_s6 + $0x458] sm:$0xf0]  ;;  %v7567_v10 = vld [vmem:[%s12215_s6 + $0x564] sm:$0xf]  ;;  %v5877_v46 = vld [vmem:[%s12215_s6 + $0x6c8] sm:$0xf0] }
 0x239   :  { %v5568_v15 = vor.u32 %v7533_v35, %v5565_v48  ;;  %v5704_v27 = vor.u32 %v7567_v10, %v5701_v0  ;;  %v5893_v35 = vld [vmem:[%s12215_s6 + $0x6e8] sm:$0xf0]  ;;  %v7529_v10 = vld [vmem:[%s12215_s6 + $0x434] sm:$0xf] }
 0x23a   :  { %4450 = vmatpush.bf16.msra.mxu1 %v5416_v8  ;;  %4426 = vmatpush.bf16.msrb.mxu2 %v5272_v55  ;;  %v7571_v8 = vld [vmem:[%s12215_s6 + $0x584] sm:$0xf]  ;;  %v4235_v55 = vpop.f32.mrf.mxu0 }
 0x23b   :  { %v5685_v55 = vld [vmem:[%s12215_s6 + $0x548] sm:$0xf0] }
 0x23c   :  { %4489 = vmatpush.bf16.msra.mxu0 %v5608_v17  ;;  %4516 = vmatpush.bf16.msra.mxu3 %v5728_v58  ;;  %v7531_v17 = vld [vmem:[%s12215_s6 + $0x444] sm:$0xf] }
 0x23d   :  { %4427 = vmatmul.bf16.vlgmr.msrb.gmra.mxu2 %v8403_v25  ;;  %v5901_v25 = vld [vmem:[%s12215_s6 + $0x6f8] sm:$0xf0]  ;;  %v5560_v47 = vor.u32 %v7531_v17, %v5557_v54 }
 0x23e   :  { %4451 = vmatpush.bf16.msra.mxu1 %v5408_v28  ;;  %4471 = vmatpush.bf16.msra.mxu2 %v5584_v12  ;;  %v5720_v28 = vor.u32 %v7571_v8, %v5717_v18  ;;  %v7539_v12 = vld [vmem:[%s12215_s6 + $0x484] sm:$0xf]  ;;  %v5693_v8 = vld [vmem:[%s12215_s6 + $0x558] sm:$0xf0]  ;;  %v5904_v18 = vor.u32 %v7617_v2, %v5901_v25 }
 0x23f   :  { %v5592_v58 = vor.u32 %v7539_v12, %v5589_v3  ;;  %v5696_v48 = vor.u32 %v7565_v62, %v5693_v8  ;;  %v7613_v3 = vld [vmem:[%s12215_s6 + $0x6d4] sm:$0xf] }
 0x240   :  { %4490 = vmatpush.bf16.msra.mxu0 %v5600_v51  ;;  %4517 = vmatpush.bf16.msra.mxu3 %v5720_v28  ;;  %v5549_v51 = vld [vmem:[%s12215_s6 + $0x438] sm:$0xf0]  ;;  %v4207_v28 = vpop.f32.mrf.mxu1  ;;  %v7641_v8 = vld [vmem:[%s12215_s6 + $0x7b4] sm:$0xf] }
 0x241   :  { %v4208_v2 = vadd.f32 %v4207_v28, %v10598_v59  ;;  %v5552_v25 = vor.u32 %v7529_v10, %v5549_v51  ;;  %v5541_v59 = vld [vmem:[%s12215_s6 + $0x428] sm:$0xf0] }
 0x242   :  { %4452 = vmatpush.bf16.msra.mxu1 %v5400_v45  ;;  %4472 = vmatpush.bf16.msra.mxu2 %v5576_v34  ;;  %v6024_v45 = vor.u32 %v7647_v4, %v6021_v22  ;;  %v7615_v34 = vld [vmem:[%s12215_s6 + $0x6e4] sm:$0xf]  ;;  %v5688_v4 = vor.u32 %v7563_v21, %v5685_v55  ;;  %v7609_v55 = vld [vmem:[%s12215_s6 + $0x6b4] sm:$0xf] }
 0x243   :  { %4518 = vmatmul.bf16.vlgmr.msra.gmra.mxu3 %v8808_v49  ;;  %v5896_v0 = vor.u32 %v7615_v34, %v5893_v35  ;;  %v7643_v49 = vld [vmem:[%s12215_s6 + $0x7c4] sm:$0xf]  ;;  %v7525_v35 = vld [vmem:[%s12215_s6 + $0x414] sm:$0xf] }
 0x244   :  { %4562 = vmatpush.bf16.msrb.mxu3 %v6032_v30  ;;  %4491 = vmatpush.bf16.msra.mxu0 %v5592_v58  ;;  %v5885_v30 = vld [vmem:[%s12215_s6 + $0x6d8] sm:$0xf0]  ;;  %v7527_v22 = vld [vmem:[%s12215_s6 + $0x424] sm:$0xf] }
 0x245   :  { %4453 = vmatmul.bf16.vlgmr.msra.gmra.mxu1 %v8713_v60  ;;  %v6013_v60 = vld [vmem:[%s12215_s6 + $0x7d8] sm:$0xf0]  ;;  %v5888_v17 = vor.u32 %v7613_v3, %v5885_v30  ;;  %v7611_v58 = vld [vmem:[%s12215_s6 + $0x6c4] sm:$0xf]  ;;  %v5544_v62 = vor.u32 %v7527_v22, %v5541_v59  ;;  %v5989_v30 = vld [vmem:[%s12215_s6 + $0x7a8] sm:$0xf0]  ;;  %v10813_v59 = vpop.f32.mrf.mxu0 }
 0x246   :  { %4497 = vmatpush.bf16.msrb.mxu1 %v5712_v36  ;;  %4473 = vmatpush.bf16.msra.mxu2 %v5568_v15  ;;  %v7645_v36 = vld [vmem:[%s12215_s6 + $0x7d4] sm:$0xf]  ;;  %v6005_v15 = vld [vmem:[%s12215_s6 + $0x7c8] sm:$0xf0]  ;;  %v5880_v10 = vor.u32 %v7611_v58, %v5877_v46  ;;  %v7639_v3 = vld [vmem:[%s12215_s6 + $0x7a4] sm:$0xf] }
 0x247   :  { %v6016_v12 = vor.u32 %v7645_v36, %v6013_v60  ;;  %4492 = vmatmul.bf16.vlgmr.msra.gmra.mxu0 %v8924_v56  ;;  %v7561_v56 = vld [vmem:[%s12215_s6 + $0x534] sm:$0xf]  ;;  %v6008_v54 = vor.u32 %v7643_v49, %v6005_v15  ;;  %v7559_v60 = vld [vmem:[%s12215_s6 + $0x524] sm:$0xf]  ;;  %v5661_v15 = vld [vmem:[%s12215_s6 + $0x518] sm:$0xf0] }
 0x248   :  { %4536 = vmatpush.bf16.msrb.mxu0 %v5904_v18  ;;  %4563 = vmatpush.bf16.msrb.mxu3 %v6024_v45  ;;  %v5997_v18 = vld [vmem:[%s12215_s6 + $0x7b8] sm:$0xf0]  ;;  %v4220_v45 = vpop.f32.mrf.mxu2  ;;  %v4209_v51 = vpop.f32.mrf.mxu1  ;;  %v7557_v49 = vld [vmem:[%s12215_s6 + $0x514] sm:$0xf] }
 0x249   :  { %v4221_v36 = vadd.f32 %v4220_v45, %v4208_v2  ;;  %v6000_v21 = vor.u32 %v7641_v8, %v5997_v18  ;;  %v5837_v22 = vld [vmem:[%s12215_s6 + $0x678] sm:$0xf0]  ;;  %v7637_v46 = vld [vmem:[%s12215_s6 + $0x794] sm:$0xf]  ;;  %v7555_v18 = vld [vmem:[%s12215_s6 + $0x504] sm:$0xf] }
 0x24a   :  { %4498 = vmatpush.bf16.msrb.mxu1 %v5704_v27  ;;  %4474 = vmatpush.bf16.msra.mxu2 %v5560_v47  ;;  %v5677_v27 = vld [vmem:[%s12215_s6 + $0x538] sm:$0xf0]  ;;  %v5653_v45 = vld [vmem:[%s12215_s6 + $0x508] sm:$0xf0] }
 0x24b   :  { %v5680_v34 = vor.u32 %v7561_v56, %v5677_v27  ;;  %v5533_v47 = vld [vmem:[%s12215_s6 + $0x418] sm:$0xf0]  ;;  %v10787_v28 = vadd.f32 %v10609_v23, %v4221_v36  ;;  %v5525_v23 = vld [vmem:[%s12215_s6 + $0x408] sm:$0xf0]  ;;  %v5992_v27 = vor.u32 %v7639_v3, %v5989_v30  ;;  %v5656_v30 = vor.u32 %v7555_v18, %v5653_v45  ;;  %v7711_v45 = vld [vmem:[%s12215_s6 + $0x9e4] sm:$0xf] }
 0x24c   :  { %4537 = vmatpush.bf16.msrb.mxu0 %v5896_v0  ;;  %4564 = vmatpush.bf16.msrb.mxu3 %v6016_v12  ;;  %v5869_v0 = vld [vmem:[%s12215_s6 + $0x6b8] sm:$0xf0]  ;;  %v5536_v12 = vor.u32 %v7525_v35, %v5533_v47  ;;  %v7599_v47 = vld [vmem:[%s12215_s6 + $0x664] sm:$0xf]  ;;  %v5829_v36 = vld [vmem:[%s12215_s6 + $0x668] sm:$0xf0] }
 0x24d   :  { %v5872_v56 = vor.u32 %v7609_v55, %v5869_v0  ;;  %v5981_v35 = vld [vmem:[%s12215_s6 + $0x798] sm:$0xf0]  ;;  %v7605_v55 = vld [vmem:[%s12215_s6 + $0x694] sm:$0xf]  ;;  %v5973_v3 = vld [vmem:[%s12215_s6 + $0x788] sm:$0xf0] }
 0x24e   :  { %4499 = vmatpush.bf16.msrb.mxu1 %v5696_v48  ;;  %4475 = vmatpush.bf16.msra.mxu2 %v5552_v25  ;;  %v5669_v48 = vld [vmem:[%s12215_s6 + $0x528] sm:$0xf0]  ;;  %v7523_v25 = vld [vmem:[%s12215_s6 + $0x404] sm:$0xf]  ;;  %v5965_v51 = vld [vmem:[%s12215_s6 + $0x778] sm:$0xf0] }
 0x24f   :  { %v5672_v2 = vor.u32 %v7559_v60, %v5669_v48  ;;  %v5528_v58 = vor.u32 %v7523_v25, %v5525_v23  ;;  %v7633_v60 = vld [vmem:[%s12215_s6 + $0x774] sm:$0xf]  ;;  %v10842_v48 = vpop.f32.mrf.mxu3  ;;  %v5853_v0 = vld [vmem:[%s12215_s6 + $0x698] sm:$0xf0] }
 0x250   :  { %4538 = vmatpush.bf16.msrb.mxu0 %v5888_v17  ;;  %4565 = vmatpush.bf16.msrb.mxu3 %v6008_v54  ;;  %v7607_v17 = vld [vmem:[%s12215_s6 + $0x6a4] sm:$0xf]  ;;  %v5861_v54 = vld [vmem:[%s12215_s6 + $0x6a8] sm:$0xf0]  ;;  %v7597_v25 = vld [vmem:[%s12215_s6 + $0x654] sm:$0xf] }
 0x251   :  { %v7713_v23 = vld [vmem:[%s12215_s6 + $0x9f4] sm:$0xf] }
 0x252   :  { %4500 = vmatpush.bf16.msrb.mxu1 %v5688_v4  ;;  %4476 = vmatpush.bf16.msra.mxu2 %v5544_v62  ;;  %v7601_v4 = vld [vmem:[%s12215_s6 + $0x674] sm:$0xf]  ;;  %v5664_v62 = vor.u32 %v7557_v49, %v5661_v15  ;;  %v5968_v49 = vor.u32 %v7633_v60, %v5965_v51  ;;  %v5821_v15 = vld [vmem:[%s12215_s6 + $0x658] sm:$0xf0] }
 0x253   :  { %v5840_v8 = vor.u32 %v7601_v4, %v5837_v22  ;;  %v7631_v4 = vld [vmem:[%s12215_s6 + $0x764] sm:$0xf]  ;;  %v5856_v22 = vor.u32 %v7605_v55, %v5853_v0  ;;  %v5824_v18 = vor.u32 %v7597_v25, %v5821_v15  ;;  %v7629_v51 = vld [vmem:[%s12215_s6 + $0x754] sm:$0xf] }
 0x254   :  { %4539 = vmatpush.bf16.msrb.mxu0 %v5880_v10  ;;  %4566 = vmatpush.bf16.msrb.mxu3 %v6000_v21  ;;  %v5864_v10 = vor.u32 %v7607_v17, %v5861_v54  ;;  %v5984_v21 = vor.u32 %v7637_v46, %v5981_v35  ;;  %v5957_v17 = vld [vmem:[%s12215_s6 + $0x768] sm:$0xf0]  ;;  %v7627_v15 = vld [vmem:[%s12215_s6 + $0x744] sm:$0xf] }
 0x255   :  { %v5845_v46 = vld [vmem:[%s12215_s6 + $0x688] sm:$0xf0]  ;;  %v5960_v35 = vor.u32 %v7631_v4, %v5957_v17  ;;  %v7677_v17 = vld [vmem:[%s12215_s6 + $0x8d4] sm:$0xf] }
 0x256   :  { %4501 = vmatpush.bf16.msrb.mxu1 %v5680_v34  ;;  %4477 = vmatpush.bf16.msra.mxu2 %v5536_v12  ;;  %v4222_v34 = vpop.f32.mrf.mxu2  ;;  %v7635_v12 = vld [vmem:[%s12215_s6 + $0x784] sm:$0xf]  ;;  %v5941_v4 = vld [vmem:[%s12215_s6 + $0x748] sm:$0xf0] }
 0x257   :  { %v5976_v54 = vor.u32 %v7635_v12, %v5973_v3  ;;  %v6277_v34 = vld [vmem:[%s12215_s6 + $0x9e8] sm:$0xf0]  ;;  %v7679_v12 = vld [vmem:[%s12215_s6 + $0x8e4] sm:$0xf] }
 0x258   :  { %4540 = vmatpush.bf16.msrb.mxu0 %v5872_v56  ;;  %4567 = vmatpush.bf16.msrb.mxu3 %v5992_v27  ;;  %v6285_v56 = vld [vmem:[%s12215_s6 + $0x9f8] sm:$0xf0]  ;;  %v4287_v27 = vpop.f32.mrf.mxu0  ;;  %v6280_v0 = vor.u32 %v7711_v45, %v6277_v34  ;;  %v6149_v3 = vld [vmem:[%s12215_s6 + $0x8e8] sm:$0xf0] }
 0x259   :  { %v5933_v45 = vld [vmem:[%s12215_s6 + $0x738] sm:$0xf0] }
 0x25a   :  { %4502 = vmatpush.bf16.msrb.mxu1 %v5672_v2  ;;  %4478 = vmatpush.bf16.msra.mxu2 %v5528_v58  ;;  %v5832_v2 = vor.u32 %v7599_v47, %v5829_v36  ;;  %v7603_v58 = vld [vmem:[%s12215_s6 + $0x684] sm:$0xf]  ;;  %v5813_v36 = vld [vmem:[%s12215_s6 + $0x648] sm:$0xf0] }
 0x25b   :  { %v7595_v47 = vld [vmem:[%s12215_s6 + $0x644] sm:$0xf]  ;;  %v5848_v60 = vor.u32 %v7603_v58, %v5845_v46  ;;  %v6261_v46 = vld [vmem:[%s12215_s6 + $0x9c8] sm:$0xf0] }
 0x25c   :  { %4541 = vmatpush.bf16.msrb.mxu0 %v5864_v10  ;;  %4568 = vmatpush.bf16.msrb.mxu3 %v5984_v21  ;;  %v4300_v10 = vpop.f32.mrf.mxu3  ;;  %v5949_v21 = vld [vmem:[%s12215_s6 + $0x758] sm:$0xf0] }
 0x25d   :  { %4479 = vmatmul.bf16.vlgmr.msra.gmra.mxu2 %v8561_v41  ;;  %v6157_v41 = vld [vmem:[%s12215_s6 + $0x8f8] sm:$0xf0]  ;;  %v5952_v25 = vor.u32 %v7629_v51, %v5949_v21 }
 0x25e   :  { %4503 = vmatpush.bf16.msrb.mxu1 %v5664_v62  ;;  %4523 = vmatpush.bf16.msrb.mxu2 %v5840_v8  ;;  %v6288_v62 = vor.u32 %v7713_v23, %v6285_v56  ;;  %v7681_v8 = vld [vmem:[%s12215_s6 + $0x8f4] sm:$0xf]  ;;  %v4259_v56 = vpop.f32.mrf.mxu1  ;;  %v6253_v10 = vld [vmem:[%s12215_s6 + $0x9b8] sm:$0xf0] }
 0x25f   :  { %v6160_v55 = vor.u32 %v7681_v8, %v6157_v41  ;;  %v7593_v23 = vld [vmem:[%s12215_s6 + $0x634] sm:$0xf]  ;;  %v7591_v8 = vld [vmem:[%s12215_s6 + $0x624] sm:$0xf]  ;;  %v5797_v41 = vld [vmem:[%s12215_s6 + $0x628] sm:$0xf0] }
 0x260   :  { %4542 = vmatpush.bf16.msrb.mxu0 %v5856_v22  ;;  %4569 = vmatpush.bf16.msrb.mxu3 %v5976_v54  ;;  %v6152_v22 = vor.u32 %v7679_v12, %v6149_v3  ;;  %v6141_v54 = vld [vmem:[%s12215_s6 + $0x8d8] sm:$0xf0]  ;;  %v4272_v51 = vpop.f32.mrf.mxu2  ;;  %v7623_v3 = vld [vmem:[%s12215_s6 + $0x724] sm:$0xf] }
 0x261   :  { %v6144_v34 = vor.u32 %v7677_v17, %v6141_v54  ;;  %v7587_v17 = vld [vmem:[%s12215_s6 + $0x604] sm:$0xf]  ;;  %v7621_v54 = vld [vmem:[%s12215_s6 + $0x714] sm:$0xf] }
 0x262   :  { %4504 = vmatpush.bf16.msrb.mxu1 %v5656_v30  ;;  %4524 = vmatpush.bf16.msrb.mxu2 %v5832_v2  ;;  %v5816_v30 = vor.u32 %v7595_v47, %v5813_v36  ;;  %v7709_v2 = vld [vmem:[%s12215_s6 + $0x9d4] sm:$0xf]  ;;  %v7675_v47 = vld [vmem:[%s12215_s6 + $0x8c4] sm:$0xf]  ;;  %v5800_v36 = vor.u32 %v7591_v8, %v5797_v41  ;;  %v11019_v8 = vpop.f32.mrf.mxu0 }
 0x263   :  { %4570 = vmatmul.bf16.vlgmr.msrb.gmra.mxu3 %v9023_v50  ;;  %v7707_v50 = vld [vmem:[%s12215_s6 + $0x9c4] sm:$0xf] }
 0x264   :  { %4614 = vmatpush.bf16.msra.mxu3 %v6288_v62  ;;  %4543 = vmatpush.bf16.msrb.mxu0 %v5848_v60  ;;  %v5944_v62 = vor.u32 %v7627_v15, %v5941_v4  ;;  %v7705_v60 = vld [vmem:[%s12215_s6 + $0x9b4] sm:$0xf] }
 0x265   :  { %4505 = vmatmul.bf16.vlgmr.msrb.gmra.mxu1 %v8928_v57  ;;  %v6269_v57 = vld [vmem:[%s12215_s6 + $0x9d8] sm:$0xf0] }
 0x266   :  { %4549 = vmatpush.bf16.msra.mxu1 %v5968_v49  ;;  %4525 = vmatpush.bf16.msrb.mxu2 %v5824_v18  ;;  %v5805_v49 = vld [vmem:[%s12215_s6 + $0x638] sm:$0xf0]  ;;  %v6272_v27 = vor.u32 %v7709_v2, %v6269_v57  ;;  %v7625_v18 = vld [vmem:[%s12215_s6 + $0x734] sm:$0xf]  ;;  %v4261_v57 = vpop.f32.mrf.mxu1 }
 0x267   :  { %v5808_v58 = vor.u32 %v7593_v23, %v5805_v49  ;;  %4544 = vmatmul.bf16.vlgmr.msrb.gmra.mxu0 %v9139_v63  ;;  %v4247_v63 = vadd.f32 %v10638_v26, %v10787_v28  ;;  %v6133_v26 = vld [vmem:[%s12215_s6 + $0x8c8] sm:$0xf0]  ;;  %v5936_v21 = vor.u32 %v7625_v18, %v5933_v45  ;;  %v7673_v23 = vld [vmem:[%s12215_s6 + $0x8b4] sm:$0xf]  ;;  %v6125_v49 = vld [vmem:[%s12215_s6 + $0x8b8] sm:$0xf0] }
 0x268   :  { %4588 = vmatpush.bf16.msra.mxu0 %v6160_v55  ;;  %4615 = vmatpush.bf16.msra.mxu3 %v6280_v0  ;;  %v7589_v55 = vld [vmem:[%s12215_s6 + $0x614] sm:$0xf]  ;;  %v5789_v0 = vld [vmem:[%s12215_s6 + $0x618] sm:$0xf0]  ;;  %v6136_v2 = vor.u32 %v7675_v47, %v6133_v26  ;;  %v6128_v41 = vor.u32 %v7673_v23, %v6125_v49  ;;  %v6117_v18 = vld [vmem:[%s12215_s6 + $0x8a8] sm:$0xf0] }
 0x269   :  { %v4260_v28 = vadd.f32 %v4259_v56, %v4247_v63  ;;  %v5792_v4 = vor.u32 %v7589_v55, %v5789_v0  ;;  %v6245_v56 = vld [vmem:[%s12215_s6 + $0x9a8] sm:$0xf0]  ;;  %v6221_v0 = vld [vmem:[%s12215_s6 + $0x978] sm:$0xf0]  ;;  %v7699_v57 = vld [vmem:[%s12215_s6 + $0x984] sm:$0xf] }
 0x26a   :  { %4550 = vmatpush.bf16.msra.mxu1 %v5960_v35  ;;  %4526 = vmatpush.bf16.msrb.mxu2 %v5816_v30  ;;  %v6264_v35 = vor.u32 %v7707_v50, %v6261_v46  ;;  %v5925_v30 = vld [vmem:[%s12215_s6 + $0x728] sm:$0xf0]  ;;  %v5917_v50 = vld [vmem:[%s12215_s6 + $0x718] sm:$0xf0]  ;;  %v7665_v46 = vld [vmem:[%s12215_s6 + $0x874] sm:$0xf] }
 0x26b   :  { %v4273_v12 = vadd.f32 %v4272_v51, %v4260_v28  ;;  %v5909_v26 = vld [vmem:[%s12215_s6 + $0x708] sm:$0xf0]  ;;  %v4274_v28 = vpop.f32.mrf.mxu2 }
 0x26c   :  { %4589 = vmatpush.bf16.msra.mxu0 %v6152_v22  ;;  %4616 = vmatpush.bf16.msra.mxu3 %v6272_v27  ;;  %v7703_v22 = vld [vmem:[%s12215_s6 + $0x9a4] sm:$0xf]  ;;  %v5928_v27 = vor.u32 %v7623_v3, %v5925_v30  ;;  %v6085_v51 = vld [vmem:[%s12215_s6 + $0x868] sm:$0xf0]  ;;  %v7669_v3 = vld [vmem:[%s12215_s6 + $0x894] sm:$0xf] }
 0x26d   :  { %v4286_v15 = vadd.f32 %v10813_v59, %v4273_v12  ;;  %v5781_v59 = vld [vmem:[%s12215_s6 + $0x608] sm:$0xf0]  ;;  %v6248_v63 = vor.u32 %v7703_v22, %v6245_v56  ;;  %v6109_v30 = vld [vmem:[%s12215_s6 + $0x898] sm:$0xf0] }
 0x26e   :  { %4551 = vmatpush.bf16.msra.mxu1 %v5952_v25  ;;  %4527 = vmatpush.bf16.msrb.mxu2 %v5808_v58  ;;  %v6256_v25 = vor.u32 %v7705_v60, %v6253_v10  ;;  %v5784_v45 = vor.u32 %v7587_v17, %v5781_v59  ;;  %v6237_v60 = vld [vmem:[%s12215_s6 + $0x998] sm:$0xf0]  ;;  %v7663_v10 = vld [vmem:[%s12215_s6 + $0x864] sm:$0xf]  ;;  %v6112_v17 = vor.u32 %v7669_v3, %v6109_v30  ;;  %v7773_v3 = vld [vmem:[%s12215_s6 + $0xbd4] sm:$0xf] }
 0x26f   :  { %v11008_v58 = vadd.f32 %v10842_v48, %v4286_v15  ;;  %v7671_v48 = vld [vmem:[%s12215_s6 + $0x8a4] sm:$0xf]  ;;  %v6088_v49 = vor.u32 %v7663_v10, %v6085_v51  ;;  %v7661_v15 = vld [vmem:[%s12215_s6 + $0x854] sm:$0xf]  ;;  %v6077_v56 = vld [vmem:[%s12215_s6 + $0x858] sm:$0xf0] }
 0x270   :  { %4590 = vmatpush.bf16.msra.mxu0 %v6144_v34  ;;  %4617 = vmatpush.bf16.msra.mxu3 %v6264_v35  ;;  %v7619_v34 = vld [vmem:[%s12215_s6 + $0x704] sm:$0xf]  ;;  %v5920_v35 = vor.u32 %v7621_v54, %v5917_v50  ;;  %v6120_v55 = vor.u32 %v7671_v48, %v6117_v18  ;;  %v6541_v59 = vld [vmem:[%s12215_s6 + $0xbf8] sm:$0xf0]  ;;  %v4339_v54 = vpop.f32.mrf.mxu0  ;;  %v6213_v50 = vld [vmem:[%s12215_s6 + $0x968] sm:$0xf0]  ;;  %v6080_v18 = vor.u32 %v7661_v15, %v6077_v56 }
 0x271   :  { %v5912_v23 = vor.u32 %v7619_v34, %v5909_v26  ;;  %v7745_v48 = vld [vmem:[%s12215_s6 + $0xaf4] sm:$0xf]  ;;  %v6533_v34 = vld [vmem:[%s12215_s6 + $0xbe8] sm:$0xf0] }
 0x272   :  { %4552 = vmatpush.bf16.msra.mxu1 %v5944_v62  ;;  %4528 = vmatpush.bf16.msrb.mxu2 %v5800_v36  ;;  %v6093_v62 = vld [vmem:[%s12215_s6 + $0x878] sm:$0xf0]  ;;  %v7701_v36 = vld [vmem:[%s12215_s6 + $0x994] sm:$0xf]  ;;  %v6069_v26 = vld [vmem:[%s12215_s6 + $0x848] sm:$0xf0] }
 0x273   :  { %v6096_v47 = vor.u32 %v7665_v46, %v6093_v62  ;;  %v6240_v12 = vor.u32 %v7701_v36, %v6237_v60  ;;  %v7667_v62 = vld [vmem:[%s12215_s6 + $0x884] sm:$0xf]  ;;  %v7693_v36 = vld [vmem:[%s12215_s6 + $0x954] sm:$0xf]  ;;  %v6205_v60 = vld [vmem:[%s12215_s6 + $0x958] sm:$0xf0] }
 0x274   :  { %4591 = vmatpush.bf16.msra.mxu0 %v6136_v2  ;;  %4618 = vmatpush.bf16.msra.mxu3 %v6256_v25  ;;  %v11057_v2 = vpop.f32.mrf.mxu3  ;;  %v6229_v25 = vld [vmem:[%s12215_s6 + $0x988] sm:$0xf0]  ;;  %v6208_v30 = vor.u32 %v7693_v36, %v6205_v60  ;;  %v7741_v56 = vld [vmem:[%s12215_s6 + $0xad4] sm:$0xf]  ;;  %v7687_v60 = vld [vmem:[%s12215_s6 + $0x924] sm:$0xf] }
 0x275   :  { %v6232_v46 = vor.u32 %v7699_v57, %v6229_v25  ;;  %v7657_v57 = vld [vmem:[%s12215_s6 + $0x834] sm:$0xf]  ;;  %v6061_v25 = vld [vmem:[%s12215_s6 + $0x838] sm:$0xf0]  ;;  %v6517_v54 = vld [vmem:[%s12215_s6 + $0xbc8] sm:$0xf0] }
 0x276   :  { %4553 = vmatpush.bf16.msra.mxu1 %v5936_v21  ;;  %4529 = vmatpush.bf16.msrb.mxu2 %v5792_v4  ;;  %v7697_v21 = vld [vmem:[%s12215_s6 + $0x974] sm:$0xf] }
 0x277   :  { %v7777_v4 = vld [vmem:[%s12215_s6 + $0xbf4] sm:$0xf]  ;;  %v6224_v22 = vor.u32 %v7697_v21, %v6221_v0  ;;  %v7743_v21 = vld [vmem:[%s12215_s6 + $0xae4] sm:$0xf] }
 0x278   :  { %4592 = vmatpush.bf16.msra.mxu0 %v6128_v41  ;;  %4619 = vmatpush.bf16.msra.mxu3 %v6248_v63  ;;  %v6101_v41 = vld [vmem:[%s12215_s6 + $0x888] sm:$0xf0]  ;;  %v6544_v63 = vor.u32 %v7777_v4, %v6541_v59  ;;  %v6064_v59 = vor.u32 %v7657_v57, %v6061_v25 }
 0x279   :  { %v6104_v28 = vor.u32 %v7667_v62, %v6101_v41  ;;  %v6189_v62 = vld [vmem:[%s12215_s6 + $0x938] sm:$0xf0]  ;;  %v6501_v57 = vld [vmem:[%s12215_s6 + $0xba8] sm:$0xf0] }
 0x27a   :  { %4554 = vmatpush.bf16.msra.mxu1 %v5928_v27  ;;  %4530 = vmatpush.bf16.msrb.mxu2 %v5784_v45  ;;  %v7695_v27 = vld [vmem:[%s12215_s6 + $0x964] sm:$0xf]  ;;  %v4311_v4 = vpop.f32.mrf.mxu1 }
 0x27b   :  { %v7775_v45 = vld [vmem:[%s12215_s6 + $0xbe4] sm:$0xf] }
 0x27c   :  { %4593 = vmatpush.bf16.msra.mxu0 %v6120_v55  ;;  %4620 = vmatpush.bf16.msra.mxu3 %v6240_v12  ;;  %v6536_v51 = vor.u32 %v7775_v45, %v6533_v34  ;;  %v6405_v55 = vld [vmem:[%s12215_s6 + $0xae8] sm:$0xf0]  ;;  %v4352_v0 = vpop.f32.mrf.mxu3  ;;  %v7769_v45 = vld [vmem:[%s12215_s6 + $0xbb4] sm:$0xf]  ;;  %v6509_v34 = vld [vmem:[%s12215_s6 + $0xbb8] sm:$0xf0] }
 0x27d   :  { %4531 = vmatmul.bf16.vlgmr.msrb.gmra.mxu2 %v8778_v31  ;;  %v6413_v31 = vld [vmem:[%s12215_s6 + $0xaf8] sm:$0xf0]  ;;  %v6408_v15 = vor.u32 %v7743_v21, %v6405_v55  ;;  %v6512_v55 = vor.u32 %v7769_v45, %v6509_v34  ;;  %v7737_v0 = vld [vmem:[%s12215_s6 + $0xab4] sm:$0xf] }
 0x27e   :  { %4555 = vmatpush.bf16.msra.mxu1 %v5920_v35  ;;  %4575 = vmatpush.bf16.msra.mxu2 %v6096_v47  ;;  %v6216_v35 = vor.u32 %v7695_v27, %v6213_v50  ;;  %v7659_v47 = vld [vmem:[%s12215_s6 + $0x844] sm:$0xf]  ;;  %v6416_v10 = vor.u32 %v7745_v48, %v6413_v31  ;;  %v6397_v27 = vld [vmem:[%s12215_s6 + $0xad8] sm:$0xf0]  ;;  %v6389_v31 = vld [vmem:[%s12215_s6 + $0xac8] sm:$0xf0] }
 0x27f   :  { %v6072_v12 = vor.u32 %v7659_v47, %v6069_v26  ;;  %v6400_v41 = vor.u32 %v7741_v56, %v6397_v27  ;;  %v7739_v48 = vld [vmem:[%s12215_s6 + $0xac4] sm:$0xf]  ;;  %v7653_v26 = vld [vmem:[%s12215_s6 + $0x814] sm:$0xf]  ;;  %v6349_v27 = vld [vmem:[%s12215_s6 + $0xa78] sm:$0xf0] }
 0x280   :  { %4594 = vmatpush.bf16.msra.mxu0 %v6112_v17  ;;  %4621 = vmatpush.bf16.msra.mxu3 %v6232_v46  ;;  %v4312_v17 = vadd.f32 %v4311_v4, %v11008_v58  ;;  %v7655_v46 = vld [vmem:[%s12215_s6 + $0x824] sm:$0xf]  ;;  %v6053_v58 = vld [vmem:[%s12215_s6 + $0x828] sm:$0xf0]  ;;  %v7729_v56 = vld [vmem:[%s12215_s6 + $0xa74] sm:$0xf] }
 0x281   :  { %v7761_v45 = vld [vmem:[%s12215_s6 + $0xb74] sm:$0xf] }
 0x282   :  { %4556 = vmatpush.bf16.msra.mxu1 %v5912_v23  ;;  %4576 = vmatpush.bf16.msra.mxu2 %v6088_v49  ;;  %v7691_v23 = vld [vmem:[%s12215_s6 + $0x944] sm:$0xf]  ;;  %v6197_v49 = vld [vmem:[%s12215_s6 + $0x948] sm:$0xf0]  ;;  %v4313_v21 = vpop.f32.mrf.mxu1 }
 0x283   :  { %4622 = vmatmul.bf16.vlgmr.msra.gmra.mxu3 %v9233_v61  ;;  %v7771_v61 = vld [vmem:[%s12215_s6 + $0xbc4] sm:$0xf]  ;;  %v6200_v50 = vor.u32 %v7691_v23, %v6197_v49  ;;  %v7685_v49 = vld [vmem:[%s12215_s6 + $0x914] sm:$0xf] }
 0x284   :  { %4666 = vmatpush.bf16.msrb.mxu3 %v6544_v63  ;;  %4595 = vmatpush.bf16.msra.mxu0 %v6104_v28  ;;  %v6520_v63 = vor.u32 %v7771_v61, %v6517_v54  ;;  %v6045_v28 = vld [vmem:[%s12215_s6 + $0x818] sm:$0xf0]  ;;  %v7651_v23 = vld [vmem:[%s12215_s6 + $0x804] sm:$0xf]  ;;  %v6373_v61 = vld [vmem:[%s12215_s6 + $0xaa8] sm:$0xf0] }
 0x285   :  { %4557 = vmatmul.bf16.vlgmr.msra.gmra.mxu1 %v9143_v33  ;;  %v6525_v33 = vld [vmem:[%s12215_s6 + $0xbd8] sm:$0xf0] }
 0x286   :  { %4601 = vmatpush.bf16.msrb.mxu1 %v6224_v22  ;;  %4577 = vmatpush.bf16.msra.mxu2 %v6080_v18  ;;  %v6528_v22 = vor.u32 %v7773_v3, %v6525_v33  ;;  %v6056_v18 = vor.u32 %v7655_v46, %v6053_v58  ;;  %v6048_v33 = vor.u32 %v7653_v26, %v6045_v28  ;;  %v7733_v28 = vld [vmem:[%s12215_s6 + $0xa94] sm:$0xf] }
 0x287   :  { %4596 = vmatmul.bf16.vlgmr.msra.gmra.mxu0 %v9351_v14  ;;  %v7689_v14 = vld [vmem:[%s12215_s6 + $0x934] sm:$0xf]  ;;  %v6352_v58 = vor.u32 %v7729_v56, %v6349_v27 }
 0x288   :  { %4640 = vmatpush.bf16.msrb.mxu0 %v6416_v10  ;;  %4667 = vmatpush.bf16.msrb.mxu3 %v6536_v51  ;;  %v6192_v47 = vor.u32 %v7689_v14, %v6189_v62  ;;  %v6181_v10 = vld [vmem:[%s12215_s6 + $0x928] sm:$0xf0]  ;;  %v6392_v51 = vor.u32 %v7739_v48, %v6389_v31  ;;  %v7683_v14 = vld [vmem:[%s12215_s6 + $0x904] sm:$0xf]  ;;  %v6493_v48 = vld [vmem:[%s12215_s6 + $0xb98] sm:$0xf0] }
 0x289   :  { %v6184_v25 = vor.u32 %v7687_v60, %v6181_v10  ;;  %v6165_v62 = vld [vmem:[%s12215_s6 + $0x908] sm:$0xf0]  ;;  %v7727_v31 = vld [vmem:[%s12215_s6 + $0xa64] sm:$0xf]  ;;  %v7809_v27 = vld [vmem:[%s12215_s6 + $0xcf4] sm:$0xf] }
 0x28a   :  { %4602 = vmatpush.bf16.msrb.mxu1 %v6216_v35  ;;  %4578 = vmatpush.bf16.msra.mxu2 %v6072_v12  ;;  %v4324_v35 = vpop.f32.mrf.mxu2  ;;  %v6381_v12 = vld [vmem:[%s12215_s6 + $0xab8] sm:$0xf0]  ;;  %v7763_v10 = vld [vmem:[%s12215_s6 + $0xb84] sm:$0xf]  ;;  %v6168_v21 = vor.u32 %v7683_v14, %v6165_v62  ;;  %v7757_v62 = vld [vmem:[%s12215_s6 + $0xb54] sm:$0xf] }
 0x28b   :  { %v4325_v36 = vadd.f32 %v4324_v35, %v4312_v17  ;;  %v6384_v17 = vor.u32 %v7737_v0, %v6381_v12  ;;  %v4363_v35 = vpop.f32.mrf.mxu1  ;;  %v7725_v0 = vld [vmem:[%s12215_s6 + $0xa54] sm:$0xf] }
 0x28c   :  { %4641 = vmatpush.bf16.msrb.mxu0 %v6408_v15  ;;  %4668 = vmatpush.bf16.msrb.mxu3 %v6528_v22  ;;  %v11212_v15 = vpop.f32.mrf.mxu0  ;;  %v6173_v22 = vld [vmem:[%s12215_s6 + $0x918] sm:$0xf0]  ;;  %v7841_v12 = vld [vmem:[%s12215_s6 + $0xdf4] sm:$0xf] }
 0x28d   :  { %v4338_v3 = vadd.f32 %v11019_v8, %v4325_v36  ;;  %v6037_v8 = vld [vmem:[%s12215_s6 + $0x808] sm:$0xf0]  ;;  %v6176_v46 = vor.u32 %v7685_v49, %v6173_v22  ;;  %v6365_v36 = vld [vmem:[%s12215_s6 + $0xa98] sm:$0xf0] }
 0x28e   :  { %4603 = vmatpush.bf16.msrb.mxu1 %v6208_v30  ;;  %4579 = vmatpush.bf16.msra.mxu2 %v6064_v59  ;;  %v7767_v30 = vld [vmem:[%s12215_s6 + $0xba4] sm:$0xf]  ;;  %v6040_v54 = vor.u32 %v7651_v23, %v6037_v8  ;;  %v6797_v23 = vld [vmem:[%s12215_s6 + $0xdf8] sm:$0xf0]  ;;  %v6469_v8 = vld [vmem:[%s12215_s6 + $0xb68] sm:$0xf0] }
 0x28f   :  { %v4351_v4 = vadd.f32 %v11057_v2, %v4338_v3  ;;  %v6504_v59 = vor.u32 %v7767_v30, %v6501_v57  ;;  %v7735_v2 = vld [vmem:[%s12215_s6 + $0xaa4] sm:$0xf]  ;;  %v6333_v30 = vld [vmem:[%s12215_s6 + $0xa58] sm:$0xf0]  ;;  %v6357_v22 = vld [vmem:[%s12215_s6 + $0xa88] sm:$0xf0]  ;;  %v6800_v56 = vor.u32 %v7841_v12, %v6797_v23 }
 0x290   :  { %4642 = vmatpush.bf16.msrb.mxu0 %v6400_v41  ;;  %4669 = vmatpush.bf16.msrb.mxu3 %v6520_v63  ;;  %v11239_v63 = vpop.f32.mrf.mxu3  ;;  %v6376_v34 = vor.u32 %v7735_v2, %v6373_v61  ;;  %v7759_v57 = vld [vmem:[%s12215_s6 + $0xb64] sm:$0xf]  ;;  %v6789_v2 = vld [vmem:[%s12215_s6 + $0xde8] sm:$0xf0] }
 0x291   :  { %v11262_v60 = vadd.f32 %v4363_v35, %v4351_v4  ;;  %v7731_v4 = vld [vmem:[%s12215_s6 + $0xa84] sm:$0xf]  ;;  %v7837_v35 = vld [vmem:[%s12215_s6 + $0xdd4] sm:$0xf] }
 0x292   :  { %4604 = vmatpush.bf16.msrb.mxu1 %v6200_v50  ;;  %4580 = vmatpush.bf16.msra.mxu2 %v6056_v18  ;;  %v7765_v50 = vld [vmem:[%s12215_s6 + $0xb94] sm:$0xf]  ;;  %v4326_v41 = vpop.f32.mrf.mxu2  ;;  %v6341_v18 = vld [vmem:[%s12215_s6 + $0xa68] sm:$0xf0] }
 0x293   :  { %v6496_v26 = vor.u32 %v7765_v50, %v6493_v48  ;;  %v7723_v50 = vld [vmem:[%s12215_s6 + $0xa44] sm:$0xf]  ;;  %v4365_v14 = vpop.f32.mrf.mxu1  ;;  %v6461_v41 = vld [vmem:[%s12215_s6 + $0xb58] sm:$0xf0] }
 0x294   :  { %4643 = vmatpush.bf16.msrb.mxu0 %v6392_v51  ;;  %4670 = vmatpush.bf16.msrb.mxu3 %v6512_v55  ;;  %v6485_v51 = vld [vmem:[%s12215_s6 + $0xb88] sm:$0xf0]  ;;  %v6344_v55 = vor.u32 %v7727_v31, %v6341_v18  ;;  %v4391_v3 = vpop.f32.mrf.mxu0  ;;  %v7807_v18 = vld [vmem:[%s12215_s6 + $0xce4] sm:$0xf] }
 0x295   :  { %v6488_v49 = vor.u32 %v7763_v10, %v6485_v51  ;;  %v6453_v10 = vld [vmem:[%s12215_s6 + $0xb48] sm:$0xf0] }
 0x296   :  { %4605 = vmatpush.bf16.msrb.mxu1 %v6192_v47  ;;  %4581 = vmatpush.bf16.msra.mxu2 %v6048_v33  ;;  %v6477_v47 = vld [vmem:[%s12215_s6 + $0xb78] sm:$0xf0]  ;;  %v6773_v3 = vld [vmem:[%s12215_s6 + $0xdc8] sm:$0xf0] }
 0x297   :  { %v6480_v33 = vor.u32 %v7761_v45, %v6477_v47  ;;  %v6661_v45 = vld [vmem:[%s12215_s6 + $0xce8] sm:$0xf0]  ;;  %v6464_v47 = vor.u32 %v7757_v62, %v6461_v41  ;;  %v7801_v62 = vld [vmem:[%s12215_s6 + $0xcb4] sm:$0xf] }
 0x298   :  { %4644 = vmatpush.bf16.msrb.mxu0 %v6384_v17  ;;  %4671 = vmatpush.bf16.msrb.mxu3 %v6504_v59  ;;  %v6336_v17 = vor.u32 %v7725_v0, %v6333_v30  ;;  %v7839_v59 = vld [vmem:[%s12215_s6 + $0xde4] sm:$0xf]  ;;  %v4417_v61 = vpop.f32.mrf.mxu3  ;;  %v6664_v51 = vor.u32 %v7807_v18, %v6661_v45  ;;  %v6653_v0 = vld [vmem:[%s12215_s6 + $0xcd8] sm:$0xf0]  ;;  %v6757_v18 = vld [vmem:[%s12215_s6 + $0xda8] sm:$0xf0] }
 0x299   :  { %v6792_v31 = vor.u32 %v7839_v59, %v6789_v2  ;;  %v7719_v30 = vld [vmem:[%s12215_s6 + $0xa24] sm:$0xf]  ;;  %v7717_v2 = vld [vmem:[%s12215_s6 + $0xa14] sm:$0xf]  ;;  %v6301_v61 = vld [vmem:[%s12215_s6 + $0xa18] sm:$0xf0] }
 0x29a   :  { %4606 = vmatpush.bf16.msrb.mxu1 %v6184_v25  ;;  %4582 = vmatpush.bf16.msra.mxu2 %v6040_v54  ;;  %v6368_v25 = vor.u32 %v7733_v28, %v6365_v36  ;;  %v6472_v54 = vor.u32 %v7759_v57, %v6469_v8  ;;  %v6317_v28 = vld [vmem:[%s12215_s6 + $0xa38] sm:$0xf0]  ;;  %v7755_v36 = vld [vmem:[%s12215_s6 + $0xb44] sm:$0xf]  ;;  %v6309_v57 = vld [vmem:[%s12215_s6 + $0xa28] sm:$0xf0] }
 0x29c   :  { %4645 = vmatpush.bf16.msrb.mxu0 %v6376_v34  ;;  %4672 = vmatpush.bf16.msrb.mxu3 %v6496_v26  ;;  %v7721_v26 = vld [vmem:[%s12215_s6 + $0xa34] sm:$0xf] }
 0x29d   :  { %4583 = vmatmul.bf16.vlgmr.msra.gmra.mxu2 %v8993_v29  ;;  %v6669_v29 = vld [vmem:[%s12215_s6 + $0xcf8] sm:$0xf0]  ;;  %v6320_v12 = vor.u32 %v7721_v26, %v6317_v28  ;;  %v7793_v28 = vld [vmem:[%s12215_s6 + $0xc74] sm:$0xf] }
 0x29e   :  { %4607 = vmatpush.bf16.msrb.mxu1 %v6176_v46  ;;  %4627 = vmatpush.bf16.msrb.mxu2 %v6352_v58  ;;  %v6325_v46 = vld [vmem:[%s12215_s6 + $0xa48] sm:$0xf0]  ;;  %v6360_v58 = vor.u32 %v7731_v4, %v6357_v22  ;;  %v6672_v48 = vor.u32 %v7809_v27, %v6669_v29  ;;  %v6312_v22 = vor.u32 %v7719_v30, %v6309_v57  ;;  %v7833_v27 = vld [vmem:[%s12215_s6 + $0xdb4] sm:$0xf]  ;;  %v6765_v29 = vld [vmem:[%s12215_s6 + $0xdb8] sm:$0xf0] }
 0x29f   :  { %v6328_v34 = vor.u32 %v7723_v50, %v6325_v46  ;;  %v6645_v4 = vld [vmem:[%s12215_s6 + $0xcc8] sm:$0xf0]  ;;  %v7751_v50 = vld [vmem:[%s12215_s6 + $0xb24] sm:$0xf]  ;;  %v6768_v14 = vor.u32 %v7833_v27, %v6765_v29  ;;  %v6429_v26 = vld [vmem:[%s12215_s6 + $0xb18] sm:$0xf0] }
 0x2a0   :  { %4646 = vmatpush.bf16.msrb.mxu0 %v6368_v25  ;;  %4673 = vmatpush.bf16.msrb.mxu3 %v6488_v49  ;;  %v6445_v25 = vld [vmem:[%s12215_s6 + $0xb38] sm:$0xf0]  ;;  %v7803_v49 = vld [vmem:[%s12215_s6 + $0xcc4] sm:$0xf]  ;;  %v6437_v46 = vld [vmem:[%s12215_s6 + $0xb28] sm:$0xf0] }
 0x2a1   :  { %v6440_v45 = vor.u32 %v7751_v50, %v6437_v46  ;;  %v7747_v57 = vld [vmem:[%s12215_s6 + $0xb04] sm:$0xf]  ;;  %v7797_v29 = vld [vmem:[%s12215_s6 + $0xc94] sm:$0xf] }
 0x2a2   :  { %4608 = vmatpush.bf16.msrb.mxu1 %v6168_v21  ;;  %4628 = vmatpush.bf16.msrb.mxu2 %v6344_v55  ;;  %v7805_v55 = vld [vmem:[%s12215_s6 + $0xcd4] sm:$0xf] }
 0x2a3   :  { %4674 = vmatmul.bf16.vlgmr.msrb.gmra.mxu3 %v9440_v32  ;;  %v7835_v32 = vld [vmem:[%s12215_s6 + $0xdc4] sm:$0xf]  ;;  %v6656_v23 = vor.u32 %v7805_v55, %v6653_v0  ;;  %v6629_v55 = vld [vmem:[%s12215_s6 + $0xca8] sm:$0xf0]  ;;  %v7789_v50 = vld [vmem:[%s12215_s6 + $0xc54] sm:$0xf] }
 0x2a4   :  { %4718 = vmatpush.bf16.msra.mxu3 %v6800_v56  ;;  %4647 = vmatpush.bf16.msrb.mxu0 %v6360_v58  ;;  %v6776_v8 = vor.u32 %v7835_v32, %v6773_v3  ;;  %v4402_v56 = vpop.f32.mrf.mxu1  ;;  %v6648_v58 = vor.u32 %v7803_v49, %v6645_v4  ;;  %v7829_v3 = vld [vmem:[%s12215_s6 + $0xd94] sm:$0xf]  ;;  %v6597_v49 = vld [vmem:[%s12215_s6 + $0xc68] sm:$0xf0] }
 0x2a5   :  { %4609 = vmatmul.bf16.vlgmr.msrb.gmra.mxu1 %v9353_v19  ;;  %v6781_v19 = vld [vmem:[%s12215_s6 + $0xdd8] sm:$0xf0]  ;;  %v7825_v4 = vld [vmem:[%s12215_s6 + $0xd74] sm:$0xf] }
 0x2a6   :  { %4653 = vmatpush.bf16.msra.mxu1 %v6480_v33  ;;  %4629 = vmatpush.bf16.msrb.mxu2 %v6336_v17  ;;  %v6784_v21 = vor.u32 %v7837_v35, %v6781_v19  ;;  %v6456_v33 = vor.u32 %v7755_v36, %v6453_v10  ;;  %v4376_v17 = vpop.f32.mrf.mxu2  ;;  %v7749_v35 = vld [vmem:[%s12215_s6 + $0xb14] sm:$0xf]  ;;  %v11417_v19 = vpop.f32.mrf.mxu0  ;;  %v6605_v36 = vld [vmem:[%s12215_s6 + $0xc78] sm:$0xf0] }
 0x2a7   :  { %4648 = vmatmul.bf16.vlgmr.msrb.gmra.mxu0 %v9572_v11  ;;  %v7753_v11 = vld [vmem:[%s12215_s6 + $0xb34] sm:$0xf]  ;;  %v6608_v30 = vor.u32 %v7793_v28, %v6605_v36  ;;  %v7045_v28 = vld [vmem:[%s12215_s6 + $0xfe8] sm:$0xf0] }
 0x2a8   :  { %4692 = vmatpush.bf16.msra.mxu0 %v6672_v48  ;;  %4719 = vmatpush.bf16.msra.mxu3 %v6792_v31  ;;  %v6448_v59 = vor.u32 %v7753_v11, %v6445_v25  ;;  %v6304_v48 = vor.u32 %v7717_v2, %v6301_v61  ;;  %v7831_v31 = vld [vmem:[%s12215_s6 + $0xda4] sm:$0xf]  ;;  %v6421_v11 = vld [vmem:[%s12215_s6 + $0xb08] sm:$0xf0]  ;;  %v11446_v25 = vpop.f32.mrf.mxu3  ;;  %v7905_v46 = vld [vmem:[%s12215_s6 + $0xff4] sm:$0xf] }
 0x2a9   :  { %v6741_v2 = vld [vmem:[%s12215_s6 + $0xd88] sm:$0xf0]  ;;  %v6424_v61 = vor.u32 %v7747_v57, %v6421_v11 }
 0x2aa   :  { %4654 = vmatpush.bf16.msra.mxu1 %v6472_v54  ;;  %4630 = vmatpush.bf16.msrb.mxu2 %v6328_v34  ;;  %v4377_v54 = vadd.f32 %v4376_v17, %v9471_v52  ;;  %v6637_v52 = vld [vmem:[%s12215_s6 + $0xcb8] sm:$0xf0]  ;;  %v7715_v34 = vld [vmem:[%s12215_s6 + $0xa04] sm:$0xf]  ;;  %v6917_v57 = vld [vmem:[%s12215_s6 + $0xee8] sm:$0xf0] }
 0x2ab   :  { %v6640_v10 = vor.u32 %v7801_v62, %v6637_v52  ;;  %v6621_v17 = vld [vmem:[%s12215_s6 + $0xc98] sm:$0xf0]  ;;  %v7823_v52 = vld [vmem:[%s12215_s6 + $0xd64] sm:$0xf] }
 0x2ac   :  { %4693 = vmatpush.bf16.msra.mxu0 %v6664_v51  ;;  %4720 = vmatpush.bf16.msra.mxu3 %v6784_v21  ;;  %v4390_v41 = vadd.f32 %v11212_v15, %v4377_v54  ;;  %v6293_v15 = vld [vmem:[%s12215_s6 + $0xa08] sm:$0xf0]  ;;  %v6760_v51 = vor.u32 %v7831_v31, %v6757_v18  ;;  %v7799_v21 = vld [vmem:[%s12215_s6 + $0xca4] sm:$0xf]  ;;  %v4404_v32 = vpop.f32.mrf.mxu1  ;;  %v6589_v62 = vld [vmem:[%s12215_s6 + $0xc58] sm:$0xf0] }
 0x2ad   :  { %v6725_v31 = vld [vmem:[%s12215_s6 + $0xd68] sm:$0xf0]  ;;  %v6717_v32 = vld [vmem:[%s12215_s6 + $0xd58] sm:$0xf0] }
 0x2ae   :  { %4655 = vmatpush.bf16.msra.mxu1 %v6464_v47  ;;  %4631 = vmatpush.bf16.msrb.mxu2 %v6320_v12  ;;  %v4403_v47 = vadd.f32 %v4402_v56, %v4390_v41  ;;  %v6296_v12 = vor.u32 %v7715_v34, %v6293_v15  ;;  %v6733_v56 = vld [vmem:[%s12215_s6 + $0xd78] sm:$0xf0]  ;;  %v6624_v41 = vor.u32 %v7797_v29, %v6621_v17  ;;  %v6613_v34 = vld [vmem:[%s12215_s6 + $0xc88] sm:$0xf0]  ;;  %v7869_v29 = vld [vmem:[%s12215_s6 + $0xed4] sm:$0xf] }
 0x2af   :  { %v6909_v17 = vld [vmem:[%s12215_s6 + $0xed8] sm:$0xf0] }
 0x2b0   :  { %4694 = vmatpush.bf16.msra.mxu0 %v6656_v23  ;;  %4721 = vmatpush.bf16.msra.mxu3 %v6776_v8  ;;  %v11435_v0 = vadd.f32 %v11239_v63, %v4403_v47  ;;  %v4378_v63 = vpop.f32.mrf.mxu2  ;;  %v6749_v23 = vld [vmem:[%s12215_s6 + $0xd98] sm:$0xf0]  ;;  %v7791_v8 = vld [vmem:[%s12215_s6 + $0xc64] sm:$0xf]  ;;  %v6592_v47 = vor.u32 %v7789_v50, %v6589_v62  ;;  %v4469_v36 = vpop.f32.mrf.mxu3  ;;  %v6565_v50 = vld [vmem:[%s12215_s6 + $0xc28] sm:$0xf0] }
 0x2b1   :  { %v6752_v27 = vor.u32 %v7829_v3, %v6749_v23  ;;  %v6600_v54 = vor.u32 %v7791_v8, %v6597_v49  ;;  %v7901_v63 = vld [vmem:[%s12215_s6 + $0xfd4] sm:$0xf]  ;;  %v6573_v49 = vld [vmem:[%s12215_s6 + $0xc38] sm:$0xf0]  ;;  %v7867_v62 = vld [vmem:[%s12215_s6 + $0xec4] sm:$0xf] }
 0x2b2   :  { %4656 = vmatpush.bf16.msra.mxu1 %v6456_v33  ;;  %4632 = vmatpush.bf16.msrb.mxu2 %v6312_v22  ;;  %v6432_v33 = vor.u32 %v7749_v35, %v6429_v26  ;;  %v6632_v22 = vor.u32 %v7799_v21, %v6629_v55  ;;  %v7873_v35 = vld [vmem:[%s12215_s6 + $0xef4] sm:$0xf]  ;;  %v7903_v26 = vld [vmem:[%s12215_s6 + $0xfe4] sm:$0xf]  ;;  %v6581_v21 = vld [vmem:[%s12215_s6 + $0xc48] sm:$0xf0] }
 0x2b3   :  { %v7785_v8 = vld [vmem:[%s12215_s6 + $0xc34] sm:$0xf] }
 0x2b4   :  { %4695 = vmatpush.bf16.msra.mxu0 %v6648_v58  ;;  %4722 = vmatpush.bf16.msra.mxu3 %v6768_v14  ;;  %v4443_v58 = vpop.f32.mrf.mxu0  ;;  %v6736_v14 = vor.u32 %v7825_v4, %v6733_v56  ;;  %v7819_v4 = vld [vmem:[%s12215_s6 + $0xd44] sm:$0xf] }
 0x2b5   :  { %v6912_v58 = vor.u32 %v7869_v29, %v6909_v17  ;;  %v7893_v29 = vld [vmem:[%s12215_s6 + $0xf94] sm:$0xf] }
 0x2b6   :  { %4657 = vmatpush.bf16.msra.mxu1 %v6448_v59  ;;  %4633 = vmatpush.bf16.msrb.mxu2 %v6304_v48  ;;  %v7827_v59 = vld [vmem:[%s12215_s6 + $0xd84] sm:$0xf]  ;;  %v7053_v48 = vld [vmem:[%s12215_s6 + $0xff8] sm:$0xf0] }
 0x2b7   :  { %v6744_v18 = vor.u32 %v7827_v59, %v6741_v2  ;;  %v7056_v15 = vor.u32 %v7905_v46, %v7053_v48  ;;  %v6576_v59 = vor.u32 %v7785_v8, %v6573_v49  ;;  %v7029_v2 = vld [vmem:[%s12215_s6 + $0xfc8] sm:$0xf0]  ;;  %v6701_v46 = vld [vmem:[%s12215_s6 + $0xd38] sm:$0xf0]  ;;  %v7863_v49 = vld [vmem:[%s12215_s6 + $0xea4] sm:$0xf] }
 0x2b8   :  { %4696 = vmatpush.bf16.msra.mxu0 %v6640_v10  ;;  %4723 = vmatpush.bf16.msra.mxu3 %v6760_v51  ;;  %v6728_v10 = vor.u32 %v7823_v52, %v6725_v31  ;;  %v7787_v51 = vld [vmem:[%s12215_s6 + $0xc44] sm:$0xf]  ;;  %v6901_v52 = vld [vmem:[%s12215_s6 + $0xec8] sm:$0xf0]  ;;  %v7897_v31 = vld [vmem:[%s12215_s6 + $0xfb4] sm:$0xf] }
 0x2b9   :  { %v6584_v11 = vor.u32 %v7787_v51, %v6581_v21 }
 0x2ba   :  { %4658 = vmatpush.bf16.msra.mxu1 %v6440_v45  ;;  %4634 = vmatpush.bf16.msrb.mxu2 %v6296_v12  ;;  %v7795_v45 = vld [vmem:[%s12215_s6 + $0xc84] sm:$0xf]  ;;  %v7821_v12 = vld [vmem:[%s12215_s6 + $0xd54] sm:$0xf] }
 0x2bb   :  { %v6616_v55 = vor.u32 %v7795_v45, %v6613_v34  ;;  %v6720_v23 = vor.u32 %v7821_v12, %v6717_v32  ;;  %v7013_v12 = vld [vmem:[%s12215_s6 + $0xfa8] sm:$0xf0] }
 0x2bc   :  { %4697 = vmatpush.bf16.msra.mxu0 %v6632_v22  ;;  %4724 = vmatpush.bf16.msra.mxu3 %v6752_v27  ;;  %v6709_v22 = vld [vmem:[%s12215_s6 + $0xd48] sm:$0xf0] }
 0x2bd   :  { %4635 = vmatmul.bf16.vlgmr.msrb.gmra.mxu2 %v9204_v37  ;;  %v6925_v37 = vld [vmem:[%s12215_s6 + $0xef8] sm:$0xf0] }
 0x2be   :  { %4659 = vmatpush.bf16.msra.mxu1 %v6432_v33  ;;  %4679 = vmatpush.bf16.msra.mxu2 %v6608_v30  ;;  %v6928_v3 = vor.u32 %v7873_v35, %v6925_v37  ;;  %v7048_v33 = vor.u32 %v7903_v26, %v7045_v28  ;;  %v7871_v30 = vld [vmem:[%s12215_s6 + $0xee4] sm:$0xf]  ;;  %v6557_v35 = vld [vmem:[%s12215_s6 + $0xc18] sm:$0xf0]  ;;  %v6693_v26 = vld [vmem:[%s12215_s6 + $0xd28] sm:$0xf0]  ;;  %v6904_v28 = vor.u32 %v7867_v62, %v6901_v52 }
 0x2bf   :  { %v6920_v56 = vor.u32 %v7871_v30, %v6917_v57  ;;  %v7861_v52 = vld [vmem:[%s12215_s6 + $0xe94] sm:$0xf] }
 0x2c0   :  { %4698 = vmatpush.bf16.msra.mxu0 %v6624_v41  ;;  %4725 = vmatpush.bf16.msra.mxu3 %v6744_v18  ;;  %v7021_v18 = vld [vmem:[%s12215_s6 + $0xfb8] sm:$0xf0]  ;;  %v4428_v45 = vpop.f32.mrf.mxu2 }
 0x2c1   :  { %v4429_v37 = vadd.f32 %v4428_v45, %v11435_v0  ;;  %v7024_v36 = vor.u32 %v7897_v31, %v7021_v18  ;;  %v6893_v0 = vld [vmem:[%s12215_s6 + $0xeb8] sm:$0xf0]  ;;  %v6997_v31 = vld [vmem:[%s12215_s6 + $0xf88] sm:$0xf0] }
 0x2c2   :  { %4660 = vmatpush.bf16.msra.mxu1 %v6424_v61  ;;  %4680 = vmatpush.bf16.msra.mxu2 %v6600_v54  ;;  %v6712_v61 = vor.u32 %v7819_v4, %v6709_v22  ;;  %v7783_v54 = vld [vmem:[%s12215_s6 + $0xc24] sm:$0xf]  ;;  %v4454_v48 = vpop.f32.mrf.mxu1  ;;  %v6885_v4 = vld [vmem:[%s12215_s6 + $0xea8] sm:$0xf0] }
 0x2c3   :  { %4726 = vmatmul.bf16.vlgmr.msra.gmra.mxu3 %v9658_v40  ;;  %v7899_v40 = vld [vmem:[%s12215_s6 + $0xfc4] sm:$0xf]  ;;  %v6568_v41 = vor.u32 %v7783_v54, %v6565_v50  ;;  %v4442_v51 = vadd.f32 %v11417_v19, %v4429_v37  ;;  %v6549_v19 = vld [vmem:[%s12215_s6 + $0xc08] sm:$0xf0]  ;;  %v7005_v54 = vld [vmem:[%s12215_s6 + $0xf98] sm:$0xf0] }
 0x2c4   :  { %4770 = vmatpush.bf16.msrb.mxu3 %v7056_v15  ;;  %4699 = vmatpush.bf16.msra.mxu0 %v6616_v55  ;;  %v7781_v15 = vld [vmem:[%s12215_s6 + $0xc14] sm:$0xf]  ;;  %v7895_v55 = vld [vmem:[%s12215_s6 + $0xfa4] sm:$0xf]  ;;  %v11622_v30 = vpop.f32.mrf.mxu0  ;;  %v7008_v62 = vor.u32 %v7893_v29, %v7005_v54  ;;  %v6965_v54 = vld [vmem:[%s12215_s6 + $0xf48] sm:$0xf0] }
 0x2c5   :  { %4661 = vmatmul.bf16.vlgmr.msra.gmra.mxu1 %v9574_v20  ;;  %v7037_v20 = vld [vmem:[%s12215_s6 + $0xfd8] sm:$0xf0]  ;;  %v6560_v21 = vor.u32 %v7781_v15, %v6557_v35  ;;  %v4455_v57 = vadd.f32 %v4454_v48, %v4442_v51  ;;  %v7016_v8 = vor.u32 %v7895_v55, %v7013_v12  ;;  %v7855_v50 = vld [vmem:[%s12215_s6 + $0xe64] sm:$0xf]  ;;  %v7969_v15 = vld [vmem:[%s12215_s6 + $0x11f4] sm:$0xf] }
 0x2c6   :  { %4705 = vmatpush.bf16.msrb.mxu1 %v6736_v14  ;;  %4681 = vmatpush.bf16.msra.mxu2 %v6592_v47  ;;  %v7040_v27 = vor.u32 %v7901_v63, %v7037_v20  ;;  %v7032_v14 = vor.u32 %v7899_v40, %v7029_v2  ;;  %v7815_v47 = vld [vmem:[%s12215_s6 + $0xd24] sm:$0xf]  ;;  %v7857_v63 = vld [vmem:[%s12215_s6 + $0xe74] sm:$0xf]  ;;  %v6861_v20 = vld [vmem:[%s12215_s6 + $0xe78] sm:$0xf0] }
 0x2c7   :  { %4700 = vmatmul.bf16.vlgmr.msra.gmra.mxu0 %v9788_v43  ;;  %v7817_v43 = vld [vmem:[%s12215_s6 + $0xd34] sm:$0xf]  ;;  %v6696_v32 = vor.u32 %v7815_v47, %v6693_v26  ;;  %v11640_v22 = vadd.f32 %v11446_v25, %v4455_v57  ;;  %v7811_v40 = vld [vmem:[%s12215_s6 + $0xd04] sm:$0xf]  ;;  %v6677_v2 = vld [vmem:[%s12215_s6 + $0xd08] sm:$0xf0] }
 0x2c8   :  { %4744 = vmatpush.bf16.msrb.mxu0 %v6928_v3  ;;  %4771 = vmatpush.bf16.msrb.mxu3 %v7048_v33  ;;  %v6704_v34 = vor.u32 %v7817_v43, %v6701_v46  ;;  %v7779_v3 = vld [vmem:[%s12215_s6 + $0xc04] sm:$0xf]  ;;  %v7813_v33 = vld [vmem:[%s12215_s6 + $0xd14] sm:$0xf]  ;;  %v4430_v25 = vpop.f32.mrf.mxu2  ;;  %v6853_v43 = vld [vmem:[%s12215_s6 + $0xe68] sm:$0xf0]  ;;  %v6680_v18 = vor.u32 %v7811_v40, %v6677_v2 }
 0x2c9   :  { %v7889_v46 = vld [vmem:[%s12215_s6 + $0xf74] sm:$0xf]  ;;  %v7891_v48 = vld [vmem:[%s12215_s6 + $0xf84] sm:$0xf]  ;;  %v6856_v45 = vor.u32 %v7855_v50, %v6853_v43  ;;  %v6845_v47 = vld [vmem:[%s12215_s6 + $0xe58] sm:$0xf0] }
 0x2ca   :  { %4706 = vmatpush.bf16.msrb.mxu1 %v6728_v10  ;;  %4682 = vmatpush.bf16.msra.mxu2 %v6584_v11  ;;  %v7865_v10 = vld [vmem:[%s12215_s6 + $0xeb4] sm:$0xf]  ;;  %v6685_v11 = vld [vmem:[%s12215_s6 + $0xd18] sm:$0xf0]  ;;  %v7887_v26 = vld [vmem:[%s12215_s6 + $0xf64] sm:$0xf] }
 0x2cb   :  { %v6688_v17 = vor.u32 %v7813_v33, %v6685_v11  ;;  %v7859_v51 = vld [vmem:[%s12215_s6 + $0xe84] sm:$0xf]  ;;  %v7937_v12 = vld [vmem:[%s12215_s6 + $0x10f4] sm:$0xf]  ;;  %v6829_v2 = vld [vmem:[%s12215_s6 + $0xe38] sm:$0xf0] }
 0x2cc   :  { %4745 = vmatpush.bf16.msrb.mxu0 %v6920_v56  ;;  %4772 = vmatpush.bf16.msrb.mxu3 %v7040_v27  ;;  %v6552_v56 = vor.u32 %v7779_v3, %v6549_v19  ;;  %v4456_v27 = vpop.f32.mrf.mxu1  ;;  %v4495_v35 = vpop.f32.mrf.mxu0  ;;  %v7967_v3 = vld [vmem:[%s12215_s6 + $0x11e4] sm:$0xf]  ;;  %v7301_v19 = vld [vmem:[%s12215_s6 + $0x11e8] sm:$0xf0]  ;;  %v7849_v40 = vld [vmem:[%s12215_s6 + $0xe34] sm:$0xf] }
 0x2cd   :  { %v7851_v11 = vld [vmem:[%s12215_s6 + $0xe44] sm:$0xf]  ;;  %v7173_v27 = vld [vmem:[%s12215_s6 + $0x10e8] sm:$0xf0] }
 0x2ce   :  { %4707 = vmatpush.bf16.msrb.mxu1 %v6720_v23  ;;  %4683 = vmatpush.bf16.msra.mxu2 %v6576_v59  ;;  %v6896_v23 = vor.u32 %v7865_v10, %v6893_v0  ;;  %v6864_v59 = vor.u32 %v7857_v63, %v6861_v20  ;;  %v6981_v10 = vld [vmem:[%s12215_s6 + $0xf68] sm:$0xf0]  ;;  %v7000_v0 = vor.u32 %v7891_v48, %v6997_v31  ;;  %v7883_v25 = vld [vmem:[%s12215_s6 + $0xf44] sm:$0xf]  ;;  %v6957_v31 = vld [vmem:[%s12215_s6 + $0xf38] sm:$0xf0] }
 0x2cf   :  { %v6984_v57 = vor.u32 %v7887_v26, %v6981_v10  ;;  %v6837_v63 = vld [vmem:[%s12215_s6 + $0xe48] sm:$0xf0]  ;;  %v7277_v26 = vld [vmem:[%s12215_s6 + $0x11b8] sm:$0xf0]  ;;  %v7845_v10 = vld [vmem:[%s12215_s6 + $0xe14] sm:$0xf] }
 0x2d0   :  { %4746 = vmatpush.bf16.msrb.mxu0 %v6912_v58  ;;  %4773 = vmatpush.bf16.msrb.mxu3 %v7032_v14  ;;  %v6888_v58 = vor.u32 %v7863_v49, %v6885_v4  ;;  %v6989_v14 = vld [vmem:[%s12215_s6 + $0xf78] sm:$0xf0]  ;;  %v7304_v4 = vor.u32 %v7967_v3, %v7301_v19  ;;  %v6840_v29 = vor.u32 %v7851_v11, %v6837_v63  ;;  %v6821_v48 = vld [vmem:[%s12215_s6 + $0xe28] sm:$0xf0]  ;;  %v7843_v63 = vld [vmem:[%s12215_s6 + $0xe04] sm:$0xf] }
 0x2d1   :  { %v6992_v37 = vor.u32 %v7889_v46, %v6989_v14  ;;  %v7933_v46 = vld [vmem:[%s12215_s6 + $0x10d4] sm:$0xf]  ;;  %v6832_v14 = vor.u32 %v7849_v40, %v6829_v2 }
 0x2d2   :  { %4708 = vmatpush.bf16.msrb.mxu1 %v6712_v61  ;;  %4684 = vmatpush.bf16.msra.mxu2 %v6568_v41  ;;  %v11651_v61 = vpop.f32.mrf.mxu3  ;;  %v6877_v41 = vld [vmem:[%s12215_s6 + $0xe98] sm:$0xf0] }
 0x2d4   :  { %4747 = vmatpush.bf16.msrb.mxu0 %v6904_v28  ;;  %4774 = vmatpush.bf16.msrb.mxu3 %v7024_v36  ;;  %v6880_v28 = vor.u32 %v7861_v52, %v6877_v41  ;;  %v7309_v36 = vld [vmem:[%s12215_s6 + $0x11f8] sm:$0xf0]  ;;  %v6968_v52 = vor.u32 %v7883_v25, %v6965_v54  ;;  %v7847_v41 = vld [vmem:[%s12215_s6 + $0xe24] sm:$0xf]  ;;  %v7957_v25 = vld [vmem:[%s12215_s6 + $0x1194] sm:$0xf] }
 0x2d5   :  { %v7312_v55 = vor.u32 %v7969_v15, %v7309_v36  ;;  %v7157_v15 = vld [vmem:[%s12215_s6 + $0x10c8] sm:$0xf0]  ;;  %v6824_v35 = vor.u32 %v7847_v41, %v6821_v48  ;;  %v7245_v48 = vld [vmem:[%s12215_s6 + $0x1178] sm:$0xf0] }
 0x2d6   :  { %4709 = vmatpush.bf16.msrb.mxu1 %v6704_v34  ;;  %4685 = vmatpush.bf16.msra.mxu2 %v6560_v21  ;;  %v7853_v34 = vld [vmem:[%s12215_s6 + $0xe54] sm:$0xf]  ;;  %v6869_v21 = vld [vmem:[%s12215_s6 + $0xe88] sm:$0xf0] }
 0x2d7   :  { %v6872_v20 = vor.u32 %v7859_v51, %v6869_v21  ;;  %v7879_v21 = vld [vmem:[%s12215_s6 + $0xf24] sm:$0xf] }
 0x2d8   :  { %4748 = vmatpush.bf16.msrb.mxu0 %v6896_v23  ;;  %4775 = vmatpush.bf16.msrb.mxu3 %v7016_v8  ;;  %v7885_v23 = vld [vmem:[%s12215_s6 + $0xf54] sm:$0xf]  ;;  %v6973_v8 = vld [vmem:[%s12215_s6 + $0xf58] sm:$0xf0] }
 0x2da   :  { %4710 = vmatpush.bf16.msrb.mxu1 %v6696_v32  ;;  %4686 = vmatpush.bf16.msra.mxu2 %v6552_v56  ;;  %v6848_v32 = vor.u32 %v7853_v34, %v6845_v47  ;;  %v4521_v33 = vpop.f32.mrf.mxu3  ;;  %v7935_v56 = vld [vmem:[%s12215_s6 + $0x10e4] sm:$0xf]  ;;  %v7961_v47 = vld [vmem:[%s12215_s6 + $0x11b4] sm:$0xf] }
 0x2db   :  { %v7176_v50 = vor.u32 %v7935_v56, %v7173_v27  ;;  %v7931_v34 = vld [vmem:[%s12215_s6 + $0x10c4] sm:$0xf]  ;;  %v7117_v56 = vld [vmem:[%s12215_s6 + $0x1078] sm:$0xf0] }
 0x2dc   :  { %4749 = vmatpush.bf16.msrb.mxu0 %v6888_v58  ;;  %4776 = vmatpush.bf16.msrb.mxu3 %v7008_v62  ;;  %v7165_v58 = vld [vmem:[%s12215_s6 + $0x10d8] sm:$0xf0]  ;;  %v7285_v62 = vld [vmem:[%s12215_s6 + $0x11c8] sm:$0xf0]  ;;  %v7959_v33 = vld [vmem:[%s12215_s6 + $0x11a4] sm:$0xf] }
 0x2dd   :  { %4687 = vmatmul.bf16.vlgmr.msra.gmra.mxu2 %v9438_v24  ;;  %v7181_v24 = vld [vmem:[%s12215_s6 + $0x10f8] sm:$0xf0] }
 0x2de   :  { %4711 = vmatpush.bf16.msrb.mxu1 %v6688_v17  ;;  %4731 = vmatpush.bf16.msrb.mxu2 %v6864_v59  ;;  %v7184_v49 = vor.u32 %v7937_v12, %v7181_v24  ;;  %v7965_v17 = vld [vmem:[%s12215_s6 + $0x11d4] sm:$0xf]  ;;  %v6976_v59 = vor.u32 %v7885_v23, %v6973_v8  ;;  %v7160_v12 = vor.u32 %v7931_v34, %v7157_v15  ;;  %v7253_v34 = vld [vmem:[%s12215_s6 + $0x1188] sm:$0xf0] }
 0x2df   :  { %v7280_v24 = vor.u32 %v7961_v47, %v7277_v26  ;;  %v7917_v26 = vld [vmem:[%s12215_s6 + $0x1054] sm:$0xf] }
 0x2e0   :  { %4750 = vmatpush.bf16.msrb.mxu0 %v6880_v28  ;;  %4777 = vmatpush.bf16.msrb.mxu3 %v7000_v0  ;;  %v4480_v28 = vpop.f32.mrf.mxu2  ;;  %v6813_v0 = vld [vmem:[%s12215_s6 + $0xe18] sm:$0xf0] }
 0x2e1   :  { %v4481_v51 = vadd.f32 %v4480_v28, %v11640_v22  ;;  %v7149_v22 = vld [vmem:[%s12215_s6 + $0x10b8] sm:$0xf0]  ;;  %v6816_v19 = vor.u32 %v7845_v10, %v6813_v0  ;;  %v7237_v0 = vld [vmem:[%s12215_s6 + $0x1168] sm:$0xf0] }
 0x2e2   :  { %4712 = vmatpush.bf16.msrb.mxu1 %v6680_v18  ;;  %4732 = vmatpush.bf16.msrb.mxu2 %v6856_v45  ;;  %v7168_v18 = vor.u32 %v7933_v46, %v7165_v58  ;;  %v6933_v46 = vld [vmem:[%s12215_s6 + $0xf08] sm:$0xf0]  ;;  %v7101_v28 = vld [vmem:[%s12215_s6 + $0x1058] sm:$0xf0] }
 0x2e3   :  { %4778 = vmatmul.bf16.vlgmr.msrb.gmra.mxu3 %v9874_v39  ;;  %v7963_v39 = vld [vmem:[%s12215_s6 + $0x11c4] sm:$0xf]  ;;  %v4494_v3 = vadd.f32 %v11622_v30, %v4481_v51  ;;  %v6805_v30 = vld [vmem:[%s12215_s6 + $0xe08] sm:$0xf0] }
 0x2e4   :  { %4822 = vmatpush.bf16.msra.mxu3 %v7312_v55  ;;  %4751 = vmatpush.bf16.msrb.mxu0 %v6872_v20  ;;  %v7288_v45 = vor.u32 %v7963_v39, %v7285_v62  ;;  %v6949_v55 = vld [vmem:[%s12215_s6 + $0xf28] sm:$0xf0]  ;;  %v7877_v20 = vld [vmem:[%s12215_s6 + $0xf14] sm:$0xf]  ;;  %v11827_v23 = vpop.f32.mrf.mxu0  ;;  %v6808_v40 = vor.u32 %v7843_v63, %v6805_v30  ;;  %v7919_v39 = vld [vmem:[%s12215_s6 + $0x1064] sm:$0xf] }
 0x2e5   :  { %4713 = vmatmul.bf16.vlgmr.msrb.gmra.mxu1 %v9790_v44  ;;  %v7293_v44 = vld [vmem:[%s12215_s6 + $0x11d8] sm:$0xf0]  ;;  %v6952_v11 = vor.u32 %v7879_v21, %v6949_v55  ;;  %v7109_v62 = vld [vmem:[%s12215_s6 + $0x1068] sm:$0xf0]  ;;  %v7923_v21 = vld [vmem:[%s12215_s6 + $0x1084] sm:$0xf] }
 0x2e6   :  { %4757 = vmatpush.bf16.msra.mxu1 %v6992_v37  ;;  %4733 = vmatpush.bf16.msrb.mxu2 %v6848_v32  ;;  %v7296_v43 = vor.u32 %v7965_v17, %v7293_v44  ;;  %v4506_v37 = vpop.f32.mrf.mxu1  ;;  %v7929_v32 = vld [vmem:[%s12215_s6 + $0x10b4] sm:$0xf]  ;;  %v7927_v17 = vld [vmem:[%s12215_s6 + $0x10a4] sm:$0xf]  ;;  %v7141_v44 = vld [vmem:[%s12215_s6 + $0x10a8] sm:$0xf0]  ;;  %v11856_v58 = vpop.f32.mrf.mxu3 }
 0x2e7   :  { %4752 = vmatmul.bf16.vlgmr.msrb.gmra.mxu0 %v9998_v6  ;;  %v7881_v6 = vld [vmem:[%s12215_s6 + $0xf34] sm:$0xf]  ;;  %v4507_v8 = vadd.f32 %v4506_v37, %v4494_v3  ;;  %v7152_v27 = vor.u32 %v7929_v32, %v7149_v22  ;;  %v7144_v41 = vor.u32 %v7927_v17, %v7141_v44  ;;  %v7125_v55 = vld [vmem:[%s12215_s6 + $0x1088] sm:$0xf0]  ;;  %v7915_v32 = vld [vmem:[%s12215_s6 + $0x1044] sm:$0xf] }
 0x2e8   :  { %4796 = vmatpush.bf16.msra.mxu0 %v7184_v49  ;;  %4823 = vmatpush.bf16.msra.mxu3 %v7304_v4  ;;  %v6960_v36 = vor.u32 %v7881_v6, %v6957_v31  ;;  %v6941_v49 = vld [vmem:[%s12215_s6 + $0xf18] sm:$0xf0]  ;;  %v7921_v4 = vld [vmem:[%s12215_s6 + $0x1074] sm:$0xf]  ;;  %v7093_v22 = vld [vmem:[%s12215_s6 + $0x1048] sm:$0xf0]  ;;  %v7128_v3 = vor.u32 %v7923_v21, %v7125_v55 }
 0x2e9   :  { %v6944_v54 = vor.u32 %v7877_v20, %v6941_v49  ;;  %v7925_v31 = vld [vmem:[%s12215_s6 + $0x1094] sm:$0xf]  ;;  %v7085_v30 = vld [vmem:[%s12215_s6 + $0x1038] sm:$0xf0]  ;;  %v7947_v20 = vld [vmem:[%s12215_s6 + $0x1144] sm:$0xf] }
 0x2ea   :  { %4758 = vmatpush.bf16.msra.mxu1 %v6984_v57  ;;  %4734 = vmatpush.bf16.msrb.mxu2 %v6840_v29  ;;  %v7269_v57 = vld [vmem:[%s12215_s6 + $0x11a8] sm:$0xf0]  ;;  %v7913_v63 = vld [vmem:[%s12215_s6 + $0x1034] sm:$0xf]  ;;  %v7389_v44 = vld [vmem:[%s12215_s6 + $0x1298] sm:$0x10] }
 0x2eb   :  { %v7272_v29 = vor.u32 %v7959_v33, %v7269_v57  ;;  %v7229_v33 = vld [vmem:[%s12215_s6 + $0x1158] sm:$0xf0]  ;;  %v7096_v57 = vor.u32 %v7915_v32, %v7093_v22  ;;  %v7989_v17 = vld [vmem:[%s12215_s6 + $0x1294] sm:$0xf]  ;;  %v7365_v21 = vld [vmem:[%s12215_s6 + $0x1268] sm:$0xf0] }
 0x2ec   :  { %4797 = vmatpush.bf16.msra.mxu0 %v7176_v50  ;;  %4824 = vmatpush.bf16.msra.mxu3 %v7296_v43  ;;  %v7120_v50 = vor.u32 %v7921_v4, %v7117_v56  ;;  %v7875_v43 = vld [vmem:[%s12215_s6 + $0xf04] sm:$0xf]  ;;  %v4547_v37 = vpop.f32.mrf.mxu0  ;;  %v7077_v56 = vld [vmem:[%s12215_s6 + $0x1028] sm:$0xf0]  ;;  %v7357_v32 = vld [vmem:[%s12215_s6 + $0x1258] sm:$0xf0] }
 0x2ed   :  { %v6936_v15 = vor.u32 %v7875_v43, %v6933_v46  ;;  %v7911_v4 = vld [vmem:[%s12215_s6 + $0x1024] sm:$0xf]  ;;  %v4886_v22 = vld [vmem:[%s12218_s9 + $0x78] sm:$0xff] }
 0x2ee   :  { %4759 = vmatpush.bf16.msra.mxu1 %v6976_v59  ;;  %4735 = vmatpush.bf16.msrb.mxu2 %v6832_v14  ;;  %v11845_v59 = vadd.f32 %v11651_v61, %v4507_v8  ;;  %v4508_v2 = vpop.f32.mrf.mxu1  ;;  %v4482_v61 = vpop.f32.mrf.mxu2  ;;  %v7261_v14 = vld [vmem:[%s12215_s6 + $0x1198] sm:$0xf0]  ;;  %v7088_v8 = vor.u32 %v7913_v63, %v7085_v30  ;;  %v7943_v46 = vld [vmem:[%s12215_s6 + $0x1124] sm:$0xf]  ;;  %v7977_v30 = vld [vmem:[%s12215_s6 + $0x1234] sm:$0xf] }
 0x2ef   :  { %v7264_v6 = vor.u32 %v7957_v25, %v7261_v14  ;;  %v7909_v25 = vld [vmem:[%s12215_s6 + $0x1014] sm:$0xf]  ;;  %v7205_v61 = vld [vmem:[%s12215_s6 + $0x1128] sm:$0xf0] }
 0x2f0   :  { %4798 = vmatpush.bf16.msra.mxu0 %v7168_v18  ;;  %4825 = vmatpush.bf16.msra.mxu3 %v7288_v45  ;;  %v7133_v18 = vld [vmem:[%s12215_s6 + $0x1098] sm:$0xf0]  ;;  %v7955_v45 = vld [vmem:[%s12215_s6 + $0x1184] sm:$0xf] }
 0x2f1   :  { %v7136_v10 = vor.u32 %v7925_v31, %v7133_v18  ;;  %v7256_v51 = vor.u32 %v7955_v45, %v7253_v34  ;;  %v7985_v31 = vld [vmem:[%s12215_s6 + $0x1274] sm:$0xf]  ;;  %v7373_v18 = vld [vmem:[%s12215_s6 + $0x1278] sm:$0xf0]  ;;  %v7987_v45 = vld [vmem:[%s12215_s6 + $0x1284] sm:$0xf] }
 0x2f2   :  { %4760 = vmatpush.bf16.msra.mxu1 %v6968_v52  ;;  %4736 = vmatpush.bf16.msrb.mxu2 %v6824_v35  ;;  %v7953_v52 = vld [vmem:[%s12215_s6 + $0x1174] sm:$0xf]  ;;  %v7112_v35 = vor.u32 %v7919_v39, %v7109_v62  ;;  %v7381_v34 = vld [vmem:[%s12215_s6 + $0x1288] sm:$0xf0] }
 0x2f3   :  { %v7248_v47 = vor.u32 %v7953_v52, %v7245_v48  ;;  %v7208_v52 = vor.u32 %v7943_v46, %v7205_v61  ;;  %v7941_v48 = vld [vmem:[%s12215_s6 + $0x1114] sm:$0xf]  ;;  %v7317_v46 = vld [vmem:[%s12215_s6 + $0x1208] sm:$0xf0] }
 0x2f4   :  { %4799 = vmatpush.bf16.msra.mxu0 %v7160_v12  ;;  %4826 = vmatpush.bf16.msra.mxu3 %v7280_v24  ;;  %v7104_v12 = vor.u32 %v7917_v26, %v7101_v28  ;;  %v4573_v24 = vpop.f32.mrf.mxu3  ;;  %v7376_v28 = vor.u32 %v7985_v31, %v7373_v18  ;;  %v4874_v31 = vld [vmem:[%s12218_s9 + $0x18] sm:$0xff]  ;;  %v4873_v18 = vld [vmem:[%s12218_s9 + $0x10] sm:$0xff] }
 0x2f6   :  { %4761 = vmatpush.bf16.msra.mxu1 %v6960_v36  ;;  %4737 = vmatpush.bf16.msrb.mxu2 %v6816_v19  ;;  %v7951_v36 = vld [vmem:[%s12215_s6 + $0x1164] sm:$0xf]  ;;  %v7949_v19 = vld [vmem:[%s12215_s6 + $0x1154] sm:$0xf] }
 0x2f8   :  { %4800 = vmatpush.bf16.msra.mxu0 %v7152_v27  ;;  %4827 = vmatpush.bf16.msra.mxu3 %v7272_v29  ;;  %v7945_v27 = vld [vmem:[%s12215_s6 + $0x1134] sm:$0xf] }
 0x2fa   :  { %4762 = vmatpush.bf16.msra.mxu1 %v6952_v11  ;;  %4738 = vmatpush.bf16.msrb.mxu2 %v6808_v40  ;;  %v7232_v11 = vor.u32 %v7949_v19, %v7229_v33 }
 0x2fc   :  { %4801 = vmatpush.bf16.msra.mxu0 %v7144_v41  ;;  %4828 = vmatpush.bf16.msra.mxu3 %v7264_v6  ;;  %v7061_v41 = vld [vmem:[%s12215_s6 + $0x1008] sm:$0xf0] }
 0x2fd   :  { %4739 = vmatmul.bf16.vlgmr.msrb.gmra.mxu2 %v9656_v38  ;;  %v7240_v38 = vor.u32 %v7951_v36, %v7237_v0  ;;  %v7939_v36 = vld [vmem:[%s12215_s6 + $0x1104] sm:$0xf] }
 0x2fe   :  { %4763 = vmatpush.bf16.msra.mxu1 %v6944_v54  ;;  %4783 = vmatpush.bf16.msra.mxu2 %v7120_v50  ;;  %v7069_v54 = vld [vmem:[%s12215_s6 + $0x1018] sm:$0xf0]  ;;  %v7392_v50 = vor.u32 %v7989_v17, %v7389_v44  ;;  %v7973_v17 = vld [vmem:[%s12215_s6 + $0x1214] sm:$0xf] }
 0x2ff   :  { %v7072_v62 = vor.u32 %v7909_v25, %v7069_v54  ;;  %v7325_v44 = vld [vmem:[%s12215_s6 + $0x1218] sm:$0xf0]  ;;  %v4877_v54 = vld [vmem:[%s12218_s9 + $0x30] sm:$0xff] }
 0x300   :  { %4802 = vmatpush.bf16.msra.mxu0 %v7136_v10  ;;  %4829 = vmatpush.bf16.msra.mxu3 %v7256_v51  ;;  %v4532_v40 = vpop.f32.mrf.mxu2  ;;  %v3871_v14 = vand.u32 %v7392_v50, %v10185_v53  ;;  %v7189_v51 = vld [vmem:[%s12215_s6 + $0x1108] sm:$0xf0]  ;;  %v7328_v50 = vor.u32 %v7973_v17, %v7325_v44 }
 0x301   :  { %v4533_v43 = vadd.f32 %v4532_v40, %v11845_v59  ;;  %v7907_v59 = vld [vmem:[%s12215_s6 + $0x1004] sm:$0xf]  ;;  %v7192_v55 = vor.u32 %v7939_v36, %v7189_v51 }
 0x302   :  { %4764 = vmatpush.bf16.msra.mxu1 %v6936_v15  ;;  %4784 = vmatpush.bf16.msra.mxu2 %v7112_v35  ;;  %v4558_v29 = vpop.f32.mrf.mxu1  ;;  %v7064_v35 = vor.u32 %v7907_v59, %v7061_v41  ;;  %v4875_v59 = vld [vmem:[%s12218_s9 + $0x20] sm:$0xff] }
 0x303   :  { %4830 = vmatmul.bf16.vlgmr.msra.gmra.mxu3 %v10088_v9  ;;  %v7213_v9 = vld [vmem:[%s12215_s6 + $0x1138] sm:$0xf0]  ;;  %v4546_v39 = vadd.f32 %v11827_v23, %v4533_v43  ;;  %v7971_v43 = vld [vmem:[%s12215_s6 + $0x1204] sm:$0xf] }
 0x304   :  { %4803 = vmatpush.bf16.msra.mxu0 %v7128_v3  ;;  %v7216_v2 = vor.u32 %v7945_v27, %v7213_v9  ;;  %v11973_v6 = vpop.f32.mrf.mxu0  ;;  %v7197_v23 = vld [vmem:[%s12215_s6 + $0x1118] sm:$0xf0]  ;;  %v4885_v3 = vld [vmem:[%s12218_s9 + $0x70] sm:$0xff]  ;;  %v4879_v27 = vld [vmem:[%s12218_s9 + $0x40] sm:$0xff]  ;;  %v7320_v41 = vor.u32 %v7971_v43, %v7317_v46 }
 0x305   :  { %4765 = vmatmul.bf16.vlgmr.msra.gmra.mxu1 %v10000_v7  ;;  %v7221_v7 = vld [vmem:[%s12215_s6 + $0x1148] sm:$0xf0]  ;;  %v4559_v53 = vadd.f32 %v4558_v29, %v4546_v39  ;;  %v7200_v26 = vor.u32 %v7941_v48, %v7197_v23  ;;  %v4894_v46 = vld [vmem:[%s12218_s9 + $0xb8] sm:$0xff] }
 0x306   :  { %4809 = vmatpush.bf16.msrb.mxu1 %v7248_v47  ;;  %4785 = vmatpush.bf16.msra.mxu2 %v7104_v12  ;;  %v7224_v49 = vor.u32 %v7947_v20, %v7221_v7  ;;  %v7384_v47 = vor.u32 %v7987_v45, %v7381_v34  ;;  %v11994_v0 = vpop.f32.mrf.mxu3  ;;  %v7341_v20 = vld [vmem:[%s12215_s6 + $0x1238] sm:$0xf0]  ;;  %v4876_v39 = vld [vmem:[%s12218_s9 + $0x28] sm:$0xff] }
 0x307   :  { %4804 = vmatmul.bf16.vlgmr.msra.gmra.mxu0 %v10222_v42  ;;  %v7080_v42 = vor.u32 %v7911_v4, %v7077_v56  ;;  %v4572_v15 = vadd.f32 %v11856_v58, %v4559_v53  ;;  %v7983_v58 = vld [vmem:[%s12215_s6 + $0x1264] sm:$0xf]  ;;  %v4882_v7 = vld [vmem:[%s12218_s9 + $0x58] sm:$0xff]  ;;  %v7333_v4 = vld [vmem:[%s12215_s6 + $0x1228] sm:$0xf0] }
 0x308   :  { %4854 = vmatpush.bf16.msrb.mxu0 %v3871_v14  ;;  %v4534_v10 = vpop.f32.mrf.mxu2  ;;  %v7368_v12 = vor.u32 %v7983_v58, %v7365_v21  ;;  %v4880_v56 = vld [vmem:[%s12218_s9 + $0x48] sm:$0xff] }
 0x30a   :  { %4810 = vmatpush.bf16.msrb.mxu1 %v7240_v38  ;;  %4786 = vmatpush.bf16.msra.mxu2 %v7096_v57  ;;  %v4560_v37 = vpop.f32.mrf.mxu1  ;;  %v7981_v38 = vld [vmem:[%s12215_s6 + $0x1254] sm:$0xf]  ;;  %v7979_v57 = vld [vmem:[%s12215_s6 + $0x1244] sm:$0xf] }
 0x30b   :  { %v7360_v19 = vor.u32 %v7981_v38, %v7357_v32 }
 0x30c   :  { %4855 = vmatpush.bf16.msrb.mxu0 %v7384_v47  ;;  %v4599_v24 = vpop.f32.mrf.mxu0 }
 0x30e   :  { %4811 = vmatpush.bf16.msrb.mxu1 %v7232_v11  ;;  %4787 = vmatpush.bf16.msra.mxu2 %v7088_v8  ;;  %v4625_v33 = vpop.f32.mrf.mxu3  ;;  %v4883_v11 = vld [vmem:[%s12218_s9 + $0x60] sm:$0xff]  ;;  %v7344_v8 = vor.u32 %v7977_v30, %v7341_v20 }
 0x312   :  { %4812 = vmatpush.bf16.msrb.mxu1 %v7224_v49  ;;  %4788 = vmatpush.bf16.msra.mxu2 %v7080_v42  ;;  %v7975_v49 = vld [vmem:[%s12215_s6 + $0x1224] sm:$0xf] }
 0x313   :  { %v7336_v9 = vor.u32 %v7975_v49, %v7333_v4  ;;  %v4901_v4 = vld [vmem:[%s12218_s9 + $0xf0] sm:$0xff] }
 0x316   :  { %4813 = vmatpush.bf16.msrb.mxu1 %v7216_v2  ;;  %4789 = vmatpush.bf16.msra.mxu2 %v7072_v62  ;;  %v4878_v2 = vld [vmem:[%s12218_s9 + $0x38] sm:$0xff]  ;;  %v12082_v62 = vld [vmem:[%s12217_s8] sm:$0x3] }
 0x317   :  { %7394 = vmatmul.msk.bf16.vlgmr.msrb.gmra.mxu0 %vm3859_vm4, %v10336_v13  ;;  %v4884_v13 = vld [vmem:[%s12218_s9 + $0x68] sm:$0xff]  ;;  %v4863_v23 = vperm.slane %v12082_v62, 0 }
 0x319   :  { %v4867_v34 = vadd.f32 %v4863_v23, %v11262_v60  ;;  %v4888_v23 = vld [vmem:[%s12218_s9 + $0x88] sm:$0xff] }
 0x31a   :  { %4814 = vmatpush.bf16.msrb.mxu1 %v7208_v52  ;;  %4790 = vmatpush.bf16.msra.mxu2 %v7064_v35  ;;  %v4871_v35 = vld [vmem:[%s12218_s9] sm:$0xff] }
 0x31b   :  { %v4869_v47 = vmax.f32 %v4867_v34, 0.0 }
 0x31d   :  { %4791 = vmatmul.bf16.vlgmr.msra.gmra.mxu2 %v9872_v1  ;;  %v7349_v1 = vld [vmem:[%s12215_s6 + $0x1248] sm:$0xf0] }
 0x31e   :  { %4815 = vmatpush.bf16.msrb.mxu1 %v7200_v26  ;;  %4835 = vmatpush.bf16.msrb.mxu2 %v7376_v28  ;;  %v7352_v63 = vor.u32 %v7979_v57, %v7349_v1 }
 0x320   :  { %v4584_v29 = vpop.f32.mrf.mxu2 }
 0x321   :  { %v4585_v40 = vadd.f32 %v4584_v29, %v4572_v15  ;;  %v4872_v15 = vld [vmem:[%s12218_s9 + $0x8] sm:$0xff]  ;;  %v4899_v29 = vld [vmem:[%s12218_s9 + $0xe0] sm:$0xff] }
 0x322   :  { %4816 = vmatpush.bf16.msrb.mxu1 %v7192_v55  ;;  %4836 = vmatpush.bf16.msrb.mxu2 %v7368_v12  ;;  %v4610_v42 = vpop.f32.mrf.mxu1 }
 0x323   :  { %v4598_v25 = vadd.f32 %v11973_v6, %v4585_v40  ;;  %v4898_v40 = vld [vmem:[%s12218_s9 + $0xd8] sm:$0xff] }
 0x324   :  { %v4649_v61 = vpop.f32.mrf.mxu0 }
 0x325   :  { %4817 = vmatmul.bf16.vlgmr.msrb.gmra.mxu1 %v10224_v5  ;;  %v4881_v5 = vld [vmem:[%s12218_s9 + $0x50] sm:$0xff]  ;;  %v4611_v14 = vadd.f32 %v4610_v42, %v4598_v25 }
 0x326   :  { %4907 = vmatpush.msra.mxu1 %v4886_v22  ;;  %4837 = vmatpush.bf16.msrb.mxu2 %v7360_v19  ;;  %v4675_v53 = vpop.f32.mrf.mxu3 }
 0x327   :  { %v4624_v52 = vadd.f32 %v11994_v0, %v4611_v14  ;;  %v4892_v14 = vld [vmem:[%s12218_s9 + $0xa8] sm:$0xff] }
 0x328   :  { %4908 = vmatpush.msra.mxu1 %v4885_v3  ;;  %v4586_v6 = vpop.f32.mrf.mxu2 }
 0x329   :  { %v4889_v6 = vld [vmem:[%s12218_s9 + $0x90] sm:$0xff] }
 0x32a   :  { %4909 = vmatpush.msra.mxu1 %v4884_v13  ;;  %4838 = vmatpush.bf16.msrb.mxu2 %v7352_v63  ;;  %v4612_v48 = vpop.f32.mrf.mxu1 }
 0x32c   :  { %4910 = vmatpush.msra.mxu1 %v4883_v11  ;;  %v4651_v45 = vpop.f32.mrf.mxu0 }
 0x32d   :  { %v4962_v45 = vld [vmem:[%s12220_s11 + $0x70] sm:$0xff] }
 0x32e   :  { %4911 = vmatpush.msra.mxu1 %v4882_v7  ;;  %4839 = vmatpush.bf16.msrb.mxu2 %v7344_v8  ;;  %v4677_v37 = vpop.f32.mrf.mxu3  ;;  %v4902_v8 = vld [vmem:[%s12218_s9 + $0xf8] sm:$0xff] }
 0x32f   :  { %4927 = vmatpush.msra.mxu0 %v4902_v8  ;;  %v4960_v37 = vld [vmem:[%s12220_s11 + $0x60] sm:$0xff] }
 0x330   :  { %4912 = vmatpush.msra.mxu1 %v4881_v5 }
 0x331   :  { %4928 = vmatpush.msra.mxu0 %v4901_v4 }
 0x332   :  { %4913 = vmatpush.msra.mxu1 %v4880_v56  ;;  %4840 = vmatpush.bf16.msrb.mxu2 %v7336_v9 }
 0x334   :  { %4914 = vmatpush.msra.mxu1 %v4879_v27  ;;  %v4900_v27 = vld [vmem:[%s12218_s9 + $0xe8] sm:$0xff] }
 0x335   :  { %4929 = vmatpush.msra.mxu0 %v4900_v27 }
 0x336   :  { %4915 = vmatpush.msra.mxu1 %v4878_v2  ;;  %4841 = vmatpush.bf16.msrb.mxu2 %v7328_v50  ;;  %v4897_v2 = vld [vmem:[%s12218_s9 + $0xd0] sm:$0xff]  ;;  %v4895_v50 = vld [vmem:[%s12218_s9 + $0xc0] sm:$0xff] }
 0x337   :  { %4930 = vmatpush.msra.mxu0 %v4899_v29 }
 0x338   :  { %4916 = vmatpush.msra.mxu1 %v4877_v54  ;;  %v4896_v54 = vld [vmem:[%s12218_s9 + $0xc8] sm:$0xff] }
 0x339   :  { %4931 = vmatpush.msra.mxu0 %v4898_v40 }
 0x33a   :  { %4917 = vmatpush.msra.mxu1 %v4876_v39  ;;  %4842 = vmatpush.bf16.msrb.mxu2 %v7320_v41 }
 0x33b   :  { %4932 = vmatpush.msra.mxu0 %v4897_v2 }
 0x33c   :  { %4918 = vmatpush.msra.mxu1 %v4875_v59  ;;  %v4890_v59 = vld [vmem:[%s12218_s9 + $0x98] sm:$0xff] }
 0x33d   :  { %4843 = vmatmul.bf16.vlgmr.msrb.gmra.mxu2 %v10093_v16  ;;  %4933 = vmatpush.msra.mxu0 %v4896_v54 }
 0x33e   :  { %4919 = vmatpush.msra.mxu1 %v4874_v31  ;;  %v4887_v31 = vld [vmem:[%s12218_s9 + $0x80] sm:$0xff] }
 0x33f   :  { %4934 = vmatpush.msra.mxu0 %v4895_v50 }
 0x340   :  { %4920 = vmatpush.msra.mxu1 %v4873_v18  ;;  %v4636_v28 = vpop.f32.mrf.mxu2  ;;  %v4963_v18 = vld [vmem:[%s12220_s11 + $0x78] sm:$0xff] }
 0x341   :  { %v4637_v36 = vadd.f32 %v4636_v28, %v4624_v52  ;;  %4935 = vmatpush.msra.mxu0 %v4894_v46  ;;  %v4891_v52 = vld [vmem:[%s12218_s9 + $0xa0] sm:$0xff]  ;;  %4968 = vmatpush.msrb.mxu3 %v4963_v18 }
 0x342   :  { %4921 = vmatpush.msra.mxu1 %v4872_v15  ;;  %v4662_v26 = vpop.f32.mrf.mxu1 }
 0x343   :  { %v4650_v60 = vadd.f32 %v4649_v61, %v4637_v36  ;;  %v4893_v61 = vld [vmem:[%s12218_s9 + $0xb0] sm:$0xff]  ;;  %4969 = vmatpush.msrb.mxu3 %v4962_v45  ;;  %v4957_v36 = vld [vmem:[%s12220_s11 + $0x48] sm:$0xff] }
 0x344   :  { %4922 = vmatpush.msra.mxu1 %v4871_v35  ;;  %v4701_v10 = vpop.f32.mrf.mxu0  ;;  %4936 = vmatpush.msra.mxu0 %v4893_v61  ;;  %v4961_v35 = vld [vmem:[%s12220_s11 + $0x68] sm:$0xff] }
 0x345   :  { %4923 = vmatmul.f32.vlgmr.msra.gmra.mxu1 %v4869_v47  ;;  %v4663_v0 = vadd.f32 %v4662_v26, %v4650_v60  ;;  %4970 = vmatpush.msrb.mxu3 %v4961_v35  ;;  %v4959_v47 = vld [vmem:[%s12220_s11 + $0x58] sm:$0xff]  ;;  %v4958_v26 = vld [vmem:[%s12220_s11 + $0x50] sm:$0xff]  ;;  %v4956_v60 = vld [vmem:[%s12220_s11 + $0x40] sm:$0xff] }
 0x346   :  { %v4727_v16 = vpop.f32.mrf.mxu3  ;;  %4937 = vmatpush.msra.mxu0 %v4892_v14 }
 0x347   :  { %v4676_v51 = vadd.f32 %v4675_v53, %v4663_v0  ;;  %4971 = vmatpush.msrb.mxu3 %v4960_v37  ;;  %v4955_v0 = vld [vmem:[%s12220_s11 + $0x38] sm:$0xff] }
 0x348   :  { %v4638_v21 = vpop.f32.mrf.mxu2  ;;  %4938 = vmatpush.msra.mxu0 %v4891_v52 }
 0x349   :  { %4972 = vmatpush.msrb.mxu3 %v4959_v47  ;;  %v4953_v21 = vld [vmem:[%s12220_s11 + $0x28] sm:$0xff] }
 0x34a   :  { %v4664_v58 = vpop.f32.mrf.mxu1  ;;  %4939 = vmatpush.msra.mxu0 %v4890_v59 }
 0x34b   :  { %4973 = vmatpush.msrb.mxu3 %v4958_v26 }
 0x34c   :  { %v4703_v55 = vpop.f32.mrf.mxu0  ;;  %4940 = vmatpush.msra.mxu0 %v4889_v6 }
 0x34d   :  { %4974 = vmatpush.msrb.mxu3 %v4957_v36 }
 0x34e   :  { %v4729_v12 = vpop.f32.mrf.mxu3  ;;  %4941 = vmatpush.msra.mxu0 %v4888_v23 }
 0x34f   :  { %4975 = vmatpush.msrb.mxu3 %v4956_v60  ;;  %v4951_v12 = vld [vmem:[%s12220_s11 + $0x18] sm:$0xff] }
 0x350   :  { %4942 = vmatpush.msra.mxu0 %v4887_v31 }
 0x351   :  { %4976 = vmatpush.msrb.mxu3 %v4955_v0 }
 0x360   :  { %v4688_v38 = vpop.f32.mrf.mxu2 }
 0x361   :  { %v4689_v32 = vadd.f32 %v4688_v38, %v4676_v51  ;;  %v4954_v51 = vld [vmem:[%s12220_s11 + $0x30] sm:$0xff] }
 0x362   :  { %v4714_v24 = vpop.f32.mrf.mxu1  ;;  %4977 = vmatpush.msrb.mxu3 %v4954_v51 }
 0x363   :  { %v4702_v22 = vadd.f32 %v4701_v10, %v4689_v32  ;;  %v4864_v32 = vperm.slane %v12082_v62, 1  ;;  %v4948_v62 = vld [vmem:[%s12220_s11] sm:$0xff] }
 0x364   :  { %v4753_v3 = vpop.f32.mrf.mxu0  ;;  %4978 = vmatpush.msrb.mxu3 %v4953_v21 }
 0x365   :  { %v4715_v19 = vadd.f32 %v4714_v24, %v4702_v22 }
 0x366   :  { %v4779_v13 = vpop.f32.mrf.mxu3 }
 0x367   :  { %v4728_v33 = vadd.f32 %v4727_v16, %v4715_v19  ;;  %v4952_v16 = vld [vmem:[%s12220_s11 + $0x20] sm:$0xff] }
 0x368   :  { %v4690_v1 = vpop.f32.mrf.mxu2  ;;  %4979 = vmatpush.msrb.mxu3 %v4952_v16 }
 0x369   :  { %v4949_v1 = vld [vmem:[%s12220_s11 + $0x8] sm:$0xff] }
 0x36a   :  { %v4716_v57 = vpop.f32.mrf.mxu1  ;;  %4980 = vmatpush.msrb.mxu3 %v4951_v12 }
 0x36b   :  { %v4950_v57 = vld [vmem:[%s12220_s11 + $0x10] sm:$0xff]  ;;  %s4997_s11 = sshll.u32 %s12222_s13, 4  ;;  %s4998_s11 = int_to_ptr.hbm [resolvable:$true] %s4997_s11 }
 0x36c   :  { %v4755_v11 = vpop.f32.mrf.mxu0  ;;  %4981 = vmatpush.msrb.mxu3 %v4950_v57 }
 0x36e   :  { %v4781_v63 = vpop.f32.mrf.mxu3  ;;  %4982 = vmatpush.msrb.mxu3 %v4949_v1 }
 0x370   :  { %4983 = vmatpush.msrb.mxu3 %v4948_v62 }
 0x380   :  { %v4740_v20 = vpop.f32.mrf.mxu2 }
 0x381   :  { %v4741_v7 = vadd.f32 %v4740_v20, %v4728_v33 }
 0x382   :  { %v4766_v30 = vpop.f32.mrf.mxu1 }
 0x383   :  { %v4754_v5 = vadd.f32 %v4753_v3, %v4741_v7 }
 0x384   :  { %v4805_v49 = vpop.f32.mrf.mxu0 }
 0x385   :  { %v4767_v56 = vadd.f32 %v4766_v30, %v4754_v5  ;;  %v7999_v5 = vld [vmem:[%s12221_s12] ss:$0 sm:$0xff] }
 0x386   :  { %v4831_v44 = vpop.f32.mrf.mxu3 }
 0x387   :  { %v4780_v9 = vadd.f32 %v4779_v13, %v4767_v56  ;;  %v7998_v13 = vld [vmem:[%s12219_s10] ss:$0 sm:$0xff] }
 0x388   :  { %v4742_v17 = vpop.f32.mrf.mxu2 }
 0x38a   :  { %v4768_v42 = vpop.f32.mrf.mxu1 }
 0x38c   :  { %v4807_v25 = vpop.f32.mrf.mxu0 }
 0x38e   :  { %v4833_v43 = vpop.f32.mrf.mxu3 }
 0x394   :  { %v4857_v39 = vpop.f32.mrf.mxu0 }
 0x39c   :  { %v4859_v53 = vpop.f32.mrf.mxu0 }
 0x3a0   :  { %v4792_v41 = vpop.f32.mrf.mxu2 }
 0x3a1   :  { %v4793_v28 = vadd.f32 %v4792_v41, %v4780_v9 }
 0x3a2   :  { %v4818_v48 = vpop.f32.mrf.mxu1 }
 0x3a3   :  { %v4806_v10 = vadd.f32 %v4805_v49, %v4793_v28 }
 0x3a5   :  { %v4819_v58 = vadd.f32 %v4818_v48, %v4806_v10 }
 0x3a7   :  { %v4832_v55 = vadd.f32 %v4831_v44, %v4819_v58 }
 0x3a8   :  { %v4794_v34 = vpop.f32.mrf.mxu2 }
 0x3aa   :  { %v4820_v15 = vpop.f32.mrf.mxu1 }
 0x3c0   :  { %v4844_v24 = vpop.f32.mrf.mxu2 }
 0x3c1   :  { %v4845_v38 = vadd.f32 %v4844_v24, %v4832_v55 }
 0x3c2   :  { %v4924_v11 = vpop.f32.mrf.mxu1 }
 0x3c3   :  { %v4858_v22 = vadd.f32 %v4857_v39, %v4845_v38  ;;  %v4925_v63 = vadd.f32 %v7998_v13, %v4924_v11 }
 0x3c5   :  { %v4868_v3 = vadd.f32 %v4864_v32, %v4858_v22 }
 0x3c7   :  { %v4870_v19 = vmax.f32 %v4868_v3, 0.0 }
 0x3c8   :  { %v4846_v33 = vpop.f32.mrf.mxu2 }
 0x3c9   :  { %4943 = vmatmul.f32.vlgmr.msra.gmra.mxu0 %v4870_v19 }
 0x446   :  { %v4944_v30 = vpop.f32.mrf.mxu0 }
 0x447   :  { %v4945_v20 = vadd.f32 %v4944_v30, %v4925_v63 }
 0x449   :  { %v4947_v7 = vmax.f32 %v4945_v20, 0.0 }
 0x44b   :  { %4984 = vmatmul.f32.vlgmr.msrb.gmra.mxu3 %v4947_v7 }
 0x4ce   :  { %v4985_v8 = vpop.f32.mrf.mxu3 }
 0x4cf   :  { %v4986_v49 = vadd.f32 %v7999_v5, %v4985_v8 }
 0x4d1   :  { %4989 = vst.msk [vmem:[#allocation2] sm:$0x3] %vm4988_vm5, %v4986_v49 }
 0x4d2   :  { %5000 = dma.vmem_to_hbm [thread:$0]  %s4996_s22, 32, %s4998_s11, [#allocation3]  }
 0x4d3   :  { %8024 = dma.done.wait [#allocation3], 32  }
 0x4d4   :  { %8025 = vsyncadd [#allocation3], 4294967264 }
 0x4d5   :  { %5005 = vsyncpa [#allocation3], 1 }

</bundles_post_ra>
